<compile_context>
chip_gen: v7x
topology: tpu7x:2x2x1
jax: 0.10.0
libtpu: 0.0.40
codegen_flags: <defaults>
</compile_context>

<pallas_src>
import functools

import jax
import jax.numpy as jnp
import numpy as np
from jax.experimental import pallas as pl
from jax.experimental.pallas import tpu as pltpu

_EPS = 1e-5


def _unet_up_kernel(x_ref, w_ref, o_ref, acc_ref, *, h, w, c_in, c_tile, fold):
    """One (sample, channel-tile): phase-decomposed ConvTranspose2d + IN + ReLU.

    x_ref:   (1, h+2, w+2, c_in)        bf16  NHWC input, spatially padded by 1
    w_ref:   fold:  (4, 4*c_in, c_tile) bf16  per-phase tap-folded weights
             else:  (4, 4, c_in, c_tile)bf16  per-phase, per-tap weights
    o_ref:   (1, 4, h*w, c_tile)        bf16  phase-separated normalized output
    acc_ref: (4, h*w, c_tile)           f32   VMEM scratch for raw conv results
    """
    ssum = jnp.zeros((1, c_tile), jnp.float32)
    ssq = jnp.zeros((1, c_tile), jnp.float32)

    # Pass 1: conv per phase; stash raw f32 results in VMEM scratch; accumulate
    # per-channel stats in f32 while the result is live in registers.
    for rh in range(2):
        for rw in range(2):
            ph = rh * 2 + rw
            if fold:
                # Small C_in: fold the 4 taps into the contraction dim so the
                # MXU K dim is 4*c_in instead of c_in.
                taps = [x_ref[0, rh + dh:rh + dh + h, rw + dw:rw + dw + w, :]
                        for dh in range(2) for dw in range(2)]
                patch = jnp.concatenate(taps, axis=-1).reshape(h * w, 4 * c_in)
                y = jnp.dot(patch, w_ref[ph],
                            preferred_element_type=jnp.float32)   # (h*w, c_tile)
            else:
                # Large C_in: 4 accumulating dots, no patch materialization.
                y = jnp.zeros((h * w, c_tile), jnp.float32)
                for t, (dh, dw) in enumerate(((0, 0), (0, 1), (1, 0), (1, 1))):
                    xt = x_ref[0, rh + dh:rh + dh + h,
                               rw + dw:rw + dw + w, :].reshape(h * w, c_in)
                    y = y + jnp.dot(xt, w_ref[ph, t],
                                    preferred_element_type=jnp.float32)
            ssum = ssum + jnp.sum(y, axis=0, keepdims=True)
            ssq = ssq + jnp.sum(y * y, axis=0, keepdims=True)
            acc_ref[ph] = y

    # InstanceNorm2d(affine=False, eps=1e-5): per-channel stats over the full
    # 2H*2W extent (= all 4 phases together).  Clamp var >= 0 (single-pass
    # E[x^2]-E[x]^2 can round slightly negative).
    inv_n = 1.0 / (4.0 * h * w)
    mean = ssum * inv_n                                   # (1, c_tile)
    var = jnp.maximum(ssq * inv_n - mean * mean, 0.0)
    inv = jax.lax.rsqrt(var + _EPS)

    # Pass 2: normalize + ReLU from scratch into the bf16 output block.
    for ph in range(4):
        y = acc_ref[ph]                                    # (h*w, c_tile) f32
        o_ref[0, ph] = jnp.maximum((y - mean) * inv, 0.0).astype(o_ref.dtype)


def unet_up_forward(x, skip_input, weight):
    """Forward matching UNetUp(in_size, out_size, dropout=0.0).forward(x, skip_input).

    x:          (N, C_in, H, W)        NCHW float32
    skip_input: (N, C_skip, 2H, 2W)    NCHW float32, or None
    weight:     (C_in, C_out, 4, 4)    PyTorch ConvTranspose2d weight (bias=False)
    returns:    (N, C_out + C_skip, 2H, 2W) NCHW float32
    """
    N, C_in, H, W = x.shape
    C_out = weight.shape[1]

    # Light XLA glue on the (4x smaller) input: NCHW -> NHWC, pad by 1, bf16.
    x_nhwc = jnp.transpose(x, (0, 2, 3, 1)).astype(jnp.bfloat16)
    x_pad = jnp.pad(x_nhwc, ((0, 0), (1, 1), (1, 1), (0, 0)))

    # Weight prep (host side / tiny).  Phase (rh, rw), tap (dh, dw) uses
    # kernel element weight[:, :, 3-rh-2*dh, 3-rw-2*dw].
    fold = C_in < 128
    wbf = weight.astype(jnp.bfloat16)
    phase_blocks = []
    for rh in range(2):
        for rw in range(2):
            taps = [wbf[:, :, 3 - rh - 2 * dh, 3 - rw - 2 * dw]   # (C_in, C_out)
                    for dh in range(2) for dw in range(2)]
            if fold:
                phase_blocks.append(jnp.concatenate(taps, axis=0))  # (4*C_in, C_out)
            else:
                phase_blocks.append(jnp.stack(taps))                # (4, C_in, C_out)
    wp = jnp.stack(phase_blocks)   # fold: (4, 4*C_in, C_out) else (4, 4, C_in, C_out)

    # --- Per-generation tiling / VMEM sizing -------------------------------
    kind = jax.devices()[0].device_kind.lower()
    mxu_n = 128 if ("v5 lite" in kind or "v5e" in kind or "v5lite" in kind) else 256
    try:
        vmem_cap = int(pltpu.get_tpu_info().vmem_capacity_bytes)
    except Exception:
        vmem_cap = (64 if "v7" in kind else 128) * 1024 * 1024

    def _vmem_need(tc):
        x_b = 2 * (H + 2) * (W + 2) * C_in * 2        # bf16 input, double-buffered
        w_b = 2 * 4 * 4 * C_in * tc * 2               # bf16 weights, double-buffered
        o_b = 2 * 4 * H * W * tc * 2                  # bf16 output, double-buffered
        s_b = 4 * H * W * tc * 4                      # f32 scratch, single
        return x_b + w_b + o_b + s_b

    if C_out % 128 == 0:
        cands = [t for t in range(128, C_out + 1, 128) if C_out % t == 0]
        cands.sort(key=lambda t: (t % mxu_n != 0, -t))  # prefer MXU-width, then big
        budget = int(0.75 * vmem_cap)
        TC = next((t for t in cands if _vmem_need(t) <= budget), min(cands))
    else:
        TC = C_out
    n_ct = C_out // TC

    vmem_limit = int(min(max(_vmem_need(TC) + (8 << 20), 32 << 20),
                         int(0.9 * vmem_cap)))

    if fold:
        w_block = (4, 4 * C_in, TC)
        w_index = lambda n, c: (0, 0, c)
    else:
        w_block = (4, 4, C_in, TC)
        w_index = lambda n, c: (0, 0, 0, c)

    flops = 2 * N * 4 * H * W * (4 * C_in) * C_out
    bytes_accessed = (x_pad.size * 2 + wp.size * 2 * n_ct
                      + N * 4 * H * W * C_out * 2)

    conv_ph = pl.pallas_call(
        functools.partial(_unet_up_kernel, h=H, w=W, c_in=C_in,
                          c_tile=TC, fold=fold),
        out_shape=jax.ShapeDtypeStruct((N, 4, H * W, C_out), jnp.bfloat16),
        grid=(N, n_ct),
        in_specs=[
            pl.BlockSpec((1, H + 2, W + 2, C_in), lambda n, c: (n, 0, 0, 0)),
            pl.BlockSpec(w_block, w_index),
        ],
        out_specs=pl.BlockSpec((1, 4, H * W, TC), lambda n, c: (n, 0, 0, c)),
        scratch_shapes=[pltpu.VMEM((4, H * W, TC), jnp.float32)],
        compiler_params=pltpu.CompilerParams(
            dimension_semantics=("parallel", "parallel"),
            vmem_limit_bytes=vmem_limit),
        cost_estimate=pl.CostEstimate(
            flops=int(flops),
            transcendentals=int(N * C_out),
            bytes_accessed=int(bytes_accessed)),
    )(x_pad, wp)

    # One output pass: de-interleave phases AND convert to NCHW together.
    # (n, rh, rw, p, q, c) -> (n, c, p, rh, q, rw) -> (n, c, 2p+rh, 2q+rw)
    out = jnp.transpose(conv_ph.reshape(N, 2, 2, H, W, C_out),
                        (0, 5, 3, 1, 4, 2)).reshape(N, C_out, 2 * H, 2 * W)
    out = out.astype(jnp.float32)

    if skip_input is not None:
        out = jnp.concatenate([out, skip_input.astype(jnp.float32)], axis=1)
    return out


def _reference(x, skip_input, weight):
    """Pure-JAX reference (direct ConvTranspose2d scatter formula) + IN + ReLU + cat."""
    N, C_in, H, W = x.shape
    C_out = weight.shape[1]
    OH, OW = 2 * H, 2 * W
    y = jnp.einsum('nihw,iokl->noklhw', x, weight)
    out = jnp.zeros((N, C_out, OH + 2, OW + 2), jnp.float32)
    for kh in range(4):
        for kw in range(4):
            out = out.at[:, :, kh:kh + OH:2, kw:kw + OW:2].add(y[:, :, kh, kw])
    out = out[:, :, 1:OH + 1, 1:OW + 1]
    mean = out.mean(axis=(2, 3), keepdims=True)
    var = ((out - mean) ** 2).mean(axis=(2, 3), keepdims=True)
    out = jnp.maximum((out - mean) * jax.lax.rsqrt(var + _EPS), 0.0)
    if skip_input is not None:
        out = jnp.concatenate([out, skip_input], axis=1)
    return out


if __name__ == "__main__":
    # Small shapes consistent with the module: in_size=4, out_size=8, batch=2,
    # spatial 16x16 -> upsampled 32x32; skip has out_size channels at 32x32.
    N, in_size, out_size, H, W = 2, 4, 8, 16, 16

    key = jax.random.PRNGKey(0)
    kx, ks, kw = jax.random.split(key, 3)
    x = jax.random.normal(kx, (N, in_size, H, W), dtype=jnp.float32)
    skip = jax.random.normal(ks, (N, out_size, 2 * H, 2 * W), dtype=jnp.float32)
    weight = 0.1 * jax.random.normal(kw, (in_size, out_size, 4, 4),
                                     dtype=jnp.float32)

    fwd = jax.jit(unet_up_forward)
    out = jax.block_until_ready(fwd(x, skip, weight))
    assert out.shape == (N, 2 * out_size, 2 * H, 2 * W), out.shape

    # Reference fed the same bf16 rounding of x / weight that the kernel's MXU
    # path sees (accumulation and InstanceNorm stats stay f32 in both; kernel
    # output is bf16, well inside the tolerance below).
    xq = x.astype(jnp.bfloat16).astype(jnp.float32)
    wq = weight.astype(jnp.bfloat16).astype(jnp.float32)
    ref = jax.block_until_ready(_reference(xq, skip, wq))
    np.testing.assert_allclose(np.asarray(out), np.asarray(ref),
                               rtol=2e-2, atol=2e-2)

    print("KERNEL_OK")
</pallas_src>

<mosaic_0001>
module attributes {stable_mosaic.version = 11 : i64} {
  func.func @_unet_up_kernel(%arg0: i32, %arg1: i32, %arg2: memref<1x18x18x4xbf16, #tpu.memory_space<vmem>>, %arg3: memref<4x16x8xbf16, #tpu.memory_space<vmem>>, %arg4: memref<1x4x256x8xbf16, #tpu.memory_space<vmem>>, %arg5: memref<4x256x8xf32, #tpu.memory_space<vmem>>) attributes {dimension_semantics = [#tpu.dimension_semantics<parallel>, #tpu.dimension_semantics<parallel>], iteration_bounds = array<i64: 2, 1>, scalar_prefetch = 0 : i64, scratch_operands = 1 : i64, tpu.core_type = #tpu.core_type<tc>, window_params = [{transform_indices = @transform_0, window_bounds = array<i64: 1, 18, 18, 4>}, {transform_indices = @transform_1, window_bounds = array<i64: 4, 16, 8>}, {transform_indices = @transform_2, window_bounds = array<i64: 1, 4, 256, 8>}]} {
    %cst = arith.constant 0.000000e+00 : f32
    %0 = vector.broadcast %cst : f32 to vector<1x8xf32>
    %cst_0 = arith.constant 0.000000e+00 : f32
    %1 = vector.broadcast %cst_0 : f32 to vector<1x8xf32>
    %c0 = arith.constant 0 : index
    %c0_1 = arith.constant 0 : index
    %c0_2 = arith.constant 0 : index
    %c0_3 = arith.constant 0 : index
    %2 = vector.load %arg2[%c0, %c0_1, %c0_2, %c0_3] : memref<1x18x18x4xbf16, #tpu.memory_space<vmem>>, vector<1x16x16x4xbf16>
    %3 = vector.shape_cast %2 : vector<1x16x16x4xbf16> to vector<16x16x4xbf16>
    %c0_4 = arith.constant 0 : index
    %c0_5 = arith.constant 0 : index
    %c1 = arith.constant 1 : index
    %c0_6 = arith.constant 0 : index
    %4 = vector.load %arg2[%c0_4, %c0_5, %c1, %c0_6] : memref<1x18x18x4xbf16, #tpu.memory_space<vmem>>, vector<1x16x16x4xbf16>
    %5 = vector.shape_cast %4 : vector<1x16x16x4xbf16> to vector<16x16x4xbf16>
    %c0_7 = arith.constant 0 : index
    %c1_8 = arith.constant 1 : index
    %c0_9 = arith.constant 0 : index
    %c0_10 = arith.constant 0 : index
    %6 = vector.load %arg2[%c0_7, %c1_8, %c0_9, %c0_10] : memref<1x18x18x4xbf16, #tpu.memory_space<vmem>>, vector<1x16x16x4xbf16>
    %7 = vector.shape_cast %6 : vector<1x16x16x4xbf16> to vector<16x16x4xbf16>
    %c0_11 = arith.constant 0 : index
    %c1_12 = arith.constant 1 : index
    %c1_13 = arith.constant 1 : index
    %c0_14 = arith.constant 0 : index
    %8 = vector.load %arg2[%c0_11, %c1_12, %c1_13, %c0_14] : memref<1x18x18x4xbf16, #tpu.memory_space<vmem>>, vector<1x16x16x4xbf16>
    %9 = vector.shape_cast %8 : vector<1x16x16x4xbf16> to vector<16x16x4xbf16>
    %10 = tpu.concatenate %3, %5, %7, %9 in 2 : vector<16x16x4xbf16>, vector<16x16x4xbf16>, vector<16x16x4xbf16>, vector<16x16x4xbf16> -> vector<16x16x16xbf16>
    %11 = vector.shape_cast %10 : vector<16x16x16xbf16> to vector<256x16xbf16>
    %c0_15 = arith.constant 0 : index
    %c0_16 = arith.constant 0 : index
    %c0_17 = arith.constant 0 : index
    %12 = vector.load %arg3[%c0_15, %c0_16, %c0_17] : memref<4x16x8xbf16, #tpu.memory_space<vmem>>, vector<1x16x8xbf16>
    %13 = vector.shape_cast %12 : vector<1x16x8xbf16> to vector<16x8xbf16>
    %cst_18 = arith.constant dense<0.000000e+00> : vector<256x8xf32>
    %14 = tpu.matmul %11, %13, %cst_18 {dimension_numbers = #tpu.dot_dimension_numbers<[1], [0], [0], [1], [0, 0, 1, 1], [], []>} : vector<256x16xbf16>, vector<16x8xbf16>, vector<256x8xf32> -> vector<256x8xf32>
    %cst_19 = arith.constant dense<0.000000e+00> : vector<8xf32>
    %15 = vector.multi_reduction <add>, %14, %cst_19 [0] : vector<256x8xf32> to vector<8xf32>
    %16 = vector.shape_cast %15 : vector<8xf32> to vector<1x8xf32>
    %17 = arith.addf %0, %16 : vector<1x8xf32>
    %18 = arith.mulf %14, %14 : vector<256x8xf32>
    %cst_20 = arith.constant dense<0.000000e+00> : vector<8xf32>
    %19 = vector.multi_reduction <add>, %18, %cst_20 [0] : vector<256x8xf32> to vector<8xf32>
    %20 = vector.shape_cast %19 : vector<8xf32> to vector<1x8xf32>
    %21 = arith.addf %1, %20 : vector<1x8xf32>
    %c0_21 = arith.constant 0 : index
    %c0_22 = arith.constant 0 : index
    %c0_23 = arith.constant 0 : index
    %22 = vector.load %arg5[%c0_21, %c0_22, %c0_23] : memref<4x256x8xf32, #tpu.memory_space<vmem>>, vector<1x256x8xf32>
    %23 = vector.shape_cast %22 : vector<1x256x8xf32> to vector<256x8xf32>
    %24 = vector.shape_cast %14 : vector<256x8xf32> to vector<1x256x8xf32>
    tpu.vector_store %arg5[%c0_21, %c0_22, %c0_23], %24 {strides = array<i32>} : memref<4x256x8xf32, #tpu.memory_space<vmem>>, vector<1x256x8xf32>,
    %c0_24 = arith.constant 0 : index
    %c0_25 = arith.constant 0 : index
    %c1_26 = arith.constant 1 : index
    %c0_27 = arith.constant 0 : index
    %25 = vector.load %arg2[%c0_24, %c0_25, %c1_26, %c0_27] : memref<1x18x18x4xbf16, #tpu.memory_space<vmem>>, vector<1x16x16x4xbf16>
    %26 = vector.shape_cast %25 : vector<1x16x16x4xbf16> to vector<16x16x4xbf16>
    %c0_28 = arith.constant 0 : index
    %c0_29 = arith.constant 0 : index
    %c2 = arith.constant 2 : index
    %c0_30 = arith.constant 0 : index
    %27 = vector.load %arg2[%c0_28, %c0_29, %c2, %c0_30] : memref<1x18x18x4xbf16, #tpu.memory_space<vmem>>, vector<1x16x16x4xbf16>
    %28 = vector.shape_cast %27 : vector<1x16x16x4xbf16> to vector<16x16x4xbf16>
    %c0_31 = arith.constant 0 : index
    %c1_32 = arith.constant 1 : index
    %c1_33 = arith.constant 1 : index
    %c0_34 = arith.constant 0 : index
    %29 = vector.load %arg2[%c0_31, %c1_32, %c1_33, %c0_34] : memref<1x18x18x4xbf16, #tpu.memory_space<vmem>>, vector<1x16x16x4xbf16>
    %30 = vector.shape_cast %29 : vector<1x16x16x4xbf16> to vector<16x16x4xbf16>
    %c0_35 = arith.constant 0 : index
    %c1_36 = arith.constant 1 : index
    %c2_37 = arith.constant 2 : index
    %c0_38 = arith.constant 0 : index
    %31 = vector.load %arg2[%c0_35, %c1_36, %c2_37, %c0_38] : memref<1x18x18x4xbf16, #tpu.memory_space<vmem>>, vector<1x16x16x4xbf16>
    %32 = vector.shape_cast %31 : vector<1x16x16x4xbf16> to vector<16x16x4xbf16>
    %33 = tpu.concatenate %26, %28, %30, %32 in 2 : vector<16x16x4xbf16>, vector<16x16x4xbf16>, vector<16x16x4xbf16>, vector<16x16x4xbf16> -> vector<16x16x16xbf16>
    %34 = vector.shape_cast %33 : vector<16x16x16xbf16> to vector<256x16xbf16>
    %c1_39 = arith.constant 1 : index
    %c0_40 = arith.constant 0 : index
    %c0_41 = arith.constant 0 : index
    %35 = vector.load %arg3[%c1_39, %c0_40, %c0_41] : memref<4x16x8xbf16, #tpu.memory_space<vmem>>, vector<1x16x8xbf16>
    %36 = vector.shape_cast %35 : vector<1x16x8xbf16> to vector<16x8xbf16>
    %cst_42 = arith.constant dense<0.000000e+00> : vector<256x8xf32>
    %37 = tpu.matmul %34, %36, %cst_42 {dimension_numbers = #tpu.dot_dimension_numbers<[1], [0], [0], [1], [0, 0, 1, 1], [], []>} : vector<256x16xbf16>, vector<16x8xbf16>, vector<256x8xf32> -> vector<256x8xf32>
    %cst_43 = arith.constant dense<0.000000e+00> : vector<8xf32>
    %38 = vector.multi_reduction <add>, %37, %cst_43 [0] : vector<256x8xf32> to vector<8xf32>
    %39 = vector.shape_cast %38 : vector<8xf32> to vector<1x8xf32>
    %40 = arith.addf %17, %39 : vector<1x8xf32>
    %41 = arith.mulf %37, %37 : vector<256x8xf32>
    %cst_44 = arith.constant dense<0.000000e+00> : vector<8xf32>
    %42 = vector.multi_reduction <add>, %41, %cst_44 [0] : vector<256x8xf32> to vector<8xf32>
    %43 = vector.shape_cast %42 : vector<8xf32> to vector<1x8xf32>
    %44 = arith.addf %21, %43 : vector<1x8xf32>
    %c1_45 = arith.constant 1 : index
    %c0_46 = arith.constant 0 : index
    %c0_47 = arith.constant 0 : index
    %45 = vector.load %arg5[%c1_45, %c0_46, %c0_47] : memref<4x256x8xf32, #tpu.memory_space<vmem>>, vector<1x256x8xf32>
    %46 = vector.shape_cast %45 : vector<1x256x8xf32> to vector<256x8xf32>
    %47 = vector.shape_cast %37 : vector<256x8xf32> to vector<1x256x8xf32>
    tpu.vector_store %arg5[%c1_45, %c0_46, %c0_47], %47 {strides = array<i32>} : memref<4x256x8xf32, #tpu.memory_space<vmem>>, vector<1x256x8xf32>,
    %c0_48 = arith.constant 0 : index
    %c1_49 = arith.constant 1 : index
    %c0_50 = arith.constant 0 : index
    %c0_51 = arith.constant 0 : index
    %48 = vector.load %arg2[%c0_48, %c1_49, %c0_50, %c0_51] : memref<1x18x18x4xbf16, #tpu.memory_space<vmem>>, vector<1x16x16x4xbf16>
    %49 = vector.shape_cast %48 : vector<1x16x16x4xbf16> to vector<16x16x4xbf16>
    %c0_52 = arith.constant 0 : index
    %c1_53 = arith.constant 1 : index
    %c1_54 = arith.constant 1 : index
    %c0_55 = arith.constant 0 : index
    %50 = vector.load %arg2[%c0_52, %c1_53, %c1_54, %c0_55] : memref<1x18x18x4xbf16, #tpu.memory_space<vmem>>, vector<1x16x16x4xbf16>
    %51 = vector.shape_cast %50 : vector<1x16x16x4xbf16> to vector<16x16x4xbf16>
    %c0_56 = arith.constant 0 : index
    %c2_57 = arith.constant 2 : index
    %c0_58 = arith.constant 0 : index
    %c0_59 = arith.constant 0 : index
    %52 = vector.load %arg2[%c0_56, %c2_57, %c0_58, %c0_59] : memref<1x18x18x4xbf16, #tpu.memory_space<vmem>>, vector<1x16x16x4xbf16>
    %53 = vector.shape_cast %52 : vector<1x16x16x4xbf16> to vector<16x16x4xbf16>
    %c0_60 = arith.constant 0 : index
    %c2_61 = arith.constant 2 : index
    %c1_62 = arith.constant 1 : index
    %c0_63 = arith.constant 0 : index
    %54 = vector.load %arg2[%c0_60, %c2_61, %c1_62, %c0_63] : memref<1x18x18x4xbf16, #tpu.memory_space<vmem>>, vector<1x16x16x4xbf16>
    %55 = vector.shape_cast %54 : vector<1x16x16x4xbf16> to vector<16x16x4xbf16>
    %56 = tpu.concatenate %49, %51, %53, %55 in 2 : vector<16x16x4xbf16>, vector<16x16x4xbf16>, vector<16x16x4xbf16>, vector<16x16x4xbf16> -> vector<16x16x16xbf16>
    %57 = vector.shape_cast %56 : vector<16x16x16xbf16> to vector<256x16xbf16>
    %c2_64 = arith.constant 2 : index
    %c0_65 = arith.constant 0 : index
    %c0_66 = arith.constant 0 : index
    %58 = vector.load %arg3[%c2_64, %c0_65, %c0_66] : memref<4x16x8xbf16, #tpu.memory_space<vmem>>, vector<1x16x8xbf16>
    %59 = vector.shape_cast %58 : vector<1x16x8xbf16> to vector<16x8xbf16>
    %cst_67 = arith.constant dense<0.000000e+00> : vector<256x8xf32>
    %60 = tpu.matmul %57, %59, %cst_67 {dimension_numbers = #tpu.dot_dimension_numbers<[1], [0], [0], [1], [0, 0, 1, 1], [], []>} : vector<256x16xbf16>, vector<16x8xbf16>, vector<256x8xf32> -> vector<256x8xf32>
    %cst_68 = arith.constant dense<0.000000e+00> : vector<8xf32>
    %61 = vector.multi_reduction <add>, %60, %cst_68 [0] : vector<256x8xf32> to vector<8xf32>
    %62 = vector.shape_cast %61 : vector<8xf32> to vector<1x8xf32>
    %63 = arith.addf %40, %62 : vector<1x8xf32>
    %64 = arith.mulf %60, %60 : vector<256x8xf32>
    %cst_69 = arith.constant dense<0.000000e+00> : vector<8xf32>
    %65 = vector.multi_reduction <add>, %64, %cst_69 [0] : vector<256x8xf32> to vector<8xf32>
    %66 = vector.shape_cast %65 : vector<8xf32> to vector<1x8xf32>
    %67 = arith.addf %44, %66 : vector<1x8xf32>
    %c2_70 = arith.constant 2 : index
    %c0_71 = arith.constant 0 : index
    %c0_72 = arith.constant 0 : index
    %68 = vector.load %arg5[%c2_70, %c0_71, %c0_72] : memref<4x256x8xf32, #tpu.memory_space<vmem>>, vector<1x256x8xf32>
    %69 = vector.shape_cast %68 : vector<1x256x8xf32> to vector<256x8xf32>
    %70 = vector.shape_cast %60 : vector<256x8xf32> to vector<1x256x8xf32>
    tpu.vector_store %arg5[%c2_70, %c0_71, %c0_72], %70 {strides = array<i32>} : memref<4x256x8xf32, #tpu.memory_space<vmem>>, vector<1x256x8xf32>,
    %c0_73 = arith.constant 0 : index
    %c1_74 = arith.constant 1 : index
    %c1_75 = arith.constant 1 : index
    %c0_76 = arith.constant 0 : index
    %71 = vector.load %arg2[%c0_73, %c1_74, %c1_75, %c0_76] : memref<1x18x18x4xbf16, #tpu.memory_space<vmem>>, vector<1x16x16x4xbf16>
    %72 = vector.shape_cast %71 : vector<1x16x16x4xbf16> to vector<16x16x4xbf16>
    %c0_77 = arith.constant 0 : index
    %c1_78 = arith.constant 1 : index
    %c2_79 = arith.constant 2 : index
    %c0_80 = arith.constant 0 : index
    %73 = vector.load %arg2[%c0_77, %c1_78, %c2_79, %c0_80] : memref<1x18x18x4xbf16, #tpu.memory_space<vmem>>, vector<1x16x16x4xbf16>
    %74 = vector.shape_cast %73 : vector<1x16x16x4xbf16> to vector<16x16x4xbf16>
    %c0_81 = arith.constant 0 : index
    %c2_82 = arith.constant 2 : index
    %c1_83 = arith.constant 1 : index
    %c0_84 = arith.constant 0 : index
    %75 = vector.load %arg2[%c0_81, %c2_82, %c1_83, %c0_84] : memref<1x18x18x4xbf16, #tpu.memory_space<vmem>>, vector<1x16x16x4xbf16>
    %76 = vector.shape_cast %75 : vector<1x16x16x4xbf16> to vector<16x16x4xbf16>
    %c0_85 = arith.constant 0 : index
    %c2_86 = arith.constant 2 : index
    %c2_87 = arith.constant 2 : index
    %c0_88 = arith.constant 0 : index
    %77 = vector.load %arg2[%c0_85, %c2_86, %c2_87, %c0_88] : memref<1x18x18x4xbf16, #tpu.memory_space<vmem>>, vector<1x16x16x4xbf16>
    %78 = vector.shape_cast %77 : vector<1x16x16x4xbf16> to vector<16x16x4xbf16>
    %79 = tpu.concatenate %72, %74, %76, %78 in 2 : vector<16x16x4xbf16>, vector<16x16x4xbf16>, vector<16x16x4xbf16>, vector<16x16x4xbf16> -> vector<16x16x16xbf16>
    %80 = vector.shape_cast %79 : vector<16x16x16xbf16> to vector<256x16xbf16>
    %c3 = arith.constant 3 : index
    %c0_89 = arith.constant 0 : index
    %c0_90 = arith.constant 0 : index
    %81 = vector.load %arg3[%c3, %c0_89, %c0_90] : memref<4x16x8xbf16, #tpu.memory_space<vmem>>, vector<1x16x8xbf16>
    %82 = vector.shape_cast %81 : vector<1x16x8xbf16> to vector<16x8xbf16>
    %cst_91 = arith.constant dense<0.000000e+00> : vector<256x8xf32>
    %83 = tpu.matmul %80, %82, %cst_91 {dimension_numbers = #tpu.dot_dimension_numbers<[1], [0], [0], [1], [0, 0, 1, 1], [], []>} : vector<256x16xbf16>, vector<16x8xbf16>, vector<256x8xf32> -> vector<256x8xf32>
    %cst_92 = arith.constant dense<0.000000e+00> : vector<8xf32>
    %84 = vector.multi_reduction <add>, %83, %cst_92 [0] : vector<256x8xf32> to vector<8xf32>
    %85 = vector.shape_cast %84 : vector<8xf32> to vector<1x8xf32>
    %86 = arith.addf %63, %85 : vector<1x8xf32>
    %87 = arith.mulf %83, %83 : vector<256x8xf32>
    %cst_93 = arith.constant dense<0.000000e+00> : vector<8xf32>
    %88 = vector.multi_reduction <add>, %87, %cst_93 [0] : vector<256x8xf32> to vector<8xf32>
    %89 = vector.shape_cast %88 : vector<8xf32> to vector<1x8xf32>
    %90 = arith.addf %67, %89 : vector<1x8xf32>
    %c3_94 = arith.constant 3 : index
    %c0_95 = arith.constant 0 : index
    %c0_96 = arith.constant 0 : index
    %91 = vector.load %arg5[%c3_94, %c0_95, %c0_96] : memref<4x256x8xf32, #tpu.memory_space<vmem>>, vector<1x256x8xf32>
    %92 = vector.shape_cast %91 : vector<1x256x8xf32> to vector<256x8xf32>
    %93 = vector.shape_cast %83 : vector<256x8xf32> to vector<1x256x8xf32>
    tpu.vector_store %arg5[%c3_94, %c0_95, %c0_96], %93 {strides = array<i32>} : memref<4x256x8xf32, #tpu.memory_space<vmem>>, vector<1x256x8xf32>,
    %cst_97 = arith.constant 9.765625E-4 : f32
    %94 = vector.broadcast %cst_97 : f32 to vector<1x8xf32>
    %95 = arith.mulf %86, %94 : vector<1x8xf32>
    %cst_98 = arith.constant 9.765625E-4 : f32
    %96 = vector.broadcast %cst_98 : f32 to vector<1x8xf32>
    %97 = arith.mulf %90, %96 : vector<1x8xf32>
    %98 = arith.mulf %95, %95 : vector<1x8xf32>
    %99 = arith.subf %97, %98 : vector<1x8xf32>
    %cst_99 = arith.constant 0.000000e+00 : f32
    %100 = vector.broadcast %cst_99 : f32 to vector<1x8xf32>
    %101 = arith.maximumf %99, %100 : vector<1x8xf32>
    %cst_100 = arith.constant 9.99999974E-6 : f32
    %102 = vector.broadcast %cst_100 : f32 to vector<1x8xf32>
    %103 = arith.addf %101, %102 : vector<1x8xf32>
    %104 = math.rsqrt %103 : vector<1x8xf32>
    %c0_101 = arith.constant 0 : index
    %c0_102 = arith.constant 0 : index
    %c0_103 = arith.constant 0 : index
    %105 = vector.load %arg5[%c0_101, %c0_102, %c0_103] : memref<4x256x8xf32, #tpu.memory_space<vmem>>, vector<1x256x8xf32>
    %106 = vector.shape_cast %105 : vector<1x256x8xf32> to vector<256x8xf32>
    %107 = vector.broadcast %95 : vector<1x8xf32> to vector<256x8xf32>
    %108 = arith.subf %106, %107 : vector<256x8xf32>
    %109 = vector.broadcast %104 : vector<1x8xf32> to vector<256x8xf32>
    %110 = arith.mulf %108, %109 : vector<256x8xf32>
    %cst_104 = arith.constant 0.000000e+00 : f32
    %111 = vector.broadcast %cst_104 : f32 to vector<256x8xf32>
    %112 = arith.maximumf %110, %111 : vector<256x8xf32>
    %113 = arith.truncf %112 : vector<256x8xf32> to vector<256x8xbf16>
    %c0_105 = arith.constant 0 : index
    %c0_106 = arith.constant 0 : index
    %c0_107 = arith.constant 0 : index
    %c0_108 = arith.constant 0 : index
    %114 = vector.load %arg4[%c0_105, %c0_106, %c0_107, %c0_108] : memref<1x4x256x8xbf16, #tpu.memory_space<vmem>>, vector<1x1x256x8xbf16>
    %115 = vector.shape_cast %114 : vector<1x1x256x8xbf16> to vector<256x8xbf16>
    %116 = vector.shape_cast %113 : vector<256x8xbf16> to vector<1x1x256x8xbf16>
    tpu.vector_store %arg4[%c0_105, %c0_106, %c0_107, %c0_108], %116 {strides = array<i32>} : memref<1x4x256x8xbf16, #tpu.memory_space<vmem>>, vector<1x1x256x8xbf16>,
    %c1_109 = arith.constant 1 : index
    %c0_110 = arith.constant 0 : index
    %c0_111 = arith.constant 0 : index
    %117 = vector.load %arg5[%c1_109, %c0_110, %c0_111] : memref<4x256x8xf32, #tpu.memory_space<vmem>>, vector<1x256x8xf32>
    %118 = vector.shape_cast %117 : vector<1x256x8xf32> to vector<256x8xf32>
    %119 = vector.broadcast %95 : vector<1x8xf32> to vector<256x8xf32>
    %120 = arith.subf %118, %119 : vector<256x8xf32>
    %121 = vector.broadcast %104 : vector<1x8xf32> to vector<256x8xf32>
    %122 = arith.mulf %120, %121 : vector<256x8xf32>
    %cst_112 = arith.constant 0.000000e+00 : f32
    %123 = vector.broadcast %cst_112 : f32 to vector<256x8xf32>
    %124 = arith.maximumf %122, %123 : vector<256x8xf32>
    %125 = arith.truncf %124 : vector<256x8xf32> to vector<256x8xbf16>
    %c0_113 = arith.constant 0 : index
    %c1_114 = arith.constant 1 : index
    %c0_115 = arith.constant 0 : index
    %c0_116 = arith.constant 0 : index
    %126 = vector.load %arg4[%c0_113, %c1_114, %c0_115, %c0_116] : memref<1x4x256x8xbf16, #tpu.memory_space<vmem>>, vector<1x1x256x8xbf16>
    %127 = vector.shape_cast %126 : vector<1x1x256x8xbf16> to vector<256x8xbf16>
    %128 = vector.shape_cast %125 : vector<256x8xbf16> to vector<1x1x256x8xbf16>
    tpu.vector_store %arg4[%c0_113, %c1_114, %c0_115, %c0_116], %128 {strides = array<i32>} : memref<1x4x256x8xbf16, #tpu.memory_space<vmem>>, vector<1x1x256x8xbf16>,
    %c2_117 = arith.constant 2 : index
    %c0_118 = arith.constant 0 : index
    %c0_119 = arith.constant 0 : index
    %129 = vector.load %arg5[%c2_117, %c0_118, %c0_119] : memref<4x256x8xf32, #tpu.memory_space<vmem>>, vector<1x256x8xf32>
    %130 = vector.shape_cast %129 : vector<1x256x8xf32> to vector<256x8xf32>
    %131 = vector.broadcast %95 : vector<1x8xf32> to vector<256x8xf32>
    %132 = arith.subf %130, %131 : vector<256x8xf32>
    %133 = vector.broadcast %104 : vector<1x8xf32> to vector<256x8xf32>
    %134 = arith.mulf %132, %133 : vector<256x8xf32>
    %cst_120 = arith.constant 0.000000e+00 : f32
    %135 = vector.broadcast %cst_120 : f32 to vector<256x8xf32>
    %136 = arith.maximumf %134, %135 : vector<256x8xf32>
    %137 = arith.truncf %136 : vector<256x8xf32> to vector<256x8xbf16>
    %c0_121 = arith.constant 0 : index
    %c2_122 = arith.constant 2 : index
    %c0_123 = arith.constant 0 : index
    %c0_124 = arith.constant 0 : index
    %138 = vector.load %arg4[%c0_121, %c2_122, %c0_123, %c0_124] : memref<1x4x256x8xbf16, #tpu.memory_space<vmem>>, vector<1x1x256x8xbf16>
    %139 = vector.shape_cast %138 : vector<1x1x256x8xbf16> to vector<256x8xbf16>
    %140 = vector.shape_cast %137 : vector<256x8xbf16> to vector<1x1x256x8xbf16>
    tpu.vector_store %arg4[%c0_121, %c2_122, %c0_123, %c0_124], %140 {strides = array<i32>} : memref<1x4x256x8xbf16, #tpu.memory_space<vmem>>, vector<1x1x256x8xbf16>,
    %c3_125 = arith.constant 3 : index
    %c0_126 = arith.constant 0 : index
    %c0_127 = arith.constant 0 : index
    %141 = vector.load %arg5[%c3_125, %c0_126, %c0_127] : memref<4x256x8xf32, #tpu.memory_space<vmem>>, vector<1x256x8xf32>
    %142 = vector.shape_cast %141 : vector<1x256x8xf32> to vector<256x8xf32>
    %143 = vector.broadcast %95 : vector<1x8xf32> to vector<256x8xf32>
    %144 = arith.subf %142, %143 : vector<256x8xf32>
    %145 = vector.broadcast %104 : vector<1x8xf32> to vector<256x8xf32>
    %146 = arith.mulf %144, %145 : vector<256x8xf32>
    %cst_128 = arith.constant 0.000000e+00 : f32
    %147 = vector.broadcast %cst_128 : f32 to vector<256x8xf32>
    %148 = arith.maximumf %146, %147 : vector<256x8xf32>
    %149 = arith.truncf %148 : vector<256x8xf32> to vector<256x8xbf16>
    %c0_129 = arith.constant 0 : index
    %c3_130 = arith.constant 3 : index
    %c0_131 = arith.constant 0 : index
    %c0_132 = arith.constant 0 : index
    %150 = vector.load %arg4[%c0_129, %c3_130, %c0_131, %c0_132] : memref<1x4x256x8xbf16, #tpu.memory_space<vmem>>, vector<1x1x256x8xbf16>
    %151 = vector.shape_cast %150 : vector<1x1x256x8xbf16> to vector<256x8xbf16>
    %152 = vector.shape_cast %149 : vector<256x8xbf16> to vector<1x1x256x8xbf16>
    tpu.vector_store %arg4[%c0_129, %c3_130, %c0_131, %c0_132], %152 {strides = array<i32>} : memref<1x4x256x8xbf16, #tpu.memory_space<vmem>>, vector<1x1x256x8xbf16>,
    return
  }
  func.func @transform_0(%arg0: i32, %arg1: i32) -> (i32, i32, i32, i32) {
    %c0_i32 = arith.constant 0 : i32
    %c0_i32_0 = arith.constant 0 : i32
    %c0_i32_1 = arith.constant 0 : i32
    %c0_i32_2 = arith.constant 0 : i32
    return %arg0, %c0_i32, %c0_i32_0, %c0_i32_1 : i32, i32, i32, i32
  }
  func.func @transform_1(%arg0: i32, %arg1: i32) -> (i32, i32, i32) {
    %c0_i32 = arith.constant 0 : i32
    %c0_i32_0 = arith.constant 0 : i32
    %c0_i32_1 = arith.constant 0 : i32
    return %c0_i32, %c0_i32_0, %arg1 : i32, i32, i32
  }
  func.func @transform_2(%arg0: i32, %arg1: i32) -> (i32, i32, i32, i32) {
    %c0_i32 = arith.constant 0 : i32
    %c0_i32_0 = arith.constant 0 : i32
    %c0_i32_1 = arith.constant 0 : i32
    return %arg0, %c0_i32, %c0_i32_0, %arg1 : i32, i32, i32, i32
  }
}

</mosaic_0001>

<bundles_post_ra>
// kernel: unet_up_forward.1
= control target key start
LH: loop header
LB: loop body
LE: loop exit
PB: predicated region body
PF: predicated region fallthrough
CT: control target
= control target key end

     0   :  { %s9707_s9 = smov 0   ;;  %s9709_s10 = smov 0   ;;  %s14271_s0 = inlined_call_operand.vmem [shape: bf16[2,18,18,4], index: 0, kind: input, shape index: {}]   ;;  %s14272_s1 = inlined_call_operand.vmem [shape: bf16[4,16,8], index: 1, kind: input, shape index: {}]   ;;  %s14273_s2 = inlined_call_operand.vmem [shape: bf16[2,4,256,8], index: 2, kind: output, shape index: {}]  }
   0x1   :  { %s9711_s11 = smov 0  }
   0x2 LB: > { %s24_s12 = sadd.s32 1, %s9683_s10  ;;  %p7940_p0 = scmp.ge.s32.totalorder %s9687_s11, 1  ;;  %s9687_s11 = sphi %s9711_s11, %s12_s11   ;;  %s9683_s10 = sphi %s9709_s10, %s14440_s10   ;;  %s9679_s9 = sphi %s9707_s9, %s14439_s9  }
   0x3   : > { %p26_p1 = scmp.ge.s32.totalorder %s24_s12, 2  ;;  %p135_p2 = scmp.lt.s32.totalorder %s9687_s11, 3 }
   0x5   : > { %s14442_s12 = smov (%p26_p1, %s24_s12), 0  ;;  %p136_p3 = pnand %p7940_p0, %p135_p2 }
   0x7   : > { %139 = sbr.rel (%p136_p3) target bundleno = 1133 (0x46d), region = 28 }
   0xe   : > { %p164_p4 = scmp.lt.s32.totalorder %s9679_s9, 1  ;;  %vm407_vm0 = vsmask.f32 7424  ;;  %s9689_s17 = smov 4   ;;  %vm1016_vm1 = vcmask 31744   ;;  %vm1049_vm2 = vcmask 64512  }
   0xf   : > { %s9690_s18 = smov 8   ;;  %s9691_s21 = smov 12   ;;  %vm1082_vm3 = vcmask 97280   ;;  %vm1123_vm4 = vcmask 130048   ;;  %vm6942_vm5 = vcmask 60416  }
  0x10   : > { %s14444_s9 = smov (!%p164_p4, %s9679_s9), 1 }
  0x11   : > { %s9233_s13 = smul.u32 216, %s14444_s9  ;;  %s8900_s28 = sshll.u32 %s14444_s9, 9 }
  0x12   : > { %s13354_s3 = scalar_lea.vmem %s14273_s2, %s8900_s28 }
  0x13   : > { %s9731_s16 = scalar_lea.vmem %s14271_s0, %s9233_s13 }
  0x14   : > { %v9261_v0 = vld [vmem:[%s9731_s16 + $0x18] sm:$0xff]   ;;  %v9262_v1 = vld [vmem:[%s9731_s16 + $0x20] ss:$0 sps:$4 sm:$0x11]   ;;  %v9265_v12 = vld [vmem:[%s9731_s16 + $0x24] sm:$0xff]  }
  0x15   : > { %v9263_v2 = vld [vmem:[%s9731_s16] sm:$0xff]   ;;  %v433_v3 = vshrl.u32 %v9261_v0, 16  ;;  %v435_v4 = vshll.u32 %v9261_v0, 16  ;;  %v440_v5 = vshll.u32 %v9262_v1, 16  ;;  %v445_v17 = vshrl.u32 %v9265_v12, 16  ;;  %v9267_v19 = vld [vmem:[%s9731_s16 + $0xc] sm:$0xff]  }
  0x16   : > { %v9264_v6 = vld [vmem:[%s9731_s16 + $0x8] ss:$0 sps:$4 sm:$0x11]   ;;  %v409_v7 = vshrl.u32 %v9263_v2, 16  ;;  %v411_v8 = vshll.u32 %v9263_v2, 16  ;;  %v447_v18 = vshll.u32 %v9265_v12, 16 }
  0x17   : > { %v437_v9 = vrot.slane %v435_v4, 1  ;;  %v442_v10 = vrot.slane %v440_v5, 1  ;;  %v416_v11 = vshll.u32 %v9264_v6, 16  ;;  %v9266_v14 = vld [vmem:[%s9731_s16 + $0x2c] ss:$0 sps:$4 sm:$0x11]  }
  0x18   : > { %v413_v13 = vrot.slane %v411_v8, 1  ;;  %v452_v21 = vshll.u32 %v9266_v14, 16  ;;  %v9268_v22 = vld [vmem:[%s9731_s16 + $0x14] ss:$0 sps:$4 sm:$0x11]   ;;  %v449_v24 = vrot.slane %v447_v18, 1 }
  0x19   : > { %v438_v15 = vor.u32 %v437_v9, %v433_v3  ;;  %v418_v16 = vrot.slane %v416_v11, 1  ;;  %v421_v25 = vshrl.u32 %v9267_v19, 16  ;;  %v423_v26 = vshll.u32 %v9267_v19, 16  ;;  %v9269_v27 = vld [vmem:[%s9731_s16 + $0x3c] sm:$0xff]   ;;  %v9271_v37 = vld [vmem:[%s9731_s16 + $0x30] sm:$0xff]   ;;  %v9275_v49 = vld [vmem:[%s9731_s16 + $0x48] sm:$0xff]  }
  0x1a   : > { %v414_v20 = vor.u32 %v413_v13, %v409_v7  ;;  %v454_v29 = vrot.slane %v452_v21, 1  ;;  %v428_v30 = vshll.u32 %v9268_v22, 16  ;;  %v450_v31 = vor.u32 %v449_v24, %v445_v17  ;;  %v9270_v33 = vld [vmem:[%s9731_s16 + $0x44] ss:$0 sps:$4 sm:$0x11]   ;;  %v9273_v45 = vld [vmem:[%s9731_s16 + $0x54] sm:$0xff]  }
  0x1b   : > { %v443_v23 = vsel %vm407_vm0, %v438_v15, %v442_v10  ;;  %v425_v32 = vrot.slane %v423_v26, 1  ;;  %v469_v34 = vshrl.u32 %v9269_v27, 16  ;;  %v471_v35 = vshll.u32 %v9269_v27, 16  ;;  %v9272_v42 = vld [vmem:[%s9731_s16 + $0x38] ss:$0 sps:$4 sm:$0x11]  }
  0x1c   : > { %604 = vrot.lane.b32.xlu1 %v443_v23, %s9689_s17  ;;  %v419_v28 = vsel %vm407_vm0, %v414_v20, %v418_v16  ;;  %v430_v36 = vrot.slane %v428_v30, 1  ;;  %v455_v38 = vsel %vm407_vm0, %v450_v31, %v454_v29  ;;  %v476_v41 = vshll.u32 %v9270_v33, 16  ;;  %v9274_v52 = vld [vmem:[%s9731_s16 + $0x5c] ss:$0 sps:$4 sm:$0x11]   ;;  %v9277_v61 = vld [vmem:[%s9731_s16 + $0x6c] sm:$0xff]  }
  0x1d   : > { %600 = vrot.lane.b32.xlu0 %v419_v28, %s9689_s17  ;;  %v426_v39 = vor.u32 %v425_v32, %v421_v25  ;;  %v473_v40 = vrot.slane %v471_v35, 1  ;;  %v457_v43 = vshrl.u32 %v9271_v37, 16  ;;  %v459_v44 = vshll.u32 %v9271_v37, 16  ;;  %v9276_v63 = vld [vmem:[%s9731_s16 + $0x50] ss:$0 sps:$4 sm:$0x11]  }
  0x1e   : > { %v478_v48 = vrot.slane %v476_v41, 1  ;;  %v464_v51 = vshll.u32 %v9272_v42, 16  ;;  %v493_v53 = vshrl.u32 %v9273_v45, 16  ;;  %v495_v55 = vshll.u32 %v9273_v45, 16  ;;  %v9279_v13 = vld [vmem:[%s9731_s16 + $0x60] sm:$0xff]   ;;  %v9283_v26 = vld [vmem:[%s9731_s16 + $0x78] sm:$0xff]  }
  0x1f   : > { %v431_v46 = vsel %vm407_vm0, %v426_v39, %v430_v36  ;;  %v474_v47 = vor.u32 %v473_v40, %v469_v34  ;;  %v461_v50 = vrot.slane %v459_v44, 1  ;;  %v481_v56 = vshrl.u32 %v9275_v49, 16  ;;  %v9278_v5 = vld [vmem:[%s9731_s16 + $0x74] ss:$0 sps:$4 sm:$0x11]   ;;  %v9281_v15 = vld [vmem:[%s9731_s16 + $0x84] sm:$0xff]  }
  0x20   : > { %606 = vrot.lane.b32.xlu1 %v455_v38, %s9689_s17  ;;  %v466_v58 = vrot.slane %v464_v51, 1  ;;  %v500_v59 = vshll.u32 %v9274_v52, 16  ;;  %v483_v60 = vshll.u32 %v9275_v49, 16  ;;  %v497_v62 = vrot.slane %v495_v55, 1  ;;  %v9285_v34 = vld [vmem:[%s9731_s16 + $0x9c] sm:$0xff]   ;;  %v9287_v45 = vld [vmem:[%s9731_s16 + $0x90] sm:$0xff]  }
  0x21   : > { %602 = vrot.lane.b32.xlu0 %v431_v46, %s9689_s17  ;;  %v479_v54 = vsel %vm407_vm0, %v474_v47, %v478_v48  ;;  %v462_v57 = vor.u32 %v461_v50, %v457_v43  ;;  %v488_v4 = vshll.u32 %v9276_v63, 16  ;;  %v517_v6 = vshrl.u32 %v9277_v61, 16  ;;  %v9280_v14 = vld [vmem:[%s9731_s16 + $0x68] ss:$0 sps:$4 sm:$0x11]  }
  0x22   : > { %v502_v1 = vrot.slane %v500_v59, 1  ;;  %v485_v2 = vrot.slane %v483_v60, 1  ;;  %v498_v3 = vor.u32 %v497_v62, %v493_v53  ;;  %v519_v7 = vshll.u32 %v9277_v61, 16  ;;  %v9282_v22 = vld [vmem:[%s9731_s16 + $0x8c] ss:$0 sps:$4 sm:$0x11]  }
  0x23   : > { %v467_v0 = vsel %vm407_vm0, %v462_v57, %v466_v58  ;;  %v490_v10 = vrot.slane %v488_v4, 1  ;;  %v524_v12 = vshll.u32 %v9278_v5, 16  ;;  %v505_v19 = vshrl.u32 %v9279_v13, 16  ;;  %v9284_v30 = vld [vmem:[%s9731_s16 + $0x80] ss:$0 sps:$4 sm:$0x11]  }
  0x24   : > { %610 = vrot.lane.b32.xlu1 %v479_v54, %s9689_s17  ;;  %v486_v8 = vor.u32 %v485_v2, %v481_v56  ;;  %v503_v9 = vsel %vm407_vm0, %v498_v3, %v502_v1  ;;  %v521_v11 = vrot.slane %v519_v7, 1  ;;  %v507_v20 = vshll.u32 %v9279_v13, 16  ;;  %v9286_v40 = vld [vmem:[%s9731_s16 + $0xa4] ss:$0 sps:$4 sm:$0x11]   ;;  %v9289_v53 = vld [vmem:[%s9731_s16 + $0xb4] sm:$0xff]  }
  0x25   : > { %608 = vrot.lane.b32.xlu0 %v467_v0, %s9689_s17  ;;  %v526_v18 = vrot.slane %v524_v12, 1  ;;  %v512_v21 = vshll.u32 %v9280_v14, 16  ;;  %v541_v23 = vshrl.u32 %v9281_v15, 16  ;;  %v543_v25 = vshll.u32 %v9281_v15, 16  ;;  %v9291_v57 = vld [vmem:[%s9731_s16 + $0xa8] sm:$0xff]   ;;  %v9293_v15 = vld [vmem:[%s9731_s16 + $0x18] sm:$0xff]  }
  0x26   : > { %v491_v16 = vsel %vm407_vm0, %v486_v8, %v490_v10  ;;  %v522_v17 = vor.u32 %v521_v11, %v517_v6  ;;  %v509_v27 = vrot.slane %v507_v20, 1  ;;  %v548_v29 = vshll.u32 %v9282_v22, 16  ;;  %v9288_v50 = vld [vmem:[%s9731_s16 + $0x98] ss:$0 sps:$4 sm:$0x11]   ;;  %v9810_v20 = vld [vmem:[%s9731_s16 + $0x48] sm:$0xff]  }
  0x27   : > { %v514_v28 = vrot.slane %v512_v21, 1  ;;  %v545_v31 = vrot.slane %v543_v25, 1  ;;  %v529_v32 = vshrl.u32 %v9283_v26, 16  ;;  %v531_v33 = vshll.u32 %v9283_v26, 16  ;;  %v9815_v21 = vld [vmem:[%s9731_s16 + $0x3c] sm:$0xff]   ;;  %v9835_v25 = vld [vmem:[%s9731_s16 + $0x6c] sm:$0xff]  }
  0x28   : > { %614 = vrot.lane.b32.xlu1 %v503_v9, %s9689_s17  ;;  %v527_v24 = vsel %vm407_vm0, %v522_v17, %v526_v18  ;;  %v510_v35 = vor.u32 %v509_v27, %v505_v19  ;;  %v550_v36 = vrot.slane %v548_v29, 1  ;;  %v536_v37 = vshll.u32 %v9284_v30, 16  ;;  %v9290_v60 = vld [vmem:[%s9731_s16 + $0xbc] ss:$0 sps:$4 sm:$0x11]   ;;  %v9294_v17 = vld [vmem:[%s9731_s16 + $0xc] sm:$0xff]  }
  0x29   : > { %612 = vrot.lane.b32.xlu0 %v491_v16, %s9689_s17  ;;  %v546_v38 = vor.u32 %v545_v31, %v541_v23  ;;  %v533_v39 = vrot.slane %v531_v33, 1  ;;  %v565_v41 = vshrl.u32 %v9285_v34, 16  ;;  %v567_v42 = vshll.u32 %v9285_v34, 16  ;;  %v9292_v6 = vld [vmem:[%s9731_s16 + $0xb0] ss:$0 sps:$4 sm:$0x11]  }
  0x2a   : > { %v515_v43 = vsel %vm407_vm0, %v510_v35, %v514_v28  ;;  %v538_v44 = vrot.slane %v536_v37, 1  ;;  %v572_v49 = vshll.u32 %v9286_v40, 16  ;;  %v553_v51 = vshrl.u32 %v9287_v45, 16  ;;  %v9801_v18 = vld [vmem:[%s9731_s16 + $0x30] sm:$0xff]   ;;  %v9805_v19 = vld [vmem:[%s9731_s16 + $0x24] sm:$0xff]  }
  0x2b   : > { %v551_v46 = vsel %vm407_vm0, %v546_v38, %v550_v36  ;;  %v534_v47 = vor.u32 %v533_v39, %v529_v32  ;;  %v569_v48 = vrot.slane %v567_v42, 1  ;;  %v555_v52 = vshll.u32 %v9287_v45, 16  ;;  %v9820_v22 = vld [vmem:[%s9731_s16 + $0x60] sm:$0xff]   ;;  %v9825_v23 = vld [vmem:[%s9731_s16 + $0x54] sm:$0xff]   ;;  %v9857_v35 = vld [vmem:[%s9731_s16 + $0xa8] sm:$0xff]  }
  0x2c   : > { %618 = vrot.lane.b32.xlu1 %v527_v24, %s9689_s17  ;;  %v574_v56 = vrot.slane %v572_v49, 1  ;;  %v560_v59 = vshll.u32 %v9288_v50, 16  ;;  %v589_v61 = vshrl.u32 %v9289_v53, 16  ;;  %v591_v63 = vshll.u32 %v9289_v53, 16  ;;  %v9830_v24 = vld [vmem:[%s9731_s16 + $0x78] sm:$0xff]   ;;  %v9840_v27 = vld [vmem:[%s9731_s16 + $0x90] sm:$0xff]  }
  0x2d   : > { %616 = vrot.lane.b32.xlu0 %v515_v43, %s9689_s17  ;;  %v539_v54 = vsel %vm407_vm0, %v534_v47, %v538_v44  ;;  %v570_v55 = vor.u32 %v569_v48, %v565_v41  ;;  %v557_v58 = vrot.slane %v555_v52, 1  ;;  %v577_v0 = vshrl.u32 %v9291_v57, 16  ;;  %v9309_v28 = vld [vmem:[%s9731_s16 + $0x20] ss:$0 sps:$4 sm:$0x11]   ;;  %v9846_v30 = vld [vmem:[%s9731_s16 + $0x84] sm:$0xff]  }
  0x2e   : > { %v562_v2 = vrot.slane %v560_v59, 1  ;;  %v596_v3 = vshll.u32 %v9290_v60, 16  ;;  %v579_v4 = vshll.u32 %v9291_v57, 16  ;;  %v593_v5 = vrot.slane %v591_v63, 1  ;;  %v9364_v31 = vld [vmem:[%s14272_s1] sm:$0xff]  }
  0x2f   : > { %v575_v62 = vsel %vm407_vm0, %v570_v55, %v574_v56  ;;  %v558_v1 = vor.u32 %v557_v58, %v553_v51  ;;  %v584_v11 = vshll.u32 %v9292_v6, 16  ;;  %v807_v26 = vshll.u32 %v9293_v15, 16  ;;  %v9310_v33 = vld [vmem:[%s9731_s16 + $0x14] ss:$0 sps:$4 sm:$0x11]   ;;  %9097 = vmatprep.subr.bf16.mxu0 %v9364_v31  ;;  %v9865_v42 = vld [vmem:[%s9731_s16 + $0x9c] sm:$0xff]  }
  0x30   : > { %622 = vrot.lane.b32.xlu1 %v551_v46, %s9689_s17  ;;  %v598_v8 = vrot.slane %v596_v3, 1  ;;  %v581_v9 = vrot.slane %v579_v4, 1  ;;  %v594_v10 = vor.u32 %v593_v5, %v589_v61  ;;  %v795_v29 = vshll.u32 %v9294_v17, 16  ;;  %v9311_v39 = vld [vmem:[%s9731_s16 + $0x38] ss:$0 sps:$4 sm:$0x11]   ;;  %9098 = vmatpush3.bf16.msra.mxu0 %v9364_v31 }
  0x31   : > { %620 = vrot.lane.b32.xlu0 %v539_v54, %s9689_s17  ;;  %v563_v7 = vsel %vm407_vm0, %v558_v1, %v562_v2  ;;  %v586_v14 = vrot.slane %v584_v11, 1  ;;  %v831_v32 = vshll.u32 %v9801_v18, 16  ;;  %v819_v34 = vshll.u32 %v9805_v19, 16  ;;  %v9312_v46 = vld [vmem:[%s9731_s16 + $0x2c] ss:$0 sps:$4 sm:$0x11]  }
  0x32   : > { %v582_v12 = vor.u32 %v581_v9, %v577_v0  ;;  %v599_v13 = vsel %vm407_vm0, %v594_v10, %v598_v8  ;;  %v805_v36 = vshrl.u32 %v9293_v15, 16  ;;  %v809_v37 = vrot.slane %v807_v26, 1  ;;  %v9873_v49 = vld [vmem:[%s9731_s16 + $0xc0] sm:$0xff]   ;;  %v9313_v51 = vld [vmem:[%s9731_s16 + $0x50] ss:$0 sps:$4 sm:$0x11]  }
  0x33   : > { %v812_v38 = vshll.u32 %v9309_v28, 16  ;;  %v855_v40 = vshll.u32 %v9810_v20, 16  ;;  %v843_v41 = vshll.u32 %v9815_v21, 16  ;;  %v793_v43 = vshrl.u32 %v9294_v17, 16  ;;  %v9880_v56 = vld [vmem:[%s9731_s16 + $0xb4] sm:$0xff]  }
  0x34   : > { %626 = vrot.lane.b32.xlu1 %v575_v62, %s9689_s17  ;;  %v587_v16 = vsel %vm407_vm0, %v582_v12, %v586_v14  ;;  %v797_v44 = vrot.slane %v795_v29, 1  ;;  %v800_v45 = vshll.u32 %v9310_v33, 16  ;;  %v879_v47 = vshll.u32 %v9820_v22, 16  ;;  %v9314_v62 = vld [vmem:[%s9731_s16 + $0x44] ss:$0 sps:$4 sm:$0x11]  }
  0x35   : > { %624 = vrot.lane.b32.xlu0 %v563_v7, %s9689_s17  ;;  %v867_v48 = vshll.u32 %v9825_v23, 16  ;;  %v810_v50 = vor.u32 %v809_v37, %v805_v36  ;;  %v814_v52 = vrot.slane %v812_v38, 1  ;;  %v829_v53 = vshrl.u32 %v9801_v18, 16  ;;  %v9315_v2 = vld [vmem:[%s9731_s16 + $0x68] ss:$0 sps:$4 sm:$0x11]  }
  0x36   : > { %v833_v54 = vrot.slane %v831_v32, 1  ;;  %v836_v55 = vshll.u32 %v9311_v39, 16  ;;  %v817_v57 = vshrl.u32 %v9805_v19, 16  ;;  %v798_v58 = vor.u32 %v797_v44, %v793_v43  ;;  %v9316_v10 = vld [vmem:[%s9731_s16 + $0x5c] ss:$0 sps:$4 sm:$0x11]  }
  0x37   : > { %v802_v59 = vrot.slane %v800_v45, 1  ;;  %v821_v60 = vrot.slane %v819_v34, 1  ;;  %v824_v61 = vshll.u32 %v9312_v46, 16  ;;  %v853_v63 = vshrl.u32 %v9810_v20, 16 }
  0x38   : > { %630 = vrot.lane.b32.xlu1 %v599_v13, %s9689_s17  ;;  %v857_v0 = vrot.slane %v855_v40, 1  ;;  %v860_v1 = vshll.u32 %v9313_v51, 16  ;;  %v903_v3 = vshll.u32 %v9830_v24, 16  ;;  %v815_v4 = vsel %vm407_vm0, %v810_v50, %v814_v52  ;;  %v9317_v26 = vld [vmem:[%s9731_s16 + $0x80] ss:$0 sps:$4 sm:$0x11]  }
  0x39   : > { %628 = vrot.lane.b32.xlu0 %v587_v16, %s9689_s17  ;;  %v834_v5 = vor.u32 %v833_v54, %v829_v53  ;;  %v838_v6 = vrot.slane %v836_v55, 1  ;;  %v841_v7 = vshrl.u32 %v9815_v21, 16  ;;  %v845_v8 = vrot.slane %v843_v41, 1  ;;  %v9318_v31 = vld [vmem:[%s9731_s16 + $0x74] ss:$0 sps:$4 sm:$0x11]  }
  0x3a   : > { %v877_v9 = vshrl.u32 %v9820_v22, 16  ;;  %v803_v11 = vsel %vm407_vm0, %v798_v58, %v802_v59  ;;  %v822_v12 = vor.u32 %v821_v60, %v817_v57  ;;  %v826_v13 = vrot.slane %v824_v61, 1  ;;  %v9319_v41 = vld [vmem:[%s9731_s16 + $0x98] ss:$0 sps:$4 sm:$0x11]  }
  0x3b   : > { %v848_v14 = vshll.u32 %v9314_v62, 16  ;;  %v862_v16 = vrot.slane %v860_v1, 1  ;;  %v846_v28 = vor.u32 %v845_v8, %v841_v7  ;;  %v872_v29 = vshll.u32 %v9316_v10, 16  ;;  %v9320_v54 = vld [vmem:[%s9731_s16 + $0x8c] ss:$0 sps:$4 sm:$0x11]  }
  0x3c   : > { %714 = vrot.lane.b32.xlu1 %v9293_v15, %s9690_s18  ;;  %v858_v15 = vor.u32 %v857_v0, %v853_v63  ;;  %v827_v32 = vsel %vm407_vm0, %v822_v12, %v826_v13  ;;  %v865_v34 = vshrl.u32 %v9825_v23, 16  ;;  %v869_v36 = vrot.slane %v867_v48, 1  ;;  %v9321_v57 = vld [vmem:[%s9731_s16 + $0xb0] ss:$0 sps:$4 sm:$0x11]  }
  0x3d   : > { %712 = vrot.lane.b32.xlu0 %v9294_v17, %s9690_s18  ;;  %v881_v17 = vrot.slane %v879_v47, 1  ;;  %v850_v33 = vrot.slane %v848_v14, 1  ;;  %v951_v37 = vshll.u32 %v9857_v35, 16  ;;  %v901_v43 = vshrl.u32 %v9830_v24, 16 }
  0x3e   : > { %v863_v38 = vsel %vm407_vm0, %v858_v15, %v862_v16  ;;  %v905_v44 = vrot.slane %v903_v3, 1  ;;  %v908_v45 = vshll.u32 %v9317_v26, 16  ;;  %v889_v46 = vshrl.u32 %v9835_v25, 16  ;;  %v9322_v63 = vld [vmem:[%s9731_s16 + $0xa4] ss:$0 sps:$4 sm:$0x11]  }
  0x3f   : > { %v882_v39 = vor.u32 %v881_v17, %v877_v9  ;;  %v896_v48 = vshll.u32 %v9318_v31, 16  ;;  %v925_v50 = vshrl.u32 %v9840_v27, 16  ;;  %v851_v51 = vsel %vm407_vm0, %v846_v28, %v850_v33  ;;  %v9324_v14 = vld [vmem:[%s9731_s16 + $0xbc] ss:$0 sps:$4 sm:$0x11]  }
  0x40   : > { %718 = vrot.lane.b32.xlu1 %v9801_v18, %s9690_s18  ;;  %v884_v18 = vshll.u32 %v9315_v2, 16  ;;  %v870_v52 = vor.u32 %v869_v36, %v865_v34  ;;  %v975_v55 = vshll.u32 %v9873_v49, 16  ;;  %v906_v59 = vor.u32 %v905_v44, %v901_v43  ;;  %v1525_v26 = vld [vmem:[%s9731_s16 + $0x10] sm:$0xf]  ;;  %v1570_v28 = vld [vmem:[%s9731_s16 + $0xc] sm:$0xe] }
  0x41   : > { %716 = vrot.lane.b32.xlu0 %v9805_v19, %s9690_s18  ;;  %v891_v19 = vshll.u32 %v9835_v25, 16  ;;  %v913_v60 = vshrl.u32 %v9846_v30, 16  ;;  %v898_v62 = vrot.slane %v896_v48, 1  ;;  %v920_v3 = vshll.u32 %v9320_v54, 16  ;;  %v1531_v54 = vld [vmem:[%s9731_s16 + $0x28] sm:$0xf] }
  0x42   : > { %v886_v40 = vrot.slane %v884_v18, 1  ;;  %v949_v7 = vshrl.u32 %v9857_v35, 16  ;;  %v956_v8 = vshll.u32 %v9321_v57, 16  ;;  %v963_v9 = vshll.u32 %v9880_v56, 16 }
  0x43   : > { %v893_v47 = vrot.slane %v891_v19, 1  ;;  %v937_v13 = vshrl.u32 %v9865_v42, 16  ;;  %v922_v17 = vrot.slane %v920_v3, 1  ;;  %v944_v18 = vshll.u32 %v9322_v63, 16 }
  0x44   : > { %722 = vrot.lane.b32.xlu1 %v9810_v20, %s9690_s18  ;;  %v927_v20 = vshll.u32 %v9840_v27, 16  ;;  %v887_v58 = vsel %vm407_vm0, %v882_v39, %v886_v40  ;;  %v961_v31 = vshrl.u32 %v9880_v56, 16  ;;  %v968_v33 = vshll.u32 %v9324_v14, 16  ;;  %v9325_v34 = vld [vmem:[%s9731_s16 + $0x8] ss:$0 sps:$4 sm:$0x11]  }
  0x45   : > { %720 = vrot.lane.b32.xlu0 %v9815_v21, %s9690_s18  ;;  %v915_v21 = vshll.u32 %v9846_v30, 16  ;;  %v894_v61 = vor.u32 %v893_v47, %v889_v46  ;;  %v946_v39 = vrot.slane %v944_v18, 1  ;;  %v1528_v40 = vld [vmem:[%s9731_s16 + $0x1c] sm:$0xf] }
  0x46   : > { %v929_v53 = vrot.slane %v927_v20, 1  ;;  %v9327_v46 = vld [vmem:[%s9731_s16 + $0x14] ss:$0 sps:$4 sm:$0x11]  }
  0x47   : > { %v917_v2 = vrot.slane %v915_v21, 1  ;;  %v899_v12 = vsel %vm407_vm0, %v894_v61, %v898_v62  ;;  %v958_v21 = vrot.slane %v956_v8, 1  ;;  %v9329_v57 = vld [vmem:[%s9731_s16 + $0x20] ss:$0 sps:$4 sm:$0x11]  }
  0x48   : > { %726 = vrot.lane.b32.xlu1 %v9820_v22, %s9690_s18  ;;  %v839_v22 = vsel %vm407_vm0, %v834_v5, %v838_v6  ;;  %v930_v1 = vor.u32 %v929_v53, %v925_v50  ;;  %v1569_v5 = vld [vmem:[%s9731_s16] sm:$0xe]  ;;  %v1833_v50 = vshll.u32 %v9325_v34, 16  ;;  %v1865_v14 = vshrl.u32 %v9329_v57, 16 }
  0x49   : > { %724 = vrot.lane.b32.xlu0 %v9825_v23, %s9690_s18  ;;  %v874_v23 = vrot.slane %v872_v29, 1  ;;  %v918_v16 = vor.u32 %v917_v2, %v913_v60  ;;  %v1573_v2 = vld [vmem:[%s9731_s16 + $0x30] sm:$0xe] }
  0x4b   : > { %v875_v0 = vsel %vm407_vm0, %v870_v52, %v874_v23  ;;  %v970_v23 = vrot.slane %v968_v33, 1 }
  0x4c   : > { %730 = vrot.lane.b32.xlu1 %v9830_v24, %s9690_s18  ;;  %v939_v24 = vshll.u32 %v9865_v42, 16 }
  0x4d   : > { %728 = vrot.lane.b32.xlu0 %v9835_v25, %s9690_s18  ;;  %v932_v25 = vshll.u32 %v9319_v41, 16  ;;  %v1571_v41 = vld [vmem:[%s9731_s16 + $0x18] sm:$0xe] }
  0x4e   : > { %v8171_v53 = vcombine.low %v1571_v41, %v1528_v40  ;;  %v1543_v40 = vld [vmem:[%s9731_s16 + $0x58] sm:$0xf]  ;;  %v1576_v41 = vld [vmem:[%s9731_s16 + $0x54] sm:$0xe] }
  0x4f   : > { %v934_v6 = vrot.slane %v932_v25, 1  ;;  %v1847_v25 = vshll.u32 %v9327_v46, 16 }
  0x50   : > { %734 = vrot.lane.b32.xlu1 %v9840_v27, %s9690_s18  ;;  %v910_v27 = vrot.slane %v908_v45, 1  ;;  %v1856_v62 = vshll.u32 %v8171_v53, 16 }
  0x51   : > { %732 = vrot.lane.b32.xlu0 %v9846_v30, %s9690_s18  ;;  %v953_v30 = vrot.slane %v951_v37, 1  ;;  %v935_v19 = vsel %vm407_vm0, %v930_v1, %v934_v6  ;;  %v923_v37 = vsel %vm407_vm0, %v918_v16, %v922_v17  ;;  %v1534_v1 = vld [vmem:[%s9731_s16 + $0x34] sm:$0xf]  ;;  %v1849_v3 = vrot.slane %v1847_v25, 1 }
  0x52   : > { %v911_v10 = vsel %vm407_vm0, %v906_v59, %v910_v27  ;;  %v1835_v27 = vrot.slane %v1833_v50, 1  ;;  %v1854_v6 = vshrl.u32 %v8171_v53, 16  ;;  %v1858_v8 = vrot.slane %v1856_v62, 1 }
  0x53   : > { %v954_v20 = vor.u32 %v953_v30, %v949_v7  ;;  %v9331_v7 = vld [vmem:[%s9731_s16 + $0x2c] ss:$0 sps:$4 sm:$0x11]  }
  0x54   : > { %738 = vrot.lane.b32.xlu1 %v9857_v35, %s9690_s18  ;;  %v941_v35 = vrot.slane %v939_v24, 1  ;;  %v1572_v24 = vld [vmem:[%s9731_s16 + $0x24] sm:$0xe] }
  0x55   : > { %736 = vrot.lane.b32.xlu0 %v9865_v42, %s9690_s18  ;;  %v977_v42 = vrot.slane %v975_v55, 1  ;;  %v8172_v63 = vcombine.low %v1572_v24, %v1531_v54 }
  0x57   : > { %v1868_v17 = vshrl.u32 %v8172_v63, 16 }
  0x58   : > { %742 = vrot.lane.b32.xlu1 %v9873_v49, %s9690_s18 }
  0x59   : > { %740 = vrot.lane.b32.xlu0 %v9880_v56, %s9690_s18  ;;  %v959_v56 = vsel %vm407_vm0, %v954_v20, %v958_v21  ;;  %v1859_v20 = vor.u32 %v1858_v8, %v1854_v6 }
  0x5c   : > { %986 = vrot.lane.b32.xlu1 %v815_v4, %s9691_s21  ;;  %v1522_v4 = vld [vmem:[%s9731_s16 + $0x4] sm:$0xf] }
  0x5d   : > { %984 = vrot.lane.b32.xlu0 %v803_v11, %s9691_s21  ;;  %v9323_v11 = vld [vmem:[%s9731_s16 + $0xc8] ss:$0 sps:$4 sm:$0x11]   ;;  %v8169_v15 = vcombine.low %v1569_v5, %v1522_v4  ;;  %v1861_v4 = vshll.u32 %v9329_v57, 16 }
  0x5e   : > { %v980_v29 = vshll.u32 %v9323_v11, 16  ;;  %v1537_v11 = vld [vmem:[%s9731_s16 + $0x40] sm:$0xf] }
  0x5f   : > { %v1828_v36 = vshll.u32 %v8169_v15, 16  ;;  %v1826_v47 = vshrl.u32 %v8169_v15, 16  ;;  %v9333_v15 = vld [vmem:[%s9731_s16 + $0x38] ss:$0 sps:$4 sm:$0x11]   ;;  %v1863_v16 = vrot.slane %v1861_v4, 1 }
  0x60   : > { %990 = vrot.lane.b32.xlu1 %v839_v22, %s9691_s21  ;;  %v973_v22 = vshrl.u32 %v9873_v49, 16  ;;  %v8170_v49 = vcombine.low %v1570_v28, %v1525_v26  ;;  %v982_v44 = vrot.slane %v980_v29, 1  ;;  %v1540_v26 = vld [vmem:[%s9731_s16 + $0x4c] sm:$0xf]  ;;  %v1575_v28 = vld [vmem:[%s9731_s16 + $0x48] sm:$0xe] }
  0x61   : > { %988 = vrot.lane.b32.xlu0 %v827_v32, %s9691_s21  ;;  %v965_v32 = vrot.slane %v963_v9, 1  ;;  %v1830_v48 = vrot.slane %v1828_v36, 1  ;;  %v1870_v9 = vshll.u32 %v8172_v63, 16 }
  0x62   : > { %v978_v43 = vor.u32 %v977_v42, %v973_v22  ;;  %v1842_v52 = vshll.u32 %v8170_v49, 16  ;;  %v1840_v60 = vshrl.u32 %v8170_v49, 16  ;;  %v1889_v42 = vshll.u32 %v9333_v15, 16  ;;  %v9337_v49 = vld [vmem:[%s9731_s16 + $0x50] ss:$0 sps:$4 sm:$0x11]  }
  0x63   : > { %v966_v45 = vor.u32 %v965_v32, %v961_v31  ;;  %v1831_v59 = vor.u32 %v1830_v48, %v1826_v47  ;;  %v1872_v21 = vrot.slane %v1870_v9, 1  ;;  %v9335_v32 = vld [vmem:[%s9731_s16 + $0x44] ss:$0 sps:$4 sm:$0x11]  }
  0x64   : > { %994 = vrot.lane.b32.xlu1 %v863_v38, %s9691_s21  ;;  %v942_v38 = vor.u32 %v941_v35, %v937_v13  ;;  %v983_v55 = vsel %vm407_vm0, %v978_v43, %v982_v44  ;;  %v1844_v61 = vrot.slane %v1842_v52, 1  ;;  %v1851_v13 = vshrl.u32 %v9327_v46, 16  ;;  %v8121_v43 = vld [vmem:[%s9731_s16 + $0xc] sm:$0xe] }
  0x65   : > { %992 = vrot.lane.b32.xlu0 %v851_v51, %s9691_s21  ;;  %v1836_v5 = vsel %vm407_vm0, %v1831_v59, %v1835_v27  ;;  %v1875_v35 = vshll.u32 %v9331_v7, 16  ;;  %v1873_v36 = vor.u32 %v1872_v21, %v1868_v17  ;;  %v1891_v44 = vrot.slane %v1889_v42, 1  ;;  %v9998_v59 = vld [vmem:[%s9731_s16 + $0x1c] sm:$0xf]  ;;  %v8122_v27 = vld [vmem:[%s9731_s16 + $0x18] sm:$0xe] }
  0x66   : > { %v947_v51 = vsel %vm407_vm0, %v942_v38, %v946_v39  ;;  %v1845_v30 = vor.u32 %v1844_v61, %v1840_v60  ;;  %v8175_v38 = vcombine.low %v1575_v28, %v1540_v26  ;;  %v1879_v39 = vshrl.u32 %v9331_v7, 16 }
  0x67   : > { %v1877_v29 = vrot.slane %v1875_v35, 1  ;;  %v1893_v52 = vshrl.u32 %v9333_v15, 16  ;;  %v8218_v4 = vcombine.low %v8122_v27, %v9998_v59  ;;  %v10020_v35 = vld [vmem:[%s9731_s16 + $0x20] ss:$0 sps:$4 sm:$0x11]  }
  0x68   : > { %998 = vrot.lane.b32.xlu1 %v887_v58, %s9691_s21  ;;  %v971_v58 = vsel %vm407_vm0, %v966_v45, %v970_v23  ;;  %v1903_v23 = vshll.u32 %v9335_v32, 16  ;;  %v1912_v50 = vshll.u32 %v8175_v38, 16  ;;  %v1910_v61 = vshrl.u32 %v8175_v38, 16  ;;  %v10061_v27 = vld [vmem:[%s9731_s16 + $0x38] ss:$0 sps:$4 sm:$0x11]  }
  0x69   : > { %996 = vrot.lane.b32.xlu0 %v875_v0, %s9691_s21  ;;  %v1837_v0 = vshrl.u32 %v9325_v34, 16  ;;  %v1864_v34 = vsel %vm407_vm0, %v1859_v20, %v1863_v16  ;;  %v1878_v47 = vsel %vm407_vm0, %v1873_v36, %v1877_v29  ;;  %v2370_v17 = vshll.u32 %v8218_v4, 16 }
  0x6a   : > { %v1905_v57 = vrot.slane %v1903_v23, 1  ;;  %v1914_v62 = vrot.slane %v1912_v50, 1  ;;  %v2368_v42 = vshrl.u32 %v8218_v4, 16 }
  0x6b   : > { %v2372_v29 = vrot.slane %v2370_v17, 1 }
  0x6c   : > { %1002 = vrot.lane.b32.xlu1 %v911_v10, %s9691_s21  ;;  %v8173_v10 = vcombine.low %v1573_v2, %v1534_v1 }
  0x6d   : > { %1000 = vrot.lane.b32.xlu0 %v899_v12, %s9691_s21  ;;  %v1574_v12 = vld [vmem:[%s9731_s16 + $0x3c] sm:$0xe] }
  0x6e   : > { %v8174_v18 = vcombine.low %v1574_v12, %v1537_v11  ;;  %v1884_v22 = vshll.u32 %v8173_v10, 16  ;;  %v1882_v31 = vshrl.u32 %v8173_v10, 16  ;;  %v1921_v11 = vshrl.u32 %v9337_v49, 16 }
  0x70   : > { %1006 = vrot.lane.b32.xlu1 %v935_v19, %s9691_s21  ;;  %v1850_v19 = vsel %vm407_vm0, %v1845_v30, %v1849_v3  ;;  %v1898_v33 = vshll.u32 %v8174_v18, 16  ;;  %v1896_v45 = vshrl.u32 %v8174_v18, 16  ;;  %v10006_v3 = vld [vmem:[%s9731_s16 + $0x14] ss:$0 sps:$4 sm:$0x11]   ;;  %v1915_v30 = vor.u32 %v1914_v62, %v1910_v61 }
  0x71   : > { %1004 = vrot.lane.b32.xlu0 %v923_v37, %s9691_s21  ;;  %v1886_v37 = vrot.slane %v1884_v22, 1  ;;  %v2361_v16 = vshll.u32 %v10006_v3, 16 }
  0x72   : > { %v1900_v46 = vrot.slane %v1898_v33, 1  ;;  %v8080_v33 = vld [vmem:[%s9731_s16 + $0x28] sm:$0xf] }
  0x73   : > { %v1887_v48 = vor.u32 %v1886_v37, %v1882_v31  ;;  %v2363_v28 = vrot.slane %v2361_v16, 1  ;;  %v2375_v31 = vshll.u32 %v10020_v35, 16  ;;  %v8076_v37 = vld [vmem:[%s9731_s16 + $0x18] sm:$0xf] }
  0x74   : > { %1010 = vrot.lane.b32.xlu1 %v959_v56, %s9691_s21  ;;  %v9982_v56 = vld [vmem:[%s9731_s16 + $0x10] sm:$0xf]  ;;  %v1901_v25 = vor.u32 %v1900_v46, %v1896_v45  ;;  %v10048_v46 = vld [vmem:[%s9731_s16 + $0x2c] ss:$0 sps:$4 sm:$0x11]  }
  0x75   : > { %1008 = vrot.lane.b32.xlu0 %v947_v51, %s9691_s21  ;;  %v8176_v51 = vcombine.low %v1576_v41, %v1543_v40  ;;  %v8217_v54 = vcombine.low %v8121_v43, %v9982_v56  ;;  %v1892_v60 = vsel %vm407_vm0, %v1887_v48, %v1891_v44  ;;  %v2377_v40 = vrot.slane %v2375_v31, 1  ;;  %v8083_v44 = vld [vmem:[%s9731_s16 + $0x34] sm:$0xf]  ;;  %v8124_v45 = vld [vmem:[%s9731_s16 + $0x30] sm:$0xe] }
  0x76   : > { %v8220_v48 = vcombine.low %v8124_v45, %v8083_v44  ;;  %v2393_v31 = vshrl.u32 %v10048_v46, 16 }
  0x77   : > { %v1926_v63 = vshll.u32 %v8176_v51, 16  ;;  %v2356_v2 = vshll.u32 %v8217_v54, 16  ;;  %v1924_v8 = vshrl.u32 %v8176_v51, 16 }
  0x78   : > { %1014 = vrot.lane.b32.xlu1 %v983_v55, %s9691_s21  ;;  %v9994_v55 = vld [vmem:[%s9731_s16 + $0x5c] ss:$0 sps:$4 sm:$0x11]  }
  0x79   : > { %1012 = vrot.lane.b32.xlu0 %v971_v58, %s9691_s21  ;;  %v1917_v58 = vshll.u32 %v9337_v49, 16  ;;  %v1928_v9 = vrot.slane %v1926_v63, 1  ;;  %v1931_v10 = vshll.u32 %v9994_v55, 16  ;;  %v2358_v15 = vrot.slane %v2356_v2, 1 }
  0x7a   : > { %v2373_v49 = vor.u32 %v2372_v29, %v2368_v42 }
  0x7b   : > { %v1919_v7 = vrot.slane %v1917_v58, 1  ;;  %v1929_v20 = vor.u32 %v1928_v9, %v1924_v8  ;;  %v1933_v21 = vrot.slane %v1931_v10, 1  ;;  %v8125_v8 = vld [vmem:[%s9731_s16 + $0x3c] sm:$0xe]  ;;  %v8082_v10 = vld [vmem:[%s9731_s16 + $0x30] sm:$0xf] }
  0x7c   : > { %2051 = vrot.lane.b32.xlu1 %v1837_v0, %s9689_s17  ;;  %v1907_v0 = vshrl.u32 %v9335_v32, 16  ;;  %v2378_v23 = vsel %vm407_vm0, %v2373_v49, %v2377_v40  ;;  %v8191_v17 = vcombine.low %v8082_v10, %v8083_v44  ;;  %v10103_v49 = vld [vmem:[%s9731_s16 + $0x50] ss:$0 sps:$4 sm:$0x11]  }
  0x7d   : > { %2049 = vrot.lane.b32.xlu0 %v1836_v5, %s9689_s17  ;;  %v1906_v5 = vsel %vm407_vm0, %v1901_v25, %v1905_v57  ;;  %v1920_v18 = vsel %vm407_vm0, %v1915_v30, %v1919_v7  ;;  %v1934_v36 = vsel %vm407_vm0, %v1929_v20, %v1933_v21  ;;  %v2389_v57 = vshll.u32 %v10048_v46, 16  ;;  %v8086_v30 = vld [vmem:[%s9731_s16 + $0x40] sm:$0xf]  ;;  %v9355_v21 = vld [vmem:[%s9731_s16 + $0x44] ss:$0 sps:$4 sm:$0x11]  }
  0x7f   : > { %v2391_v2 = vrot.slane %v2389_v57, 1  ;;  %v8088_v57 = vld [vmem:[%s9731_s16 + $0x48] sm:$0xf] }
  0x80   : > { %2055 = vrot.lane.b32.xlu1 %v1851_v13, %s9689_s17  ;;  %v8073_v13 = vld [vmem:[%s9731_s16 + $0xc] sm:$0xf] }
  0x81   : > { %2053 = vrot.lane.b32.xlu0 %v1850_v19, %s9689_s17  ;;  %v8185_v22 = vcombine.low %v8073_v13, %v9982_v56  ;;  %v8187_v56 = vcombine.low %v8076_v37, %v9998_v59  ;;  %v2398_v59 = vshll.u32 %v8220_v48, 16 }
  0x83   : > { %v2400_v7 = vrot.slane %v2398_v59, 1 }
  0x84   : > { %2059 = vrot.lane.b32.xlu1 %v1865_v14, %s9689_s17  ;;  %v2354_v14 = vshrl.u32 %v8217_v54, 16  ;;  %v8079_v54 = vld [vmem:[%s9731_s16 + $0x24] sm:$0xf] }
  0x85   : > { %2057 = vrot.lane.b32.xlu0 %v1864_v34, %s9689_s17  ;;  %v8123_v34 = vld [vmem:[%s9731_s16 + $0x24] sm:$0xe]  ;;  %v8189_v63 = vcombine.low %v8079_v54, %v8080_v33  ;;  %v8092_v54 = vld [vmem:[%s9731_s16 + $0x58] sm:$0xf] }
  0x86   : > { %v2359_v26 = vor.u32 %v2358_v15, %v2354_v14  ;;  %v8219_v41 = vcombine.low %v8123_v34, %v8080_v33  ;;  %v8221_v15 = vcombine.low %v8125_v8, %v8086_v30  ;;  %v8085_v33 = vld [vmem:[%s9731_s16 + $0x3c] sm:$0xf]  ;;  %v2417_v34 = vshll.u32 %v9355_v21, 16  ;;  %v8095_v8 = vld [vmem:[%s9731_s16 + $0x64] sm:$0xf] }
  0x88   : > { %2063 = vrot.lane.b32.xlu1 %v1879_v39, %s9689_s17  ;;  %v2364_v39 = vsel %vm407_vm0, %v2359_v26, %v2363_v28  ;;  %v2382_v25 = vshrl.u32 %v8219_v41, 16  ;;  %v2412_v26 = vshll.u32 %v8221_v15, 16  ;;  %v2419_v44 = vrot.slane %v2417_v34, 1 }
  0x89   : > { %2061 = vrot.lane.b32.xlu0 %v1878_v47, %s9689_s17  ;;  %v2384_v47 = vshll.u32 %v8219_v41, 16 }
  0x8a   : > { %v2414_v37 = vrot.slane %v2412_v26, 1 }
  0x8b   : > { %v2386_v58 = vrot.slane %v2384_v47, 1 }
  0x8c   : > { %2067 = vrot.lane.b32.xlu1 %v1893_v52, %s9689_s17  ;;  %v2365_v52 = vshrl.u32 %v10006_v3, 16 }
  0x8d   : > { %2065 = vrot.lane.b32.xlu0 %v1892_v60, %s9689_s17  ;;  %v9404_v60 = vld [vmem:[%s14272_s1 + $0x8] sm:$0xff]   ;;  %v2387_v4 = vor.u32 %v2386_v58, %v2382_v25  ;;  %v8127_v25 = vld [vmem:[%s9731_s16 + $0x54] sm:$0xe] }
  0x8e   : > { %v9988_v53 = vpop.permute.xlu1 %604  ;;  %9131 = vmatprep.subr.bf16.mxu1 %v9404_v60 }
  0x8f   : > { %v9991_v24 = vpop.permute.xlu0 %600  ;;  %9132 = vmatpush3.bf16.msra.mxu1 %v9404_v60 }
  0x90   : > { %2071 = vrot.lane.b32.xlu1 %v1907_v0, %s9689_s17  ;;  %v2379_v0 = vshrl.u32 %v10020_v35, 16 }
  0x91   : > { %2069 = vrot.lane.b32.xlu0 %v1906_v5, %s9689_s17  ;;  %v2396_v5 = vshrl.u32 %v8220_v48, 16  ;;  %v2431_v48 = vshll.u32 %v10103_v49, 16 }
  0x92   : > { %v10003_v1 = vpop.permute.xlu1 %606 }
  0x93   : > { %v10011_v6 = vpop.permute.xlu0 %602  ;;  %v2401_v13 = vor.u32 %v2400_v7, %v2396_v5  ;;  %v10132_v5 = vld [vmem:[%s9731_s16 + $0x5c] ss:$0 sps:$4 sm:$0x11]  }
  0x94   : > { %2075 = vrot.lane.b32.xlu1 %v1921_v11, %s9689_s17  ;;  %v2392_v11 = vsel %vm407_vm0, %v2387_v4, %v2391_v2 }
  0x95   : > { %2073 = vrot.lane.b32.xlu0 %v1920_v18, %s9689_s17  ;;  %v8126_v18 = vld [vmem:[%s9731_s16 + $0x48] sm:$0xe] }
  0x96   : > { %v10015_v12 = vpop.permute.xlu1 %610 }
  0x97   : > { %v10024_v19 = vpop.permute.xlu0 %608 }
  0x98   : > { %2241 = vrot.lane.b32.xlu1 %v8185_v22, %s9690_s18 }
  0x99   : > { %2077 = vrot.lane.b32.xlu0 %v1934_v36, %s9689_s17  ;;  %v2410_v36 = vshrl.u32 %v8221_v15, 16  ;;  %v8091_v15 = vld [vmem:[%s9731_s16 + $0x54] sm:$0xf] }
  0x9a   : > { %v10030_v32 = vpop.permute.xlu1 %614 }
  0x9b   : > { %v10037_v38 = vpop.permute.xlu0 %612  ;;  %v2415_v45 = vor.u32 %v2414_v37, %v2410_v36  ;;  %v8094_v36 = vld [vmem:[%s9731_s16 + $0x60] sm:$0xf]  ;;  %v10154_v37 = vld [vmem:[%s9731_s16 + $0x68] ss:$0 sps:$4 sm:$0x11]  }
  0x9c   : > { %2577 = vrot.lane.b32.xlu1 %v2364_v39, %s9691_s21 }
  0x9d   : > { %2245 = vrot.lane.b32.xlu0 %v8187_v56, %s9690_s18  ;;  %v8193_v56 = vcombine.low %v8085_v33, %v8086_v30  ;;  %v2420_v59 = vsel %vm407_vm0, %v2415_v45, %v2419_v44  ;;  %v1546_v45 = vld [vmem:[%s9731_s16 + $0x64] sm:$0xf] }
  0x9e   : > { %v10042_v43 = vpop.permute.xlu1 %618 }
  0x9f   : > { %v10052_v50 = vpop.permute.xlu0 %616 }
  0xa0   : > { %2581 = vrot.lane.b32.xlu1 %v2378_v23, %s9691_s21 }
  0xa1   : > { %2243 = vrot.lane.b32.xlu0 %v10006_v3, %s9690_s18  ;;  %v2403_v3 = vshll.u32 %v10061_v27, 16 }
  0xa2   : > { %v10055_v51 = vpop.permute.xlu1 %622 }
  0xa3   : > { %v10068_v61 = vpop.permute.xlu0 %620  ;;  %v2405_v14 = vrot.slane %v2403_v3, 1 }
  0xa4   : > { %2579 = vrot.lane.b32.xlu1 %v2365_v52, %s9691_s21 }
  0xa5   : > { %2247 = vrot.lane.b32.xlu0 %v10020_v35, %s9690_s18  ;;  %v8089_v35 = vld [vmem:[%s9731_s16 + $0x4c] sm:$0xf]  ;;  %v2406_v22 = vsel %vm407_vm0, %v2401_v13, %v2405_v14  ;;  %v2445_v13 = vshll.u32 %v10132_v5, 16  ;;  %v8128_v14 = vld [vmem:[%s9731_s16 + $0x60] sm:$0xe] }
  0xa6   : > { %v10071_v62 = vpop.permute.xlu1 %626  ;;  %v8222_v28 = vcombine.low %v8126_v18, %v8089_v35 }
  0xa7   : > { %v10079_v9 = vpop.permute.xlu0 %624  ;;  %v2447_v33 = vrot.slane %v2445_v13, 1 }
  0xa8   : > { %2249 = vrot.lane.b32.xlu1 %v8189_v63, %s9690_s18  ;;  %v2426_v39 = vshll.u32 %v8222_v28, 16  ;;  %v2424_v23 = vshrl.u32 %v8222_v28, 16  ;;  %v2433_v63 = vrot.slane %v2431_v48, 1  ;;  %v8197_v28 = vcombine.low %v8091_v15, %v8092_v54 }
  0xa9   : > { %2583 = vrot.lane.b32.xlu0 %v2379_v0, %s9691_s21  ;;  %v8223_v0 = vcombine.low %v8127_v25, %v8092_v54  ;;  %v8199_v54 = vcombine.low %v8094_v36, %v8095_v8 }
  0xaa   : > { %v10085_v16 = vpop.permute.xlu1 %630  ;;  %v2428_v47 = vrot.slane %v2426_v39, 1  ;;  %v1549_v39 = vld [vmem:[%s9731_s16 + $0x70] sm:$0xf] }
  0xab   : > { %v10089_v20 = vpop.permute.xlu0 %628  ;;  %v2440_v3 = vshll.u32 %v8223_v0, 16 }
  0xac   : > { %2585 = vrot.lane.b32.xlu1 %v2392_v11, %s9691_s21  ;;  %v2429_v60 = vor.u32 %v2428_v47, %v2424_v23  ;;  %v2421_v11 = vshrl.u32 %v9355_v21, 16  ;;  %v1577_v47 = vld [vmem:[%s9731_s16 + $0x60] sm:$0xe] }
  0xad   : > { %2253 = vrot.lane.b32.xlu0 %v8191_v17, %s9690_s18  ;;  %v2438_v17 = vshrl.u32 %v8223_v0, 16 }
  0xae   : > { %v10095_v42 = vpop.permute.xlu1 %714  ;;  %v2434_v7 = vsel %vm407_vm0, %v2429_v60, %v2433_v63  ;;  %v10173_v60 = vld [vmem:[%s9731_s16 + $0x74] ss:$0 sps:$4 sm:$0x11]   ;;  %v8177_v63 = vcombine.low %v1577_v47, %v1546_v45  ;;  %v2449_v45 = vshrl.u32 %v10132_v5, 16 }
  0xaf   : > { %v10097_v29 = vpop.permute.xlu0 %712 }
  0xb0   : > { %2589 = vrot.lane.b32.xlu1 %v2406_v22, %s9691_s21  ;;  %v8224_v22 = vcombine.low %v8128_v14, %v8095_v8  ;;  %v10183_v8 = vld [vmem:[%s9731_s16 + $0x70] sm:$0xf] }
  0xb1   : > { %2251 = vrot.lane.b32.xlu0 %v10048_v46, %s9690_s18  ;;  %v2407_v46 = vshrl.u32 %v10061_v27, 16  ;;  %v9572_v14 = vld [vmem:[%s9731_s16 + $0xc] sm:$0xff]  }
  0xb2   : > { %v10107_v40 = vpop.permute.xlu1 %718  ;;  %v2454_v44 = vshll.u32 %v8224_v22, 16  ;;  %v2452_v25 = vshrl.u32 %v8224_v22, 16  ;;  %v1020_v15 = vsel %vm1016_vm1, %v9572_v14, %v10011_v6  ;;  %v2463_v6 = vshrl.u32 %v10154_v37, 16 }
  0xb3   : > { %v10109_v41 = vpop.permute.xlu0 %716  ;;  %v1053_v22 = vsel %vm1049_vm2, %v1020_v15, %v10095_v42  ;;  %v8130_v15 = vld [vmem:[%s9731_s16 + $0x78] sm:$0xe] }
  0xb4   : > { %2587 = vrot.lane.b32.xlu1 %v2393_v31, %s9691_s21  ;;  %v2435_v31 = vshrl.u32 %v10103_v49, 16 }
  0xb5   : > { %2255 = vrot.lane.b32.xlu0 %v10061_v27, %s9690_s18  ;;  %v8195_v27 = vcombine.low %v8088_v57, %v8089_v35  ;;  %v2442_v35 = vrot.slane %v2440_v3, 1  ;;  %v2456_v57 = vrot.slane %v2454_v44, 1 }
  0xb6   : > { %v10115_v52 = vpop.permute.xlu1 %722 }
  0xb7   : > { %v10121_v58 = vpop.permute.xlu0 %720  ;;  %v2443_v34 = vor.u32 %v2442_v35, %v2438_v17  ;;  %v8129_v35 = vld [vmem:[%s9731_s16 + $0x6c] sm:$0xe] }
  0xb8   : > { %2257 = vrot.lane.b32.xlu1 %v8193_v56, %s9690_s18  ;;  %v1578_v56 = vld [vmem:[%s9731_s16 + $0x6c] sm:$0xe]  ;;  %v8225_v44 = vcombine.low %v8129_v35, %v10183_v8  ;;  %v9574_v35 = vld [vmem:[%s9731_s16 + $0x24] sm:$0xff]  }
  0xb9   : > { %2591 = vrot.lane.b32.xlu0 %v2407_v46, %s9691_s21  ;;  %v2448_v48 = vsel %vm407_vm0, %v2443_v34, %v2447_v33  ;;  %v8178_v46 = vcombine.low %v1578_v56, %v1549_v39  ;;  %v1959_v56 = vshll.u32 %v10173_v60, 16 }
  0xba   : > { %v10126_v2 = vpop.permute.xlu1 %726  ;;  %v2468_v14 = vshll.u32 %v8225_v44, 16 }
  0xbb   : > { %v10128_v4 = vpop.permute.xlu0 %724  ;;  %v1954_v3 = vshll.u32 %v8178_v46, 16  ;;  %v1952_v36 = vshrl.u32 %v8178_v46, 16  ;;  %v9573_v46 = vld [vmem:[%s9731_s16 + $0x18] sm:$0xff]  }
  0xbc   : > { %2593 = vrot.lane.b32.xlu1 %v2420_v59, %s9691_s21  ;;  %v2459_v59 = vshll.u32 %v10154_v37, 16 }
  0xbd   : > { %2261 = vrot.lane.b32.xlu0 %v8195_v27, %s9690_s18  ;;  %v10179_v27 = vld [vmem:[%s9731_s16 + $0x68] ss:$0 sps:$4 sm:$0x11]   ;;  %v1956_v42 = vrot.slane %v1954_v3, 1  ;;  %v10221_v3 = vld [vmem:[%s9731_s16 + $0x7c] sm:$0xf] }
  0xbe   : > { %v10136_v30 = vpop.permute.xlu1 %730  ;;  %v1945_v47 = vshll.u32 %v10179_v27, 16 }
  0xbf   : > { %v10139_v10 = vpop.permute.xlu0 %728 }
  0xc0   : > { %2597 = vrot.lane.b32.xlu1 %v2434_v7, %s9691_s21  ;;  %v1935_v7 = vshrl.u32 %v9994_v55, 16  ;;  %v2461_v55 = vrot.slane %v2459_v59, 1 }
  0xc1   : > { %2259 = vrot.lane.b32.xlu0 %v9355_v21, %s9690_s18 }
  0xc2   : > { %v10146_v18 = vpop.permute.xlu1 %734 }
  0xc3   : > { %v10148_v26 = vpop.permute.xlu0 %732 }
  0xc4   : > { %2595 = vrot.lane.b32.xlu1 %v2421_v11, %s9691_s21  ;;  %v9571_v11 = vld [vmem:[%s9731_s16] sm:$0xff]  }
  0xc5   : > { %2263 = vrot.lane.b32.xlu0 %v10103_v49, %s9690_s18  ;;  %v1018_v13 = vsel %vm1016_vm1, %v9571_v11, %v9991_v24 }
  0xc6   : > { %v10159_v21 = vpop.permute.xlu1 %738  ;;  %v1051_v33 = vsel %vm1049_vm2, %v1018_v13, %v10097_v29  ;;  %v1961_v13 = vrot.slane %v1959_v56, 1  ;;  %v8097_v56 = vld [vmem:[%s9731_s16 + $0x6c] sm:$0xf] }
  0xc7   : > { %v10163_v23 = vpop.permute.xlu0 %736 }
  0xc8   : > { %2265 = vrot.lane.b32.xlu1 %v8197_v28, %s9690_s18  ;;  %v2457_v28 = vor.u32 %v2456_v57, %v2452_v25  ;;  %v1938_v57 = vshrl.u32 %v8177_v63, 16 }
  0xc9   : > { %2599 = vrot.lane.b32.xlu0 %v2435_v31, %s9691_s21  ;;  %v1940_v31 = vshll.u32 %v8177_v63, 16 }
  0xca   : > { %v10169_v49 = vpop.permute.xlu1 %742  ;;  %v2462_v25 = vsel %vm407_vm0, %v2457_v28, %v2461_v55 }
  0xcb   : > { %v10175_v0 = vpop.permute.xlu0 %740  ;;  %v1942_v59 = vrot.slane %v1940_v31, 1 }
  0xcc   : > { %2601 = vrot.lane.b32.xlu1 %v2448_v48, %s9691_s21  ;;  %v10209_v48 = vld [vmem:[%s9731_s16 + $0x74] ss:$0 sps:$4 sm:$0x11]  }
  0xcd   : > { %2269 = vrot.lane.b32.xlu0 %v8199_v54, %s9690_s18  ;;  %v1022_v54 = vsel %vm1016_vm1, %v9573_v46, %v9988_v53  ;;  %v1957_v53 = vor.u32 %v1956_v42, %v1952_v36  ;;  %v2473_v31 = vshll.u32 %v10209_v48, 16  ;;  %v2470_v36 = vrot.slane %v2468_v14, 1  ;;  %v1555_v46 = vld [vmem:[%s9731_s16 + $0x88] sm:$0xf] }
  0xce   : > { %v987_v17 = vpop.permute.xlu1 %986 }
  0xcf   : > { %v1086_v24 = vsel %vm1082_vm3, %v1053_v22, %v987_v17  ;;  %v985_v34 = vpop.permute.xlu0 %984  ;;  %v1943_v17 = vor.u32 %v1942_v59, %v1938_v57  ;;  %v1024_v22 = vsel %vm1016_vm1, %v9574_v35, %v10003_v1  ;;  %v2466_v1 = vshrl.u32 %v8225_v44, 16  ;;  %v10252_v44 = vld [vmem:[%s9731_s16 + $0x80] ss:$0 sps:$4 sm:$0x11]  }
  0xd0   : > { %2267 = vrot.lane.b32.xlu1 %v10132_v5, %s9690_s18  ;;  %v1084_v39 = vsel %vm1082_vm3, %v1051_v33, %v985_v34  ;;  %v10236_v33 = vcombine.low %v8130_v15, %v10221_v3  ;;  %v1962_v34 = vsel %vm407_vm0, %v1957_v53, %v1961_v13  ;;  %v8201_v59 = vcombine.low %v8097_v56, %v10183_v8  ;;  %v9577_v8 = vld [vmem:[%s9731_s16 + $0x48] sm:$0xff]  }
  0xd1   : > { %2079 = vrot.lane.b32.xlu0 %v1935_v7, %s9689_s17  ;;  %9099 = vmatprep.mubr.msk.bf16.mxu0 %vm1123_vm4, %v1084_v39  ;;  %v1055_v7 = vsel %vm1049_vm2, %v1022_v54, %v10109_v41  ;;  %v1947_v41 = vrot.slane %v1945_v47, 1  ;;  %v2471_v54 = vor.u32 %v2470_v36, %v2466_v1  ;;  %v2487_v14 = vshll.u32 %v10252_v44, 16  ;;  %v10300_v1 = vld [vmem:[%s9731_s16 + $0x88] sm:$0xf]  ;;  %v9578_v36 = vld [vmem:[%s9731_s16 + $0x54] sm:$0xff]  }
  0xd2   : > { %v991_v29 = vpop.permute.xlu1 %990  ;;  %9100 = vmatmul.mubr.msk.bf16.vlgmr.msra.gmra.mrb[0].mxu0 %vm1123_vm4, %v1086_v24  ;;  %v1057_v24 = vsel %vm1049_vm2, %v1024_v22, %v10107_v40  ;;  %v2482_v47 = vshll.u32 %v10236_v33, 16  ;;  %v2480_v13 = vshrl.u32 %v10236_v33, 16  ;;  %v10293_v33 = vld [vmem:[%s9731_s16 + $0x80] ss:$0 sps:$4 sm:$0x11]  }
  0xd3   : > { %v989_v5 = vpop.permute.xlu0 %988  ;;  %v1090_v39 = vsel %vm1082_vm3, %v1057_v24, %v991_v29  ;;  %v1948_v40 = vsel %vm407_vm0, %v1943_v17, %v1947_v41  ;;  %v1949_v29 = vshrl.u32 %v10179_v27, 16  ;;  %v1552_v17 = vld [vmem:[%s9731_s16 + $0x7c] sm:$0xf]  ;;  %v1579_v41 = vld [vmem:[%s9731_s16 + $0x78] sm:$0xe] }
  0xd4   : > { %2271 = vrot.lane.b32.xlu1 %v10154_v37, %s9690_s18  ;;  %v1088_v11 = vsel %vm1082_vm3, %v1055_v7, %v989_v5  ;;  %v9575_v37 = vld [vmem:[%s9731_s16 + $0x30] sm:$0xff]   ;;  %v1963_v7 = vshrl.u32 %v10173_v60, 16  ;;  %v8100_v5 = vld [vmem:[%s9731_s16 + $0x78] sm:$0xf]  ;;  %v1030_v60 = vsel %vm1016_vm1, %v9577_v8, %v10037_v38  ;;  %v2484_v22 = vrot.slane %v2482_v47, 1 }
  0xd5   : > { %2605 = vrot.lane.b32.xlu0 %v2462_v25, %s9691_s21  ;;  %9103 = vmatprep.mubr.msk.bf16.mxu0 %vm1123_vm4, %v1088_v11  ;;  %v1026_v28 = vsel %vm1016_vm1, %v9575_v37, %v10024_v19  ;;  %v1580_v25 = vld [vmem:[%s9731_s16 + $0x84] sm:$0xe]  ;;  %v9576_v11 = vld [vmem:[%s9731_s16 + $0x3c] sm:$0xff]   ;;  %v1063_v37 = vsel %vm1049_vm2, %v1030_v60, %v10128_v4  ;;  %v8203_v38 = vcombine.low %v8100_v5, %v10221_v3 }
  0xd6   : > { %v995_v63 = vpop.permute.xlu1 %994  ;;  %v1059_v19 = vsel %vm1049_vm2, %v1026_v28, %v10121_v58  ;;  %v1028_v27 = vsel %vm1016_vm1, %v9576_v11, %v10015_v12  ;;  %v8180_v15 = vcombine.low %v1580_v25, %v1555_v46  ;;  %v8179_v24 = vcombine.low %v1579_v41, %v1552_v17  ;;  %v8131_v3 = vld [vmem:[%s9731_s16 + $0x84] sm:$0xe]  ;;  %v8132_v41 = vld [vmem:[%s9731_s16 + $0x90] sm:$0xe] }
  0xd7   : > { %v993_v55 = vpop.permute.xlu0 %992  ;;  %v1061_v35 = vsel %vm1049_vm2, %v1028_v27, %v10115_v52  ;;  %v10290_v52 = vld [vmem:[%s9731_s16 + $0x8c] ss:$0 sps:$4 sm:$0x11]   ;;  %v2485_v56 = vor.u32 %v2484_v22, %v2480_v13  ;;  %v8227_v25 = vcombine.low %v8131_v3, %v10300_v1 }
  0xd8   : > { %2607 = vrot.lane.b32.xlu1 %v2463_v6, %s9691_s21  ;;  %v1092_v42 = vsel %vm1082_vm3, %v1059_v19, %v993_v55  ;;  %v1094_v28 = vsel %vm1082_vm3, %v1061_v35, %v995_v63  ;;  %v2489_v63 = vrot.slane %v2487_v14, 1  ;;  %v1032_v19 = vsel %vm1016_vm1, %v9578_v36, %v10030_v32 }
  0xd9   : > { %2603 = vrot.lane.b32.xlu0 %v2449_v45, %s9691_s21  ;;  %v2475_v45 = vrot.slane %v2473_v31, 1  ;;  %v1966_v46 = vshrl.u32 %v8179_v24, 16  ;;  %v1065_v11 = vsel %vm1049_vm2, %v1032_v19, %v10126_v2  ;;  %v10334_v2 = vld [vmem:[%s9731_s16 + $0x8c] ss:$0 sps:$4 sm:$0x11]  }
  0xda   : > { %v10245_v6 = vpop.permute.xlu1 %998  ;;  %9104 = vmatmul.mubr.msk.bf16.gmra.mrb[4].mxu0 %vm1123_vm4, %v1090_v39  ;;  %v2501_v22 = vshll.u32 %v10334_v2, 16 }
  0xdb   : > { %9107 = vmatprep.mubr.msk.bf16.mxu0 %vm1123_vm4, %v1092_v42  ;;  %v997_v58 = vpop.permute.xlu0 %996  ;;  %v2476_v12 = vsel %vm407_vm0, %v2471_v54, %v2475_v45  ;;  %v2491_v42 = vshrl.u32 %v10252_v44, 16  ;;  %v1968_v45 = vshll.u32 %v8179_v24, 16  ;;  %v1973_v54 = vshll.u32 %v10293_v33, 16 }
  0xdc   : > { %2085 = vrot.lane.b32.xlu1 %v1962_v34, %s9689_s17  ;;  %v1096_v31 = vsel %vm1082_vm3, %v1063_v37, %v997_v58  ;;  %v1982_v34 = vshll.u32 %v8180_v15, 16  ;;  %v1980_v58 = vshrl.u32 %v8180_v15, 16  ;;  %v9580_v37 = vld [vmem:[%s9731_s16 + $0x6c] sm:$0xff]  }
  0xdd   : > { %2081 = vrot.lane.b32.xlu0 %v1948_v40, %s9689_s17  ;;  %v2477_v40 = vshrl.u32 %v10209_v48, 16  ;;  %v1970_v15 = vrot.slane %v1968_v45, 1  ;;  %v1975_v35 = vrot.slane %v1973_v54, 1  ;;  %v10381_v45 = vld [vmem:[%s9731_s16 + $0x98] ss:$0 sps:$4 sm:$0x11]  }
  0xde   : > { %v10261_v57 = vpop.permute.xlu1 %1002  ;;  %v1984_v32 = vrot.slane %v1982_v34, 1 }
  0xdf   : > { %v1001_v53 = vpop.permute.xlu0 %1000  ;;  %v1971_v60 = vor.u32 %v1970_v15, %v1966_v46 }
  0xe0   : > { %2083 = vrot.lane.b32.xlu1 %v1949_v29, %s9689_s17  ;;  %v1987_v29 = vshll.u32 %v10290_v52, 16  ;;  %v1985_v17 = vor.u32 %v1984_v32, %v1980_v58  ;;  %v1561_v32 = vld [vmem:[%s9731_s16 + $0xa0] sm:$0xf] }
  0xe1   : > { %2273 = vrot.lane.b32.xlu0 %v8201_v59, %s9690_s18  ;;  %v9579_v59 = vld [vmem:[%s9731_s16 + $0x60] sm:$0xff]  }
  0xe2   : > { %v10284_v55 = vpop.permute.xlu1 %1006  ;;  %9108 = vmatmul.mubr.msk.bf16.gmra.mrb[8].mxu0 %vm1123_vm4, %v1094_v28  ;;  %v1034_v5 = vsel %vm1016_vm1, %v9579_v59, %v10052_v50  ;;  %v2490_v50 = vsel %vm407_vm0, %v2485_v56, %v2489_v63  ;;  %v9582_v59 = vld [vmem:[%s9731_s16 + $0x84] sm:$0xff]  }
  0xe3   : > { %9111 = vmatprep.mubr.msk.bf16.mxu0 %vm1123_vm4, %v1096_v31  ;;  %v10296_v4 = vpop.permute.xlu0 %1004  ;;  %v1067_v27 = vsel %vm1049_vm2, %v1034_v5, %v10139_v10  ;;  %v9581_v31 = vld [vmem:[%s9731_s16 + $0x78] sm:$0xff]   ;;  %v1040_v5 = vsel %vm1016_vm1, %v9582_v59, %v10055_v51 }
  0xe4   : > { %2609 = vrot.lane.b32.xlu1 %v2476_v12, %s9691_s21  ;;  %v1100_v14 = vsel %vm1082_vm3, %v1067_v27, %v1001_v53  ;;  %v10342_v53 = vld [vmem:[%s9731_s16 + $0x94] sm:$0xf]  ;;  %v2494_v12 = vshrl.u32 %v8227_v25, 16  ;;  %v1038_v24 = vsel %vm1016_vm1, %v9581_v31, %v10068_v61  ;;  %v1581_v27 = vld [vmem:[%s9731_s16 + $0x90] sm:$0xe] }
  0xe5   : > { %2277 = vrot.lane.b32.xlu0 %v8203_v38, %s9690_s18  ;;  %v8228_v38 = vcombine.low %v8132_v41, %v10342_v53  ;;  %v2515_v41 = vshll.u32 %v10381_v45, 16 }
  0xe6   : > { %v10307_v39 = vpop.permute.xlu1 %1010 }
  0xe7   : > { %v10312_v47 = vpop.permute.xlu0 %1008  ;;  %v2508_v56 = vshrl.u32 %v8228_v38, 16 }
  0xe8   : > { %2275 = vrot.lane.b32.xlu1 %v10209_v48, %s9690_s18  ;;  %v1098_v48 = vsel %vm1082_vm3, %v1065_v11, %v10245_v6  ;;  %v1989_v6 = vrot.slane %v1987_v29, 1  ;;  %v8106_v29 = vld [vmem:[%s9731_s16 + $0x90] sm:$0xf] }
  0xe9   : > { %2087 = vrot.lane.b32.xlu0 %v1963_v7, %s9689_s17  ;;  %v2496_v7 = vshll.u32 %v8227_v25, 16  ;;  %v1558_v25 = vld [vmem:[%s9731_s16 + $0x94] sm:$0xf] }
  0xea   : > { %v10328_v13 = vpop.permute.xlu1 %1014  ;;  %9112 = vmatmul.mubr.msk.bf16.gmra.mrb[12].mxu0 %vm1123_vm4, %v1098_v48  ;;  %v1990_v34 = vsel %vm407_vm0, %v1985_v17, %v1989_v6  ;;  %v9583_v48 = vld [vmem:[%s9731_s16 + $0x90] sm:$0xff]  }
  0xeb   : > { %9115 = vmatprep.mubr.msk.bf16.mxu0 %vm1123_vm4, %v1100_v14  ;;  %v10337_v10 = vpop.permute.xlu0 %1012  ;;  %v2498_v3 = vrot.slane %v2496_v7, 1  ;;  %v1042_v14 = vsel %vm1016_vm1, %v9583_v48, %v10079_v9  ;;  %v8207_v9 = vcombine.low %v8106_v29, %v10342_v53 }
  0xec   : > { %2279 = vrot.lane.b32.xlu1 %v10252_v44, %s9690_s18  ;;  %v1036_v44 = vsel %vm1016_vm1, %v9580_v37, %v10042_v43  ;;  %v1071_v43 = vsel %vm1049_vm2, %v1038_v24, %v10148_v26  ;;  %v1977_v26 = vshrl.u32 %v10293_v33, 16  ;;  %v1582_v33 = vld [vmem:[%s9731_s16 + $0x9c] sm:$0xe]  ;;  %v1075_v51 = vsel %vm1049_vm2, %v1042_v14, %v10163_v23 }
  0xed   : > { %2613 = vrot.lane.b32.xlu0 %v2490_v50, %s9691_s21  ;;  %v1069_v63 = vsel %vm1049_vm2, %v1036_v44, %v10136_v30  ;;  %v1104_v61 = vsel %vm1082_vm3, %v1071_v43, %v10296_v4  ;;  %v1976_v30 = vsel %vm407_vm0, %v1971_v60, %v1975_v35  ;;  %v2510_v4 = vshll.u32 %v8228_v38, 16  ;;  %v10420_v60 = vld [vmem:[%s9731_s16 + $0xa4] ss:$0 sps:$4 sm:$0x11]   ;;  %v8133_v37 = vld [vmem:[%s9731_s16 + $0x9c] sm:$0xe] }
  0xee   : > { %v10346_v8 = vpop.permute.xlu1 %2051  ;;  %v1102_v36 = vsel %vm1082_vm3, %v1069_v63, %v10261_v57  ;;  %v2503_v57 = vrot.slane %v2501_v22, 1  ;;  %v2499_v58 = vor.u32 %v2498_v3, %v2494_v12  ;;  %v1073_v50 = vsel %vm1049_vm2, %v1040_v5, %v10146_v18  ;;  %v10423_v35 = vld [vmem:[%s9731_s16 + $0x98] ss:$0 sps:$4 sm:$0x11]   ;;  %v10430_v22 = vld [vmem:[%s9731_s16 + $0xa0] sm:$0xf] }
  0xef   : > { %v10352_v28 = vpop.permute.xlu0 %2049  ;;  %v8182_v15 = vcombine.low %v1582_v33, %v1561_v32  ;;  %v1106_v6 = vsel %vm1082_vm3, %v1073_v50, %v10284_v55  ;;  %v1108_v18 = vsel %vm1082_vm3, %v1075_v51, %v10312_v47  ;;  %v2512_v17 = vrot.slane %v2510_v4, 1  ;;  %v9584_v24 = vld [vmem:[%s9731_s16 + $0x9c] sm:$0xff]   ;;  %v9585_v43 = vld [vmem:[%s9731_s16 + $0xa8] sm:$0xff]   ;;  %v9587_v51 = vld [vmem:[%s9731_s16 + $0x4] sm:$0xf] }
  0xf0   : > { %2615 = vrot.lane.b32.xlu1 %v2491_v42, %s9691_s21  ;;  %v8103_v42 = vld [vmem:[%s9731_s16 + $0x84] sm:$0xf]  ;;  %v8181_v23 = vcombine.low %v1581_v27, %v1558_v25  ;;  %v1991_v12 = vshrl.u32 %v10290_v52, 16  ;;  %v2517_v38 = vrot.slane %v2515_v41, 1  ;;  %v1044_v63 = vsel %vm1016_vm1, %v9584_v24, %v10071_v62  ;;  %v1521_v4 = vld [vmem:[%s9731_s16] sm:$0xf] }
  0xf1   : > { %2611 = vrot.lane.b32.xlu0 %v2477_v40, %s9691_s21  ;;  %v8205_v54 = vcombine.low %v8103_v42, %v10300_v1  ;;  %v2504_v1 = vsel %vm407_vm0, %v2499_v58, %v2503_v57  ;;  %v2010_v53 = vshll.u32 %v8182_v15, 16  ;;  %v2513_v44 = vor.u32 %v2512_v17, %v2508_v56  ;;  %v10448_v62 = vld [vmem:[%s9731_s16 + $0xa4] ss:$0 sps:$4 sm:$0x11]   ;;  %v10470_v33 = vld [vmem:[%s9731_s16 + $0xac] sm:$0xf] }
  0xf2   : > { %v10367_v19 = vpop.permute.xlu1 %2055  ;;  %9116 = vmatmul.mubr.msk.bf16.gmra.mrb[16].mxu0 %vm1123_vm4, %v1102_v36  ;;  %v1996_v31 = vshll.u32 %v8181_v23, 16  ;;  %v2008_v3 = vshrl.u32 %v8182_v15, 16  ;;  %v2015_v52 = vshll.u32 %v10420_v60, 16  ;;  %v1046_v36 = vsel %vm1016_vm1, %v9585_v43, %v10089_v20  ;;  %v8109_v17 = vld [vmem:[%s9731_s16 + $0x9c] sm:$0xf] }
  0xf3   : > { %9119 = vmatprep.mubr.msk.bf16.mxu0 %vm1123_vm4, %v1104_v61  ;;  %v10376_v40 = vpop.permute.xlu0 %2053  ;;  %v1077_v61 = vsel %vm1049_vm2, %v1044_v63, %v10159_v21  ;;  %v1079_v42 = vsel %vm1049_vm2, %v1046_v36, %v10175_v0  ;;  %v2001_v20 = vshll.u32 %v10423_v35, 16  ;;  %v2518_v58 = vsel %vm407_vm0, %v2513_v44, %v2517_v38  ;;  %v10500_v38 = vld [vmem:[%s9731_s16 + $0xb0] ss:$0 sps:$4 sm:$0x11]   ;;  %v1567_v24 = vld [vmem:[%s9731_s16 + $0xb8] sm:$0xf] }
  0xf4   : > { %2093 = vrot.lane.b32.xlu1 %v1990_v34, %s9689_s17  ;;  %v1110_v57 = vsel %vm1082_vm3, %v1077_v61, %v10307_v39  ;;  %v1112_v21 = vsel %vm1082_vm3, %v1079_v42, %v10337_v10  ;;  %v1994_v29 = vshrl.u32 %v8181_v23, 16  ;;  %v1998_v0 = vrot.slane %v1996_v31, 1  ;;  %v8134_v10 = vld [vmem:[%s9731_s16 + $0xa8] sm:$0xe]  ;;  %v1584_v63 = vld [vmem:[%s9731_s16 + $0xb4] sm:$0xe] }
  0xf5   : > { %2089 = vrot.lane.b32.xlu0 %v1976_v30, %s9689_s17  ;;  %v2012_v30 = vrot.slane %v2010_v53, 1  ;;  %v2519_v32 = vshrl.u32 %v10381_v45, 16  ;;  %v2017_v25 = vrot.slane %v2015_v52, 1  ;;  %v2505_v27 = vshrl.u32 %v10334_v2, 16  ;;  %v1524_v53 = vld [vmem:[%s9731_s16 + $0xc] sm:$0xf] }
  0xf6   : > { %v10386_v46 = vpop.permute.xlu1 %2059  ;;  %v1999_v48 = vor.u32 %v1998_v0, %v1994_v29  ;;  %v2003_v14 = vrot.slane %v2001_v20, 1  ;;  %v2529_v50 = vshll.u32 %v10448_v62, 16  ;;  %v8112_v43 = vld [vmem:[%s9731_s16 + $0xa8] sm:$0xf]  ;;  %v8209_v61 = vcombine.low %v8109_v17, %v10430_v22 }
  0xf7   : > { %v10393_v11 = vpop.permute.xlu0 %2057  ;;  %v1583_v20 = vld [vmem:[%s9731_s16 + $0xa8] sm:$0xe]  ;;  %v8184_v29 = vcombine.low %v1584_v63, %v1567_v24 }
  0xf8   : > { %2091 = vrot.lane.b32.xlu1 %v1977_v26, %s9689_s17  ;;  %v8229_v26 = vcombine.low %v8133_v37, %v10430_v22  ;;  %v2004_v37 = vsel %vm407_vm0, %v1999_v48, %v2003_v14  ;;  %v2531_v44 = vrot.slane %v2529_v50, 1  ;;  %v10534_v14 = vld [vmem:[%s9731_s16 + $0xb0] ss:$0 sps:$4 sm:$0x11]  }
  0xf9   : > { %2281 = vrot.lane.b32.xlu0 %v8205_v54, %s9690_s18  ;;  %v2013_v54 = vor.u32 %v2012_v30, %v2008_v3  ;;  %v9588_v30 = vld [vmem:[%s9731_s16 + $0x10] sm:$0xf] }
  0xfa   : > { %v10408_v7 = vpop.permute.xlu1 %2063  ;;  %9120 = vmatmul.mubr.msk.bf16.gmra.mrb[20].mxu0 %vm1123_vm4, %v1106_v6  ;;  %v2524_v59 = vshll.u32 %v8229_v26, 16  ;;  %v8137_v6 = vcombine.low %v1521_v4, %v9587_v51  ;;  %v2522_v41 = vshrl.u32 %v8229_v26, 16  ;;  %v8139_v26 = vcombine.low %v1524_v53, %v9588_v30  ;;  %v9589_v51 = vld [vmem:[%s9731_s16 + $0x8] ss:$0 sps:$4 sm:$0x11]  }
  0xfb   : > { %9123 = vmatprep.mubr.msk.bf16.mxu0 %vm1123_vm4, %v1108_v18  ;;  %v10416_v55 = vpop.permute.xlu0 %2061  ;;  %v2018_v18 = vsel %vm407_vm0, %v2013_v54, %v2017_v25  ;;  %v1527_v25 = vld [vmem:[%s9731_s16 + $0x18] sm:$0xf] }
  0xfc   : > { %2617 = vrot.lane.b32.xlu1 %v2504_v1, %s9691_s21  ;;  %v9586_v1 = vld [vmem:[%s9731_s16 + $0xb4] sm:$0xff]   ;;  %v2526_v23 = vrot.slane %v2524_v59, 1  ;;  %v2643_v3 = vsel %vm1016_vm1, %v8137_v6, %v10352_v28  ;;  %v2543_v28 = vshll.u32 %v10500_v38, 16  ;;  %v2648_v54 = vsel %vm1016_vm1, %v8139_v26, %v10376_v40 }
  0xfd   : > { %2285 = vrot.lane.b32.xlu0 %v8207_v9, %s9690_s18  ;;  %v1048_v15 = vsel %vm1016_vm1, %v9586_v1, %v10085_v16  ;;  %v2019_v59 = vshrl.u32 %v10420_v60, 16  ;;  %v2645_v40 = vsel %vm1016_vm1, %v9589_v51, %v10346_v8  ;;  %v2038_v6 = vshll.u32 %v8184_v29, 16 }
  0xfe   : > { %v10426_v47 = vpop.permute.xlu1 %2067  ;;  %v2527_v52 = vor.u32 %v2526_v23, %v2522_v41 }
  0xff   : > { %v10436_v34 = vpop.permute.xlu0 %2065 }
 0x100   : > { %2283 = vrot.lane.b32.xlu1 %v10334_v2, %s9690_s18  ;;  %v1081_v2 = vsel %vm1049_vm2, %v1048_v15, %v10169_v49  ;;  %v2005_v49 = vshrl.u32 %v10423_v35, 16  ;;  %v2532_v4 = vsel %vm407_vm0, %v2527_v52, %v2531_v44  ;;  %v2547_v15 = vshrl.u32 %v10500_v38, 16 }
 0x101   : > { %2095 = vrot.lane.b32.xlu0 %v1991_v12, %s9689_s17  ;;  %v1114_v16 = vsel %vm1082_vm3, %v1081_v2, %v10328_v13  ;;  %v10544_v2 = vld [vmem:[%s9731_s16 + $0xb8] sm:$0xf] }
 0x102   : > { %v10455_v56 = vpop.permute.xlu1 %2071  ;;  %9124 = vmatmul.mubr.msk.bf16.gmra.mrb[24].mxu0 %vm1123_vm4, %v1110_v57  ;;  %v1564_v57 = vld [vmem:[%s9731_s16 + $0xac] sm:$0xf] }
 0x103   : > { %9127 = vmatprep.mubr.msk.bf16.mxu0 %vm1123_vm4, %v1112_v21  ;;  %v10464_v39 = vpop.permute.xlu0 %2069 }
 0x104   : > { %2287 = vrot.lane.b32.xlu1 %v10381_v45, %s9690_s18  ;;  %v10479_v45 = vcombine.low %v8134_v10, %v10470_v33  ;;  %v10526_v10 = vcombine.low %v1583_v20, %v1564_v57  ;;  %v9591_v57 = vld [vmem:[%s9731_s16 + $0x14] ss:$0 sps:$4 sm:$0x11]  }
 0x105   : > { %2621 = vrot.lane.b32.xlu0 %v2518_v58, %s9691_s21  ;;  %v10522_v58 = vld [vmem:[%s9731_s16 + $0xbc] ss:$0 sps:$4 sm:$0x11]   ;;  %v2650_v20 = vsel %vm1016_vm1, %v9591_v57, %v10367_v19 }
 0x106   : > { %v10474_v5 = vpop.permute.xlu1 %2075  ;;  %v2538_v31 = vshll.u32 %v10479_v45, 16  ;;  %v2024_v23 = vshll.u32 %v10526_v10, 16  ;;  %v2022_v52 = vshrl.u32 %v10526_v10, 16  ;;  %v8435_v57 = vld [vmem:[%s9731_s16 + $0x1c] sm:$0xf] }
 0x107   : > { %v10485_v9 = vpop.permute.xlu0 %2073 }
 0x108   : > { %2623 = vrot.lane.b32.xlu1 %v2519_v32, %s9691_s21  ;;  %v8211_v32 = vcombine.low %v8112_v43, %v10470_v33  ;;  %v2540_v48 = vrot.slane %v2538_v31, 1  ;;  %v2545_v33 = vrot.slane %v2543_v28, 1  ;;  %v2029_v43 = vshll.u32 %v10534_v14, 16 }
 0x109   : > { %2619 = vrot.lane.b32.xlu0 %v2505_v27, %s9691_s21  ;;  %v2536_v27 = vshrl.u32 %v10479_v45, 16  ;;  %v2036_v45 = vshrl.u32 %v8184_v29, 16 }
 0x10a   : > { %v2242_v12 = vpop.permute.xlu1 %2241  ;;  %9128 = vmatmul.mubr.msk.bf16.gmra.mrb[28].mxu0 %vm1123_vm4, %v1114_v16  ;;  %v8135_v16 = vld [vmem:[%s9731_s16 + $0xb4] sm:$0xe] }
 0x10b   : > { %v10503_v13 = vpop.permute.xlu0 %2077  ;;  %v2722_v35 = vsel %vm1049_vm2, %v2643_v3, %v2242_v12  ;;  %v2541_v8 = vor.u32 %v2540_v48, %v2536_v27  ;;  %v2040_v3 = vrot.slane %v2038_v6, 1 }
 0x10c   : > { %2101 = vrot.lane.b32.xlu1 %v2018_v18, %s9689_s17 }
 0x10d   : > { %2097 = vrot.lane.b32.xlu0 %v2004_v37, %s9689_s17  ;;  %v2043_v37 = vshll.u32 %v10522_v58, 16  ;;  %v2041_v19 = vor.u32 %v2040_v3, %v2036_v45  ;;  %v9593_v3 = vld [vmem:[%s9731_s16 + $0x20] ss:$0 sps:$4 sm:$0x11]  }
 0x10e   : > { %v2578_v36 = vpop.permute.xlu1 %2577 }
 0x10f   : > { %v2786_v42 = vsel %vm1082_vm3, %v2722_v35, %v2578_v36  ;;  %v2246_v21 = vpop.permute.xlu0 %2245  ;;  %v8231_v35 = vcombine.low %v8135_v16, %v10544_v2  ;;  %v1530_v36 = vld [vmem:[%s9731_s16 + $0x24] sm:$0xf] }
 0x110   : > { %2099 = vrot.lane.b32.xlu1 %v2005_v49, %s9689_s17  ;;  %v2851_v0 = vshll.u32 %v2786_v42, 16  ;;  %v2726_v50 = vsel %vm1049_vm2, %v2648_v54, %v2246_v21  ;;  %v2849_v53 = vshrl.u32 %v2786_v42, 16  ;;  %v9590_v49 = vld [vmem:[%s9731_s16 + $0x1c] sm:$0xf]  ;;  %v2026_v42 = vrot.slane %v2024_v23, 1 }
 0x111   : > { %2289 = vrot.lane.b32.xlu0 %v8209_v61, %s9690_s18  ;;  %v8141_v44 = vcombine.low %v1527_v25, %v9590_v49  ;;  %v2546_v21 = vsel %vm407_vm0, %v2541_v8, %v2545_v33  ;;  %v10573_v54 = vld [vmem:[%s9731_s16 + $0xbc] ss:$0 sps:$4 sm:$0x11]   ;;  %v2552_v25 = vshll.u32 %v8231_v35, 16  ;;  %v2550_v23 = vshrl.u32 %v8231_v35, 16 }
 0x112   : > { %v2582_v22 = vpop.permute.xlu1 %2581  ;;  %v2853_v18 = vrot.slane %v2851_v0, 1  ;;  %v2027_v51 = vor.u32 %v2026_v42, %v2022_v52  ;;  %v2557_v16 = vshll.u32 %v10573_v54, 16  ;;  %v8115_v49 = vld [vmem:[%s9731_s16 + $0xb4] sm:$0xf]  ;;  %v1533_v52 = vld [vmem:[%s9731_s16 + $0x30] sm:$0xf] }
 0x113   : > { %v2244_v1 = vpop.permute.xlu0 %2243  ;;  %v2790_v60 = vsel %vm1082_vm3, %v2726_v50, %v2582_v22  ;;  %v2045_v22 = vrot.slane %v2043_v37, 1  ;;  %v2533_v50 = vshrl.u32 %v10448_v62, 16  ;;  %v8213_v42 = vcombine.low %v8115_v49, %v10544_v2  ;;  %v9594_v2 = vld [vmem:[%s9731_s16 + $0x34] sm:$0xf] }
 0x114   : > { %2625 = vrot.lane.b32.xlu1 %v2532_v4, %s9691_s21  ;;  %v2724_v17 = vsel %vm1049_vm2, %v2645_v40, %v2244_v1  ;;  %v2861_v31 = vshll.u32 %v2790_v60, 16  ;;  %v2854_v61 = vor.u32 %v2853_v18, %v2849_v53  ;;  %v2031_v40 = vrot.slane %v2029_v43, 1 }
 0x115   : > { %2293 = vrot.lane.b32.xlu0 %v8211_v32, %s9690_s18  ;;  %v2653_v32 = vsel %vm1016_vm1, %v8141_v44, %v10393_v11  ;;  %v9592_v11 = vld [vmem:[%s9731_s16 + $0x28] sm:$0xf] }
 0x116   : > { %v2580_v41 = vpop.permute.xlu1 %2579  ;;  %v2863_v28 = vrot.slane %v2861_v31, 1  ;;  %v8143_v1 = vcombine.low %v1530_v36, %v9592_v11  ;;  %v2032_v37 = vsel %vm407_vm0, %v2027_v51, %v2031_v40  ;;  %v2559_v36 = vrot.slane %v2557_v16, 1  ;;  %v1536_v51 = vld [vmem:[%s9731_s16 + $0x3c] sm:$0xf] }
 0x117   : > { %v2788_v12 = vsel %vm1082_vm3, %v2724_v17, %v2580_v41  ;;  %v2248_v63 = vpop.permute.xlu0 %2247  ;;  %v8136_v17 = vld [vmem:[%s9731_s16 + $0xc0] sm:$0xe]  ;;  %v2046_v41 = vsel %vm407_vm0, %v2041_v19, %v2045_v22  ;;  %v8145_v19 = vcombine.low %v1533_v52, %v9594_v2  ;;  %v2047_v16 = vshrl.u32 %v10522_v58, 16 }
 0x118   : > { %v2855_v24 = vshll.u32 %v2788_v12, 16  ;;  %2291 = vrot.lane.b32.xlu1 %v10448_v62, %s9690_s18  ;;  %v2728_v4 = vsel %vm1049_vm2, %v2650_v20, %v2248_v63  ;;  %v2554_v62 = vrot.slane %v2552_v25, 1  ;;  %v2033_v63 = vshrl.u32 %v10534_v14, 16 }
 0x119   : > { %2103 = vrot.lane.b32.xlu0 %v2019_v59, %s9689_s17  ;;  %v2859_v59 = vshrl.u32 %v2790_v60, 16  ;;  %v10582_v60 = vld [vmem:[%s9731_s16 + $0xc4] sm:$0xf] }
 0x11a   : > { %v2857_v30 = vrot.slane %v2855_v24, 1  ;;  %v2250_v26 = vpop.permute.xlu1 %2249  ;;  %v10595_v44 = vcombine.low %v8136_v17, %v10582_v60  ;;  %v2555_v35 = vor.u32 %v2554_v62, %v2550_v23  ;;  %v10640_v23 = vld [vmem:[%s9731_s16 + $0x20] ss:$0 sps:$4 sm:$0x11]  }
 0x11b   : > { %v2584_v29 = vpop.permute.xlu0 %2583  ;;  %v2730_v27 = vsel %vm1049_vm2, %v2653_v32, %v2250_v26  ;;  %v2864_v45 = vor.u32 %v2863_v28, %v2859_v59 }
 0x11c   : > { %2295 = vrot.lane.b32.xlu1 %v10500_v38, %s9690_s18  ;;  %v2858_v0 = vsel %vm407_vm0, %v2854_v61, %v2857_v30  ;;  %v2792_v10 = vsel %vm1082_vm3, %v2728_v4, %v2584_v29  ;;  %v8118_v61 = vld [vmem:[%s9731_s16 + $0xc0] sm:$0xf]  ;;  %v2566_v28 = vshll.u32 %v10595_v44, 16  ;;  %v8432_v4 = vld [vmem:[%s9731_s16 + $0x10] sm:$0xf]  ;;  %v2560_v25 = vsel %vm407_vm0, %v2555_v35, %v2559_v36 }
 0x11d   : > { %9133 = vmatprep.mubr.msk.bf16.mxu1 %vm1123_vm4, %v2858_v0  ;;  %v2865_v38 = vshll.u32 %v2792_v10, 16  ;;  %2629 = vrot.lane.b32.xlu0 %v2546_v21, %s9691_s21  ;;  %v10615_v21 = vld [vmem:[%s9731_s16 + $0xc8] ss:$0 sps:$4 sm:$0x11]   ;;  %v8479_v10 = vld [vmem:[%s9731_s16 + $0xc] sm:$0xe] }
 0x11e   : > { %v2586_v48 = vpop.permute.xlu1 %2585  ;;  %v2564_v11 = vshrl.u32 %v10595_v44, 16  ;;  %v2568_v40 = vrot.slane %v2566_v28, 1  ;;  %v2575_v2 = vshrl.u32 %v10615_v21, 16 }
 0x11f   : > { %v2794_v33 = vsel %vm1082_vm3, %v2730_v27, %v2586_v48  ;;  %v2867_v6 = vrot.slane %v2865_v38, 1  ;;  %v2254_v18 = vpop.permute.xlu0 %2253 }
 0x120   : > { %2631 = vrot.lane.b32.xlu1 %v2547_v15, %s9691_s21  ;;  %v2871_v53 = vshll.u32 %v2794_v33, 16  ;;  %v2658_v15 = vsel %vm1016_vm1, %v8143_v1, %v10416_v55  ;;  %v2655_v55 = vsel %vm1016_vm1, %v9593_v3, %v10386_v46  ;;  %v8480_v46 = vld [vmem:[%s9731_s16 + $0x18] sm:$0xe]  ;;  %v2869_v29 = vshrl.u32 %v2794_v33, 16 }
 0x121   : > { %2627 = vrot.lane.b32.xlu0 %v2533_v50, %s9691_s21  ;;  %v2868_v12 = vsel %vm407_vm0, %v2864_v45, %v2867_v6  ;;  %v2734_v31 = vsel %vm1049_vm2, %v2658_v15, %v2254_v18  ;;  %v10624_v59 = vcombine.low %v8480_v46, %v8435_v57  ;;  %v8215_v50 = vcombine.low %v8118_v61, %v10582_v60  ;;  %v9595_v1 = vld [vmem:[%s9731_s16 + $0x2c] ss:$0 sps:$4 sm:$0x11]  }
 0x122   : > { %v2590_v8 = vpop.permute.xlu1 %2589  ;;  %9134 = vmatmul.mubr.msk.bf16.vlgmr.msra.gmra.mrb[0].mxu1 %vm1123_vm4, %v2868_v12  ;;  %v2873_v30 = vrot.slane %v2871_v53, 1  ;;  %v2660_v33 = vsel %vm1016_vm1, %v9595_v1, %v10408_v7  ;;  %v2571_v45 = vshll.u32 %v10615_v21, 16  ;;  %v10634_v6 = vcombine.low %v8479_v10, %v8432_v4  ;;  %v10649_v12 = vld [vmem:[%s9731_s16 + $0x14] ss:$0 sps:$4 sm:$0x11]  }
 0x123   : > { %v2252_v24 = vpop.permute.xlu0 %2251  ;;  %v10605_v43 = vsel %vm1082_vm3, %v2734_v31, %v2590_v8  ;;  %v2663_v7 = vsel %vm1016_vm1, %v8145_v19, %v10436_v34  ;;  %v5089_v53 = vshll.u32 %v10624_v59, 16  ;;  %v9596_v8 = vld [vmem:[%s9731_s16 + $0x40] sm:$0xf]  ;;  %v10656_v31 = vld [vmem:[%s9731_s16 + $0x1c] sm:$0xf]  ;;  %v2569_v58 = vor.u32 %v2568_v40, %v2564_v11 }
 0x124   : > { %2109 = vrot.lane.b32.xlu1 %v2046_v41, %s9689_s17  ;;  %v2732_v26 = vsel %vm1049_vm2, %v2655_v55, %v2252_v24  ;;  %v2881_v0 = vshll.u32 %v10605_v43, 16  ;;  %v2874_v27 = vor.u32 %v2873_v30, %v2869_v29  ;;  %v8147_v15 = vcombine.low %v1536_v51, %v9596_v8  ;;  %v8543_v24 = vld [vmem:[%s9731_s16 + $0x18] sm:$0xe]  ;;  %v9597_v19 = vld [vmem:[%s9731_s16 + $0x38] ss:$0 sps:$4 sm:$0x11]  }
 0x125   : > { %2105 = vrot.lane.b32.xlu0 %v2032_v37, %s9689_s17  ;;  %v2879_v37 = vshrl.u32 %v10605_v43, 16  ;;  %v2573_v3 = vrot.slane %v2571_v45, 1  ;;  %v5075_v55 = vshll.u32 %v10634_v6, 16  ;;  %v5094_v43 = vshll.u32 %v10640_v23, 16 }
 0x126   : > { %v2588_v14 = vpop.permute.xlu1 %2587  ;;  %v2883_v18 = vrot.slane %v2881_v0, 1  ;;  %v5087_v61 = vshrl.u32 %v10624_v59, 16  ;;  %v5091_v30 = vrot.slane %v5089_v53, 1  ;;  %v5080_v46 = vshll.u32 %v10649_v12, 16  ;;  %v10677_v0 = vld [vmem:[%s9731_s16 + $0x28] sm:$0xf] }
 0x127   : > { %v2796_v20 = vsel %vm1082_vm3, %v2732_v26, %v2588_v14  ;;  %v2256_v32 = vpop.permute.xlu0 %2255  ;;  %v10666_v26 = vcombine.low %v8543_v24, %v10656_v31  ;;  %v2574_v28 = vsel %vm407_vm0, %v2569_v58, %v2573_v3  ;;  %v5073_v4 = vshrl.u32 %v10634_v6, 16  ;;  %v1539_v58 = vld [vmem:[%s9731_s16 + $0x48] sm:$0xf] }
 0x128   : > { %v2875_v22 = vshll.u32 %v2796_v20, 16  ;;  %2107 = vrot.lane.b32.xlu1 %v2033_v63, %s9689_s17  ;;  %v2736_v17 = vsel %vm1049_vm2, %v2660_v33, %v2256_v32  ;;  %v2884_v52 = vor.u32 %v2883_v18, %v2879_v37  ;;  %v2668_v20 = vsel %vm1016_vm1, %v8147_v15, %v10464_v39  ;;  %v10706_v15 = vld [vmem:[%s9731_s16 + $0x2c] ss:$0 sps:$4 sm:$0x11]  }
 0x129   : > { %2297 = vrot.lane.b32.xlu0 %v8213_v42, %s9690_s18  ;;  %v5077_v29 = vrot.slane %v5075_v55, 1  ;;  %v5096_v39 = vrot.slane %v5094_v43, 1  ;;  %v5082_v40 = vrot.slane %v5080_v46, 1  ;;  %v5084_v24 = vshrl.u32 %v10649_v12, 16 }
 0x12a   : > { %v2877_v38 = vrot.slane %v2875_v22, 1  ;;  %v2258_v48 = vpop.permute.xlu1 %2257  ;;  %v8544_v22 = vld [vmem:[%s9731_s16 + $0x24] sm:$0xe]  ;;  %v5622_v46 = vshll.u32 %v10706_v15, 16 }
 0x12b   : > { %v2592_v41 = vpop.permute.xlu0 %2591  ;;  %v2738_v49 = vsel %vm1049_vm2, %v2663_v7, %v2258_v48  ;;  %v5603_v48 = vshll.u32 %v10666_v26, 16  ;;  %v10696_v33 = vcombine.low %v8544_v22, %v10677_v0  ;;  %v5078_v51 = vor.u32 %v5077_v29, %v5073_v4  ;;  %v8498_v4 = vld [vmem:[%s9731_s16 + $0x24] sm:$0xf]  ;;  %v9428_v29 = vld [vmem:[%s9731_s16 + $0x14] ss:$0 sps:$4 sm:$0x11]  }
 0x12c   : > { %2633 = vrot.lane.b32.xlu1 %v2560_v25, %s9691_s21  ;;  %v2878_v60 = vsel %vm407_vm0, %v2874_v27, %v2877_v38  ;;  %v2800_v62 = vsel %vm1082_vm3, %v2736_v17, %v2592_v41  ;;  %v2665_v25 = vsel %vm1016_vm1, %v9597_v19, %v10426_v47  ;;  %v5092_v27 = vor.u32 %v5091_v30, %v5087_v61  ;;  %v10689_v38 = vld [vmem:[%s9731_s16 + $0x20] ss:$0 sps:$4 sm:$0x11]  }
 0x12d   : > { %9137 = vmatprep.mubr.msk.bf16.mxu1 %vm1123_vm4, %v2878_v60  ;;  %v2885_v44 = vshll.u32 %v2800_v62, 16  ;;  %2301 = vrot.lane.b32.xlu0 %v8215_v50, %s9690_s18  ;;  %v5601_v60 = vshrl.u32 %v10666_v26, 16  ;;  %v5605_v7 = vrot.slane %v5603_v48, 1  ;;  %v5608_v62 = vshll.u32 %v10689_v38, 16  ;;  %v1542_v26 = vld [vmem:[%s9731_s16 + $0x54] sm:$0xf] }
 0x12e   : > { %v2594_v34 = vpop.permute.xlu1 %2593  ;;  %v5097_v41 = vsel %vm407_vm0, %v5092_v27, %v5096_v39  ;;  %v5617_v37 = vshll.u32 %v10696_v33, 16  ;;  %v5615_v30 = vshrl.u32 %v10696_v33, 16  ;;  %v9430_v39 = vld [vmem:[%s9731_s16 + $0x20] ss:$0 sps:$4 sm:$0x11]  }
 0x12f   : > { %v2802_v63 = vsel %vm1082_vm3, %v2738_v49, %v2594_v34  ;;  %v2887_v35 = vrot.slane %v2885_v44, 1  ;;  %v2262_v36 = vpop.permute.xlu0 %2261  ;;  %v9598_v49 = vld [vmem:[%s9731_s16 + $0x44] ss:$0 sps:$4 sm:$0x11]   ;;  %v5083_v34 = vsel %vm407_vm0, %v5078_v51, %v5082_v40  ;;  %v5606_v12 = vor.u32 %v5605_v7, %v5601_v60 }
 0x130   : > { %2299 = vrot.lane.b32.xlu1 %v10573_v54, %s9690_s18  ;;  %v2891_v14 = vshll.u32 %v2802_v63, 16  ;;  %v2742_v32 = vsel %vm1049_vm2, %v2668_v20, %v2262_v36  ;;  %v2889_v45 = vshrl.u32 %v2802_v63, 16  ;;  %v2670_v44 = vsel %vm1016_vm1, %v9598_v49, %v10455_v56  ;;  %v9427_v63 = vld [vmem:[%s9731_s16 + $0xc] sm:$0xff]   ;;  %v9429_v56 = vld [vmem:[%s9731_s16 + $0x18] sm:$0xff]   ;;  %v8441_v49 = vld [vmem:[%s9731_s16 + $0x34] sm:$0xf] }
 0x131   : > { %2111 = vrot.lane.b32.xlu0 %v2047_v16, %s9689_s17  ;;  %v2888_v42 = vsel %vm407_vm0, %v2884_v52, %v2887_v35  ;;  %v5610_v61 = vrot.slane %v5608_v62, 1  ;;  %v9599_v20 = vld [vmem:[%s9731_s16 + $0x4c] sm:$0xf]  ;;  %v3660_v22 = vshll.u32 %v9427_v63, 16  ;;  %v3672_v19 = vshll.u32 %v9429_v56, 16  ;;  %v10752_v62 = vld [vmem:[%s9731_s16 + $0x18] sm:$0xff]  }
 0x132   : > { %v2598_v57 = vpop.permute.xlu1 %2597  ;;  %9138 = vmatmul.mubr.msk.bf16.gmra.mrb[4].mxu1 %vm1123_vm4, %v2888_v42  ;;  %v2893_v50 = vrot.slane %v2891_v14, 1  ;;  %v3665_v40 = vshll.u32 %v9428_v29, 16  ;;  %v5098_v60 = vshrl.u32 %v10640_v23, 16  ;;  %v9495_v29 = vld [vmem:[%s14272_s1 + $0x18] sm:$0xff]  }
 0x133   : > { %v2260_v10 = vpop.permute.xlu0 %2259  ;;  %v2806_v59 = vsel %vm1082_vm3, %v2742_v32, %v2598_v57  ;;  %v5611_v27 = vsel %vm407_vm0, %v5606_v12, %v5610_v61  ;;  %v3662_v51 = vrot.slane %v3660_v22, 1  ;;  %9199 = vmatprep.subr.bf16.mxu1 %v9495_v29 }
 0x134   : > { %2303 = vrot.lane.b32.xlu1 %v10615_v21, %s9690_s18  ;;  %v2740_v11 = vsel %vm1049_vm2, %v2665_v25, %v2260_v10  ;;  %v2561_v21 = vshrl.u32 %v10573_v54, 16  ;;  %v2901_v6 = vshll.u32 %v2806_v59, 16  ;;  %v8495_v54 = vld [vmem:[%s9731_s16 + $0x18] sm:$0xf]  ;;  %v2894_v16 = vor.u32 %v2893_v50, %v2889_v45  ;;  %9200 = vmatpush3.bf16.msra.mxu1 %v9495_v29  ;;  %v1548_v29 = vld [vmem:[%s9731_s16 + $0x6c] sm:$0xf] }
 0x135   : > { %2637 = vrot.lane.b32.xlu0 %v2574_v28, %s9691_s21  ;;  %v8607_v36 = vcombine.low %v8495_v54, %v10656_v31  ;;  %v2899_v14 = vshrl.u32 %v2806_v59, 16  ;;  %v5619_v31 = vrot.slane %v5617_v37, 1  ;;  %v8149_v28 = vcombine.low %v1539_v58, %v9599_v20  ;;  %v9600_v25 = vld [vmem:[%s9731_s16 + $0x58] sm:$0xf] }
 0x136   : > { %v2596_v1 = vpop.permute.xlu1 %2595  ;;  %v2903_v3 = vrot.slane %v2901_v6, 1  ;;  %v8151_v59 = vcombine.low %v1542_v26, %v9600_v25  ;;  %v5612_v37 = vshrl.u32 %v10689_v38, 16 }
 0x137   : > { %v2804_v47 = vsel %vm1082_vm3, %v2740_v11, %v2596_v1  ;;  %v2264_v17 = vpop.permute.xlu0 %2263  ;;  %v8609_v11 = vcombine.low %v8498_v4, %v10677_v0  ;;  %v5620_v1 = vor.u32 %v5619_v31, %v5615_v30  ;;  %v2673_v33 = vsel %vm1016_vm1, %v8149_v28, %v10485_v9  ;;  %v10746_v9 = vld [vmem:[%s9731_s16 + $0x24] sm:$0xff]   ;;  %v10773_v30 = vld [vmem:[%s9731_s16 + $0x2c] ss:$0 sps:$4 sm:$0x11]   ;;  %v10786_v28 = vld [vmem:[%s9731_s16 + $0x34] sm:$0xf] }
 0x138   : > { %v2895_v18 = vshll.u32 %v2804_v47, 16  ;;  %2639 = vrot.lane.b32.xlu1 %v2575_v2, %s9691_s21  ;;  %v2744_v55 = vsel %vm1049_vm2, %v2670_v44, %v2264_v17  ;;  %v2904_v32 = vor.u32 %v2903_v3, %v2899_v14  ;;  %v3658_v47 = vshrl.u32 %v9427_v63, 16  ;;  %v8482_v44 = vld [vmem:[%s9731_s16 + $0x30] sm:$0xe]  ;;  %v8438_v3 = vld [vmem:[%s9731_s16 + $0x28] sm:$0xf] }
 0x139   : > { %2635 = vrot.lane.b32.xlu0 %v2561_v21, %s9691_s21  ;;  %v5624_v21 = vrot.slane %v5622_v46, 1  ;;  %v3674_v0 = vrot.slane %v3672_v19, 1  ;;  %v3677_v17 = vshll.u32 %v9430_v39, 16  ;;  %v4054_v26 = vshrl.u32 %v10746_v9, 16  ;;  %v8545_v4 = vld [vmem:[%s9731_s16 + $0x30] sm:$0xe] }
 0x13a   : > { %v2897_v53 = vrot.slane %v2895_v18, 1  ;;  %v2266_v8 = vpop.permute.xlu1 %2265  ;;  %v3670_v18 = vshrl.u32 %v9429_v56, 16  ;;  %v4056_v56 = vshll.u32 %v10746_v9, 16  ;;  %v4044_v14 = vshll.u32 %v10752_v62, 16 }
 0x13b   : > { %v2600_v52 = vpop.permute.xlu0 %2599  ;;  %v2746_v45 = vsel %vm1049_vm2, %v2673_v33, %v2266_v8  ;;  %v5625_v7 = vsel %vm407_vm0, %v5620_v1, %v5624_v21  ;;  %v3667_v8 = vrot.slane %v3665_v40, 1  ;;  %v3679_v58 = vrot.slane %v3677_v17, 1  ;;  %v9434_v39 = vld [vmem:[%s9731_s16 + $0x20] ss:$0 sps:$4 sm:$0x11]   ;;  %v9500_v17 = vld [vmem:[%s14272_s1 + $0x10] sm:$0xff]  }
 0x13c   : > { %5300 = vrot.lane.b32.xlu1 %v5097_v41, %s9689_s17  ;;  %v2898_v35 = vsel %vm407_vm0, %v2894_v16, %v2897_v53  ;;  %v2808_v43 = vsel %vm1082_vm3, %v2744_v55, %v2600_v52  ;;  %v2678_v16 = vsel %vm1016_vm1, %v8151_v59, %v10503_v13  ;;  %v3663_v53 = vor.u32 %v3662_v51, %v3658_v47  ;;  %v8481_v13 = vld [vmem:[%s9731_s16 + $0x24] sm:$0xe]  ;;  %v9601_v55 = vld [vmem:[%s9731_s16 + $0x5c] ss:$0 sps:$4 sm:$0x11]  }
 0x13d   : > { %9141 = vmatprep.mubr.msk.bf16.mxu1 %vm1123_vm4, %v2898_v35  ;;  %v2905_v42 = vshll.u32 %v2808_v43, 16  ;;  %5296 = vrot.lane.b32.xlu0 %v5083_v34, %s9689_s17  ;;  %v3675_v63 = vor.u32 %v3674_v0, %v3670_v18  ;;  %v10781_v46 = vcombine.low %v8482_v44, %v8441_v49  ;;  %v10783_v20 = vcombine.low %v8481_v13, %v8438_v3  ;;  %v10807_v47 = vld [vmem:[%s9731_s16 + $0x38] ss:$0 sps:$4 sm:$0x11]  }
 0x13e   : > { %v2602_v57 = vpop.permute.xlu1 %2601  ;;  %v3668_v59 = vsel %vm407_vm0, %v3663_v53, %v3667_v8  ;;  %v10810_v51 = vcombine.low %v8545_v4, %v10786_v28  ;;  %v10815_v18 = vld [vmem:[%s9731_s16 + $0x2c] ss:$0 sps:$4 sm:$0x11]   ;;  %v1545_v53 = vld [vmem:[%s9731_s16 + $0x60] sm:$0xf]  ;;  %v4042_v49 = vshrl.u32 %v10752_v62, 16  ;;  %9165 = vmatprep.subr.bf16.mxu0 %v9500_v17 }
 0x13f   : > { %v2907_v10 = vrot.slane %v2905_v42, 1  ;;  %v2270_v2 = vpop.permute.xlu0 %2269  ;;  %v10743_v41 = vsel %vm1082_vm3, %v2746_v45, %v2602_v57  ;;  %v9602_v42 = vld [vmem:[%s9731_s16 + $0x50] ss:$0 sps:$4 sm:$0x11]   ;;  %v3680_v45 = vsel %vm407_vm0, %v3675_v63, %v3679_v58  ;;  %v5103_v0 = vshll.u32 %v10783_v20, 16  ;;  %9166 = vmatpush3.bf16.msra.mxu0 %v9500_v17 }
 0x140   : > { %5298 = vrot.lane.b32.xlu1 %v5084_v24, %s9689_s17  ;;  %v2911_v34 = vshll.u32 %v10743_v41, 16  ;;  %v2750_v24 = vsel %vm1049_vm2, %v2678_v16, %v2270_v2  ;;  %v2675_v57 = vsel %vm1016_vm1, %v9602_v42, %v10474_v5  ;;  %v4046_v44 = vrot.slane %v4044_v14, 1  ;;  %v10840_v3 = vld [vmem:[%s9731_s16 + $0x38] ss:$0 sps:$4 sm:$0x11]  }
 0x141   : > { %5488 = vrot.lane.b32.xlu0 %v8607_v36, %s9690_s18  ;;  %v2908_v48 = vsel %vm407_vm0, %v2904_v32, %v2907_v10  ;;  %v5626_v36 = vshrl.u32 %v10706_v15, 16  ;;  %v5115_v63 = vshrl.u32 %v10781_v46, 16  ;;  %v5122_v58 = vshll.u32 %v10807_v47, 16  ;;  %v10895_v17 = vld [vmem:[%s9731_s16 + $0x2c] ss:$0 sps:$4 sm:$0x11]  }
 0x142   : > { %v2268_v50 = vpop.permute.xlu1 %2267  ;;  %9142 = vmatmul.mubr.msk.bf16.gmra.mrb[8].mxu1 %vm1123_vm4, %v2908_v48  ;;  %v2913_v22 = vrot.slane %v2911_v34, 1  ;;  %v10799_v48 = vld [vmem:[%s9731_s16 + $0x40] sm:$0xf]  ;;  %v4049_v34 = vshll.u32 %v9434_v39, 16  ;;  %v5631_v13 = vshll.u32 %v10810_v51, 16  ;;  %v4047_v42 = vor.u32 %v4046_v44, %v4042_v49 }
 0x143   : > { %v2080_v6 = vpop.permute.xlu0 %2079  ;;  %v2748_v32 = vsel %vm1049_vm2, %v2675_v57, %v2268_v50  ;;  %v2909_v50 = vshrl.u32 %v10743_v41, 16  ;;  %v5636_v4 = vshll.u32 %v10840_v3, 16  ;;  %v10907_v44 = vld [vmem:[%s9731_s16 + $0x7c] sm:$0xf] }
 0x144   : > { %5824 = vrot.lane.b32.xlu1 %v5611_v27, %s9691_s21  ;;  %v2680_v52 = vsel %vm1016_vm1, %v9601_v55, %v2080_v6  ;;  %v4058_v27 = vrot.slane %v4056_v56, 1  ;;  %v5117_v6 = vshll.u32 %v10781_v46, 16  ;;  %v10849_v56 = vld [vmem:[%s9731_s16 + $0x44] ss:$0 sps:$4 sm:$0x11]   ;;  %v5629_v46 = vshrl.u32 %v10810_v51, 16 }
 0x145   : > { %5492 = vrot.lane.b32.xlu0 %v8609_v11, %s9690_s18  ;;  %v8546_v11 = vld [vmem:[%s9731_s16 + $0x3c] sm:$0xe]  ;;  %v2914_v41 = vor.u32 %v2913_v22, %v2909_v50  ;;  %v5650_v39 = vshll.u32 %v10849_v56, 16 }
 0x146   : > { %v2272_v54 = vpop.permute.xlu1 %2271  ;;  %v10826_v16 = vcombine.low %v8546_v11, %v10799_v48  ;;  %v5119_v55 = vrot.slane %v5117_v6, 1 }
 0x147   : > { %v2606_v23 = vpop.permute.xlu0 %2605  ;;  %v2752_v43 = vsel %vm1049_vm2, %v2680_v52, %v2272_v54  ;;  %v5108_v52 = vshll.u32 %v10815_v18, 16 }
 0x148   : > { %5490 = vrot.lane.b32.xlu1 %v10689_v38, %s9690_s18  ;;  %v2814_v35 = vsel %vm1082_vm3, %v2750_v24, %v2606_v23  ;;  %v5101_v38 = vshrl.u32 %v10783_v20, 16  ;;  %v5633_v20 = vrot.slane %v5631_v13, 1  ;;  %v5120_v22 = vor.u32 %v5119_v55, %v5115_v63 }
 0x149   : > { %v2921_v12 = vshll.u32 %v2814_v35, 16  ;;  %5302 = vrot.lane.b32.xlu0 %v5098_v60, %s9689_s17  ;;  %v2919_v19 = vshrl.u32 %v2814_v35, 16 }
 0x14a   : > { %v2608_v61 = vpop.permute.xlu1 %2607  ;;  %v5634_v51 = vor.u32 %v5633_v20, %v5629_v46  ;;  %v8444_v20 = vld [vmem:[%s9731_s16 + $0x40] sm:$0xf] }
 0x14b   : > { %v2816_v31 = vsel %vm1082_vm3, %v2752_v43, %v2608_v61  ;;  %v2923_v10 = vrot.slane %v2921_v12, 1  ;;  %v2604_v2 = vpop.permute.xlu0 %2603  ;;  %v5645_v43 = vshll.u32 %v10826_v16, 16  ;;  %v9603_v12 = vld [vmem:[%s9731_s16 + $0x64] sm:$0xf] }
 0x14c   : > { %v2925_v5 = vshll.u32 %v2816_v31, 16  ;;  %5494 = vrot.lane.b32.xlu1 %v10706_v15, %s9690_s18  ;;  %v2812_v25 = vsel %vm1082_vm3, %v2748_v32, %v2604_v2  ;;  %v8153_v61 = vcombine.low %v1545_v53, %v9603_v12  ;;  %v4051_v31 = vrot.slane %v4049_v34, 1 }
 0x14d   : > { %v2915_v21 = vshll.u32 %v2812_v25, 16  ;;  %5828 = vrot.lane.b32.xlu0 %v5625_v7, %s9691_s21  ;;  %v2924_v40 = vor.u32 %v2923_v10, %v2919_v19  ;;  %v4061_v7 = vshll.u32 %v10773_v30, 16  ;;  %v4059_v30 = vor.u32 %v4058_v27, %v4054_v26  ;;  %v10870_v25 = vld [vmem:[%s9731_s16 + $0x30] sm:$0xf] }
 0x14e   : > { %v2927_v1 = vrot.slane %v2925_v5, 1  ;;  %v10804_v33 = vpop.permute.xlu1 %2085  ;;  %v5124_v32 = vrot.slane %v5122_v58, 1  ;;  %v5110_v10 = vrot.slane %v5108_v52, 1  ;;  %v10862_v5 = vld [vmem:[%s9731_s16 + $0x24] sm:$0xff]   ;;  %v5647_v2 = vrot.slane %v5645_v43, 1 }
 0x14f   : > { %v2917_v54 = vrot.slane %v2915_v21, 1  ;;  %v10821_v60 = vpop.permute.xlu0 %2081  ;;  %v4063_v14 = vrot.slane %v4061_v7, 1  ;;  %v9604_v27 = vld [vmem:[%s9731_s16 + $0x70] sm:$0xf]  ;;  %v10885_v21 = vld [vmem:[%s9731_s16 + $0x78] sm:$0xf]  ;;  %v8611_v49 = vcombine.low %v10870_v25, %v10786_v28 }
 0x150   : > { %3849 = vrot.lane.b32.xlu1 %v3668_v59, %s9689_s17  ;;  %v2928_v8 = vsel %vm407_vm0, %v2924_v40, %v2927_v1  ;;  %v10873_v59 = vld [vmem:[%s9731_s16 + $0x30] sm:$0xff]   ;;  %v8155_v11 = vcombine.low %v1548_v29, %v9604_v27  ;;  %v10882_v1 = vld [vmem:[%s9731_s16 + $0x84] sm:$0xf]  ;;  %v5638_v40 = vrot.slane %v5636_v4, 1  ;;  %v5125_v6 = vsel %vm407_vm0, %v5120_v22, %v5124_v32  ;;  %v10917_v58 = vld [vmem:[%s9731_s16 + $0x88] sm:$0xf] }
 0x151   : > { %5826 = vrot.lane.b32.xlu0 %v5612_v37, %s9691_s21  ;;  %v2918_v24 = vsel %vm407_vm0, %v2914_v41, %v2917_v54  ;;  %v5105_v37 = vrot.slane %v5103_v0, 1  ;;  %v4064_v19 = vsel %vm407_vm0, %v4059_v30, %v4063_v14  ;;  %v3684_v41 = vshll.u32 %v10862_v5, 16  ;;  %v8447_v52 = vld [vmem:[%s9731_s16 + $0x4c] sm:$0xf]  ;;  %v10937_v14 = vld [vmem:[%s9731_s16 + $0x30] sm:$0xff]  }
 0x152   : > { %v10835_v23 = vpop.permute.xlu1 %2083  ;;  %9145 = vmatprep.mubr.msk.bf16.mxu1 %vm1123_vm4, %v2918_v24  ;;  %v5652_v53 = vrot.slane %v5650_v39, 1  ;;  %v8157_v34 = vcombine.low %v10885_v21, %v10907_v44  ;;  %v10912_v24 = vld [vmem:[%s9731_s16 + $0x38] ss:$0 sps:$4 sm:$0x11]   ;;  %v8159_v13 = vcombine.low %v10882_v1, %v10917_v58  ;;  %v5639_v28 = vsel %vm407_vm0, %v5634_v51, %v5638_v40  ;;  %v8483_v4 = vld [vmem:[%s9731_s16 + $0x3c] sm:$0xe] }
 0x153   : > { %9146 = vmatmul.mubr.msk.bf16.gmra.mrb[12].mxu1 %vm1123_vm4, %v2928_v8  ;;  %v2274_v35 = vpop.permute.xlu0 %2273  ;;  %v5106_v26 = vor.u32 %v5105_v37, %v5101_v38  ;;  %v5126_v38 = vshrl.u32 %v10807_v47, 16  ;;  %v10926_v37 = vld [vmem:[%s9731_s16 + $0x3c] sm:$0xff]   ;;  %v2688_v43 = vsel %vm1016_vm1, %v8155_v11, %v10804_v33  ;;  %v3682_v12 = vshrl.u32 %v10862_v5, 16  ;;  %v9607_v29 = vld [vmem:[%s9731_s16 + $0x74] ss:$0 sps:$4 sm:$0x11]  }
 0x154   : > { %3851 = vrot.lane.b32.xlu1 %v3680_v45, %s9689_s17  ;;  %v2683_v45 = vsel %vm1016_vm1, %v8153_v61, %v10821_v60  ;;  %v10933_v61 = vrot.slane %v3684_v41, 1  ;;  %v3689_v30 = vshll.u32 %v10895_v17, 16  ;;  %v3694_v33 = vshrl.u32 %v10873_v59, 16  ;;  %v9608_v27 = vld [vmem:[%s9731_s16 + $0x68] ss:$0 sps:$4 sm:$0x11]  }
 0x155   : > { %5830 = vrot.lane.b32.xlu0 %v5626_v36, %s9691_s21  ;;  %v5643_v36 = vshrl.u32 %v10826_v16, 16  ;;  %v5111_v0 = vsel %vm407_vm0, %v5106_v26, %v5110_v10  ;;  %v2754_v54 = vsel %vm1049_vm2, %v2683_v45, %v2274_v35  ;;  %v5112_v16 = vshrl.u32 %v10815_v18, 16  ;;  %v8484_v35 = vld [vmem:[%s9731_s16 + $0x48] sm:$0xe]  ;;  %v10966_v45 = vld [vmem:[%s9731_s16 + $0x4c] sm:$0xf] }
 0x156   : > { %v2610_v57 = vpop.permute.xlu1 %2609  ;;  %v3696_v18 = vshll.u32 %v10873_v59, 16  ;;  %v10951_v10 = vcombine.low %v8484_v35, %v8447_v52  ;;  %v3701_v39 = vshll.u32 %v10912_v24, 16  ;;  %v4080_v25 = vshll.u32 %v10926_v37, 16 }
 0x157   : > { %v2278_v15 = vpop.permute.xlu0 %2277  ;;  %v5648_v60 = vor.u32 %v5647_v2, %v5643_v36  ;;  %v10902_v8 = vsel %vm1082_vm3, %v2754_v54, %v2610_v57  ;;  %v2685_v11 = vsel %vm1016_vm1, %v9608_v27, %v10835_v23  ;;  %v4068_v51 = vshll.u32 %v10937_v14, 16  ;;  %v9456_v23 = vld [vmem:[%s9731_s16 + $0x38] ss:$0 sps:$4 sm:$0x11]  }
 0x158   : > { %3963 = vrot.lane.b32.xlu1 %v10746_v9, %s9690_s18  ;;  %v4052_v9 = vsel %vm407_vm0, %v4047_v42, %v4051_v31  ;;  %v2931_v42 = vshll.u32 %v10902_v8, 16  ;;  %v2758_v57 = vsel %vm1049_vm2, %v2688_v43, %v2278_v15  ;;  %v3698_v26 = vrot.slane %v3696_v18, 1  ;;  %v10998_v27 = vld [vmem:[%s9731_s16 + $0x50] ss:$0 sps:$4 sm:$0x11]  }
 0x159   : > { %3961 = vrot.lane.b32.xlu0 %v10752_v62, %s9690_s18  ;;  %v10892_v62 = vld [vmem:[%s9731_s16 + $0x3c] sm:$0xf]  ;;  %v10943_v46 = vsel %vm407_vm0, %v5648_v60, %v5652_v53  ;;  %v10963_v40 = vcombine.low %v8483_v4, %v8444_v20  ;;  %v4078_v18 = vshrl.u32 %v10926_v37, 16  ;;  %v5145_v52 = vshll.u32 %v10951_v10, 16 }
 0x15a   : > { %v10878_v50 = vpop.permute.xlu1 %2275  ;;  %v8613_v55 = vcombine.low %v10892_v62, %v10799_v48  ;;  %v2929_v35 = vshrl.u32 %v10902_v8, 16  ;;  %v4066_v4 = vshrl.u32 %v10937_v14, 16  ;;  %v4070_v8 = vrot.slane %v4068_v51, 1 }
 0x15b   : > { %v2088_v7 = vpop.permute.xlu0 %2087  ;;  %v2756_v41 = vsel %vm1049_vm2, %v2685_v11, %v10878_v50  ;;  %v5147_v51 = vrot.slane %v5145_v52, 1  ;;  %v3691_v48 = vrot.slane %v3689_v30, 1  ;;  %v3699_v62 = vor.u32 %v3698_v26, %v3694_v33  ;;  %v11043_v52 = vld [vmem:[%s9731_s16 + $0x3c] sm:$0xff]  }
 0x15c   : > { %4235 = vrot.lane.b32.xlu1 %v4064_v19, %s9691_s21  ;;  %v2690_v22 = vsel %vm1016_vm1, %v9607_v29, %v2088_v7  ;;  %v9455_v19 = vld [vmem:[%s9731_s16 + $0x44] ss:$0 sps:$4 sm:$0x11]   ;;  %v5129_v17 = vshrl.u32 %v10963_v40, 16  ;;  %v4071_v33 = vor.u32 %v4070_v8, %v4066_v4  ;;  %v5654_v47 = vshrl.u32 %v10849_v56, 16 }
 0x15d   : > { %4233 = vrot.lane.b32.xlu0 %v4052_v9, %s9691_s21  ;;  %v4085_v20 = vshll.u32 %v9455_v19, 16  ;;  %v5143_v19 = vshrl.u32 %v10951_v10, 16 }
 0x15e   : > { %v2280_v63 = vpop.permute.xlu1 %2279 }
 0x15f   : > { %v2614_v31 = vpop.permute.xlu0 %2613  ;;  %v2760_v15 = vsel %vm1049_vm2, %v2690_v22, %v2280_v63  ;;  %v10976_v63 = vld [vmem:[%s9731_s16 + $0x50] ss:$0 sps:$4 sm:$0x11]  }
 0x160   : > { %5308 = vrot.lane.b32.xlu1 %v5125_v6, %s9689_s17  ;;  %v2822_v32 = vsel %vm1082_vm3, %v2758_v57, %v2614_v31  ;;  %v8547_v6 = vld [vmem:[%s9731_s16 + $0x48] sm:$0xe]  ;;  %v4082_v31 = vrot.slane %v4080_v25, 1  ;;  %v5150_v25 = vshll.u32 %v10976_v63, 16 }
 0x161   : > { %v2941_v36 = vshll.u32 %v2822_v32, 16  ;;  %5304 = vrot.lane.b32.xlu0 %v5111_v0, %s9689_s17  ;;  %v2933_v0 = vrot.slane %v2931_v42, 1  ;;  %v2939_v53 = vshrl.u32 %v2822_v32, 16 }
 0x162   : > { %v2616_v2 = vpop.permute.xlu1 %2615  ;;  %v4083_v5 = vor.u32 %v4082_v31, %v4078_v18  ;;  %v5664_v18 = vshll.u32 %v10998_v27, 16 }
 0x163   : > { %v2824_v9 = vsel %vm1082_vm3, %v2760_v15, %v2616_v2  ;;  %v2943_v54 = vrot.slane %v2941_v36, 1  ;;  %v2612_v60 = vpop.permute.xlu0 %2611  ;;  %v2934_v29 = vor.u32 %v2933_v0, %v2929_v35  ;;  %v5131_v15 = vshll.u32 %v10963_v40, 16  ;;  %v8548_v0 = vld [vmem:[%s9731_s16 + $0x54] sm:$0xe] }
 0x164   : > { %v2945_v7 = vshll.u32 %v2824_v9, 16  ;;  %5306 = vrot.lane.b32.xlu1 %v5112_v16, %s9689_s17  ;;  %v2820_v24 = vsel %vm1082_vm3, %v2756_v41, %v2612_v60  ;;  %v10984_v16 = vcombine.low %v8547_v6, %v10966_v45  ;;  %v4073_v2 = vshll.u32 %v9456_v23, 16  ;;  %v11012_v6 = vld [vmem:[%s9731_s16 + $0x58] sm:$0xf]  ;;  %v11021_v41 = vld [vmem:[%s9731_s16 + $0x90] sm:$0xf] }
 0x165   : > { %v2935_v50 = vshll.u32 %v2820_v24, 16  ;;  %5496 = vrot.lane.b32.xlu0 %v8611_v49, %s9690_s18  ;;  %v2944_v57 = vor.u32 %v2943_v54, %v2939_v53  ;;  %v10991_v49 = vld [vmem:[%s9731_s16 + $0x44] ss:$0 sps:$4 sm:$0x11]   ;;  %v3687_v9 = vor.u32 %v10933_v61, %v3682_v12  ;;  %v11027_v61 = vld [vmem:[%s9731_s16 + $0x9c] sm:$0xf]  ;;  %v5148_v40 = vor.u32 %v5147_v51, %v5143_v19 }
 0x166   : > { %v2947_v43 = vrot.slane %v2945_v7, 1  ;;  %v10981_v42 = vpop.permute.xlu1 %2093  ;;  %v5659_v10 = vshll.u32 %v10984_v16, 16  ;;  %v4087_v54 = vrot.slane %v4085_v20, 1  ;;  %v5133_v30 = vrot.slane %v5131_v15, 1  ;;  %v11060_v20 = vld [vmem:[%s9731_s16 + $0x94] sm:$0xf] }
 0x167   : > { %v2937_v22 = vrot.slane %v2935_v50, 1  ;;  %v10987_v32 = vpop.permute.xlu0 %2089  ;;  %v5136_v59 = vshll.u32 %v10991_v49, 16  ;;  %v4075_v26 = vrot.slane %v4073_v2, 1  ;;  %v11032_v7 = vcombine.low %v8548_v0, %v11012_v6  ;;  %v11035_v60 = vld [vmem:[%s9731_s16 + $0x5c] ss:$0 sps:$4 sm:$0x11]  }
 0x168   : > { %5832 = vrot.lane.b32.xlu1 %v5639_v28, %s9691_s21  ;;  %v2948_v36 = vsel %vm407_vm0, %v2944_v57, %v2947_v43  ;;  %v5657_v53 = vshrl.u32 %v10984_v16, 16  ;;  %v5661_v24 = vrot.slane %v5659_v10, 1  ;;  %v3692_v35 = vsel %vm407_vm0, %v3687_v9, %v3691_v48  ;;  %v11055_v16 = vld [vmem:[%s9731_s16 + $0xa0] sm:$0xf] }
 0x169   : > { %5500 = vrot.lane.b32.xlu0 %v8613_v55, %s9690_s18  ;;  %v2938_v28 = vsel %vm407_vm0, %v2934_v29, %v2937_v22  ;;  %v3703_v55 = vrot.slane %v3701_v39, 1  ;;  %v5152_v39 = vrot.slane %v5150_v25, 1  ;;  %v5640_v43 = vshrl.u32 %v10840_v3, 16  ;;  %v11065_v22 = vld [vmem:[%s9731_s16 + $0x48] sm:$0xf]  ;;  %v11079_v25 = vld [vmem:[%s9731_s16 + $0x54] sm:$0xff]  }
 0x16a   : > { %v11005_v11 = vpop.permute.xlu1 %2091  ;;  %9149 = vmatprep.mubr.msk.bf16.mxu1 %vm1123_vm4, %v2938_v28  ;;  %v5134_v4 = vor.u32 %v5133_v30, %v5129_v17  ;;  %v5138_v29 = vrot.slane %v5136_v59, 1  ;;  %v11068_v8 = vsel %vm407_vm0, %v4083_v5, %v4087_v54  ;;  %v11071_v15 = vsel %vm407_vm0, %v4071_v33, %v4075_v26  ;;  %v11089_v0 = vld [vmem:[%s9731_s16 + $0x44] ss:$0 sps:$4 sm:$0x11]   ;;  %v8486_v33 = vld [vmem:[%s9731_s16 + $0x60] sm:$0xe] }
 0x16b   : > { %9150 = vmatmul.mubr.msk.bf16.gmra.mrb[16].mxu1 %vm1123_vm4, %v2948_v36  ;;  %v2282_v12 = vpop.permute.xlu0 %2281  ;;  %v3704_v50 = vsel %vm407_vm0, %v3699_v62, %v3703_v55  ;;  %v11074_v36 = vld [vmem:[%s9731_s16 + $0x54] sm:$0xf]  ;;  %v5673_v2 = vshll.u32 %v11032_v7, 16  ;;  %v5678_v19 = vshll.u32 %v11035_v60, 16  ;;  %v11086_v9 = vsel %vm407_vm0, %v5148_v40, %v5152_v39 }
 0x16c   : > { %5498 = vrot.lane.b32.xlu1 %v10840_v3, %s9690_s18  ;;  %v8161_v3 = vcombine.low %v11021_v41, %v11060_v20  ;;  %v5662_v51 = vor.u32 %v5661_v24, %v5657_v53  ;;  %v5666_v10 = vrot.slane %v5664_v18, 1  ;;  %v3708_v48 = vshll.u32 %v11043_v52, 16  ;;  %v11101_v5 = vld [vmem:[%s9731_s16 + $0x50] ss:$0 sps:$4 sm:$0x11]  }
 0x16d   : > { %5310 = vrot.lane.b32.xlu0 %v5126_v38, %s9689_s17  ;;  %v11050_v38 = vld [vmem:[%s9731_s16 + $0x48] sm:$0xff]   ;;  %v5140_v62 = vshrl.u32 %v10991_v49, 16  ;;  %v8615_v55 = vcombine.low %v11065_v22, %v10966_v45  ;;  %v11107_v59 = vsel %vm407_vm0, %v5134_v4, %v5138_v29  ;;  %v5671_v44 = vshrl.u32 %v11032_v7, 16 }
 0x16e   : > { %v2618_v23 = vpop.permute.xlu1 %2617  ;;  %v3720_v54 = vshll.u32 %v11050_v38, 16  ;;  %v11120_v39 = vrot.slane %v5678_v19, 1  ;;  %v4104_v40 = vshll.u32 %v11079_v25, 16  ;;  %v11125_v24 = vsel %vm407_vm0, %v5662_v51, %v5666_v10  ;;  %v8450_v51 = vld [vmem:[%s9731_s16 + $0x58] sm:$0xf] }
 0x16f   : > { %v2286_v57 = vpop.permute.xlu0 %2285  ;;  %v3706_v18 = vshrl.u32 %v11043_v52, 16  ;;  %v3713_v4 = vshll.u32 %v11089_v0, 16  ;;  %v2698_v29 = vsel %vm1016_vm1, %v8159_v13, %v10981_v42  ;;  %v8485_v52 = vld [vmem:[%s9731_s16 + $0x54] sm:$0xe]  ;;  %v3725_v1 = vshll.u32 %v11101_v5, 16 }
 0x170   : > { %5502 = vrot.lane.b32.xlu1 %v10849_v56, %s9690_s18  ;;  %v9611_v13 = vld [vmem:[%s9731_s16 + $0x8c] ss:$0 sps:$4 sm:$0x11]   ;;  %v11159_v31 = vcombine.low %v8485_v52, %v8450_v51  ;;  %v8550_v7 = vld [vmem:[%s9731_s16 + $0x6c] sm:$0xe] }
 0x171   : > { %5836 = vrot.lane.b32.xlu0 %v10943_v46, %s9691_s21  ;;  %v2693_v46 = vsel %vm1016_vm1, %v8157_v34, %v10987_v32  ;;  %v11113_v34 = vld [vmem:[%s9731_s16 + $0x48] sm:$0xff]   ;;  %v8453_v32 = vld [vmem:[%s9731_s16 + $0x64] sm:$0xf] }
 0x172   : > { %v11083_v28 = vpop.permute.xlu1 %2283  ;;  %v2762_v17 = vsel %vm1049_vm2, %v2693_v46, %v2282_v12  ;;  %v5675_v12 = vrot.slane %v5673_v2, 1  ;;  %v3722_v2 = vrot.slane %v3720_v54, 1  ;;  %v11138_v19 = vcombine.low %v8486_v33, %v8453_v32  ;;  %v11152_v32 = vld [vmem:[%s9731_s16 + $0x50] ss:$0 sps:$4 sm:$0x11]  }
 0x173   : > { %v2096_v30 = vpop.permute.xlu0 %2095  ;;  %v11118_v26 = vsel %vm1082_vm3, %v2762_v17, %v2618_v23  ;;  %v11130_v23 = vld [vmem:[%s9731_s16 + $0x5c] ss:$0 sps:$4 sm:$0x11]   ;;  %v4092_v58 = vshll.u32 %v11113_v34, 16  ;;  %v4102_v54 = vshrl.u32 %v11079_v25, 16  ;;  %v4106_v17 = vrot.slane %v4104_v40, 1 }
 0x174   : > { %3853 = vrot.lane.b32.xlu1 %v3692_v35, %s9689_s17  ;;  %v3710_v35 = vrot.slane %v3708_v48, 1  ;;  %v2951_v10 = vshll.u32 %v11118_v26, 16  ;;  %v2766_v48 = vsel %vm1049_vm2, %v2698_v29, %v2286_v57  ;;  %v2700_v42 = vsel %vm1016_vm1, %v9611_v13, %v2096_v30  ;;  %v9612_v30 = vld [vmem:[%s9731_s16 + $0x80] ss:$0 sps:$4 sm:$0x11]  }
 0x175   : > { %5834 = vrot.lane.b32.xlu0 %v5640_v43, %s9691_s21  ;;  %v3718_v43 = vshrl.u32 %v11050_v38, 16  ;;  %v4109_v29 = vshll.u32 %v11130_v23, 16  ;;  %v5173_v13 = vshll.u32 %v11138_v19, 16  ;;  %v11318_v22 = vld [vmem:[%s9731_s16 + $0x6c] sm:$0xf] }
 0x176   : > { %v2288_v53 = vpop.permute.xlu1 %2287  ;;  %v2953_v56 = vrot.slane %v2951_v10, 1  ;;  %v2949_v10 = vshrl.u32 %v11118_v26, 16  ;;  %v11190_v26 = vld [vmem:[%s9731_s16 + $0x64] sm:$0xf] }
 0x177   : > { %v2622_v46 = vpop.permute.xlu0 %2621  ;;  %v2768_v57 = vsel %vm1049_vm2, %v2700_v42, %v2288_v53  ;;  %v11167_v53 = vld [vmem:[%s9731_s16 + $0x68] ss:$0 sps:$4 sm:$0x11]  }
 0x178   : > { %3855 = vrot.lane.b32.xlu1 %v3704_v50, %s9689_s17  ;;  %v2830_v38 = vsel %vm1082_vm3, %v2766_v48, %v2622_v46  ;;  %v2695_v48 = vsel %vm1016_vm1, %v9612_v30, %v11005_v11  ;;  %v4090_v46 = vshrl.u32 %v11113_v34, 16  ;;  %v11177_v30 = vld [vmem:[%s9731_s16 + $0x5c] ss:$0 sps:$4 sm:$0x11]  }
 0x179   : > { %v2961_v33 = vshll.u32 %v2830_v38, 16  ;;  %5838 = vrot.lane.b32.xlu0 %v5654_v47, %s9691_s21  ;;  %v2764_v47 = vsel %vm1049_vm2, %v2695_v48, %v11083_v28  ;;  %v2959_v11 = vshrl.u32 %v2830_v38, 16  ;;  %v5159_v38 = vshll.u32 %v11159_v31, 16 }
 0x17a   : > { %v2624_v50 = vpop.permute.xlu1 %2623  ;;  %v5178_v48 = vshll.u32 %v11167_v53, 16 }
 0x17b   : > { %v2832_v40 = vsel %vm1082_vm3, %v2768_v57, %v2624_v50  ;;  %v2963_v23 = vrot.slane %v2961_v33, 1  ;;  %v2620_v52 = vpop.permute.xlu0 %2619  ;;  %v4094_v57 = vrot.slane %v4092_v58, 1  ;;  %v4097_v50 = vshll.u32 %v11152_v32, 16 }
 0x17c   : > { %v2965_v51 = vshll.u32 %v2832_v40, 16  ;;  %3967 = vrot.lane.b32.xlu1 %v10926_v37, %s9690_s18  ;;  %v2828_v42 = vsel %vm1082_vm3, %v2764_v47, %v2620_v52  ;;  %v5676_v58 = vor.u32 %v5675_v12, %v5671_v44  ;;  %v5171_v32 = vshrl.u32 %v11138_v19, 16  ;;  %v8549_v40 = vld [vmem:[%s9731_s16 + $0x60] sm:$0xe] }
 0x17d   : > { %v2955_v28 = vshll.u32 %v2828_v42, 16  ;;  %3965 = vrot.lane.b32.xlu0 %v10937_v14, %s9690_s18  ;;  %v2964_v33 = vor.u32 %v2963_v23, %v2959_v11  ;;  %v2954_v47 = vor.u32 %v2953_v56, %v2949_v10  ;;  %v3711_v52 = vor.u32 %v3710_v35, %v3706_v18  ;;  %v11198_v11 = vld [vmem:[%s9731_s16 + $0x70] sm:$0xf]  ;;  %v11211_v18 = vld [vmem:[%s9731_s16 + $0xa8] sm:$0xf] }
 0x17e   : > { %v2967_v21 = vrot.slane %v2965_v51, 1  ;;  %v11182_v37 = vpop.permute.xlu1 %2101  ;;  %v5175_v23 = vrot.slane %v5173_v13, 1  ;;  %v3715_v12 = vrot.slane %v3713_v4, 1  ;;  %v3723_v19 = vor.u32 %v3722_v2, %v3718_v43  ;;  %v11227_v13 = vld [vmem:[%s9731_s16 + $0xb4] sm:$0xf] }
 0x17f   : > { %v2957_v51 = vrot.slane %v2955_v28, 1  ;;  %v11193_v14 = vpop.permute.xlu0 %2097  ;;  %v5157_v42 = vshrl.u32 %v11159_v31, 16  ;;  %v5161_v35 = vrot.slane %v5159_v38, 1  ;;  %v11215_v0 = vcombine.low %v8549_v40, %v11190_v26  ;;  %v11238_v38 = vld [vmem:[%s9731_s16 + $0xac] sm:$0xf]  ;;  %v11254_v40 = vld [vmem:[%s9731_s16 + $0x60] sm:$0xff]  }
 0x180   : > { %4239 = vrot.lane.b32.xlu1 %v11068_v8, %s9691_s21  ;;  %v2968_v44 = vsel %vm407_vm0, %v2964_v33, %v2967_v21  ;;  %v5164_v21 = vshll.u32 %v11177_v30, 16  ;;  %v3727_v31 = vrot.slane %v3725_v1, 1  ;;  %v4111_v4 = vrot.slane %v4109_v29, 1 }
 0x181   : > { %4237 = vrot.lane.b32.xlu0 %v11071_v15, %s9691_s21  ;;  %v2958_v56 = vsel %vm407_vm0, %v2954_v47, %v2957_v51  ;;  %v4107_v15 = vor.u32 %v4106_v17, %v4102_v54  ;;  %v11221_v43 = vcombine.low %v8550_v7, %v11198_v11  ;;  %v4095_v10 = vor.u32 %v4094_v57, %v4090_v46  ;;  %v11230_v54 = vld [vmem:[%s9731_s16 + $0x54] sm:$0xff]   ;;  %v11244_v57 = vld [vmem:[%s9731_s16 + $0x68] ss:$0 sps:$4 sm:$0x11]   ;;  %v11268_v7 = vld [vmem:[%s9731_s16 + $0xc] sm:$0xf] }
 0x182   : > { %v11208_v8 = vpop.permute.xlu1 %2099  ;;  %9153 = vmatprep.mubr.msk.bf16.mxu1 %vm1123_vm4, %v2958_v56  ;;  %v4099_v28 = vrot.slane %v4097_v50, 1  ;;  %v5176_v5 = vor.u32 %v5175_v23, %v5171_v32  ;;  %v5180_v1 = vrot.slane %v5178_v48, 1  ;;  %v5154_v17 = vshrl.u32 %v10976_v63, 16  ;;  %v11257_v47 = vld [vmem:[%s9731_s16 + $0xb8] sm:$0xf] }
 0x183   : > { %9154 = vmatmul.mubr.msk.bf16.gmra.mrb[20].mxu1 %vm1123_vm4, %v2968_v44  ;;  %v2290_v2 = vpop.permute.xlu0 %2289  ;;  %v11235_v29 = vsel %vm407_vm0, %v5676_v58, %v11120_v39  ;;  %v5162_v32 = vor.u32 %v5161_v35, %v5157_v42  ;;  %v5166_v39 = vrot.slane %v5164_v21, 1  ;;  %v11250_v58 = vld [vmem:[%s9731_s16 + $0x60] sm:$0xf]  ;;  %v5687_v48 = vshll.u32 %v11215_v0, 16  ;;  %v8552_v63 = vld [vmem:[%s9731_s16 + $0x84] sm:$0xe] }
 0x184   : > { %5316 = vrot.lane.b32.xlu1 %v11086_v9, %s9689_s17  ;;  %v11262_v23 = vsel %vm407_vm0, %v3711_v52, %v3715_v12  ;;  %v11271_v44 = vld [vmem:[%s9731_s16 + $0x74] ss:$0 sps:$4 sm:$0x11]   ;;  %v5701_v42 = vshll.u32 %v11221_v43, 16  ;;  %v11278_v52 = vsel %vm407_vm0, %v4107_v15, %v4111_v4  ;;  %v11281_v12 = vsel %vm407_vm0, %v4095_v10, %v4099_v28 }
 0x185   : > { %5312 = vrot.lane.b32.xlu0 %v11107_v59, %s9689_s17  ;;  %v11265_v59 = vsel %vm407_vm0, %v3723_v19, %v3727_v31  ;;  %v11284_v19 = vsel %vm407_vm0, %v5176_v5, %v5180_v1  ;;  %v9488_v35 = vld [vmem:[%s9731_s16 + $0x5c] ss:$0 sps:$4 sm:$0x11]   ;;  %v3732_v21 = vshll.u32 %v11230_v54, 16  ;;  %v5692_v15 = vshll.u32 %v11244_v57, 16 }
 0x186   : > { %v2626_v50 = vpop.permute.xlu1 %2625  ;;  %v9490_v4 = vld [vmem:[%s9731_s16 + $0x68] ss:$0 sps:$4 sm:$0x11]   ;;  %v11301_v28 = vsel %vm407_vm0, %v5162_v32, %v5166_v39  ;;  %v11304_v5 = vld [vmem:[%s9731_s16 + $0x18] sm:$0xf]  ;;  %v5689_v49 = vrot.slane %v5687_v48, 1  ;;  %v2703_v45 = vsel %vm1016_vm1, %v8161_v3, %v11193_v14 }
 0x187   : > { %v2294_v56 = vpop.permute.xlu0 %2293  ;;  %14299 = vst [vmem:[#allocation3_spill] sm:$0xff] %v11304_v5  ;;  %v11307_v1 = vld [vmem:[%s9731_s16 + $0x10] sm:$0xf]  ;;  %v3744_v31 = vshll.u32 %v11254_v40, 16  ;;  %v5703_v32 = vrot.slane %v5701_v42, 1  ;;  %v5706_v39 = vshll.u32 %v11271_v44, 16  ;;  %v2770_v51 = vsel %vm1049_vm2, %v2703_v45, %v2290_v2 }
 0x188   : > { %5314 = vrot.lane.b32.xlu1 %v5140_v62, %s9689_s17  ;;  %v5685_v62 = vshrl.u32 %v11215_v0, 16  ;;  %v3730_v48 = vshrl.u32 %v11230_v54, 16  ;;  %v3734_v0 = vrot.slane %v3732_v21, 1  ;;  %v3737_v41 = vshll.u32 %v9488_v35, 16  ;;  %v11330_v3 = vld [vmem:[%s9731_s16 + $0x1c] sm:$0xf] }
 0x189   : > { %5504 = vrot.lane.b32.xlu0 %v8615_v55, %s9690_s18  ;;  %v5699_v55 = vshrl.u32 %v11221_v43, 16  ;;  %v11327_v20 = vsel %vm1082_vm3, %v2770_v51, %v2626_v50  ;;  %14300 = vst [vmem:[#allocation4_spill] sm:$0xff] %v11330_v3  ;;  %v11334_v43 = vrot.slane %v5692_v15, 1  ;;  %v3749_v2 = vshll.u32 %v9490_v4, 16  ;;  %v11344_v21 = vld [vmem:[%s9731_s16 + $0x6c] sm:$0xff]   ;;  %v11353_v4 = vld [vmem:[%s9731_s16 + $0x60] sm:$0xff]  }
 0x18a   : > { %v11298_v10 = vpop.permute.xlu1 %2291  ;;  %v5690_v42 = vor.u32 %v5689_v49, %v5685_v62  ;;  %v3742_v51 = vshrl.u32 %v11254_v40, 16  ;;  %v3746_v35 = vrot.slane %v3744_v31, 1  ;;  %14302 = vst [vmem:[#allocation5_spill] sm:$0xff] %v11344_v21  ;;  %v14303_v15 = vcombine.low %v11027_v61, %v11055_v16  ;;  %14304 = vst [vmem:[#allocation6_spill] sm:$0xff] %v11353_v4  ;;  %v8459_v16 = vld [vmem:[%s9731_s16 + $0x7c] sm:$0xf] }
 0x18b   : > { %v2104_v9 = vpop.permute.xlu0 %2103  ;;  %v5704_v49 = vor.u32 %v5703_v32, %v5699_v55  ;;  %v5708_v62 = vrot.slane %v5706_v39, 1  ;;  %v2971_v40 = vshll.u32 %v11327_v20, 16  ;;  %v3739_v61 = vrot.slane %v3737_v41, 1  ;;  %v9617_v55 = vld [vmem:[%s9731_s16 + $0xa4] ss:$0 sps:$4 sm:$0x11]  }
 0x18c   : > { %5840 = vrot.lane.b32.xlu1 %v11125_v24, %s9691_s21  ;;  %v14301_v24 = vcombine.low %v11074_v36, %v11012_v6  ;;  %v2708_v6 = vsel %vm1016_vm1, %v14303_v15, %v11182_v37  ;;  %v8488_v37 = vld [vmem:[%s9731_s16 + $0x78] sm:$0xe]  ;;  %v2710_v32 = vsel %vm1016_vm1, %v9617_v55, %v2104_v9  ;;  %v3751_v14 = vrot.slane %v3749_v2, 1  ;;  %v11373_v55 = vld [vmem:[%s9731_s16 + $0x7c] sm:$0xf] }
 0x18d   : > { %v2774_v31 = vsel %vm1049_vm2, %v2708_v6, %v2294_v56  ;;  %v8456_v56 = vld [vmem:[%s9731_s16 + $0x70] sm:$0xf]  ;;  %v8487_v6 = vld [vmem:[%s9731_s16 + $0x6c] sm:$0xe]  ;;  %v3747_v36 = vor.u32 %v3746_v35, %v3742_v51  ;;  %v4128_v9 = vshll.u32 %v11344_v21, 16  ;;  %v14308_v5 = vcombine.low %v11211_v18, %v11238_v38 }
 0x18e   : > { %5508 = vrot.lane.b32.xlu0 %v14301_v24, %s9690_s18  ;;  %v2296_v54 = vpop.permute.xlu1 %2295  ;;  %v3735_v24 = vor.u32 %v3734_v0, %v3730_v48  ;;  %v11384_v50 = vld [vmem:[%s9731_s16 + $0x88] sm:$0xf] }
 0x18f   : > { %v2630_v45 = vpop.permute.xlu0 %2629  ;;  %v2776_v0 = vsel %vm1049_vm2, %v2710_v32, %v2296_v54  ;;  %v4116_v54 = vshll.u32 %v11353_v4, 16  ;;  %v11381_v32 = vcombine.low %v8488_v37, %v8459_v16  ;;  %v11392_v37 = vcombine.low %v8487_v6, %v8456_v56  ;;  %v11418_v6 = vld [vmem:[%s9731_s16 + $0x80] ss:$0 sps:$4 sm:$0x11]  }
 0x190   : > { %5506 = vrot.lane.b32.xlu1 %v10998_v27, %s9690_s18  ;;  %v2838_v39 = vsel %vm1082_vm3, %v2774_v31, %v2630_v45  ;;  %v8551_v31 = vld [vmem:[%s9731_s16 + $0x78] sm:$0xe]  ;;  %v9618_v45 = vld [vmem:[%s9731_s16 + $0x98] ss:$0 sps:$4 sm:$0x11]   ;;  %v11408_v56 = vsel %vm407_vm0, %v5690_v42, %v11334_v43 }
 0x191   : > { %v2981_v48 = vshll.u32 %v2838_v39, 16  ;;  %v2705_v2 = vsel %vm1016_vm1, %v9618_v45, %v11208_v8  ;;  %v2979_v8 = vshrl.u32 %v2838_v39, 16  ;;  %v11404_v39 = vcombine.low %v8552_v63, %v11384_v50  ;;  %v11425_v63 = vld [vmem:[%s9731_s16 + $0x74] ss:$0 sps:$4 sm:$0x11]  }
 0x192   : > { %5318 = vrot.lane.b32.xlu0 %v5154_v17, %s9689_s17  ;;  %v2632_v41 = vpop.permute.xlu1 %2631  ;;  %v2973_v17 = vrot.slane %v2971_v40, 1  ;;  %v2772_v51 = vsel %vm1049_vm2, %v2705_v2, %v11298_v10  ;;  %v2969_v40 = vshrl.u32 %v11327_v20, 16  ;;  %v11411_v20 = vsel %vm407_vm0, %v5704_v49, %v5708_v62 }
 0x193   : > { %v2840_v15 = vsel %vm1082_vm3, %v2776_v0, %v2632_v41  ;;  %v2983_v35 = vrot.slane %v2981_v48, 1  ;;  %v2628_v46 = vpop.permute.xlu0 %2627  ;;  %v11395_v0 = vcombine.low %v8551_v31, %v11373_v55  ;;  %v9493_v48 = vld [vmem:[%s9731_s16 + $0x74] ss:$0 sps:$4 sm:$0x11]   ;;  %v5201_v42 = vshll.u32 %v11381_v32, 16 }
 0x194   : > { %v2985_v33 = vshll.u32 %v2840_v15, 16  ;;  %5510 = vrot.lane.b32.xlu1 %v11035_v60, %s9690_s18  ;;  %v2836_v16 = vsel %vm1082_vm3, %v2772_v51, %v2628_v46  ;;  %v2974_v31 = vor.u32 %v2973_v17, %v2969_v40  ;;  %v11429_v62 = vsel %vm407_vm0, %v3747_v36, %v3751_v14  ;;  %v11434_v17 = vld [vmem:[%s9731_s16 + $0x80] ss:$0 sps:$4 sm:$0x11]  }
 0x195   : > { %v2975_v10 = vshll.u32 %v2836_v16, 16  ;;  %v2984_v46 = vor.u32 %v2983_v35, %v2979_v8  ;;  %14305 = vst [vmem:[#allocation7_spill] sm:$0xff] %v11429_v62  ;;  %v4130_v8 = vrot.slane %v4128_v9, 1  ;;  %v5715_v16 = vshll.u32 %v11395_v0, 16 }
 0x196   : > { %v2987_v41 = vrot.slane %v2985_v33, 1  ;;  %5844 = vrot.lane.b32.xlu0 %v11235_v29, %s9691_s21  ;;  %v11400_v15 = vpop.permute.xlu1 %2109  ;;  %v11414_v33 = vsel %vm407_vm0, %v3735_v24, %v3739_v61  ;;  %v9494_v29 = vld [vmem:[%s9731_s16 + $0x68] ss:$0 sps:$4 sm:$0x11]   ;;  %v4126_v24 = vshrl.u32 %v11344_v21, 16  ;;  %v5187_v61 = vshll.u32 %v11392_v37, 16 }
 0x197   : > { %v2977_v45 = vrot.slane %v2975_v10, 1  ;;  %v2106_v2 = vpop.permute.xlu0 %2105  ;;  %v11444_v14 = vld [vmem:[%s9731_s16 + $0x8c] ss:$0 sps:$4 sm:$0x11]   ;;  %v5729_v36 = vshll.u32 %v11404_v39, 16  ;;  %v4133_v40 = vshll.u32 %v9493_v48, 16 }
 0x198   : > { %3857 = vrot.lane.b32.xlu1 %v11262_v23, %s9689_s17  ;;  %v2988_v49 = vsel %vm407_vm0, %v2984_v46, %v2987_v41  ;;  %v14306_v23 = vshrl.u32 %v10998_v27, 16  ;;  %v4114_v41 = vshrl.u32 %v11353_v4, 16  ;;  %v4118_v10 = vrot.slane %v4116_v54, 1  ;;  %v11450_v27 = vld [vmem:[%s9731_s16 + $0x6c] sm:$0xff]  }
 0x199   : > { %v2978_v51 = vsel %vm407_vm0, %v2974_v31, %v2977_v45  ;;  %v4121_v46 = vshll.u32 %v9494_v29, 16  ;;  %v5199_v9 = vshrl.u32 %v11381_v32, 16  ;;  %v5203_v45 = vrot.slane %v5201_v42, 1 }
 0x19a   : > { %5842 = vrot.lane.b32.xlu0 %v14306_v23, %s9691_s21  ;;  %v11440_v35 = vpop.permute.xlu1 %2107  ;;  %9157 = vmatprep.mubr.msk.bf16.mxu1 %vm1123_vm4, %v2978_v51  ;;  %v5206_v23 = vshll.u32 %v11418_v6, 16  ;;  %v5192_v48 = vshll.u32 %v11425_v63, 16  ;;  %v5185_v51 = vshrl.u32 %v11392_v37, 16  ;;  %v5189_v54 = vrot.slane %v5187_v61, 1 }
 0x19b   : > { %9158 = vmatmul.mubr.msk.bf16.gmra.mrb[24].mxu1 %vm1123_vm4, %v2988_v49  ;;  %v2298_v31 = vpop.permute.xlu0 %2297  ;;  %v5713_v29 = vshrl.u32 %v11395_v0, 16  ;;  %v5720_v43 = vshll.u32 %v11434_v17, 16  ;;  %v14307_v49 = vshrl.u32 %v11035_v60, 16  ;;  %v5717_v4 = vrot.slane %v5715_v16, 1 }
 0x19c   : > { %3859 = vrot.lane.b32.xlu1 %v11265_v59, %s9689_s17  ;;  %v5727_v32 = vshrl.u32 %v11404_v39, 16  ;;  %v5731_v42 = vrot.slane %v5729_v36, 1  ;;  %v5734_v21 = vshll.u32 %v11444_v14, 16  ;;  %v4131_v62 = vor.u32 %v4130_v8, %v4126_v24  ;;  %v9508_v61 = vld [vmem:[%s9731_s16 + $0x74] ss:$0 sps:$4 sm:$0x11]  }
 0x19d   : > { %v4135_v3 = vrot.slane %v4133_v40, 1  ;;  %v4119_v37 = vor.u32 %v4118_v10, %v4114_v41  ;;  %v3756_v0 = vshll.u32 %v11450_v27, 16  ;;  %v2713_v60 = vsel %vm1016_vm1, %v14308_v5, %v2106_v2  ;;  %v11476_v10 = vld [vmem:[%s9731_s16 + $0x78] sm:$0xf]  ;;  %v11489_v5 = vld [vmem:[%s9731_s16 + $0x24] sm:$0xf] }
 0x19e   : > { %5846 = vrot.lane.b32.xlu0 %v14307_v49, %s9691_s21  ;;  %v2634_v59 = vpop.permute.xlu1 %2633  ;;  %v4123_v39 = vrot.slane %v4121_v46, 1  ;;  %v5204_v36 = vor.u32 %v5203_v45, %v5199_v9  ;;  %v5208_v24 = vrot.slane %v5206_v23, 1  ;;  %v2778_v8 = vsel %vm1049_vm2, %v2713_v60, %v2298_v31 }
 0x19f   : > { %v2302_v16 = vpop.permute.xlu0 %2301  ;;  %v5190_v40 = vor.u32 %v5189_v54, %v5185_v51  ;;  %v5194_v41 = vrot.slane %v5192_v48, 1  ;;  %v5722_v49 = vrot.slane %v5720_v43, 1  ;;  %v11479_v18 = vsel %vm1082_vm3, %v2778_v8, %v2634_v59  ;;  %v11495_v43 = vld [vmem:[%s9731_s16 + $0x84] sm:$0xf]  ;;  %v11499_v48 = vld [vmem:[%s9731_s16 + $0x78] sm:$0xff]  }
 0x1a0   : > { %3971 = vrot.lane.b32.xlu1 %v11079_v25, %s9690_s18  ;;  %v11486_v25 = vld [vmem:[%s9731_s16 + $0x30] sm:$0xf]  ;;  %v5718_v2 = vor.u32 %v5717_v4, %v5713_v29  ;;  %v5732_v46 = vor.u32 %v5731_v42, %v5727_v32  ;;  %v5736_v31 = vrot.slane %v5734_v21, 1  ;;  %v11492_v9 = vsel %vm407_vm0, %v4131_v62, %v4135_v3  ;;  %v11517_v29 = vld [vmem:[%s9731_s16 + $0x34] sm:$0xf] }
 0x1a1   : > { %v3754_v45 = vshrl.u32 %v11450_v27, 16  ;;  %v3758_v23 = vrot.slane %v3756_v0, 1  ;;  %v11504_v4 = vsel %vm407_vm0, %v4119_v37, %v4123_v39  ;;  %v11507_v21 = vsel %vm407_vm0, %v5204_v36, %v5208_v24  ;;  %v11522_v59 = vld [vmem:[%s9731_s16 + $0x28] sm:$0xf] }
 0x1a2   : > { %3969 = vrot.lane.b32.xlu0 %v11113_v34, %s9690_s18  ;;  %v11483_v38 = vpop.permute.xlu1 %2299  ;;  %v3761_v34 = vshll.u32 %v9508_v61, 16  ;;  %v5196_v3 = vshrl.u32 %v11425_v63, 16  ;;  %v8623_v62 = vcombine.low %v11476_v10, %v11373_v55  ;;  %v2991_v27 = vshll.u32 %v11479_v18, 16 }
 0x1a3   : > { %v2112_v51 = vpop.permute.xlu0 %2111  ;;  %v11514_v54 = vsel %vm407_vm0, %v5190_v40, %v5194_v41  ;;  %v11529_v61 = vsel %vm407_vm0, %v5718_v2, %v5722_v49  ;;  %v8625_v0 = vcombine.low %v11495_v43, %v11384_v50  ;;  %v11535_v39 = vsel %vm407_vm0, %v5732_v46, %v5736_v31  ;;  %v9621_v49 = vld [vmem:[%s9731_s16 + $0xb0] ss:$0 sps:$4 sm:$0x11]  }
 0x1a4   : > { %4243 = vrot.lane.b32.xlu1 %v11278_v52, %s9691_s21  ;;  %v14309_v36 = vcombine.low %v11227_v13, %v11257_v47  ;;  %v11543_v8 = vor.u32 %v3758_v23, %v3754_v45  ;;  %v11545_v40 = vrot.slane %v3761_v34, 1  ;;  %v3768_v41 = vshll.u32 %v11499_v48, 16  ;;  %v9622_v23 = vld [vmem:[%s9731_s16 + $0xbc] ss:$0 sps:$4 sm:$0x11]  }
 0x1a5   : > { %v9101_v42 = vpop.f32.mrb[0].mxu0  ;;  %v2715_v2 = vsel %vm1016_vm1, %v9621_v49, %v11440_v35  ;;  %v2989_v46 = vshrl.u32 %v11479_v18, 16  ;;  %v2993_v45 = vrot.slane %v2991_v27, 1  ;;  %v2720_v34 = vsel %vm1016_vm1, %v9622_v23, %v2112_v51 }
 0x1a6   : > { %4241 = vrot.lane.b32.xlu0 %v11281_v12, %s9691_s21  ;;  %v2304_v37 = vpop.permute.xlu1 %2303  ;;  %v2718_v24 = vsel %vm1016_vm1, %v14309_v36, %v11400_v15  ;;  %1491 = vst.msk [vmem:[#allocation2 + $0x10] sm:$0xff] %vm1049_vm2, %v9101_v42  ;;  %v1190_v12 = vpop.f32.mrb[1].mxu0  ;;  %v1389_v51 = vmul.f32 %v9101_v42, %v9101_v42  ;;  %v14310_v32 = vshrl.u32 %v11177_v30, 16 }
 0x1a7   : > { %v2782_v13 = vsel %vm1049_vm2, %v2718_v24, %v2302_v16  ;;  %1489 = vst.msk [vmem:[#allocation2] sm:$0xff] %vm1049_vm2, %v1190_v12  ;;  %v9102_v47 = vpop.f32.mrb[2].mxu0  ;;  %v2638_v15 = vpop.permute.xlu0 %2637  ;;  %v1387_v36 = vmul.f32 %v1190_v12, %v1190_v12  ;;  %v1317_v16 = vsel %vm1049_vm2, %v1190_v12, 0.0  ;;  %v2784_v24 = vsel %vm1049_vm2, %v2720_v34, %v2304_v37 }
 0x1a8   : > { %5324 = vrot.lane.b32.xlu1 %v11284_v19, %s9689_s17  ;;  %1492 = vst.msk [vmem:[#allocation2 + $0x18] sm:$0xff] %vm1049_vm2, %v9102_v47  ;;  %v2846_v35 = vsel %vm1082_vm3, %v2782_v13, %v2638_v15  ;;  %v1193_v18 = vpop.f32.mrb[3].mxu0  ;;  %v2780_v13 = vsel %vm1049_vm2, %v2715_v2, %v11483_v38  ;;  %v1320_v12 = vsel %vm1049_vm2, %v9101_v42, 0.0  ;;  %v1390_v37 = vmul.f32 %v9102_v47, %v9102_v47 }
 0x1a9   : > { %v3001_v49 = vshll.u32 %v2846_v35, 16  ;;  %v1318_v52 = vsel %vm1049_vm2, %v1193_v18, 0.0  ;;  %1490 = vst.msk [vmem:[#allocation2 + $0x8] sm:$0xff] %vm1049_vm2, %v1193_v18  ;;  %v1388_v23 = vmul.f32 %v1193_v18, %v1193_v18 }
 0x1aa   : > { %5320 = vrot.lane.b32.xlu0 %v11301_v28, %s9689_s17  ;;  %v2640_v19 = vpop.permute.xlu1 %2639  ;;  %v1319_v27 = vadd.f32 %v1318_v52, %v1317_v16  ;;  %v1419_v28 = vsel %vm1049_vm2, %v1387_v36, 0.0  ;;  %v1322_v16 = vsel %vm1049_vm2, %v9102_v47, 0.0  ;;  %v2999_v36 = vshrl.u32 %v2846_v35, 16 }
 0x1ab   : > { %v2848_v31 = vsel %vm1082_vm3, %v2784_v24, %v2640_v19  ;;  %v2636_v34 = vpop.permute.xlu0 %2635  ;;  %v1420_v52 = vsel %vm1049_vm2, %v1388_v23, 0.0  ;;  %v3003_v24 = vrot.slane %v3001_v49, 1  ;;  %v1424_v35 = vsel %vm1049_vm2, %v1390_v37, 0.0 }
 0x1ac   : > { %v3005_v15 = vshll.u32 %v2848_v31, 16  ;;  %5322 = vrot.lane.b32.xlu1 %v14310_v32, %s9689_s17  ;;  %v1321_v60 = vadd.f32 %v1320_v12, %v1319_v27  ;;  %v2844_v18 = vsel %vm1082_vm3, %v2780_v13, %v2636_v34  ;;  %v1421_v38 = vadd.f32 %v1420_v52, %v1419_v28  ;;  %v9510_v34 = vld [vmem:[%s9731_s16 + $0x80] ss:$0 sps:$4 sm:$0x11]  }
 0x1ad   : > { %v2995_v2 = vshll.u32 %v2844_v18, 16  ;;  %v9105_v42 = vpop.f32.mrb[4].mxu0  ;;  %v14311_v31 = vcombine.low %v11250_v58, %v11190_v26  ;;  %v1422_v32 = vsel %vm1049_vm2, %v1389_v51, 0.0  ;;  %v2994_v51 = vor.u32 %v2993_v45, %v2989_v46 }
 0x1ae   : > { %v11582_v30 = vpop.permute.xlu1 %5300  ;;  %v3007_v19 = vrot.slane %v3005_v15, 1  ;;  %1495 = vst.msk [vmem:[#allocation2 + $0x30] sm:$0xff] %vm1049_vm2, %v9105_v42  ;;  %v1206_v27 = vpop.f32.mrb[5].mxu0  ;;  %v1323_v47 = vadd.f32 %v1322_v16, %v1321_v60  ;;  %v1423_v49 = vadd.f32 %v1422_v32, %v1421_v38  ;;  %v3766_v28 = vshrl.u32 %v11499_v48, 16 }
 0x1af   : > { %5512 = vrot.lane.b32.xlu0 %v14311_v31, %s9690_s18  ;;  %v2997_v23 = vrot.slane %v2995_v2, 1  ;;  %v1324_v13 = vsel %vm1049_vm2, %v1206_v27, 0.0  ;;  %v1391_v12 = vmul.f32 %v1206_v27, %v1206_v27  ;;  %1493 = vst.msk [vmem:[#allocation2 + $0x20] sm:$0xff] %vm1049_vm2, %v1206_v27  ;;  %v9106_v26 = vpop.f32.mrb[6].mxu0  ;;  %v5297_v58 = vpop.permute.xlu0 %5296  ;;  %v3004_v52 = vor.u32 %v3003_v24, %v2999_v36  ;;  %v11605_v24 = vld [vmem:[%s9731_s16 + $0x84] sm:$0xff]  }
 0x1b0   : > { %5848 = vrot.lane.b32.xlu1 %v11408_v56, %s9691_s21  ;;  %v1325_v15 = vadd.f32 %v1324_v13, %v1323_v47  ;;  %1496 = vst.msk [vmem:[#allocation2 + $0x38] sm:$0xff] %vm1049_vm2, %v9106_v26  ;;  %v1209_v60 = vpop.f32.mrb[7].mxu0  ;;  %v1425_v18 = vadd.f32 %v1424_v35, %v1423_v49  ;;  %v14312_v56 = vcombine.low %v11318_v22, %v11198_v11  ;;  %v1328_v32 = vsel %vm1049_vm2, %v9105_v42, 0.0 }
 0x1b1   : > { %v1426_v16 = vsel %vm1049_vm2, %v1391_v12, 0.0  ;;  %v1326_v38 = vsel %vm1049_vm2, %v1209_v60, 0.0  ;;  %1494 = vst.msk [vmem:[#allocation2 + $0x28] sm:$0xff] %vm1049_vm2, %v1209_v60  ;;  %v1393_v45 = vmul.f32 %v9105_v42, %v9105_v42  ;;  %v1392_v2 = vmul.f32 %v1209_v60, %v1209_v60  ;;  %v11630_v60 = vld [vmem:[%s9731_s16 + $0x78] sm:$0xff]  }
 0x1b2   : > { %v11601_v46 = vpop.permute.xlu1 %5298  ;;  %v1327_v37 = vadd.f32 %v1326_v38, %v1325_v15  ;;  %v2998_v31 = vsel %vm407_vm0, %v2994_v51, %v2997_v23  ;;  %v1427_v36 = vadd.f32 %v1426_v16, %v1425_v18  ;;  %v3008_v27 = vsel %vm407_vm0, %v3004_v52, %v3007_v19  ;;  %v11644_v38 = vld [vmem:[%s9731_s16 + $0x8c] ss:$0 sps:$4 sm:$0x11]  }
 0x1b3   : > { %5516 = vrot.lane.b32.xlu0 %v14312_v56, %s9690_s18  ;;  %9161 = vmatprep.mubr.msk.bf16.mxu1 %vm1123_vm4, %v2998_v31  ;;  %v5489_v47 = vpop.permute.xlu0 %5488  ;;  %v3770_v11 = vrot.slane %v3768_v41, 1  ;;  %v1394_v22 = vmul.f32 %v9106_v26, %v9106_v26  ;;  %v1428_v23 = vsel %vm1049_vm2, %v1392_v2, 0.0  ;;  %v3773_v42 = vshll.u32 %v9510_v34, 16 }
 0x1b4   : > { %5514 = vrot.lane.b32.xlu1 %v11244_v57, %s9690_s18  ;;  %v1329_v49 = vadd.f32 %v1328_v32, %v1327_v37  ;;  %9162 = vmatmul.mubr.msk.bf16.gmra.mrb[28].mxu1 %vm1123_vm4, %v3008_v27  ;;  %v1330_v13 = vsel %vm1049_vm2, %v9106_v26, 0.0  ;;  %v14313_v19 = vcombine.low %v11268_v7, %v11307_v1  ;;  %v1429_v51 = vadd.f32 %v1428_v23, %v1427_v36 }
 0x1b5   : > { %v9109_v35 = vpop.f32.mrb[8].mxu0  ;;  %v14314_v48 = vshrl.u32 %v11167_v53, 16  ;;  %v11627_v15 = vsel %vm407_vm0, %v11543_v8, %v11545_v40  ;;  %v1430_v26 = vsel %vm1049_vm2, %v1393_v45, 0.0  ;;  %v4152_v53 = vshll.u32 %v11605_v24, 16 }
 0x1b6   : > { %v5890_v12 = vsel %vm1016_vm1, %v14313_v19, %v5297_v58  ;;  %v5825_v41 = vpop.permute.xlu1 %5824  ;;  %1499 = vst.msk [vmem:[#allocation2 + $0x50] sm:$0xff] %vm1049_vm2, %v9109_v35  ;;  %v1222_v1 = vpop.f32.mrb[9].mxu0  ;;  %v1331_v58 = vadd.f32 %v1330_v13, %v1329_v49  ;;  %v1431_v34 = vadd.f32 %v1430_v26, %v1429_v51  ;;  %v1432_v56 = vsel %vm1049_vm2, %v1394_v22, 0.0 }
 0x1b7   : > { %5326 = vrot.lane.b32.xlu0 %v14314_v48, %s9689_s17  ;;  %v5969_v7 = vsel %vm1049_vm2, %v5890_v12, %v5489_v47  ;;  %v1332_v52 = vsel %vm1049_vm2, %v1222_v1, 0.0  ;;  %v1395_v18 = vmul.f32 %v1222_v1, %v1222_v1  ;;  %1497 = vst.msk [vmem:[#allocation2 + $0x40] sm:$0xff] %vm1049_vm2, %v1222_v1  ;;  %v9110_v40 = vpop.f32.mrb[10].mxu0  ;;  %v5493_v16 = vpop.permute.xlu0 %5492  ;;  %v11648_v2 = vor.u32 %v3770_v11, %v3766_v28  ;;  %v14316_v1 = vld [vmem:[#allocation4_spill] sm:$0xff] }
 0x1b8   : > { %v11639_v8 = vsel %vm1082_vm3, %v5969_v7, %v5825_v41  ;;  %5518 = vrot.lane.b32.xlu1 %v11271_v44, %s9690_s18  ;;  %v1333_v45 = vadd.f32 %v1332_v52, %v1331_v58  ;;  %1500 = vst.msk [vmem:[#allocation2 + $0x58] sm:$0xff] %vm1049_vm2, %v9110_v40  ;;  %v1225_v37 = vpop.f32.mrb[11].mxu0  ;;  %v11650_v31 = vrot.slane %v3773_v42, 1  ;;  %v1433_v32 = vadd.f32 %v1432_v56, %v1431_v34  ;;  %v14315_v7 = vld [vmem:[#allocation3_spill] sm:$0xff] }
 0x1b9   : > { %v1434_v36 = vsel %vm1049_vm2, %v1395_v18, 0.0  ;;  %1498 = vst.msk [vmem:[#allocation2 + $0x48] sm:$0xff] %vm1049_vm2, %v1225_v37  ;;  %v4150_v47 = vshrl.u32 %v11605_v24, 16  ;;  %v4140_v22 = vshll.u32 %v11630_v60, 16  ;;  %v1397_v49 = vmul.f32 %v9109_v35, %v9109_v35 }
 0x1ba   : > { %v5491_v27 = vpop.permute.xlu1 %5490  ;;  %v6098_v23 = vshll.u32 %v11639_v8, 16  ;;  %v1334_v28 = vsel %vm1049_vm2, %v1225_v37, 0.0  ;;  %v1396_v11 = vmul.f32 %v1225_v37, %v1225_v37  ;;  %v1435_v42 = vadd.f32 %v1434_v36, %v1433_v32 }
 0x1bb   : > { %5852 = vrot.lane.b32.xlu0 %v11411_v20, %s9691_s21  ;;  %v1335_v13 = vadd.f32 %v1334_v28, %v1333_v45  ;;  %v5303_v19 = vpop.permute.xlu0 %5302  ;;  %v11662_v12 = vrot.slane %v4152_v53, 1  ;;  %v4157_v20 = vshll.u32 %v11644_v38, 16  ;;  %v1336_v51 = vsel %vm1049_vm2, %v9109_v35, 0.0 }
 0x1bc   : > { %3861 = vrot.lane.b32.xlu1 %v11414_v33, %s9689_s17  ;;  %v1398_v48 = vmul.f32 %v9110_v40, %v9110_v40  ;;  %v1436_v41 = vsel %vm1049_vm2, %v1396_v11, 0.0  ;;  %v4138_v26 = vshrl.u32 %v11630_v60, 16  ;;  %v14317_v58 = vcombine.low %v14315_v7, %v14316_v1 }
 0x1bd   : > { %v1337_v52 = vadd.f32 %v1336_v51, %v1335_v13  ;;  %v1437_v18 = vadd.f32 %v1436_v41, %v1435_v42  ;;  %v9113_v33 = vpop.f32.mrb[12].mxu0  ;;  %v14318_v53 = vshrl.u32 %v11244_v57, 16  ;;  %v11676_v35 = vrot.slane %v4140_v22, 1  ;;  %v14319_v51 = vld [vmem:[#allocation7_spill] sm:$0xff] }
 0x1be   : > { %v5895_v34 = vsel %vm1016_vm1, %v14317_v58, %v11582_v30  ;;  %v5495_v56 = vpop.permute.xlu1 %5494  ;;  %v1438_v45 = vsel %vm1049_vm2, %v1397_v49, 0.0  ;;  %v6100_v37 = vrot.slane %v6098_v23, 1  ;;  %v1338_v32 = vsel %vm1049_vm2, %v9110_v40, 0.0  ;;  %1503 = vst.msk [vmem:[#allocation2 + $0x70] sm:$0xff] %vm1049_vm2, %v9113_v33  ;;  %v1238_v30 = vpop.f32.mrb[13].mxu0 }
 0x1bf   : > { %5850 = vrot.lane.b32.xlu0 %v14318_v53, %s9691_s21  ;;  %v5973_v36 = vsel %vm1049_vm2, %v5895_v34, %v5493_v16  ;;  %v1439_v28 = vadd.f32 %v1438_v45, %v1437_v18  ;;  %v1339_v11 = vadd.f32 %v1338_v32, %v1337_v52  ;;  %v1340_v42 = vsel %vm1049_vm2, %v1238_v30, 0.0  ;;  %1501 = vst.msk [vmem:[#allocation2 + $0x60] sm:$0xff] %vm1049_vm2, %v1238_v30  ;;  %v9114_v13 = vpop.f32.mrb[14].mxu0  ;;  %v5829_v22 = vpop.permute.xlu0 %5828  ;;  %v9623_v49 = vld [vmem:[%s9731_s16 + $0x14] ss:$0 sps:$4 sm:$0x11]  }
 0x1c0   : > { %v1399_v57 = vmul.f32 %v1238_v30, %v1238_v30  ;;  %3863 = vrot.lane.b32.xlu1 %v14319_v51, %s9689_s17  ;;  %v5892_v40 = vsel %vm1016_vm1, %v9623_v49, %v11601_v46  ;;  %v6096_v16 = vshrl.u32 %v11639_v8, 16  ;;  %v1440_v23 = vsel %vm1049_vm2, %v1398_v48, 0.0  ;;  %1504 = vst.msk [vmem:[#allocation2 + $0x78] sm:$0xff] %vm1049_vm2, %v9114_v13  ;;  %v1241_v7 = vpop.f32.mrb[15].mxu0 }
 0x1c1   : > { %v6037_v41 = vsel %vm1082_vm3, %v5973_v36, %v5829_v22  ;;  %v5971_v1 = vsel %vm1049_vm2, %v5892_v40, %v5491_v27  ;;  %v1341_v58 = vadd.f32 %v1340_v42, %v1339_v11  ;;  %v1441_v34 = vadd.f32 %v1440_v23, %v1439_v28  ;;  %1502 = vst.msk [vmem:[#allocation2 + $0x68] sm:$0xff] %vm1049_vm2, %v1241_v7  ;;  %v9624_v36 = vld [vmem:[%s9731_s16 + $0x20] ss:$0 sps:$4 sm:$0x11]   ;;  %v14321_v42 = vld [vmem:[#allocation5_spill] sm:$0xff] }
 0x1c2   : > { %v1442_v52 = vsel %vm1049_vm2, %v1399_v57, 0.0  ;;  %v14320_v46 = vshrl.u32 %v11271_v44, 16  ;;  %v3850_v8 = vpop.permute.xlu1 %3849  ;;  %v1401_v48 = vmul.f32 %v9113_v33, %v9113_v33  ;;  %v6108_v18 = vshll.u32 %v6037_v41, 16 }
 0x1c3   : > { %v1342_v53 = vsel %vm1049_vm2, %v1241_v7, 0.0  ;;  %v1400_v45 = vmul.f32 %v1241_v7, %v1241_v7  ;;  %v6101_v32 = vor.u32 %v6100_v37, %v6096_v16  ;;  %v5897_v27 = vsel %vm1016_vm1, %v9624_v36, %v5303_v19  ;;  %v5827_v11 = vpop.permute.xlu0 %5826  ;;  %v14322_v19 = vld [vmem:[#allocation6_spill] sm:$0xff] }
 0x1c4   : > { %5854 = vrot.lane.b32.xlu0 %v14320_v46, %s9691_s21  ;;  %v1443_v30 = vadd.f32 %v1442_v52, %v1441_v34  ;;  %v1343_v28 = vadd.f32 %v1342_v53, %v1341_v58  ;;  %3975 = vrot.lane.b32.xlu1 %v14321_v42, %s9690_s18  ;;  %v1344_v57 = vsel %vm1049_vm2, %v9113_v33, 0.0  ;;  %v1402_v44 = vmul.f32 %v9114_v13, %v9114_v13 }
 0x1c5   : > { %v1444_v22 = vsel %vm1049_vm2, %v1400_v45, 0.0  ;;  %v6035_v51 = vsel %vm1082_vm3, %v5971_v1, %v5827_v11  ;;  %v5975_v49 = vsel %vm1049_vm2, %v5897_v27, %v5495_v56  ;;  %v9117_v23 = vpop.f32.mrb[16].mxu0  ;;  %v1446_v58 = vsel %vm1049_vm2, %v1401_v48, 0.0 }
 0x1c6   : > { %v1345_v40 = vadd.f32 %v1344_v57, %v1343_v28  ;;  %v1445_v37 = vadd.f32 %v1444_v22, %v1443_v30  ;;  %v6102_v16 = vshll.u32 %v6035_v51, 16  ;;  %v3852_v7 = vpop.permute.xlu1 %3851  ;;  %v1346_v33 = vsel %vm1049_vm2, %v9114_v13, 0.0  ;;  %1507 = vst.msk [vmem:[#allocation2 + $0x90] sm:$0xff] %vm1049_vm2, %v9117_v23  ;;  %v1254_v1 = vpop.f32.mrb[17].mxu0  ;;  %v9625_v13 = vld [vmem:[%s9731_s16 + $0xc] sm:$0xff]  }
 0x1c7   : > { %v6106_v34 = vshrl.u32 %v6037_v41, 16  ;;  %v6110_v52 = vrot.slane %v6108_v18, 1  ;;  %v1348_v45 = vsel %vm1049_vm2, %v1254_v1, 0.0  ;;  %1505 = vst.msk [vmem:[#allocation2 + $0x80] sm:$0xff] %vm1049_vm2, %v1254_v1  ;;  %v9118_v36 = vpop.f32.mrb[18].mxu0  ;;  %v5831_v27 = vpop.permute.xlu0 %5830  ;;  %v1448_v48 = vsel %vm1049_vm2, %v1402_v44, 0.0 }
 0x1c8   : > { %3973 = vrot.lane.b32.xlu0 %v14322_v19, %s9690_s18  ;;  %v1447_v46 = vadd.f32 %v1446_v58, %v1445_v37  ;;  %v6104_v56 = vrot.slane %v6102_v16, 1  ;;  %v1347_v53 = vadd.f32 %v1346_v33, %v1345_v40  ;;  %4247 = vrot.lane.b32.xlu1 %v11492_v9, %s9691_s21  ;;  %v4266_v41 = vsel %vm1016_vm1, %v9625_v13, %v3850_v8  ;;  %v1257_v28 = vpop.f32.mrb[19].mxu0 }
 0x1c9   : > { %v1405_v18 = vmul.f32 %v9117_v23, %v9117_v23  ;;  %v1403_v30 = vmul.f32 %v1254_v1, %v1254_v1  ;;  %1508 = vst.msk [vmem:[#allocation2 + $0x98] sm:$0xff] %vm1049_vm2, %v9118_v36  ;;  %v6039_v57 = vsel %vm1082_vm3, %v5975_v49, %v5831_v27  ;;  %v1350_v22 = vsel %vm1049_vm2, %v1257_v28, 0.0  ;;  %1506 = vst.msk [vmem:[#allocation2 + $0x88] sm:$0xff] %vm1049_vm2, %v1257_v28  ;;  %v8490_v27 = vld [vmem:[%s9731_s16 + $0x90] sm:$0xe] }
 0x1ca   : > { %v1349_v11 = vadd.f32 %v1348_v45, %v1347_v53  ;;  %v1449_v42 = vadd.f32 %v1448_v48, %v1447_v46  ;;  %v3964_v9 = vpop.permute.xlu1 %3963  ;;  %v6111_v44 = vor.u32 %v6110_v52, %v6106_v34  ;;  %v6112_v51 = vshll.u32 %v6039_v57, 16 }
 0x1cb   : > { %v1450_v8 = vsel %vm1049_vm2, %v1403_v30, 0.0  ;;  %v1404_v40 = vmul.f32 %v1257_v28, %v1257_v28  ;;  %v1352_v37 = vsel %vm1049_vm2, %v9117_v23, 0.0  ;;  %v6105_v49 = vsel %vm407_vm0, %v6101_v32, %v6104_v56  ;;  %v3962_v58 = vpop.permute.xlu0 %3961  ;;  %v11736_v23 = vld [vmem:[%s9731_s16 + $0x80] ss:$0 sps:$4 sm:$0x11]  }
 0x1cc   : > { %4245 = vrot.lane.b32.xlu0 %v11504_v4, %s9691_s21  ;;  %v1451_v16 = vadd.f32 %v1450_v8, %v1449_v42  ;;  %v1351_v19 = vadd.f32 %v1350_v22, %v1349_v11  ;;  %5332 = vrot.lane.b32.xlu1 %v11507_v21, %s9689_s17  ;;  %v9626_v4 = vld [vmem:[%s9731_s16 + $0x18] sm:$0xff]   ;;  %v1406_v34 = vmul.f32 %v9118_v36, %v9118_v36  ;;  %v6114_v52 = vrot.slane %v6112_v51, 1 }
 0x1cd   : > { %v4268_v33 = vsel %vm1016_vm1, %v9626_v4, %v3852_v7  ;;  %v1452_v1 = vsel %vm1049_vm2, %v1404_v40, 0.0  ;;  %9201 = vmatprep.mubr.msk.bf16.mxu1 %vm1123_vm4, %v6105_v49  ;;  %v1454_v46 = vsel %vm1049_vm2, %v1405_v18, 0.0  ;;  %v9121_v45 = vpop.f32.mrb[20].mxu0  ;;  %v8465_v7 = vld [vmem:[%s9731_s16 + $0x94] sm:$0xf]  ;;  %v1354_v48 = vsel %vm1049_vm2, %v9118_v36, 0.0 }
 0x1ce   : > { %v1353_v32 = vadd.f32 %v1352_v37, %v1351_v19  ;;  %v1453_v56 = vadd.f32 %v1452_v1, %v1451_v16  ;;  %v4300_v53 = vsel %vm1049_vm2, %v4268_v33, %v3964_v9  ;;  %v4236_v21 = vpop.permute.xlu1 %4235  ;;  %v6115_v13 = vsel %vm407_vm0, %v6111_v44, %v6114_v52  ;;  %1511 = vst.msk [vmem:[#allocation2 + $0xb0] sm:$0xff] %vm1049_vm2, %v9121_v45  ;;  %v1270_v18 = vpop.f32.mrb[21].mxu0  ;;  %v11779_v33 = vld [vmem:[%s9731_s16 + $0x98] ss:$0 sps:$4 sm:$0x11]  }
 0x1cf   : > { %v4298_v30 = vsel %vm1049_vm2, %v4266_v41, %v3962_v58  ;;  %v4332_v28 = vsel %vm1082_vm3, %v4300_v53, %v4236_v21  ;;  %v1356_v57 = vsel %vm1049_vm2, %v1270_v18, 0.0  ;;  %v1407_v22 = vmul.f32 %v1270_v18, %v1270_v18  ;;  %1509 = vst.msk [vmem:[#allocation2 + $0xa0] sm:$0xff] %vm1049_vm2, %v1270_v18  ;;  %9202 = vmatmul.mubr.msk.bf16.vlgmr.msra.gmra.mrb[32].mxu1 %vm1123_vm4, %v6115_v13  ;;  %v4234_v36 = vpop.permute.xlu0 %4233  ;;  %v8462_v1 = vld [vmem:[%s9731_s16 + $0x88] sm:$0xf] }
 0x1d0   : > { %5328 = vrot.lane.b32.xlu0 %v11514_v54, %s9689_s17  ;;  %v1455_v11 = vadd.f32 %v1454_v46, %v1453_v56  ;;  %v1355_v42 = vadd.f32 %v1354_v48, %v1353_v32  ;;  %v9122_v54 = vpop.f32.mrb[22].mxu0  ;;  %5330 = vrot.lane.b32.xlu1 %v5196_v3, %s9689_s17  ;;  %v1456_v41 = vsel %vm1049_vm2, %v1406_v34, 0.0  ;;  %v4330_v9 = vsel %vm1082_vm3, %v4298_v30, %v4234_v36 }
 0x1d1   : > { %1512 = vst.msk [vmem:[#allocation2 + $0xb8] sm:$0xff] %vm1049_vm2, %v9122_v54  ;;  %v1273_v44 = vpop.f32.mrb[23].mxu0  ;;  %v4145_v8 = vshll.u32 %v11736_v23, 16  ;;  %v11759_v51 = vcombine.low %v8490_v27, %v8465_v7  ;;  %v1458_v16 = vsel %vm1049_vm2, %v1407_v22, 0.0  ;;  %9167 = vmatprep.mubr.msk.bf16.mxu0 %vm1123_vm4, %v4330_v9  ;;  %v1409_v3 = vmul.f32 %v9121_v45, %v9121_v45 }
 0x1d2   : > { %v1357_v40 = vadd.f32 %v1356_v57, %v1355_v42  ;;  %v1457_v37 = vadd.f32 %v1456_v41, %v1455_v11  ;;  %v1358_v19 = vsel %vm1049_vm2, %v1273_v44, 0.0  ;;  %1510 = vst.msk [vmem:[#allocation2 + $0xa8] sm:$0xff] %vm1049_vm2, %v1273_v44  ;;  %v11769_v63 = vpop.permute.xlu1 %5308  ;;  %v1408_v49 = vmul.f32 %v1273_v44, %v1273_v44  ;;  %9168 = vmatmul.mubr.msk.bf16.vlgmr.msra.gmra.mrb[32].mxu0 %vm1123_vm4, %v4332_v28  ;;  %v11825_v9 = vld [vmem:[%s9731_s16 + $0x8c] ss:$0 sps:$4 sm:$0x11]  }
 0x1d3   : > { %v11775_v58 = vsel %vm407_vm0, %v11648_v2, %v11650_v31  ;;  %v5738_v4 = vshrl.u32 %v11444_v14, 16  ;;  %v4155_v34 = vor.u32 %v11662_v12, %v4150_v47  ;;  %v4159_v52 = vrot.slane %v4157_v20, 1  ;;  %v8489_v2 = vld [vmem:[%s9731_s16 + $0x84] sm:$0xe] }
 0x1d4   : > { %5520 = vrot.lane.b32.xlu0 %v8623_v62, %s9690_s18  ;;  %v1459_v55 = vadd.f32 %v1458_v16, %v1457_v37  ;;  %v1359_v10 = vadd.f32 %v1358_v19, %v1357_v40  ;;  %v5305_v62 = vpop.permute.xlu0 %5304  ;;  %5856 = vrot.lane.b32.xlu1 %v11529_v61, %s9691_s21  ;;  %v1360_v31 = vsel %vm1049_vm2, %v9121_v45, 0.0  ;;  %v1410_v23 = vmul.f32 %v9122_v54, %v9122_v54 }
 0x1d5   : > { %v1460_v46 = vsel %vm1049_vm2, %v1408_v49, 0.0  ;;  %v5229_v32 = vshll.u32 %v11759_v51, 16  ;;  %v9125_v21 = vpop.f32.mrb[24].mxu0  ;;  %v4143_v38 = vor.u32 %v11676_v35, %v4138_v26  ;;  %v4147_v47 = vrot.slane %v4145_v8, 1  ;;  %v11835_v49 = vld [vmem:[%s9731_s16 + $0x94] sm:$0xf] }
 0x1d6   : > { %v1361_v56 = vadd.f32 %v1360_v31, %v1359_v10  ;;  %v1461_v53 = vadd.f32 %v1460_v46, %v1459_v55  ;;  %v11797_v61 = vpop.permute.xlu1 %5306  ;;  %v1462_v12 = vsel %vm1049_vm2, %v1409_v3, 0.0  ;;  %v1362_v20 = vsel %vm1049_vm2, %v9122_v54, 0.0  ;;  %1515 = vst.msk [vmem:[#allocation2 + $0xd0] sm:$0xff] %vm1049_vm2, %v9125_v21  ;;  %v1286_v45 = vpop.f32.mrb[25].mxu0  ;;  %v8553_v55 = vld [vmem:[%s9731_s16 + $0x90] sm:$0xe] }
 0x1d7   : > { %v5234_v7 = vshll.u32 %v11779_v33, 16  ;;  %v11806_v27 = vcombine.low %v8489_v2, %v8462_v1  ;;  %v1411_v48 = vmul.f32 %v1286_v45, %v1286_v45  ;;  %1513 = vst.msk [vmem:[#allocation2 + $0xc0] sm:$0xff] %vm1049_vm2, %v1286_v45  ;;  %v9126_v26 = vpop.f32.mrb[26].mxu0  ;;  %v1464_v13 = vsel %vm1049_vm2, %v1410_v23, 0.0 }
 0x1d8   : > { %5524 = vrot.lane.b32.xlu0 %v8625_v0, %s9690_s18  ;;  %v1463_v50 = vadd.f32 %v1462_v12, %v1461_v53  ;;  %v1363_v43 = vadd.f32 %v1362_v20, %v1361_v56  ;;  %v1364_v0 = vsel %vm1049_vm2, %v1286_v45, 0.0  ;;  %v5497_v35 = vpop.permute.xlu0 %5496  ;;  %5522 = vrot.lane.b32.xlu1 %v11434_v17, %s9690_s18  ;;  %1516 = vst.msk [vmem:[#allocation2 + $0xd8] sm:$0xff] %vm1049_vm2, %v9126_v26  ;;  %v1289_v30 = vpop.f32.mrb[27].mxu0  ;;  %v5227_v28 = vshrl.u32 %v11759_v51, 16 }
 0x1d9   : > { %v11815_v18 = vsel %vm407_vm0, %v4155_v34, %v4159_v52  ;;  %v5231_v11 = vrot.slane %v5229_v32, 1  ;;  %v1466_v22 = vsel %vm1049_vm2, %v1411_v48, 0.0  ;;  %v1366_v54 = vsel %vm1049_vm2, %v1289_v30, 0.0  ;;  %1514 = vst.msk [vmem:[#allocation2 + $0xc8] sm:$0xff] %vm1049_vm2, %v1289_v30 }
 0x1da   : > { %v1365_v42 = vadd.f32 %v1364_v0, %v1363_v43  ;;  %v1465_v57 = vadd.f32 %v1464_v13, %v1463_v50  ;;  %v14323_v36 = vshrl.u32 %v11418_v6, 16  ;;  %v5833_v41 = vpop.permute.xlu1 %5832  ;;  %v1413_v44 = vmul.f32 %v9125_v21, %v9125_v21 }
 0x1db   : > { %v1412_v8 = vmul.f32 %v1289_v30, %v1289_v30  ;;  %v11828_v51 = vsel %vm407_vm0, %v4143_v38, %v4147_v47  ;;  %v5236_v40 = vrot.slane %v5234_v7, 1  ;;  %v5213_v3 = vshrl.u32 %v11806_v27, 16 }
 0x1dc   : > { %5334 = vrot.lane.b32.xlu0 %v14323_v36, %s9689_s17  ;;  %v1467_v37 = vadd.f32 %v1466_v22, %v1465_v57  ;;  %v1367_v16 = vadd.f32 %v1366_v54, %v1365_v42  ;;  %v5501_v19 = vpop.permute.xlu0 %5500  ;;  %5526 = vrot.lane.b32.xlu1 %v11444_v14, %s9690_s18  ;;  %v5215_v6 = vshll.u32 %v11806_v27, 16  ;;  %v1368_v10 = vsel %vm1049_vm2, %v9125_v21, 0.0  ;;  %v9526_v27 = vld [vmem:[%s9731_s16 + $0x8c] ss:$0 sps:$4 sm:$0x11]  }
 0x1dd   : > { %v1414_v34 = vmul.f32 %v9126_v26, %v9126_v26  ;;  %v1468_v52 = vsel %vm1049_vm2, %v1412_v8, 0.0  ;;  %v5232_v1 = vor.u32 %v5231_v11, %v5227_v28  ;;  %v14324_v2 = vcombine.low %v11489_v5, %v11522_v59  ;;  %v9129_v32 = vpop.f32.mrb[28].mxu0 }
 0x1de   : > { %v1369_v23 = vadd.f32 %v1368_v10, %v1367_v16  ;;  %v1469_v46 = vadd.f32 %v1468_v52, %v1467_v37  ;;  %v5499_v56 = vpop.permute.xlu1 %5498  ;;  %v5220_v53 = vshll.u32 %v11825_v9, 16  ;;  %v1470_v21 = vsel %vm1049_vm2, %v1413_v44, 0.0  ;;  %1519 = vst.msk [vmem:[#allocation2 + $0xf0] sm:$0xff] %vm1049_vm2, %v9129_v32  ;;  %v1302_v5 = vpop.f32.mrb[29].mxu0 }
 0x1df   : > { %v5900_v31 = vsel %vm1016_vm1, %v14324_v2, %v5305_v62  ;;  %v1370_v38 = vsel %vm1049_vm2, %v9126_v26, 0.0  ;;  %v11852_v59 = vcombine.low %v8553_v55, %v11835_v49  ;;  %v1372_v20 = vsel %vm1049_vm2, %v1302_v5, 0.0  ;;  %1517 = vst.msk [vmem:[#allocation2 + $0xe0] sm:$0xff] %vm1049_vm2, %v1302_v5  ;;  %v9130_v45 = vpop.f32.mrb[30].mxu0 }
 0x1e0   : > { %5860 = vrot.lane.b32.xlu0 %v11535_v39, %s9691_s21  ;;  %v5977_v47 = vsel %vm1049_vm2, %v5900_v31, %v5497_v35  ;;  %v1471_v62 = vadd.f32 %v1470_v21, %v1469_v46  ;;  %v1371_v39 = vadd.f32 %v1370_v38, %v1369_v23  ;;  %v5311_v7 = vpop.permute.xlu0 %5310  ;;  %3865 = vrot.lane.b32.xlu1 %v11627_v15, %s9689_s17  ;;  %v1472_v50 = vsel %vm1049_vm2, %v1414_v34, 0.0  ;;  %v1305_v0 = vpop.f32.mrb[31].mxu0  ;;  %v11890_v55 = vld [vmem:[%s9731_s16 + $0x98] ss:$0 sps:$4 sm:$0x11]  }
 0x1e1   : > { %v11855_v12 = vsel %vm1082_vm3, %v5977_v47, %v5833_v41  ;;  %v1415_v43 = vmul.f32 %v1302_v5, %v1302_v5  ;;  %1520 = vst.msk [vmem:[#allocation2 + $0xf8] sm:$0xff] %vm1049_vm2, %v9130_v45  ;;  %v11864_v48 = vsel %vm407_vm0, %v5232_v1, %v5236_v40  ;;  %v5217_v26 = vrot.slane %v5215_v6, 1  ;;  %1518 = vst.msk [vmem:[#allocation2 + $0xe8] sm:$0xff] %vm1049_vm2, %v1305_v0  ;;  %v9627_v1 = vld [vmem:[%s9731_s16 + $0x2c] ss:$0 sps:$4 sm:$0x11]  }
 0x1e2   : > { %v14325_v35 = vcombine.low %v11486_v25, %v11517_v29  ;;  %v1373_v30 = vadd.f32 %v1372_v20, %v1371_v39  ;;  %v1473_v15 = vadd.f32 %v1472_v50, %v1471_v62  ;;  %v1374_v28 = vsel %vm1049_vm2, %v1305_v0, 0.0  ;;  %v5503_v42 = vpop.permute.xlu1 %5502  ;;  %v11879_v29 = vld [vmem:[%s9731_s16 + $0xa0] sm:$0xf] }
 0x1e3   : > { %v14326_v11 = vshrl.u32 %v11434_v17, 16  ;;  %v6118_v57 = vshll.u32 %v11855_v12, 16  ;;  %v1417_v22 = vmul.f32 %v9129_v32, %v9129_v32  ;;  %v1474_v54 = vsel %vm1049_vm2, %v1415_v43, 0.0 }
 0x1e4   : > { %v5905_v13 = vsel %vm1016_vm1, %v14325_v35, %v11769_v63  ;;  %v1416_v25 = vmul.f32 %v1305_v0, %v1305_v0  ;;  %v8554_v63 = vld [vmem:[%s9731_s16 + $0x9c] sm:$0xe]  ;;  %v1475_v41 = vadd.f32 %v1474_v54, %v1473_v15  ;;  %v1375_v44 = vadd.f32 %v1374_v28, %v1373_v30  ;;  %v5837_v8 = vpop.permute.xlu0 %5836  ;;  %3867 = vrot.lane.b32.xlu1 %v11775_v58, %s9689_s17  ;;  %v11930_v35 = vld [vmem:[%s9731_s16 + $0xa4] ss:$0 sps:$4 sm:$0x11]  }
 0x1e5   : > { %5858 = vrot.lane.b32.xlu0 %v14326_v11, %s9691_s21  ;;  %v5981_v36 = vsel %vm1049_vm2, %v5905_v13, %v5501_v19  ;;  %v5743_v17 = vshll.u32 %v11852_v59, 16  ;;  %v1376_v40 = vsel %vm1049_vm2, %v9129_v32, 0.0  ;;  %v1418_v37 = vmul.f32 %v9130_v45, %v9130_v45  ;;  %v11907_v32 = vld [vmem:[%s9731_s16 + $0x84] sm:$0xff]  }
 0x1e6   : > { %v1476_v16 = vsel %vm1049_vm2, %v1416_v25, 0.0  ;;  %v6045_v6 = vsel %vm1082_vm3, %v5981_v36, %v5837_v8  ;;  %v1377_v19 = vadd.f32 %v1376_v40, %v1375_v44  ;;  %v11895_v34 = vpop.permute.xlu1 %3853  ;;  %v5741_v58 = vshrl.u32 %v11852_v59, 16 }
 0x1e7   : > { %v1477_v10 = vadd.f32 %v1476_v16, %v1475_v41  ;;  %v11899_v52 = vcombine.low %v8554_v63, %v11879_v29  ;;  %v5902_v2 = vsel %vm1016_vm1, %v9627_v1, %v11797_v61  ;;  %v6120_v31 = vrot.slane %v6118_v57, 1  ;;  %v11940_v57 = vld [vmem:[%s9731_s16 + $0x90] sm:$0xff]  }
 0x1e8   : > { %v1478_v23 = vsel %vm1049_vm2, %v1417_v22, 0.0  ;;  %v1378_v46 = vsel %vm1049_vm2, %v9130_v45, 0.0  ;;  %v5979_v14 = vsel %vm1049_vm2, %v5902_v2, %v5499_v56  ;;  %v6128_v38 = vshll.u32 %v6045_v6, 16  ;;  %v5835_v47 = vpop.permute.xlu0 %5834  ;;  %3979 = vrot.lane.b32.xlu1 %v11605_v24, %s9690_s18  ;;  %v9628_v24 = vld [vmem:[%s9731_s16 + $0x38] ss:$0 sps:$4 sm:$0x11]  }
 0x1e9   : > { %5862 = vrot.lane.b32.xlu0 %v5738_v4, %s9691_s21  ;;  %v11910_v4 = vadd.f32 %v1378_v46, %v1377_v19  ;;  %v1479_v21 = vadd.f32 %v1478_v23, %v1477_v10  ;;  %v1480_v61 = vsel %vm1049_vm2, %v1418_v37, 0.0  ;;  %v6043_v5 = vsel %vm1082_vm3, %v5979_v14, %v5835_v47  ;;  %v8525_v63 = vld [vmem:[%s9731_s16 + $0x90] sm:$0xf]  ;;  %v8471_v23 = vld [vmem:[%s9731_s16 + $0xac] sm:$0xf] }
 0x1ea   : > { %v5745_v59 = vrot.slane %v5743_v17, 1  ;;  %v5748_v62 = vshll.u32 %v11890_v55, 16  ;;  %v6116_v39 = vshrl.u32 %v11855_v12, 16  ;;  %v6122_v20 = vshll.u32 %v6043_v5, 16  ;;  %v3856_v45 = vpop.permute.xlu1 %3855  ;;  %v9629_v1 = vld [vmem:[%s9731_s16 + $0x30] sm:$0xff]  }
 0x1eb   : > { %v11918_v56 = vadd.f32 %v1480_v61, %v1479_v21  ;;  %v5757_v50 = vshll.u32 %v11899_v52, 16  ;;  %v5907_v43 = vsel %vm1016_vm1, %v9628_v24, %v5311_v7  ;;  %v5218_v0 = vor.u32 %v5217_v26, %v5213_v3  ;;  %v8492_v46 = vld [vmem:[%s9731_s16 + $0xa8] sm:$0xe]  ;;  %v11975_v61 = vld [vmem:[%s9731_s16 + $0x98] ss:$0 sps:$4 sm:$0x11]  }
 0x1ec   : > { %v5222_v12 = vrot.slane %v5220_v53, 1  ;;  %v3780_v13 = vshll.u32 %v11907_v32, 16  ;;  %v6121_v30 = vor.u32 %v6120_v31, %v6116_v39  ;;  %v6130_v15 = vrot.slane %v6128_v38, 1  ;;  %v5839_v11 = vpop.permute.xlu0 %5838  ;;  %4251 = vrot.lane.b32.xlu1 %v11815_v18, %s9691_s21  ;;  %v11978_v5 = vld [vmem:[%s9731_s16 + $0x90] sm:$0xff]  }
 0x1ed   : > { %3977 = vrot.lane.b32.xlu0 %v11630_v60, %s9690_s18  ;;  %v5983_v60 = vsel %vm1049_vm2, %v5907_v43, %v5503_v42  ;;  %v6124_v28 = vrot.slane %v6122_v20, 1  ;;  %v5746_v7 = vor.u32 %v5745_v59, %v5741_v58  ;;  %v5750_v26 = vrot.slane %v5748_v62, 1  ;;  %v11959_v58 = vld [vmem:[%s9731_s16 + $0x9c] sm:$0xf] }
 0x1ee   : > { %v6047_v3 = vsel %vm1082_vm3, %v5983_v60, %v5839_v11  ;;  %v5755_v53 = vshrl.u32 %v11899_v52, 16  ;;  %v6126_v22 = vshrl.u32 %v6045_v6, 16  ;;  %v3968_v25 = vpop.permute.xlu1 %3967  ;;  %v5759_v18 = vrot.slane %v5757_v50, 1  ;;  %v11954_v6 = vld [vmem:[%s9731_s16 + $0x9c] sm:$0xff]  }
 0x1ef   : > { %v6132_v54 = vshll.u32 %v6047_v3, 16  ;;  %v6125_v42 = vsel %vm407_vm0, %v6121_v30, %v6124_v28  ;;  %v5223_v36 = vsel %vm407_vm0, %v5218_v0, %v5222_v12  ;;  %v5762_v41 = vshll.u32 %v11930_v35, 16  ;;  %v11990_v0 = vld [vmem:[%s9731_s16 + $0xa4] ss:$0 sps:$4 sm:$0x11]  }
 0x1f0   : > { %9205 = vmatprep.mubr.msk.bf16.mxu1 %vm1123_vm4, %v6125_v42  ;;  %v3778_v44 = vshrl.u32 %v11907_v32, 16  ;;  %v3782_v8 = vrot.slane %v3780_v13, 1  ;;  %v6131_v17 = vor.u32 %v6130_v15, %v6126_v22  ;;  %5340 = vrot.lane.b32.xlu1 %v11864_v48, %s9689_s17  ;;  %v5224_v37 = vshrl.u32 %v11825_v9, 16  ;;  %v9630_v32 = vld [vmem:[%s9731_s16 + $0x24] sm:$0xff]   ;;  %v8468_v28 = vld [vmem:[%s9731_s16 + $0xa0] sm:$0xf] }
 0x1f1   : > { %4249 = vrot.lane.b32.xlu0 %v11828_v51, %s9691_s21  ;;  %v6134_v40 = vrot.slane %v6132_v54, 1  ;;  %v3966_v51 = vpop.permute.xlu0 %3965  ;;  %v3785_v16 = vshll.u32 %v9526_v27, 16  ;;  %v8627_v19 = vcombine.low %v8525_v63, %v11835_v49  ;;  %v5751_v10 = vsel %vm407_vm0, %v5746_v7, %v5750_v26  ;;  %v8491_v11 = vld [vmem:[%s9731_s16 + $0x9c] sm:$0xe]  ;;  %v12006_v3 = vld [vmem:[%s9731_s16 + $0x40] sm:$0xf] }
 0x1f2   : > { %v3792_v52 = vshll.u32 %v11940_v57, 16  ;;  %v4272_v48 = vsel %vm1016_vm1, %v9629_v1, %v3856_v45  ;;  %v4240_v2 = vpop.permute.xlu1 %4239  ;;  %v5238_v31 = vshrl.u32 %v11779_v33, 16  ;;  %v5760_v49 = vor.u32 %v5759_v18, %v5755_v53  ;;  %v9532_v53 = vld [vmem:[%s9731_s16 + $0x98] ss:$0 sps:$4 sm:$0x11]  }
 0x1f3   : > { %v6135_v9 = vsel %vm407_vm0, %v6131_v17, %v6134_v40  ;;  %v4270_v14 = vsel %vm1016_vm1, %v9630_v32, %v11895_v34  ;;  %v4304_v21 = vsel %vm1049_vm2, %v4272_v48, %v3968_v25  ;;  %v5764_v38 = vrot.slane %v5762_v41, 1  ;;  %v11984_v34 = vld [vmem:[%s9731_s16 + $0x3c] sm:$0xf] }
 0x1f4   : > { %9206 = vmatmul.mubr.msk.bf16.gmra.mrb[36].mxu1 %vm1123_vm4, %v6135_v9  ;;  %v3783_v47 = vor.u32 %v3782_v8, %v3778_v44  ;;  %v4302_v59 = vsel %vm1049_vm2, %v4270_v14, %v3966_v51  ;;  %v4336_v62 = vsel %vm1082_vm3, %v4304_v21, %v4240_v2  ;;  %5338 = vrot.lane.b32.xlu1 %v5224_v37, %s9689_s17  ;;  %v3787_v20 = vrot.slane %v3785_v16, 1  ;;  %v12027_v8 = vld [vmem:[%s9731_s16 + $0xb0] ss:$0 sps:$4 sm:$0x11]   ;;  %v12040_v9 = vld [vmem:[%s9731_s16 + $0xac] sm:$0xf] }
 0x1f5   : > { %5336 = vrot.lane.b32.xlu0 %v5223_v36, %s9689_s17  ;;  %v4238_v39 = vpop.permute.xlu0 %4237  ;;  %v4176_v45 = vshll.u32 %v11954_v6, 16  ;;  %v3790_v24 = vshrl.u32 %v11940_v57, 16  ;;  %v3794_v43 = vrot.slane %v3792_v52, 1  ;;  %v11992_v12 = vcombine.low %v8492_v46, %v8471_v23  ;;  %v9135_v13 = vpop.f32.mrb[0].mxu1  ;;  %v8555_v14 = vld [vmem:[%s9731_s16 + $0xa8] sm:$0xe] }
 0x1f6   : > { %v4334_v50 = vsel %vm1082_vm3, %v4302_v59, %v4238_v39  ;;  %v11996_v30 = vpop.permute.xlu1 %5316  ;;  %v8629_v60 = vcombine.low %v11959_v58, %v11879_v29  ;;  %v5752_v15 = vshrl.u32 %v11890_v55, 16  ;;  %3402 = vst.msk [vmem:[#allocation2 + $0x110] sm:$0xff] %vm1049_vm2, %v9135_v13  ;;  %v3100_v27 = vpop.f32.mrb[1].mxu1  ;;  %v8567_v7 = vcombine.low %v11984_v34, %v12006_v3  ;;  %v12051_v59 = vld [vmem:[%s9731_s16 + $0xa4] ss:$0 sps:$4 sm:$0x11]  }
 0x1f7   : > { %9171 = vmatprep.mubr.msk.bf16.mxu0 %vm1123_vm4, %v4334_v50  ;;  %v12011_v26 = vsel %vm407_vm0, %v5760_v49, %v5764_v38  ;;  %v3797_v29 = vshll.u32 %v11975_v61, 16  ;;  %v4164_v57 = vshll.u32 %v11978_v5, 16  ;;  %v3297_v22 = vmul.f32 %v3100_v27, %v3100_v27  ;;  %3400 = vst.msk [vmem:[#allocation2 + $0x100] sm:$0xff] %vm1049_vm2, %v3100_v27  ;;  %v9136_v54 = vpop.f32.mrb[2].mxu1 }
 0x1f8   : > { %9172 = vmatmul.mubr.msk.bf16.gmra.mrb[36].mxu0 %vm1123_vm4, %v4336_v62  ;;  %5864 = vrot.lane.b32.xlu1 %v5751_v10, %s9691_s21  ;;  %v12019_v25 = vsel %vm407_vm0, %v3783_v47, %v3787_v20  ;;  %v4174_v63 = vshrl.u32 %v11954_v6, 16  ;;  %v4178_v18 = vrot.slane %v4176_v45, 1  ;;  %3403 = vst.msk [vmem:[#allocation2 + $0x118] sm:$0xff] %vm1049_vm2, %v9136_v54  ;;  %v3103_v36 = vpop.f32.mrb[3].mxu1  ;;  %v12023_v41 = vor.u32 %v3794_v43, %v3790_v24 }
 0x1f9   : > { %5528 = vrot.lane.b32.xlu0 %v8627_v19, %s9690_s18  ;;  %v5313_v42 = vpop.permute.xlu0 %5312  ;;  %v4181_v44 = vshll.u32 %v11990_v0, 16  ;;  %v5257_v17 = vshll.u32 %v11992_v12, 16  ;;  %v12030_v40 = vcombine.low %v8491_v11, %v8468_v28  ;;  %v3299_v51 = vmul.f32 %v9135_v13, %v9135_v13  ;;  %3401 = vst.msk [vmem:[#allocation2 + $0x108] sm:$0xff] %vm1049_vm2, %v3103_v36  ;;  %v12066_v11 = vld [vmem:[%s9731_s16 + $0xb0] ss:$0 sps:$4 sm:$0x11]  }
 0x1fa   : > { %v3227_v37 = vsel %vm1049_vm2, %v3100_v27, 0.0  ;;  %v3228_v16 = vsel %vm1049_vm2, %v3103_v36, 0.0  ;;  %v3298_v19 = vmul.f32 %v3103_v36, %v3103_v36  ;;  %v12036_v10 = vpop.permute.xlu1 %5314  ;;  %v4162_v52 = vshrl.u32 %v11978_v5, 16  ;;  %v8446_v27 = vld [vmem:[%s9731_s16 + $0x48] sm:$0xf] }
 0x1fb   : > { %v3229_v58 = vadd.f32 %v3228_v16, %v3227_v37  ;;  %v4166_v1 = vrot.slane %v4164_v57, 1  ;;  %v4169_v48 = vshll.u32 %v9532_v53, 16  ;;  %v3230_v2 = vsel %vm1049_vm2, %v9135_v13, 0.0  ;;  %v9632_v37 = vld [vmem:[%s9731_s16 + $0x4c] sm:$0xf] }
 0x1fc   : > { %v3329_v49 = vsel %vm1049_vm2, %v3297_v22, 0.0  ;;  %v3300_v23 = vmul.f32 %v9136_v54, %v9136_v54  ;;  %v3330_v46 = vsel %vm1049_vm2, %v3298_v19, 0.0  ;;  %5530 = vrot.lane.b32.xlu1 %v11890_v55, %s9690_s18  ;;  %v5255_v47 = vshrl.u32 %v11992_v12, 16 }
 0x1fd   : > { %5532 = vrot.lane.b32.xlu0 %v8629_v60, %s9690_s18  ;;  %v5505_v32 = vpop.permute.xlu0 %5504  ;;  %v3231_v21 = vadd.f32 %v3230_v2, %v3229_v58  ;;  %v3331_v38 = vadd.f32 %v3330_v46, %v3329_v49  ;;  %v5262_v61 = vshll.u32 %v12027_v8, 16  ;;  %v3332_v62 = vsel %vm1049_vm2, %v3299_v51, 0.0 }
 0x1fe   : > { %v3232_v39 = vsel %vm1049_vm2, %v9136_v54, 0.0  ;;  %v5841_v20 = vpop.permute.xlu1 %5840  ;;  %v5259_v45 = vrot.slane %v5257_v17, 1  ;;  %v5243_v50 = vshll.u32 %v12030_v40, 16  ;;  %v3799_v0 = vrot.slane %v3797_v29, 1 }
 0x1ff   : > { %v3333_v24 = vadd.f32 %v3332_v62, %v3331_v38  ;;  %v3233_v43 = vadd.f32 %v3232_v39, %v3231_v21  ;;  %v12060_v12 = vcombine.low %v8555_v14, %v12040_v9  ;;  %v3334_v13 = vsel %vm1049_vm2, %v3300_v23, 0.0 }
 0x200   : > { %5534 = vrot.lane.b32.xlu1 %v11930_v35, %s9690_s18  ;;  %v4179_v28 = vor.u32 %v4178_v18, %v4174_v63  ;;  %v4183_v33 = vrot.slane %v4181_v44, 1  ;;  %v4171_v57 = vrot.slane %v4169_v48, 1  ;;  %v5264_v22 = vrot.slane %v5262_v61, 1  ;;  %v9633_v61 = vld [vmem:[%s9731_s16 + $0x44] ss:$0 sps:$4 sm:$0x11]  }
 0x201   : > { %5342 = vrot.lane.b32.xlu0 %v5238_v31, %s9689_s17  ;;  %v5509_v60 = vpop.permute.xlu0 %5508  ;;  %v4167_v31 = vor.u32 %v4166_v1, %v4162_v52  ;;  %v3335_v53 = vadd.f32 %v3334_v13, %v3333_v24  ;;  %v5248_v29 = vshll.u32 %v12051_v59, 16  ;;  %v5910_v54 = vsel %vm1016_vm1, %v8567_v7, %v5313_v42  ;;  %v12087_v7 = vld [vmem:[%s9731_s16 + $0xb8] sm:$0xf] }
 0x202   : > { %v5507_v63 = vpop.permute.xlu1 %5506  ;;  %v5260_v18 = vor.u32 %v5259_v45, %v5255_v47  ;;  %v5241_v36 = vshrl.u32 %v12030_v40, 16  ;;  %v5245_v44 = vrot.slane %v5243_v50, 1  ;;  %v5985_v17 = vsel %vm1049_vm2, %v5910_v54, %v5505_v32 }
 0x203   : > { %v5771_v51 = vshll.u32 %v12060_v12, 16  ;;  %v8569_v16 = vcombine.low %v8446_v27, %v9632_v37  ;;  %v12081_v19 = vsel %vm1082_vm3, %v5985_v17, %v5841_v20  ;;  %v5776_v3 = vshll.u32 %v12066_v11, 16 }
 0x204   : > { %3869 = vrot.lane.b32.xlu1 %v12019_v25, %s9689_s17  ;;  %v3800_v42 = vsel %vm407_vm0, %v12023_v41, %v3799_v0  ;;  %v5766_v40 = vshrl.u32 %v11930_v35, 16  ;;  %v12094_v58 = vsel %vm407_vm0, %v4179_v28, %v4183_v33  ;;  %v12100_v25 = vsel %vm407_vm0, %v4167_v31, %v4171_v57 }
 0x205   : > { %5868 = vrot.lane.b32.xlu0 %v12011_v26, %s9691_s21  ;;  %v5319_v34 = vpop.permute.xlu0 %5318  ;;  %v8556_v26 = vld [vmem:[%s9731_s16 + $0xb4] sm:$0xe]  ;;  %v9139_v52 = vpop.f32.mrb[4].mxu1  ;;  %v12103_v48 = vsel %vm407_vm0, %v5260_v18, %v5264_v22  ;;  %v12105_v2 = vor.u32 %v5245_v44, %v5241_v36  ;;  %v12107_v41 = vrot.slane %v5248_v29, 1  ;;  %v6138_v35 = vshll.u32 %v12081_v19, 16 }
 0x206   : > { %v5511_v1 = vpop.permute.xlu1 %5510  ;;  %3406 = vst.msk [vmem:[#allocation2 + $0x130] sm:$0xff] %vm1049_vm2, %v9139_v52  ;;  %v3116_v49 = vpop.f32.mrb[5].mxu1  ;;  %v5769_v55 = vshrl.u32 %v12060_v12, 16  ;;  %v12113_v23 = vcombine.low %v8556_v26, %v12087_v7  ;;  %v5915_v46 = vsel %vm1016_vm1, %v8569_v16, %v11996_v30  ;;  %v12120_v47 = vrot.slane %v5776_v3, 1 }
 0x207   : > { %v3234_v32 = vsel %vm1049_vm2, %v3116_v49, 0.0  ;;  %v3301_v14 = vmul.f32 %v3116_v49, %v3116_v49  ;;  %3404 = vst.msk [vmem:[#allocation2 + $0x120] sm:$0xff] %vm1049_vm2, %v3116_v49  ;;  %v9140_v21 = vpop.f32.mrb[6].mxu1  ;;  %v5912_v62 = vsel %vm1016_vm1, %v9633_v61, %v12036_v10  ;;  %v5989_v39 = vsel %vm1049_vm2, %v5915_v46, %v5509_v60  ;;  %v12150_v26 = vld [vmem:[%s9731_s16 + $0xbc] ss:$0 sps:$4 sm:$0x11]  }
 0x208   : > { %3871 = vrot.lane.b32.xlu1 %v3800_v42, %s9689_s17  ;;  %v3303_v20 = vmul.f32 %v9139_v52, %v9139_v52  ;;  %v3235_v45 = vadd.f32 %v3234_v32, %v3233_v43  ;;  %3407 = vst.msk [vmem:[#allocation2 + $0x138] sm:$0xff] %vm1049_vm2, %v9140_v21  ;;  %v3119_v30 = vpop.f32.mrb[7].mxu1  ;;  %v6140_v13 = vrot.slane %v6138_v35, 1  ;;  %v5987_v43 = vsel %vm1049_vm2, %v5912_v62, %v5507_v63  ;;  %v8531_v49 = vld [vmem:[%s9731_s16 + $0xa8] sm:$0xf] }
 0x209   : > { %5866 = vrot.lane.b32.xlu0 %v5752_v15, %s9691_s21  ;;  %v5773_v15 = vrot.slane %v5771_v51, 1  ;;  %v5845_v38 = vpop.permute.xlu0 %5844  ;;  %v3336_v50 = vsel %vm1049_vm2, %v3301_v14, 0.0  ;;  %v3236_v0 = vsel %vm1049_vm2, %v3119_v30, 0.0  ;;  %v3302_v12 = vmul.f32 %v3119_v30, %v3119_v30  ;;  %3405 = vst.msk [vmem:[#allocation2 + $0x128] sm:$0xff] %vm1049_vm2, %v3119_v30 }
 0x20a   : > { %v6053_v24 = vsel %vm1082_vm3, %v5989_v39, %v5845_v38  ;;  %v12132_v10 = vpop.permute.xlu1 %3857  ;;  %v3337_v60 = vadd.f32 %v3336_v50, %v3335_v53  ;;  %v5785_v28 = vshll.u32 %v12113_v23, 16  ;;  %v3304_v33 = vmul.f32 %v9140_v21, %v9140_v21  ;;  %v9634_v53 = vld [vmem:[%s9731_s16 + $0x50] ss:$0 sps:$4 sm:$0x11]  }
 0x20b   : > { %v6148_v31 = vshll.u32 %v6053_v24, 16  ;;  %v3237_v27 = vadd.f32 %v3236_v0, %v3235_v45  ;;  %v3338_v57 = vsel %vm1049_vm2, %v3302_v12, 0.0  ;;  %v6136_v29 = vshrl.u32 %v12081_v19, 16 }
 0x20c   : > { %3983 = vrot.lane.b32.xlu1 %v11954_v6, %s9690_s18  ;;  %v3238_v54 = vsel %vm1049_vm2, %v9139_v52, 0.0  ;;  %v3339_v18 = vadd.f32 %v3338_v57, %v3337_v60  ;;  %v5917_v36 = vsel %vm1016_vm1, %v9634_v53, %v5319_v34  ;;  %v3340_v44 = vsel %vm1049_vm2, %v3303_v20, 0.0 }
 0x20d   : > { %5870 = vrot.lane.b32.xlu0 %v5766_v40, %s9691_s21  ;;  %v5843_v22 = vpop.permute.xlu0 %5842  ;;  %v3239_v17 = vadd.f32 %v3238_v54, %v3237_v27  ;;  %v6141_v37 = vor.u32 %v6140_v13, %v6136_v29  ;;  %v5991_v16 = vsel %vm1049_vm2, %v5917_v36, %v5511_v1  ;;  %v3240_v19 = vsel %vm1049_vm2, %v9140_v21, 0.0  ;;  %v9544_v54 = vld [vmem:[%s9731_s16 + $0xa4] ss:$0 sps:$4 sm:$0x11]  }
 0x20e   : > { %v6051_v63 = vsel %vm1082_vm3, %v5987_v43, %v5843_v22  ;;  %v3860_v6 = vpop.permute.xlu1 %3859  ;;  %v3341_v3 = vadd.f32 %v3340_v44, %v3339_v18  ;;  %v3342_v42 = vsel %vm1049_vm2, %v3304_v33, 0.0  ;;  %v6150_v34 = vrot.slane %v6148_v31, 1  ;;  %v8477_v44 = vld [vmem:[%s9731_s16 + $0xc4] sm:$0xf] }
 0x20f   : > { %v6142_v51 = vshll.u32 %v6051_v63, 16  ;;  %v3241_v35 = vadd.f32 %v3240_v19, %v3239_v17  ;;  %v5774_v46 = vor.u32 %v5773_v15, %v5769_v55  ;;  %v5783_v32 = vshrl.u32 %v12113_v23, 16  ;;  %v12172_v15 = vld [vmem:[%s9731_s16 + $0x9c] sm:$0xff]   ;;  %v12175_v23 = vld [vmem:[%s9731_s16 + $0xa8] sm:$0xff]  }
 0x210   : > { %4255 = vrot.lane.b32.xlu1 %v12094_v58, %s9691_s21  ;;  %v12156_v1 = vadd.f32 %v3342_v42, %v3341_v3  ;;  %v6146_v14 = vshrl.u32 %v6053_v24, 16  ;;  %v12164_v58 = vld [vmem:[%s9731_s16 + $0xb4] sm:$0xf]  ;;  %v5787_v62 = vrot.slane %v5785_v28, 1  ;;  %v5251_v39 = vsel %vm407_vm0, %v12105_v2, %v12107_v41  ;;  %v8494_v17 = vld [vmem:[%s9731_s16 + $0xc0] sm:$0xe] }
 0x211   : > { %3981 = vrot.lane.b32.xlu0 %v11978_v5, %s9690_s18  ;;  %v6144_v40 = vrot.slane %v6142_v51, 1  ;;  %v5847_v52 = vpop.permute.xlu0 %5846  ;;  %v5790_v55 = vshll.u32 %v12150_v26, 16  ;;  %v5252_v30 = vshrl.u32 %v12051_v59, 16  ;;  %v8631_v50 = vcombine.low %v8531_v49, %v12040_v9  ;;  %v9635_v59 = vld [vmem:[%s9731_s16 + $0x48] sm:$0xff]  }
 0x212   : > { %v6055_v5 = vsel %vm1082_vm3, %v5991_v16, %v5847_v52  ;;  %v3972_v61 = vpop.permute.xlu1 %3971  ;;  %v8633_v2 = vcombine.low %v12164_v58, %v12087_v7  ;;  %v5779_v12 = vsel %vm407_vm0, %v5774_v46, %v12120_v47  ;;  %v5266_v13 = vshrl.u32 %v12027_v8, 16  ;;  %v9636_v47 = vld [vmem:[%s9731_s16 + $0x3c] sm:$0xff]   ;;  %v9546_v3 = vld [vmem:[%s9731_s16 + $0xb0] ss:$0 sps:$4 sm:$0x11]  }
 0x213   : > { %v6152_v21 = vshll.u32 %v6055_v5, 16  ;;  %v6145_v38 = vsel %vm407_vm0, %v6141_v37, %v6144_v40  ;;  %v4276_v9 = vsel %vm1016_vm1, %v9635_v59, %v3860_v6  ;;  %v12194_v43 = vrot.slane %v5790_v55, 1  ;;  %v8449_v55 = vld [vmem:[%s9731_s16 + $0x54] sm:$0xf]  ;;  %v9637_v59 = vld [vmem:[%s9731_s16 + $0x58] sm:$0xf] }
 0x214   : > { %9209 = vmatprep.mubr.msk.bf16.mxu1 %vm1123_vm4, %v6145_v38  ;;  %5348 = vrot.lane.b32.xlu1 %v12103_v48, %s9689_s17  ;;  %v12188_v48 = vor.u32 %v5787_v62, %v5783_v32  ;;  %v3804_v60 = vshll.u32 %v12172_v15, 16  ;;  %v3816_v28 = vshll.u32 %v12175_v23, 16  ;;  %v4274_v33 = vsel %vm1016_vm1, %v9636_v47, %v12132_v10  ;;  %v12255_v47 = vld [vmem:[%s9731_s16 + $0xc8] ss:$0 sps:$4 sm:$0x11]  }
 0x215   : > { %4253 = vrot.lane.b32.xlu0 %v12100_v25, %s9691_s21  ;;  %v6151_v25 = vor.u32 %v6150_v34, %v6146_v14  ;;  %v6154_v20 = vrot.slane %v6152_v21, 1  ;;  %v3970_v45 = vpop.permute.xlu0 %3969  ;;  %v9143_v41 = vpop.f32.mrb[8].mxu1  ;;  %v4308_v31 = vsel %vm1049_vm2, %v4276_v9, %v3972_v61  ;;  %v3802_v40 = vshrl.u32 %v12172_v15, 16 }
 0x216   : > { %v4244_v0 = vpop.permute.xlu1 %4243  ;;  %3410 = vst.msk [vmem:[#allocation2 + $0x150] sm:$0xff] %vm1049_vm2, %v9143_v41  ;;  %v3132_v7 = vpop.f32.mrb[9].mxu1  ;;  %v4306_v18 = vsel %vm1049_vm2, %v4274_v33, %v3970_v45  ;;  %v3307_v63 = vmul.f32 %v9143_v41, %v9143_v41  ;;  %v3806_v52 = vrot.slane %v3804_v60, 1  ;;  %v3246_v5 = vsel %vm1049_vm2, %v9143_v41, 0.0  ;;  %v8452_v33 = vld [vmem:[%s9731_s16 + $0x60] sm:$0xf] }
 0x217   : > { %v6155_v24 = vsel %vm407_vm0, %v6151_v25, %v6154_v20  ;;  %v3242_v27 = vsel %vm1049_vm2, %v3132_v7, 0.0  ;;  %v3305_v57 = vmul.f32 %v3132_v7, %v3132_v7  ;;  %3408 = vst.msk [vmem:[#allocation2 + $0x140] sm:$0xff] %vm1049_vm2, %v3132_v7  ;;  %v9144_v22 = vpop.f32.mrb[10].mxu1  ;;  %v4340_v10 = vsel %vm1082_vm3, %v4308_v31, %v4244_v0 }
 0x218   : > { %9210 = vmatmul.mubr.msk.bf16.gmra.mrb[40].mxu1 %vm1123_vm4, %v6155_v24  ;;  %5346 = vrot.lane.b32.xlu1 %v5252_v30, %s9689_s17  ;;  %v3243_v53 = vadd.f32 %v3242_v27, %v3241_v35  ;;  %3411 = vst.msk [vmem:[#allocation2 + $0x158] sm:$0xff] %vm1049_vm2, %v9144_v22  ;;  %v3135_v36 = vpop.f32.mrb[11].mxu1  ;;  %v12223_v35 = vld [vmem:[%s9731_s16 + $0xb4] sm:$0xff]   ;;  %v3308_v49 = vmul.f32 %v9144_v22, %v9144_v22  ;;  %v3809_v61 = vshll.u32 %v9544_v54, 16  ;;  %v3814_v58 = vshrl.u32 %v12175_v23, 16 }
 0x219   : > { %5344 = vrot.lane.b32.xlu0 %v5251_v39, %s9689_s17  ;;  %v4242_v29 = vpop.permute.xlu0 %4241  ;;  %v3344_v51 = vsel %vm1049_vm2, %v3305_v57, 0.0  ;;  %v3244_v37 = vsel %vm1049_vm2, %v3135_v36, 0.0  ;;  %v3306_v16 = vmul.f32 %v3135_v36, %v3135_v36  ;;  %3409 = vst.msk [vmem:[#allocation2 + $0x148] sm:$0xff] %vm1049_vm2, %v3135_v36  ;;  %v12232_v14 = vcombine.low %v8494_v17, %v8477_v44 }
 0x21a   : > { %v4338_v6 = vsel %vm1082_vm3, %v4306_v18, %v4242_v29  ;;  %v12216_v19 = vpop.permute.xlu1 %5324  ;;  %v3345_v42 = vadd.f32 %v3344_v51, %v12156_v1  ;;  %v3245_v34 = vadd.f32 %v3244_v37, %v3243_v53  ;;  %v12230_v1 = vld [vmem:[%s9731_s16 + $0xa8] sm:$0xff]   ;;  %v3348_v62 = vsel %vm1049_vm2, %v3307_v63, 0.0  ;;  %v8474_v29 = vld [vmem:[%s9731_s16 + $0xb8] sm:$0xf]  ;;  %v9638_v37 = vld [vmem:[%s9731_s16 + $0x64] sm:$0xf] }
 0x21b   : > { %9175 = vmatprep.mubr.msk.bf16.mxu0 %vm1123_vm4, %v4338_v6  ;;  %v3346_v46 = vsel %vm1049_vm2, %v3306_v16, 0.0  ;;  %v3248_v39 = vsel %vm1049_vm2, %v9144_v22, 0.0  ;;  %v3818_v25 = vrot.slane %v3816_v28, 1  ;;  %v3821_v20 = vshll.u32 %v9546_v3, 16 }
 0x21c   : > { %9176 = vmatmul.mubr.msk.bf16.gmra.mrb[40].mxu0 %vm1123_vm4, %v4340_v10  ;;  %5872 = vrot.lane.b32.xlu1 %v5779_v12, %s9691_s21  ;;  %v3247_v21 = vadd.f32 %v3246_v5, %v3245_v34  ;;  %v3347_v38 = vadd.f32 %v3346_v46, %v3345_v42  ;;  %v4200_v23 = vshll.u32 %v12223_v35, 16  ;;  %v3350_v41 = vsel %vm1049_vm2, %v3308_v49, 0.0  ;;  %v8493_v10 = vld [vmem:[%s9731_s16 + $0xb4] sm:$0xe] }
 0x21d   : > { %5536 = vrot.lane.b32.xlu0 %v8631_v50, %s9690_s18  ;;  %v5321_v32 = vpop.permute.xlu0 %5320  ;;  %v9549_v50 = vld [vmem:[%s9731_s16 + $0xbc] ss:$0 sps:$4 sm:$0x11]   ;;  %v4188_v0 = vshll.u32 %v12230_v1, 16  ;;  %v5285_v12 = vshll.u32 %v12232_v14, 16  ;;  %v8571_v9 = vcombine.low %v8449_v55, %v9637_v59  ;;  %v3807_v60 = vor.u32 %v3806_v52, %v3802_v40 }
 0x21e   : > { %v12239_v15 = vpop.permute.xlu1 %5322  ;;  %v3349_v45 = vadd.f32 %v3348_v62, %v3347_v38  ;;  %v12241_v30 = vadd.f32 %v3248_v39, %v3247_v21  ;;  %v3811_v28 = vrot.slane %v3809_v61, 1  ;;  %v5793_v27 = vsel %vm407_vm0, %v12188_v48, %v12194_v43  ;;  %v12275_v6 = vld [vmem:[%s9731_s16 + $0xbc] ss:$0 sps:$4 sm:$0x11]   ;;  %v12295_v62 = vld [vmem:[%s9731_s16 + $0xc4] sm:$0xf] }
 0x21f   : > { %v3819_v57 = vor.u32 %v3818_v25, %v3814_v58  ;;  %v3823_v22 = vrot.slane %v3821_v20, 1  ;;  %v4198_v54 = vshrl.u32 %v12223_v35, 16  ;;  %v4202_v18 = vrot.slane %v4200_v23, 1 }
 0x220   : > { %5538 = vrot.lane.b32.xlu1 %v12066_v11, %s9690_s18  ;;  %v12252_v7 = vadd.f32 %v3350_v41, %v3349_v45  ;;  %v4205_v63 = vshll.u32 %v9549_v50, 16  ;;  %v4186_v53 = vshrl.u32 %v12230_v1, 16  ;;  %v4190_v8 = vrot.slane %v4188_v0, 1  ;;  %v8557_v45 = vld [vmem:[%s9731_s16 + $0xc0] sm:$0xe] }
 0x221   : > { %5540 = vrot.lane.b32.xlu0 %v8633_v2, %s9690_s18  ;;  %v5513_v24 = vpop.permute.xlu0 %5512  ;;  %v9550_v2 = vld [vmem:[%s9731_s16 + $0xb0] ss:$0 sps:$4 sm:$0x11]   ;;  %v5283_v48 = vshrl.u32 %v12232_v14, 16  ;;  %v5287_v43 = vrot.slane %v5285_v12, 1  ;;  %v5920_v44 = vsel %vm1016_vm1, %v8571_v9, %v5321_v32  ;;  %v3812_v17 = vsel %vm407_vm0, %v3807_v60, %v3811_v28 }
 0x222   : > { %v5849_v31 = vpop.permute.xlu1 %5848  ;;  %v5290_v51 = vshll.u32 %v12255_v47, 16  ;;  %v8573_v16 = vcombine.low %v8452_v33, %v9638_v37  ;;  %v5993_v3 = vsel %vm1049_vm2, %v5920_v44, %v5513_v24  ;;  %v5780_v34 = vshrl.u32 %v12066_v11, 16 }
 0x223   : > { %v12281_v40 = vcombine.low %v8493_v10, %v8474_v29  ;;  %v12284_v52 = vsel %vm1082_vm3, %v5993_v3, %v5849_v31  ;;  %v3824_v49 = vsel %vm407_vm0, %v3819_v57, %v3823_v22  ;;  %v5794_v46 = vshrl.u32 %v12150_v26, 16  ;;  %v9639_v10 = vld [vmem:[%s9731_s16 + $0x5c] ss:$0 sps:$4 sm:$0x11]  }
 0x224   : > { %5542 = vrot.lane.b32.xlu1 %v12150_v26, %s9690_s18  ;;  %v4207_v32 = vrot.slane %v4205_v63, 1  ;;  %v4203_v11 = vor.u32 %v4202_v18, %v4198_v54  ;;  %v4191_v38 = vor.u32 %v4190_v8, %v4186_v53  ;;  %v12292_v58 = vor.u32 %v5287_v43, %v5283_v48 }
 0x225   : > { %5350 = vrot.lane.b32.xlu0 %v5266_v13, %s9689_s17  ;;  %v5517_v36 = vpop.permute.xlu0 %5516  ;;  %v4193_v13 = vshll.u32 %v9550_v2, 16  ;;  %v5292_v25 = vrot.slane %v5290_v51, 1  ;;  %v5276_v20 = vshll.u32 %v12275_v6, 16  ;;  %v5925_v50 = vsel %vm1016_vm1, %v8573_v16, %v12216_v19 }
 0x226   : > { %v5515_v42 = vpop.permute.xlu1 %5514  ;;  %v9147_v5 = vpop.f32.mrb[12].mxu1  ;;  %v6158_v23 = vshll.u32 %v12284_v52, 16  ;;  %v5271_v0 = vshll.u32 %v12281_v40, 16  ;;  %v5997_v19 = vsel %vm1049_vm2, %v5925_v50, %v5517_v36  ;;  %v12315_v31 = vcombine.low %v8557_v45, %v12295_v62 }
 0x227   : > { %3414 = vst.msk [vmem:[#allocation2 + $0x170] sm:$0xff] %vm1049_vm2, %v9147_v5  ;;  %v3148_v14 = vpop.f32.mrb[13].mxu1  ;;  %v4195_v61 = vrot.slane %v4193_v13, 1  ;;  %v3311_v12 = vmul.f32 %v9147_v5, %v9147_v5  ;;  %v5922_v36 = vsel %vm1016_vm1, %v9639_v10, %v12239_v15  ;;  %v4208_v3 = vsel %vm407_vm0, %v4203_v11, %v4207_v32 }
 0x228   : > { %3873 = vrot.lane.b32.xlu1 %v3812_v17, %s9689_s17  ;;  %v3250_v39 = vsel %vm1049_vm2, %v3148_v14, 0.0  ;;  %v3309_v55 = vmul.f32 %v3148_v14, %v3148_v14  ;;  %3412 = vst.msk [vmem:[#allocation2 + $0x160] sm:$0xff] %vm1049_vm2, %v3148_v14  ;;  %v9148_v26 = vpop.f32.mrb[14].mxu1  ;;  %v5273_v53 = vrot.slane %v5271_v0, 1  ;;  %v6160_v8 = vrot.slane %v6158_v23, 1 }
 0x229   : > { %5876 = vrot.lane.b32.xlu0 %v5793_v27, %s9691_s21  ;;  %v12289_v21 = vpop.permute.xlu0 %5326  ;;  %v3251_v41 = vadd.f32 %v3250_v39, %v12241_v30  ;;  %3415 = vst.msk [vmem:[#allocation2 + $0x178] sm:$0xff] %vm1049_vm2, %v9148_v26  ;;  %v3151_v24 = vpop.f32.mrb[15].mxu1  ;;  %v3254_v27 = vsel %vm1049_vm2, %v9147_v5, 0.0  ;;  %v3312_v57 = vmul.f32 %v9148_v26, %v9148_v26  ;;  %v3356_v13 = vsel %vm1049_vm2, %v3311_v12, 0.0  ;;  %v8537_v0 = vld [vmem:[%s9731_s16 + $0xc0] sm:$0xf] }
 0x22a   : > { %v5519_v2 = vpop.permute.xlu1 %5518  ;;  %v3352_v59 = vsel %vm1049_vm2, %v3309_v55, 0.0  ;;  %v3252_v9 = vsel %vm1049_vm2, %v3151_v24, 0.0  ;;  %v3310_v60 = vmul.f32 %v3151_v24, %v3151_v24  ;;  %3413 = vst.msk [vmem:[#allocation2 + $0x168] sm:$0xff] %vm1049_vm2, %v3151_v24  ;;  %v3256_v48 = vsel %vm1049_vm2, %v9148_v26, 0.0  ;;  %v12353_v26 = vld [vmem:[%s9731_s16 + $0xd0] sm:$0xf] }
 0x22b   : > { %v3353_v30 = vadd.f32 %v3352_v59, %v12252_v7  ;;  %v3253_v28 = vadd.f32 %v3252_v9, %v3251_v41  ;;  %v5269_v7 = vshrl.u32 %v12281_v40, 16  ;;  %v5995_v43 = vsel %vm1049_vm2, %v5922_v36, %v5515_v42  ;;  %v9640_v14 = vld [vmem:[%s9731_s16 + $0x68] ss:$0 sps:$4 sm:$0x11]   ;;  %v12368_v59 = vld [vmem:[%s9731_s16 + $0xb4] sm:$0xff]  }
 0x22c   : > { %3875 = vrot.lane.b32.xlu1 %v3824_v49, %s9689_s17  ;;  %v3354_v22 = vsel %vm1049_vm2, %v3310_v60, 0.0  ;;  %v3358_v16 = vsel %vm1049_vm2, %v3312_v57, 0.0  ;;  %v5799_v42 = vshll.u32 %v12315_v31, 16  ;;  %v6156_v40 = vshrl.u32 %v12284_v52, 16  ;;  %v8558_v52 = vld [vmem:[%s9731_s16 + $0xcc] sm:$0xe] }
 0x22d   : > { %5874 = vrot.lane.b32.xlu0 %v5780_v34, %s9691_s21  ;;  %v5853_v33 = vpop.permute.xlu0 %5852  ;;  %v3255_v54 = vadd.f32 %v3254_v27, %v3253_v28  ;;  %v3355_v18 = vadd.f32 %v3354_v22, %v3353_v30  ;;  %v12338_v34 = vld [vmem:[%s9731_s16 + $0xc8] ss:$0 sps:$4 sm:$0x11]   ;;  %v4196_v49 = vsel %vm407_vm0, %v4191_v38, %v4195_v61  ;;  %v5927_v39 = vsel %vm1016_vm1, %v9640_v14, %v12289_v21  ;;  %v12376_v57 = vld [vmem:[%s9731_s16 + $0xd4] ss:$0 sps:$4 sm:$0x11]  }
 0x22e   : > { %v6061_v29 = vsel %vm1082_vm3, %v5997_v19, %v5853_v33  ;;  %v12321_v63 = vpop.permute.xlu1 %3861  ;;  %v5293_v32 = vsel %vm407_vm0, %v12292_v58, %v5292_v25  ;;  %v5274_v11 = vor.u32 %v5273_v53, %v5269_v7  ;;  %v5278_v55 = vrot.slane %v5276_v20, 1  ;;  %v9641_v22 = vld [vmem:[%s9731_s16 + $0x60] sm:$0xff]   ;;  %v8540_v7 = vld [vmem:[%s9731_s16 + $0xcc] sm:$0xf] }
 0x22f   : > { %v3357_v44 = vadd.f32 %v3356_v13, %v3355_v18  ;;  %v6168_v17 = vshll.u32 %v6061_v29, 16  ;;  %v12332_v37 = vadd.f32 %v3256_v48, %v3255_v54  ;;  %v6161_v45 = vor.u32 %v6160_v8, %v6156_v40 }
 0x230   : > { %3987 = vrot.lane.b32.xlu1 %v12223_v35, %s9690_s18  ;;  %v5797_v23 = vshrl.u32 %v12315_v31, 16  ;;  %v5801_v58 = vrot.slane %v5799_v42, 1  ;;  %v5804_v25 = vshll.u32 %v12338_v34, 16  ;;  %v6166_v20 = vshrl.u32 %v6061_v29, 16 }
 0x231   : > { %5878 = vrot.lane.b32.xlu0 %v5794_v46, %s9691_s21  ;;  %v5851_v51 = vpop.permute.xlu0 %5850  ;;  %v12345_v46 = vadd.f32 %v3358_v16, %v3357_v44  ;;  %v6170_v38 = vrot.slane %v6168_v17, 1  ;;  %v12365_v12 = vcombine.low %v8558_v52, %v12353_v26  ;;  %v5279_v9 = vsel %vm407_vm0, %v5274_v11, %v5278_v55  ;;  %v12399_v16 = vld [vmem:[%s9731_s16 + $0xc0] sm:$0xff]   ;;  %v9564_v11 = vld [vmem:[%s9731_s16 + $0xc8] ss:$0 sps:$4 sm:$0x11]  }
 0x232   : > { %v6059_v15 = vsel %vm1082_vm3, %v5995_v43, %v5851_v51  ;;  %v3864_v35 = vpop.permute.xlu1 %3863  ;;  %v5280_v28 = vshrl.u32 %v12275_v6, 16  ;;  %v8635_v33 = vcombine.low %v8537_v0, %v12295_v62  ;;  %v5802_v31 = vor.u32 %v5801_v58, %v5797_v23  ;;  %v9642_v62 = vld [vmem:[%s9731_s16 + $0x54] sm:$0xff]   ;;  %v9562_v43 = vld [vmem:[%s9731_s16 + $0xbc] ss:$0 sps:$4 sm:$0x11]  }
 0x233   : > { %v6162_v5 = vshll.u32 %v6059_v15, 16  ;;  %v6171_v60 = vor.u32 %v6170_v38, %v6166_v20  ;;  %v5806_v27 = vrot.slane %v5804_v25, 1  ;;  %v4280_v29 = vsel %vm1016_vm1, %v9641_v22, %v3864_v35 }
 0x234   : > { %4259 = vrot.lane.b32.xlu1 %v4208_v3, %s9691_s21  ;;  %v5813_v53 = vshll.u32 %v12365_v12, 16  ;;  %v3828_v6 = vshll.u32 %v12368_v59, 16  ;;  %v4278_v10 = vsel %vm1016_vm1, %v9642_v62, %v12321_v63  ;;  %v8637_v51 = vcombine.low %v8540_v7, %v12353_v26  ;;  %v8458_v7 = vld [vmem:[%s9731_s16 + $0x78] sm:$0xf] }
 0x235   : > { %3985 = vrot.lane.b32.xlu0 %v12230_v1, %s9690_s18  ;;  %v5999_v1 = vsel %vm1049_vm2, %v5927_v39, %v5519_v2  ;;  %v6164_v61 = vrot.slane %v6162_v5, 1  ;;  %v5807_v17 = vsel %vm407_vm0, %v5802_v31, %v5806_v27  ;;  %v5818_v63 = vshll.u32 %v12376_v57, 16 }
 0x236   : > { %v5855_v50 = vpop.permute.xlu0 %5854  ;;  %v3976_v2 = vpop.permute.xlu1 %3975  ;;  %v5811_v3 = vshrl.u32 %v12365_v12, 16  ;;  %v5815_v42 = vrot.slane %v5813_v53, 1  ;;  %v3826_v40 = vshrl.u32 %v12368_v59, 16  ;;  %v3830_v5 = vrot.slane %v3828_v6, 1  ;;  %v9643_v53 = vld [vmem:[%s9731_s16 + $0x70] sm:$0xf] }
 0x237   : > { %v6063_v21 = vsel %vm1082_vm3, %v5999_v1, %v5855_v50  ;;  %v6165_v24 = vsel %vm407_vm0, %v6161_v45, %v6164_v61  ;;  %v4312_v36 = vsel %vm1049_vm2, %v4280_v29, %v3976_v2  ;;  %v5294_v39 = vshrl.u32 %v12255_v47, 16 }
 0x238   : > { %v6172_v41 = vshll.u32 %v6063_v21, 16  ;;  %9213 = vmatprep.mubr.msk.bf16.mxu1 %vm1123_vm4, %v6165_v24  ;;  %5356 = vrot.lane.b32.xlu1 %v5293_v32, %s9689_s17  ;;  %v3833_v32 = vshll.u32 %v9562_v43, 16  ;;  %v5820_v45 = vrot.slane %v5818_v63, 1  ;;  %v3840_v1 = vshll.u32 %v12399_v16, 16 }
 0x239   : > { %4257 = vrot.lane.b32.xlu0 %v4196_v49, %s9691_s21  ;;  %v5816_v47 = vor.u32 %v5815_v42, %v5811_v3  ;;  %v3831_v21 = vor.u32 %v3830_v5, %v3826_v40  ;;  %v3838_v23 = vshrl.u32 %v12399_v16, 16  ;;  %v3845_v12 = vshll.u32 %v9564_v11, 16  ;;  %v9644_v42 = vld [vmem:[%s9731_s16 + $0x7c] sm:$0xf] }
 0x23a   : > { %v6174_v19 = vrot.slane %v6172_v41, 1  ;;  %v3974_v30 = vpop.permute.xlu0 %3973  ;;  %v4248_v18 = vpop.permute.xlu1 %4247  ;;  %v3835_v0 = vrot.slane %v3833_v32, 1  ;;  %v5808_v63 = vshrl.u32 %v12338_v34, 16  ;;  %v8577_v40 = vcombine.low %v8458_v7, %v9644_v42  ;;  %v9568_v5 = vld [vmem:[%s9731_s16 + $0xc8] ss:$0 sps:$4 sm:$0x11]  }
 0x23b   : > { %v4310_v8 = vsel %vm1049_vm2, %v4278_v10, %v3974_v30  ;;  %v4344_v13 = vsel %vm1082_vm3, %v4312_v36, %v4248_v18  ;;  %v9566_v18 = vld [vmem:[%s9731_s16 + $0xc0] sm:$0xff]   ;;  %v3847_v43 = vrot.slane %v3845_v12, 1 }
 0x23c   : > { %v6175_v54 = vsel %vm407_vm0, %v6171_v60, %v6174_v19  ;;  %5354 = vrot.lane.b32.xlu1 %v5280_v28, %s9689_s17  ;;  %v8455_v60 = vld [vmem:[%s9731_s16 + $0x6c] sm:$0xf]  ;;  %v3842_v28 = vrot.slane %v3840_v1, 1  ;;  %v3836_v36 = vsel %vm407_vm0, %v3831_v21, %v3835_v0  ;;  %v4210_v1 = vshrl.u32 %v9566_v18, 16 }
 0x23d   : > { %5352 = vrot.lane.b32.xlu0 %v5279_v9, %s9689_s17  ;;  %9214 = vmatmul.mubr.msk.bf16.gmra.mrb[44].mxu1 %vm1123_vm4, %v6175_v54  ;;  %v5821_v54 = vsel %vm407_vm0, %v5816_v47, %v5820_v45  ;;  %v8575_v6 = vcombine.low %v8455_v60, %v9643_v53  ;;  %v5822_v45 = vshrl.u32 %v12376_v57, 16 }
 0x23e   : > { %v4246_v48 = vpop.permute.xlu0 %4245  ;;  %v12403_v15 = vpop.permute.xlu1 %5332 }
 0x23f   : > { %v4342_v44 = vsel %vm1082_vm3, %v4310_v8, %v4246_v48  ;;  %v9151_v35 = vpop.f32.mrb[16].mxu1  ;;  %v3843_v48 = vor.u32 %v3842_v28, %v3838_v23 }
 0x240   : > { %9179 = vmatprep.mubr.msk.bf16.mxu0 %vm1123_vm4, %v4342_v44  ;;  %3418 = vst.msk [vmem:[#allocation2 + $0x190] sm:$0xff] %vm1049_vm2, %v9151_v35  ;;  %v3164_v49 = vpop.f32.mrb[17].mxu1  ;;  %5880 = vrot.lane.b32.xlu1 %v5807_v17, %s9691_s21  ;;  %v3315_v58 = vmul.f32 %v9151_v35, %v9151_v35  ;;  %v3262_v9 = vsel %vm1049_vm2, %v9151_v35, 0.0  ;;  %v9567_v44 = vld [vmem:[%s9731_s16 + $0xd4] ss:$0 sps:$4 sm:$0x11]  }
 0x241   : > { %5544 = vrot.lane.b32.xlu0 %v8635_v33, %s9690_s18  ;;  %9180 = vmatmul.mubr.msk.bf16.gmra.mrb[44].mxu0 %vm1123_vm4, %v4344_v13  ;;  %v3258_v55 = vsel %vm1049_vm2, %v3164_v49, 0.0  ;;  %v3313_v26 = vmul.f32 %v3164_v49, %v3164_v49  ;;  %3416 = vst.msk [vmem:[#allocation2 + $0x180] sm:$0xff] %vm1049_vm2, %v3164_v49  ;;  %v9152_v52 = vpop.f32.mrb[18].mxu1  ;;  %v9565_v33 = vld [vmem:[%s9731_s16 + $0xcc] sm:$0xff]   ;;  %v4212_v35 = vshll.u32 %v9566_v18, 16  ;;  %v3848_v11 = vsel %vm407_vm0, %v3843_v48, %v3847_v43 }
 0x242   : > { %v12409_v14 = vpop.permute.xlu0 %5328  ;;  %v3259_v38 = vadd.f32 %v3258_v55, %v12332_v37  ;;  %3419 = vst.msk [vmem:[#allocation2 + $0x198] sm:$0xff] %vm1049_vm2, %v9152_v52  ;;  %v3167_v61 = vpop.f32.mrb[19].mxu1  ;;  %v3316_v19 = vmul.f32 %v9152_v52, %v9152_v52  ;;  %v3364_v22 = vsel %vm1049_vm2, %v3315_v58, 0.0  ;;  %v3264_v29 = vsel %vm1049_vm2, %v9152_v52, 0.0 }
 0x243   : > { %v12420_v50 = vpop.permute.xlu1 %5330  ;;  %v3360_v25 = vsel %vm1049_vm2, %v3313_v26, 0.0  ;;  %v3260_v20 = vsel %vm1049_vm2, %v3167_v61, 0.0  ;;  %v3314_v41 = vmul.f32 %v3167_v61, %v3167_v61  ;;  %3417 = vst.msk [vmem:[#allocation2 + $0x188] sm:$0xff] %vm1049_vm2, %v3167_v61  ;;  %v4224_v17 = vshll.u32 %v9565_v33, 16 }
 0x244   : > { %v3361_v37 = vadd.f32 %v3360_v25, %v12345_v46  ;;  %v3261_v24 = vadd.f32 %v3260_v20, %v3259_v38  ;;  %5546 = vrot.lane.b32.xlu1 %v12338_v34, %s9690_s18  ;;  %v3366_v13 = vsel %vm1049_vm2, %v3316_v19, 0.0  ;;  %v5930_v32 = vsel %vm1016_vm1, %v8575_v6, %v12409_v14 }
 0x245   : > { %5548 = vrot.lane.b32.xlu0 %v8637_v51, %s9690_s18  ;;  %v3362_v30 = vsel %vm1049_vm2, %v3314_v41, 0.0  ;;  %v4226_v55 = vrot.slane %v4224_v17, 1  ;;  %v4229_v26 = vshll.u32 %v9567_v44, 16  ;;  %v5935_v38 = vsel %vm1016_vm1, %v8577_v40, %v12403_v15  ;;  %v9645_v15 = vld [vmem:[%s9731_s16 + $0x74] ss:$0 sps:$4 sm:$0x11]  }
 0x246   : > { %v5521_v2 = vpop.permute.xlu0 %5520  ;;  %v3263_v31 = vadd.f32 %v3262_v9, %v3261_v24  ;;  %v3363_v46 = vadd.f32 %v3362_v30, %v3361_v37  ;;  %v4214_v47 = vrot.slane %v4212_v35, 1  ;;  %v4217_v14 = vshll.u32 %v9568_v5, 16 }
 0x247   : > { %v5857_v27 = vpop.permute.xlu1 %5856  ;;  %v6001_v52 = vsel %vm1049_vm2, %v5930_v32, %v5521_v2  ;;  %v4231_v20 = vrot.slane %v4229_v26, 1  ;;  %v5932_v24 = vsel %vm1016_vm1, %v9645_v15, %v12420_v50 }
 0x248   : > { %v3365_v62 = vadd.f32 %v3364_v22, %v3363_v46  ;;  %5550 = vrot.lane.b32.xlu1 %v12376_v57, %s9690_s18  ;;  %v12443_v8 = vadd.f32 %v3264_v29, %v3263_v31  ;;  %v6065_v61 = vsel %vm1082_vm3, %v6001_v52, %v5857_v27  ;;  %v4215_v2 = vor.u32 %v4214_v47, %v4210_v1  ;;  %v9646_v27 = vld [vmem:[%s9731_s16 + $0x80] ss:$0 sps:$4 sm:$0x11]   ;;  %v9648_v47 = vld [vmem:[%s9731_s16 + $0x6c] sm:$0xff]  }
 0x249   : > { %5358 = vrot.lane.b32.xlu0 %v5294_v39, %s9689_s17  ;;  %v4222_v39 = vshrl.u32 %v9565_v33, 16  ;;  %v6178_v41 = vshll.u32 %v6065_v61, 16  ;;  %v4219_v0 = vrot.slane %v4217_v14, 1 }
 0x24a   : > { %v5525_v10 = vpop.permute.xlu0 %5524  ;;  %v12449_v3 = vadd.f32 %v3366_v13, %v3365_v62 }
 0x24b   : > { %v5523_v51 = vpop.permute.xlu1 %5522  ;;  %v6005_v21 = vsel %vm1049_vm2, %v5935_v38, %v5525_v10  ;;  %v4227_v25 = vor.u32 %v4226_v55, %v4222_v39  ;;  %v6180_v30 = vrot.slane %v6178_v41, 1  ;;  %v4220_v29 = vsel %vm407_vm0, %v4215_v2, %v4219_v0 }
 0x24c   : > { %3877 = vrot.lane.b32.xlu1 %v3836_v36, %s9689_s17  ;;  %v6003_v12 = vsel %vm1049_vm2, %v5932_v24, %v5523_v51 }
 0x24d   : > { %5884 = vrot.lane.b32.xlu0 %v5821_v54, %s9691_s21  ;;  %v4232_v19 = vsel %vm407_vm0, %v4227_v25, %v4231_v20  ;;  %v6176_v54 = vshrl.u32 %v6065_v61, 16 }
 0x24e   : > { %v5335_v49 = vpop.permute.xlu0 %5334 }
 0x24f   : > { %v5527_v34 = vpop.permute.xlu1 %5526  ;;  %v5937_v50 = vsel %vm1016_vm1, %v9646_v27, %v5335_v49  ;;  %v6181_v48 = vor.u32 %v6180_v30, %v6176_v54  ;;  %v9649_v30 = vld [vmem:[%s9731_s16 + $0x88] sm:$0xf] }
 0x250   : > { %3879 = vrot.lane.b32.xlu1 %v3848_v11, %s9689_s17  ;;  %v6007_v7 = vsel %vm1049_vm2, %v5937_v50, %v5527_v34  ;;  %v9647_v34 = vld [vmem:[%s9731_s16 + $0x78] sm:$0xff]  }
 0x251   : > { %5882 = vrot.lane.b32.xlu0 %v5808_v63, %s9691_s21 }
 0x252   : > { %v5861_v23 = vpop.permute.xlu0 %5860 }
 0x253   : > { %v6069_v58 = vsel %vm1082_vm3, %v6005_v21, %v5861_v23  ;;  %v3866_v37 = vpop.permute.xlu1 %3865 }
 0x254   : > { %v6188_v57 = vshll.u32 %v6069_v58, 16  ;;  %3991 = vrot.lane.b32.xlu1 %v9565_v33, %s9690_s18  ;;  %v6186_v33 = vshrl.u32 %v6069_v58, 16  ;;  %v4282_v14 = vsel %vm1016_vm1, %v9648_v47, %v3866_v37 }
 0x255   : > { %5886 = vrot.lane.b32.xlu0 %v5822_v45, %s9691_s21 }
 0x256   : > { %v6190_v28 = vrot.slane %v6188_v57, 1  ;;  %v9155_v22 = vpop.f32.mrb[20].mxu1 }
 0x257   : > { %v5859_v9 = vpop.permute.xlu0 %5858  ;;  %v3868_v46 = vpop.permute.xlu1 %3867  ;;  %3422 = vst.msk [vmem:[#allocation2 + $0x1b0] sm:$0xff] %vm1049_vm2, %v9155_v22  ;;  %v3319_v42 = vmul.f32 %v9155_v22, %v9155_v22  ;;  %v3270_v55 = vsel %vm1049_vm2, %v9155_v22, 0.0  ;;  %v9650_v22 = vld [vmem:[%s9731_s16 + $0x94] sm:$0xf] }
 0x258   : > { %v6067_v60 = vsel %vm1082_vm3, %v6003_v12, %v5859_v9  ;;  %v3180_v6 = vpop.f32.mrb[21].mxu1  ;;  %4263 = vrot.lane.b32.xlu1 %v4232_v19, %s9691_s21  ;;  %v6191_v43 = vor.u32 %v6190_v28, %v6186_v33  ;;  %v4284_v45 = vsel %vm1016_vm1, %v9647_v34, %v3868_v46  ;;  %v8461_v9 = vld [vmem:[%s9731_s16 + $0x84] sm:$0xf]  ;;  %v8464_v46 = vld [vmem:[%s9731_s16 + $0x90] sm:$0xf] }
 0x259   : > { %v6182_v31 = vshll.u32 %v6067_v60, 16  ;;  %3989 = vrot.lane.b32.xlu0 %v9566_v18, %s9690_s18  ;;  %v3266_v18 = vsel %vm1049_vm2, %v3180_v6, 0.0  ;;  %v3317_v10 = vmul.f32 %v3180_v6, %v3180_v6  ;;  %3420 = vst.msk [vmem:[#allocation2 + $0x1a0] sm:$0xff] %vm1049_vm2, %v3180_v6  ;;  %v9156_v13 = vpop.f32.mrb[22].mxu1  ;;  %v3372_v21 = vsel %vm1049_vm2, %v3319_v42, 0.0 }
 0x25a   : > { %v3267_v44 = vadd.f32 %v3266_v18, %v12443_v8  ;;  %3423 = vst.msk [vmem:[#allocation2 + $0x1b8] sm:$0xff] %vm1049_vm2, %v9156_v13  ;;  %v3183_v51 = vpop.f32.mrb[23].mxu1  ;;  %v3320_v26 = vmul.f32 %v9156_v13, %v9156_v13  ;;  %v3272_v23 = vsel %vm1049_vm2, %v9156_v13, 0.0  ;;  %v8579_v28 = vcombine.low %v8461_v9, %v9649_v30 }
 0x25b   : > { %v6184_v53 = vrot.slane %v6182_v31, 1  ;;  %v5863_v62 = vpop.permute.xlu0 %5862  ;;  %v3980_v63 = vpop.permute.xlu1 %3979  ;;  %v3368_v40 = vsel %vm1049_vm2, %v3317_v10, 0.0  ;;  %v3268_v5 = vsel %vm1049_vm2, %v3183_v51, 0.0  ;;  %v3318_v35 = vmul.f32 %v3183_v51, %v3183_v51  ;;  %3421 = vst.msk [vmem:[#allocation2 + $0x1a8] sm:$0xff] %vm1049_vm2, %v3183_v51 }
 0x25c   : > { %v6071_v36 = vsel %vm1082_vm3, %v6007_v7, %v5863_v62  ;;  %v3369_v49 = vadd.f32 %v3368_v40, %v12449_v3  ;;  %v3269_v39 = vadd.f32 %v3268_v5, %v3267_v44  ;;  %v4316_v58 = vsel %vm1049_vm2, %v4284_v45, %v3980_v63  ;;  %v9651_v45 = vld [vmem:[%s9731_s16 + $0x8c] ss:$0 sps:$4 sm:$0x11]  }
 0x25d   : > { %v6192_v17 = vshll.u32 %v6071_v36, 16  ;;  %4261 = vrot.lane.b32.xlu0 %v4220_v29, %s9691_s21  ;;  %v6185_v32 = vsel %vm407_vm0, %v6181_v48, %v6184_v53  ;;  %v3370_v52 = vsel %vm1049_vm2, %v3318_v35, 0.0  ;;  %v3374_v37 = vsel %vm1049_vm2, %v3320_v26, 0.0 }
 0x25e   : > { %9217 = vmatprep.mubr.msk.bf16.mxu1 %vm1123_vm4, %v6185_v32  ;;  %v3271_v1 = vadd.f32 %v3270_v55, %v3269_v39  ;;  %v3371_v38 = vadd.f32 %v3370_v52, %v3369_v49  ;;  %v8581_v29 = vcombine.low %v8464_v46, %v9650_v22 }
 0x25f   : > { %v6194_v8 = vrot.slane %v6192_v17, 1  ;;  %v3978_v11 = vpop.permute.xlu0 %3977  ;;  %v4252_v3 = vpop.permute.xlu1 %4251 }
 0x260   : > { %v3373_v25 = vadd.f32 %v3372_v21, %v3371_v38  ;;  %v4314_v20 = vsel %vm1049_vm2, %v4282_v14, %v3978_v11  ;;  %v4348_v41 = vsel %vm1082_vm3, %v4316_v58, %v4252_v3  ;;  %v3273_v15 = vadd.f32 %v3272_v23, %v3271_v1 }
 0x261   : > { %v6195_v61 = vsel %vm407_vm0, %v6191_v43, %v6194_v8 }
 0x262   : > { %9218 = vmatmul.mubr.msk.bf16.gmra.mrb[48].mxu1 %vm1123_vm4, %v6195_v61  ;;  %v3375_v0 = vadd.f32 %v3374_v37, %v3373_v25 }
 0x263   : > { %v4250_v57 = vpop.permute.xlu0 %4249  ;;  %v5341_v2 = vpop.permute.xlu1 %5340 }
 0x264   : > { %v4346_v24 = vsel %vm1082_vm3, %v4314_v20, %v4250_v57  ;;  %v5945_v13 = vsel %vm1016_vm1, %v8581_v29, %v5341_v2 }
 0x265   : > { %9183 = vmatprep.mubr.msk.bf16.mxu0 %vm1123_vm4, %v4346_v24  ;;  %v9652_v24 = vld [vmem:[%s9731_s16 + $0x98] ss:$0 sps:$4 sm:$0x11]  }
 0x266   : > { %9184 = vmatmul.mubr.msk.bf16.gmra.mrb[48].mxu0 %vm1123_vm4, %v4348_v41 }
 0x267   : > { %v5337_v12 = vpop.permute.xlu0 %5336  ;;  %v5339_v60 = vpop.permute.xlu1 %5338 }
 0x268   : > { %v5940_v50 = vsel %vm1016_vm1, %v8579_v28, %v5337_v12  ;;  %v5942_v1 = vsel %vm1016_vm1, %v9651_v45, %v5339_v60 }
 0x26b   : > { %v5529_v19 = vpop.permute.xlu0 %5528  ;;  %v5865_v31 = vpop.permute.xlu1 %5864 }
 0x26c   : > { %v6009_v54 = vsel %vm1049_vm2, %v5940_v50, %v5529_v19 }
 0x26d   : > { %v6073_v33 = vsel %vm1082_vm3, %v6009_v54, %v5865_v31  ;;  %v9653_v54 = vld [vmem:[%s9731_s16 + $0x90] sm:$0xff]  }
 0x26e   : > { %v9159_v53 = vpop.f32.mrb[24].mxu1  ;;  %v6198_v48 = vshll.u32 %v6073_v33, 16  ;;  %v6196_v41 = vshrl.u32 %v6073_v33, 16 }
 0x26f   : > { %v5533_v27 = vpop.permute.xlu0 %5532  ;;  %v5531_v7 = vpop.permute.xlu1 %5530  ;;  %3426 = vst.msk [vmem:[#allocation2 + $0x1d0] sm:$0xff] %vm1049_vm2, %v9159_v53  ;;  %v3323_v51 = vmul.f32 %v9159_v53, %v9159_v53  ;;  %v3278_v39 = vsel %vm1049_vm2, %v9159_v53, 0.0 }
 0x270   : > { %v3196_v6 = vpop.f32.mrb[25].mxu1  ;;  %v6013_v5 = vsel %vm1049_vm2, %v5945_v13, %v5533_v27  ;;  %v6200_v38 = vrot.slane %v6198_v48, 1  ;;  %v6011_v47 = vsel %vm1049_vm2, %v5942_v1, %v5531_v7 }
 0x271   : > { %v3274_v18 = vsel %vm1049_vm2, %v3196_v6, 0.0  ;;  %v3321_v10 = vmul.f32 %v3196_v6, %v3196_v6  ;;  %3424 = vst.msk [vmem:[#allocation2 + $0x1c0] sm:$0xff] %vm1049_vm2, %v3196_v6  ;;  %v9160_v36 = vpop.f32.mrb[26].mxu1  ;;  %v3380_v61 = vsel %vm1049_vm2, %v3323_v51, 0.0  ;;  %v9654_v6 = vld [vmem:[%s9731_s16 + $0x84] sm:$0xff]   ;;  %v1380_v51 = vrot.slane %v11910_v4, 4 }
 0x272   : > { %v3275_v43 = vadd.f32 %v3274_v18, %v3273_v15  ;;  %3427 = vst.msk [vmem:[#allocation2 + $0x1d8] sm:$0xff] %vm1049_vm2, %v9160_v36  ;;  %v3199_v44 = vpop.f32.mrb[27].mxu1  ;;  %v3324_v32 = vmul.f32 %v9160_v36, %v9160_v36  ;;  %v3280_v3 = vsel %vm1049_vm2, %v9160_v36, 0.0 }
 0x273   : > { %v5343_v62 = vpop.permute.xlu0 %5342  ;;  %v5535_v17 = vpop.permute.xlu1 %5534  ;;  %v3376_v63 = vsel %vm1049_vm2, %v3321_v10, 0.0  ;;  %v3276_v42 = vsel %vm1049_vm2, %v3199_v44, 0.0  ;;  %v3322_v40 = vmul.f32 %v3199_v44, %v3199_v44  ;;  %3425 = vst.msk [vmem:[#allocation2 + $0x1c8] sm:$0xff] %vm1049_vm2, %v3199_v44  ;;  %v1381_v45 = vadd.f32 %v1380_v51, %v11910_v4 }
 0x274   : > { %v3377_v35 = vadd.f32 %v3376_v63, %v3375_v0  ;;  %v3277_v49 = vadd.f32 %v3276_v42, %v3275_v43  ;;  %v3382_v25 = vsel %vm1049_vm2, %v3324_v32, 0.0  ;;  %v5947_v2 = vsel %vm1016_vm1, %v9652_v24, %v5343_v62 }
 0x275   : > { %v3378_v11 = vsel %vm1049_vm2, %v3322_v40, 0.0  ;;  %v6201_v0 = vor.u32 %v6200_v38, %v6196_v41  ;;  %v6015_v12 = vsel %vm1049_vm2, %v5947_v2, %v5535_v17  ;;  %v1482_v42 = vrot.slane %v11918_v56, 4 }
 0x276   : > { %v3279_v26 = vadd.f32 %v3278_v39, %v3277_v49  ;;  %v3379_v52 = vadd.f32 %v3378_v11, %v3377_v35 }
 0x277   : > { %v5869_v8 = vpop.permute.xlu0 %5868  ;;  %v3870_v34 = vpop.permute.xlu1 %3869 }
 0x278   : > { %v6077_v55 = vsel %vm1082_vm3, %v6013_v5, %v5869_v8  ;;  %v3381_v14 = vadd.f32 %v3380_v61, %v3379_v52  ;;  %v3281_v58 = vadd.f32 %v3280_v3, %v3279_v26  ;;  %v4286_v62 = vsel %vm1016_vm1, %v9654_v6, %v3870_v34 }
 0x279   : > { %v6208_v21 = vshll.u32 %v6077_v55, 16  ;;  %v6206_v28 = vshrl.u32 %v6077_v55, 16  ;;  %v8467_v55 = vld [vmem:[%s9731_s16 + $0x9c] sm:$0xf]  ;;  %v1483_v61 = vadd.f32 %v1482_v42, %v11918_v56 }
 0x27a   : > { %v3383_v37 = vadd.f32 %v3382_v25, %v3381_v14 }
 0x27b   : > { %v5867_v23 = vpop.permute.xlu0 %5866  ;;  %v3872_v15 = vpop.permute.xlu1 %3871  ;;  %v6210_v9 = vrot.slane %v6208_v21, 1  ;;  %v1484_v2 = vrot.slane %v1483_v61, 2 }
 0x27c   : > { %v6075_v20 = vsel %vm1082_vm3, %v6011_v47, %v5867_v23  ;;  %v4288_v7 = vsel %vm1016_vm1, %v9653_v54, %v3872_v15  ;;  %v9655_v23 = vld [vmem:[%s9731_s16 + $0xa0] sm:$0xf] }
 0x27d   : > { %v6202_v57 = vshll.u32 %v6075_v20, 16  ;;  %v6211_v50 = vor.u32 %v6210_v9, %v6206_v28  ;;  %v9656_v9 = vld [vmem:[%s9731_s16 + $0xac] sm:$0xf] }
 0x27f   : > { %v6204_v60 = vrot.slane %v6202_v57, 1  ;;  %v5871_v19 = vpop.permute.xlu0 %5870  ;;  %v3984_v27 = vpop.permute.xlu1 %3983  ;;  %v8470_v57 = vld [vmem:[%s9731_s16 + $0xa8] sm:$0xf] }
 0x280   : > { %v6079_v30 = vsel %vm1082_vm3, %v6015_v12, %v5871_v19  ;;  %v4320_v18 = vsel %vm1049_vm2, %v4288_v7, %v3984_v27  ;;  %v1485_v7 = vadd.f32 %v1484_v2, %v1483_v61 }
 0x281   : > { %v6212_v31 = vshll.u32 %v6079_v30, 16  ;;  %v6205_v46 = vsel %vm407_vm0, %v6201_v0, %v6204_v60  ;;  %v8585_v60 = vcombine.low %v8470_v57, %v9656_v9  ;;  %v9659_v9 = vld [vmem:[%s9731_s16 + $0xa8] sm:$0xff]  }
 0x282   : > { %9221 = vmatprep.mubr.msk.bf16.mxu1 %vm1123_vm4, %v6205_v46  ;;  %v1486_v51 = vrot.slane %v1485_v7, 1 }
 0x283   : > { %v6214_v22 = vrot.slane %v6212_v31, 1  ;;  %v3982_v29 = vpop.permute.xlu0 %3981  ;;  %v4256_v53 = vpop.permute.xlu1 %4255 }
 0x284   : > { %v4318_v10 = vsel %vm1049_vm2, %v4286_v62, %v3982_v29  ;;  %v4352_v36 = vsel %vm1082_vm3, %v4320_v18, %v4256_v53 }
 0x285   : > { %v6215_v33 = vsel %vm407_vm0, %v6211_v50, %v6214_v22 }
 0x286   : > { %9222 = vmatmul.mubr.msk.bf16.gmra.mrb[52].mxu1 %vm1123_vm4, %v6215_v33 }
 0x287   : > { %v4254_v13 = vpop.permute.xlu0 %4253  ;;  %v5349_v43 = vpop.permute.xlu1 %5348 }
 0x288   : > { %v4350_v48 = vsel %vm1082_vm3, %v4318_v10, %v4254_v13  ;;  %v9163_v44 = vpop.f32.mrb[28].mxu1  ;;  %v5955_v33 = vsel %vm1016_vm1, %v8585_v60, %v5349_v43 }
 0x289   : > { %9187 = vmatprep.mubr.msk.bf16.mxu0 %vm1123_vm4, %v4350_v48  ;;  %3430 = vst.msk [vmem:[#allocation2 + $0x1f0] sm:$0xff] %vm1049_vm2, %v9163_v44  ;;  %v3212_v63 = vpop.f32.mrb[29].mxu1  ;;  %v3327_v32 = vmul.f32 %v9163_v44, %v9163_v44  ;;  %v3286_v3 = vsel %vm1049_vm2, %v9163_v44, 0.0 }
 0x28a   : > { %9188 = vmatmul.mubr.msk.bf16.gmra.mrb[52].mxu0 %vm1123_vm4, %v4352_v36  ;;  %v3282_v40 = vsel %vm1049_vm2, %v3212_v63, 0.0  ;;  %v3325_v5 = vmul.f32 %v3212_v63, %v3212_v63  ;;  %3428 = vst.msk [vmem:[#allocation2 + $0x1e0] sm:$0xff] %vm1049_vm2, %v3212_v63  ;;  %v9164_v35 = vpop.f32.mrb[30].mxu1 }
 0x28b   : > { %v5345_v17 = vpop.permute.xlu0 %5344  ;;  %v5347_v49 = vpop.permute.xlu1 %5346  ;;  %v3283_v8 = vadd.f32 %v3282_v40, %v3281_v58  ;;  %3431 = vst.msk [vmem:[#allocation2 + $0x1f8] sm:$0xff] %vm1049_vm2, %v9164_v35  ;;  %v3328_v47 = vmul.f32 %v9164_v35, %v9164_v35  ;;  %v8583_v58 = vcombine.low %v8467_v55, %v9655_v23  ;;  %v3388_v41 = vsel %vm1049_vm2, %v3327_v32, 0.0  ;;  %v9657_v40 = vld [vmem:[%s9731_s16 + $0xa4] ss:$0 sps:$4 sm:$0x11]  }
 0x28c   : > { %v3215_v39 = vpop.f32.mrb[31].mxu1  ;;  %v3384_v11 = vsel %vm1049_vm2, %v3325_v5, 0.0  ;;  %v3288_v4 = vsel %vm1049_vm2, %v9164_v35, 0.0  ;;  %v5952_v5 = vsel %vm1016_vm1, %v9657_v40, %v5347_v49 }
 0x28d   : > { %v3284_v26 = vsel %vm1049_vm2, %v3215_v39, 0.0  ;;  %v3326_v52 = vmul.f32 %v3215_v39, %v3215_v39  ;;  %3429 = vst.msk [vmem:[#allocation2 + $0x1e8] sm:$0xff] %vm1049_vm2, %v3215_v39  ;;  %v3385_v1 = vadd.f32 %v3384_v11, %v3383_v37  ;;  %v1382_v37 = vrot.slane %v1381_v45, 2 }
 0x28e   : > { %v3285_v38 = vadd.f32 %v3284_v26, %v3283_v8  ;;  %v3390_v0 = vsel %vm1049_vm2, %v3328_v47, 0.0  ;;  %v5950_v19 = vsel %vm1016_vm1, %v8583_v58, %v5345_v17 }
 0x28f   : > { %v5537_v34 = vpop.permute.xlu0 %5536  ;;  %v3386_v14 = vsel %vm1049_vm2, %v3326_v52, 0.0  ;;  %v5873_v21 = vpop.permute.xlu1 %5872  ;;  %v1383_v27 = vadd.f32 %v1382_v37, %v1381_v45 }
 0x290   : > { %v3287_v25 = vadd.f32 %v3286_v3, %v3285_v38  ;;  %v3387_v20 = vadd.f32 %v3386_v14, %v3385_v1  ;;  %v6017_v31 = vsel %vm1049_vm2, %v5950_v19, %v5537_v34  ;;  %v1487_v1 = vadd.f32 %v1486_v51, %v1485_v7  ;;  %v9658_v3 = vld [vmem:[%s9731_s16 + $0xb0] ss:$0 sps:$4 sm:$0x11]  }
 0x291   : > { %v6081_v29 = vsel %vm1082_vm3, %v6017_v31, %v5873_v21  ;;  %v1384_v36 = vrot.slane %v1383_v27, 1 }
 0x292   : > { %v3289_v24 = vadd.f32 %v3288_v4, %v3287_v25  ;;  %v3389_v56 = vadd.f32 %v3388_v41, %v3387_v20  ;;  %v6218_v62 = vshll.u32 %v6081_v29, 16  ;;  %v6216_v52 = vshrl.u32 %v6081_v29, 16 }
 0x293   : > { %v5541_v15 = vpop.permute.xlu0 %5540  ;;  %v5539_v12 = vpop.permute.xlu1 %5538  ;;  %v1385_v32 = vadd.f32 %v1384_v36, %v1383_v27 }
 0x294   : > { %v3290_v30 = vrot.slane %v3289_v24, 4  ;;  %v3391_v28 = vadd.f32 %v3390_v0, %v3389_v56  ;;  %v6021_v18 = vsel %vm1049_vm2, %v5955_v33, %v5541_v15  ;;  %v6220_v43 = vrot.slane %v6218_v62, 1 }
 0x295   : > { %v6019_v35 = vsel %vm1049_vm2, %v5952_v5, %v5539_v12 }
 0x296   : > { %v3291_v50 = vadd.f32 %v3290_v30, %v3289_v24  ;;  %v3392_v22 = vrot.slane %v3391_v28, 4  ;;  %v6221_v47 = vor.u32 %v6220_v43, %v6216_v52 }
 0x297   : > { %v5351_v46 = vpop.permute.xlu0 %5350  ;;  %v5543_v54 = vpop.permute.xlu1 %5542 }
 0x298   : > { %v3292_v53 = vrot.slane %v3291_v50, 2  ;;  %v3393_v6 = vadd.f32 %v3392_v22, %v3391_v28  ;;  %v5957_v49 = vsel %vm1016_vm1, %v9658_v3, %v5351_v46  ;;  %v9660_v28 = vld [vmem:[%s9731_s16 + $0x9c] sm:$0xff]  }
 0x299   : > { %v6023_v14 = vsel %vm1049_vm2, %v5957_v49, %v5543_v54 }
 0x29a   : > { %v3293_v13 = vadd.f32 %v3292_v53, %v3291_v50  ;;  %v3394_v48 = vrot.slane %v3393_v6, 2 }
 0x29b   : > { %v5877_v10 = vpop.permute.xlu0 %5876  ;;  %v3874_v17 = vpop.permute.xlu1 %3873 }
 0x29c   : > { %v6085_v44 = vsel %vm1082_vm3, %v6021_v18, %v5877_v10  ;;  %v3294_v63 = vrot.slane %v3293_v13, 1  ;;  %v3395_v42 = vadd.f32 %v3394_v48, %v3393_v6  ;;  %v4290_v31 = vsel %vm1016_vm1, %v9660_v28, %v3874_v17  ;;  %v9662_v28 = vld [vmem:[%s9731_s16 + $0xc4] sm:$0xf] }
 0x29d   : > { %v6228_v8 = vshll.u32 %v6085_v44, 16  ;;  %v6226_v41 = vshrl.u32 %v6085_v44, 16 }
 0x29e   : > { %v3295_v11 = vadd.f32 %v3294_v63, %v3293_v13  ;;  %v3396_v55 = vrot.slane %v3395_v42, 1 }
 0x29f   : > { %v5875_v39 = vpop.permute.xlu0 %5874  ;;  %v3876_v45 = vpop.permute.xlu1 %3875  ;;  %v6230_v21 = vrot.slane %v6228_v8, 1 }
 0x2a0   : > { %v6083_v26 = vsel %vm1082_vm3, %v6019_v35, %v5875_v39  ;;  %v12584_v38 = vadd.f32 %v3295_v11, %v1385_v32  ;;  %v3397_v61 = vadd.f32 %v3396_v55, %v3395_v42  ;;  %v4292_v60 = vsel %vm1016_vm1, %v9659_v9, %v3876_v45 }
 0x2a1   : > { %v6222_v34 = vshll.u32 %v6083_v26, 16  ;;  %v6231_v24 = vor.u32 %v6230_v21, %v6226_v41 }
 0x2a2   : > { %v12589_v25 = vadd.f32 %v3397_v61, %v1487_v1  ;;  %v9203_v37 = vpop.f32.mrb[32].mxu1 }
 0x2a3   : > { %v6224_v23 = vrot.slane %v6222_v34, 1  ;;  %v5879_v58 = vpop.permute.xlu0 %5878  ;;  %v3988_v15 = vpop.permute.xlu1 %3987  ;;  %v6546_v2 = vmul.f32 %v9203_v37, %v9203_v37  ;;  %6649 = vst.msk [vmem:[#allocation2 + $0x310] sm:$0xff] %vm1049_vm2, %v9203_v37  ;;  %v6477_v29 = vsel %vm1049_vm2, %v9203_v37, 0.0 }
 0x2a4   : > { %v6087_v20 = vsel %vm1082_vm3, %v6023_v14, %v5879_v58  ;;  %v6347_v0 = vpop.f32.mrb[33].mxu1  ;;  %v4324_v46 = vsel %vm1049_vm2, %v4292_v60, %v3988_v15  ;;  %v8476_v60 = vld [vmem:[%s9731_s16 + $0xc0] sm:$0xf] }
 0x2a5   : > { %v6232_v57 = vshll.u32 %v6087_v20, 16  ;;  %v6225_v4 = vsel %vm407_vm0, %v6221_v47, %v6224_v23  ;;  %v6544_v19 = vmul.f32 %v6347_v0, %v6347_v0  ;;  %6647 = vst.msk [vmem:[#allocation2 + $0x300] sm:$0xff] %vm1049_vm2, %v6347_v0  ;;  %v9204_v30 = vpop.f32.mrb[34].mxu1  ;;  %v9169_v50 = vpop.f32.mrb[32].mxu0  ;;  %v6474_v54 = vsel %vm1049_vm2, %v6347_v0, 0.0 }
 0x2a6   : > { %9225 = vmatprep.mubr.msk.bf16.mxu1 %vm1123_vm4, %v6225_v4  ;;  %6650 = vst.msk [vmem:[#allocation2 + $0x318] sm:$0xff] %vm1049_vm2, %v9204_v30  ;;  %v6350_v27 = vpop.f32.mrb[35].mxu1  ;;  %4738 = vst.msk [vmem:[#allocation2 + $0x210] sm:$0xff] %vm1049_vm2, %v9169_v50  ;;  %v4436_v53 = vpop.f32.mrb[33].mxu0  ;;  %v6579_v62 = vsel %vm1049_vm2, %v6546_v2, 0.0  ;;  %v6547_v18 = vmul.f32 %v9204_v30, %v9204_v30  ;;  %v6479_v17 = vsel %vm1049_vm2, %v9204_v30, 0.0  ;;  %v4635_v43 = vmul.f32 %v9169_v50, %v9169_v50 }
 0x2a7   : > { %v6234_v56 = vrot.slane %v6232_v57, 1  ;;  %v3986_v12 = vpop.permute.xlu0 %3985  ;;  %v6475_v7 = vsel %vm1049_vm2, %v6350_v27, 0.0  ;;  %v6545_v33 = vmul.f32 %v6350_v27, %v6350_v27  ;;  %6648 = vst.msk [vmem:[#allocation2 + $0x308] sm:$0xff] %vm1049_vm2, %v6350_v27  ;;  %v4260_v6 = vpop.permute.xlu1 %4259  ;;  %4736 = vst.msk [vmem:[#allocation2 + $0x200] sm:$0xff] %vm1049_vm2, %v4436_v53  ;;  %v6576_v44 = vsel %vm1049_vm2, %v6544_v19, 0.0 }
 0x2a8   : > { %v4322_v10 = vsel %vm1049_vm2, %v4290_v31, %v3986_v12  ;;  %v6476_v36 = vadd.f32 %v6475_v7, %v6474_v54  ;;  %v9170_v13 = vpop.f32.mrb[34].mxu0  ;;  %v4633_v63 = vmul.f32 %v4436_v53, %v4436_v53  ;;  %v4356_v35 = vsel %vm1082_vm3, %v4324_v46, %v4260_v6  ;;  %v8473_v4 = vld [vmem:[%s9731_s16 + $0xb4] sm:$0xf]  ;;  %v9661_v2 = vld [vmem:[%s9731_s16 + $0xb8] sm:$0xf] }
 0x2a9   : > { %v6235_v22 = vsel %vm407_vm0, %v6231_v24, %v6234_v56  ;;  %v6577_v51 = vsel %vm1049_vm2, %v6545_v33, 0.0  ;;  %4739 = vst.msk [vmem:[#allocation2 + $0x218] sm:$0xff] %vm1049_vm2, %v9170_v13  ;;  %v4439_v42 = vpop.f32.mrb[35].mxu0  ;;  %v4563_v8 = vsel %vm1049_vm2, %v4436_v53, 0.0  ;;  %v6581_v26 = vsel %vm1049_vm2, %v6547_v18, 0.0 }
 0x2aa   : > { %9226 = vmatmul.mubr.msk.bf16.gmra.mrb[56].mxu1 %vm1123_vm4, %v6235_v22  ;;  %v6478_v40 = vadd.f32 %v6477_v29, %v6476_v36  ;;  %v6578_v5 = vadd.f32 %v6577_v51, %v6576_v44  ;;  %4737 = vst.msk [vmem:[#allocation2 + $0x208] sm:$0xff] %vm1049_vm2, %v4439_v42  ;;  %v4564_v32 = vsel %vm1049_vm2, %v4439_v42, 0.0  ;;  %v4634_v11 = vmul.f32 %v4439_v42, %v4439_v42  ;;  %v9663_v6 = vld [vmem:[%s9731_s16 + $0xbc] ss:$0 sps:$4 sm:$0x11]  }
 0x2ab   : > { %v4258_v48 = vpop.permute.xlu0 %4257  ;;  %v5357_v55 = vpop.permute.xlu1 %5356  ;;  %v4566_v34 = vsel %vm1049_vm2, %v9169_v50, 0.0  ;;  %v4565_v45 = vadd.f32 %v4564_v32, %v4563_v8  ;;  %v4665_v61 = vsel %vm1049_vm2, %v4633_v63, 0.0  ;;  %v4636_v3 = vmul.f32 %v9170_v13, %v9170_v13  ;;  %v9664_v63 = vld [vmem:[%s9731_s16 + $0xc8] ss:$0 sps:$4 sm:$0x11]  }
 0x2ac   : > { %v4354_v39 = vsel %vm1082_vm3, %v4322_v10, %v4258_v48  ;;  %v6580_v52 = vadd.f32 %v6579_v62, %v6578_v5  ;;  %v4666_v49 = vsel %vm1049_vm2, %v4634_v11, 0.0  ;;  %v12627_v47 = vadd.f32 %v6479_v17, %v6478_v40 }
 0x2ad   : > { %9191 = vmatprep.mubr.msk.bf16.mxu0 %vm1123_vm4, %v4354_v39  ;;  %v4567_v14 = vadd.f32 %v4566_v34, %v4565_v45  ;;  %v4667_v21 = vadd.f32 %v4666_v49, %v4665_v61  ;;  %v4668_v58 = vsel %vm1049_vm2, %v4635_v43, 0.0  ;;  %v4568_v20 = vsel %vm1049_vm2, %v9170_v13, 0.0 }
 0x2ae   : > { %9192 = vmatmul.mubr.msk.bf16.gmra.mrb[56].mxu0 %vm1123_vm4, %v4356_v35  ;;  %v12629_v23 = vadd.f32 %v6581_v26, %v6580_v52  ;;  %v4670_v24 = vsel %vm1049_vm2, %v4636_v3, 0.0  ;;  %v8587_v0 = vcombine.low %v8473_v4, %v9661_v2  ;;  %v8589_v31 = vcombine.low %v8476_v60, %v9662_v28 }
 0x2af   : > { %v5353_v1 = vpop.permute.xlu0 %5352  ;;  %v5355_v41 = vpop.permute.xlu1 %5354  ;;  %v4669_v57 = vadd.f32 %v4668_v58, %v4667_v21  ;;  %v12634_v37 = vadd.f32 %v4568_v20, %v4567_v14 }
 0x2b0   : > { %v5960_v19 = vsel %vm1016_vm1, %v8587_v0, %v5353_v1  ;;  %v5965_v29 = vsel %vm1016_vm1, %v8589_v31, %v5357_v55  ;;  %v5962_v62 = vsel %vm1016_vm1, %v9663_v6, %v5355_v41 }
 0x2b1   : > { %v12637_v56 = vadd.f32 %v4670_v24, %v4669_v57 }
 0x2b3   : > { %v5545_v15 = vpop.permute.xlu0 %5544  ;;  %v5881_v12 = vpop.permute.xlu1 %5880 }
 0x2b4   : > { %v6025_v46 = vsel %vm1049_vm2, %v5960_v19, %v5545_v15 }
 0x2b5   : > { %v6089_v50 = vsel %vm1082_vm3, %v6025_v46, %v5881_v12 }
 0x2b6   : > { %v6238_v54 = vshll.u32 %v6089_v50, 16  ;;  %v6236_v17 = vshrl.u32 %v6089_v50, 16 }
 0x2b7   : > { %v5549_v9 = vpop.permute.xlu0 %5548  ;;  %v5547_v30 = vpop.permute.xlu1 %5546 }
 0x2b8   : > { %v6029_v33 = vsel %vm1049_vm2, %v5965_v29, %v5549_v9  ;;  %v6240_v10 = vrot.slane %v6238_v54, 1  ;;  %v6027_v36 = vsel %vm1049_vm2, %v5962_v62, %v5547_v30 }
 0x2ba   : > { %v6241_v5 = vor.u32 %v6240_v10, %v6236_v17 }
 0x2bb   : > { %v5359_v27 = vpop.permute.xlu0 %5358  ;;  %v5551_v22 = vpop.permute.xlu1 %5550 }
 0x2bc   : > { %v5967_v42 = vsel %vm1016_vm1, %v9664_v63, %v5359_v27 }
 0x2bd   : > { %v6031_v43 = vsel %vm1049_vm2, %v5967_v42, %v5551_v22 }
 0x2bf   : > { %v5885_v7 = vpop.permute.xlu0 %5884  ;;  %v3878_v18 = vpop.permute.xlu1 %3877 }
 0x2c0   : > { %v6093_v53 = vsel %vm1082_vm3, %v6029_v33, %v5885_v7  ;;  %v4294_v1 = vsel %vm1016_vm1, %v12368_v59, %v3878_v18 }
 0x2c1   : > { %v6248_v48 = vshll.u32 %v6093_v53, 16  ;;  %v6246_v52 = vshrl.u32 %v6093_v53, 16 }
 0x2c3   : > { %v5883_v13 = vpop.permute.xlu0 %5882  ;;  %v3880_v40 = vpop.permute.xlu1 %3879  ;;  %v6250_v39 = vrot.slane %v6248_v48, 1 }
 0x2c4   : > { %v6091_v44 = vsel %vm1082_vm3, %v6027_v36, %v5883_v13  ;;  %v4296_v20 = vsel %vm1016_vm1, %v12399_v16, %v3880_v40 }
 0x2c5   : > { %v6242_v51 = vshll.u32 %v6091_v44, 16  ;;  %v6251_v58 = vor.u32 %v6250_v39, %v6246_v52 }
 0x2c7   : > { %v6244_v35 = vrot.slane %v6242_v51, 1  ;;  %v5887_v8 = vpop.permute.xlu0 %5886  ;;  %v9207_v55 = vpop.f32.mrb[36].mxu1 }
 0x2c8   : > { %v6095_v32 = vsel %vm1082_vm3, %v6031_v43, %v5887_v8  ;;  %6653 = vst.msk [vmem:[#allocation2 + $0x330] sm:$0xff] %vm1049_vm2, %v9207_v55  ;;  %v6363_v34 = vpop.f32.mrb[37].mxu1  ;;  %v3992_v45 = vpop.permute.xlu1 %3991  ;;  %v6550_v61 = vmul.f32 %v9207_v55, %v9207_v55  ;;  %v6485_v59 = vsel %vm1049_vm2, %v9207_v55, 0.0 }
 0x2c9   : > { %v6252_v11 = vshll.u32 %v6095_v32, 16  ;;  %v6245_v26 = vsel %vm407_vm0, %v6241_v5, %v6244_v35  ;;  %v6481_v3 = vsel %vm1049_vm2, %v6363_v34, 0.0  ;;  %v6548_v49 = vmul.f32 %v6363_v34, %v6363_v34  ;;  %6651 = vst.msk [vmem:[#allocation2 + $0x320] sm:$0xff] %vm1049_vm2, %v6363_v34  ;;  %v9208_v14 = vpop.f32.mrb[38].mxu1 }
 0x2ca   : > { %9229 = vmatprep.mubr.msk.bf16.mxu1 %vm1123_vm4, %v6245_v26  ;;  %v6482_v57 = vadd.f32 %v6481_v3, %v12627_v47  ;;  %6654 = vst.msk [vmem:[#allocation2 + $0x338] sm:$0xff] %vm1049_vm2, %v9208_v14  ;;  %v6366_v4 = vpop.f32.mrb[39].mxu1  ;;  %v4328_v16 = vsel %vm1049_vm2, %v4296_v20, %v3992_v45  ;;  %v6551_v9 = vmul.f32 %v9208_v14, %v9208_v14  ;;  %v6587_v30 = vsel %vm1049_vm2, %v6550_v61, 0.0 }
 0x2cb   : > { %v3990_v21 = vpop.permute.xlu0 %3989  ;;  %v6254_v41 = vrot.slane %v6252_v11, 1  ;;  %v6583_v15 = vsel %vm1049_vm2, %v6548_v49, 0.0  ;;  %v6483_v24 = vsel %vm1049_vm2, %v6366_v4, 0.0  ;;  %v6549_v2 = vmul.f32 %v6366_v4, %v6366_v4  ;;  %6652 = vst.msk [vmem:[#allocation2 + $0x328] sm:$0xff] %vm1049_vm2, %v6366_v4  ;;  %v9173_v0 = vpop.f32.mrb[36].mxu0 }
 0x2cc   : > { %v6584_v12 = vadd.f32 %v6583_v15, %v12629_v23  ;;  %v6484_v60 = vadd.f32 %v6483_v24, %v6482_v57  ;;  %4742 = vst.msk [vmem:[#allocation2 + $0x230] sm:$0xff] %vm1049_vm2, %v9173_v0  ;;  %v4452_v47 = vpop.f32.mrb[37].mxu0  ;;  %v4264_v19 = vpop.permute.xlu1 %4263  ;;  %v6487_v33 = vsel %vm1049_vm2, %v9208_v14, 0.0  ;;  %v4326_v53 = vsel %vm1049_vm2, %v4294_v1, %v3990_v21 }
 0x2cd   : > { %v6585_v28 = vsel %vm1049_vm2, %v6549_v2, 0.0  ;;  %v4570_v31 = vsel %vm1049_vm2, %v4452_v47, 0.0  ;;  %v4637_v46 = vmul.f32 %v4452_v47, %v4452_v47  ;;  %4740 = vst.msk [vmem:[#allocation2 + $0x220] sm:$0xff] %vm1049_vm2, %v4452_v47  ;;  %v9174_v27 = vpop.f32.mrb[38].mxu0  ;;  %v6255_v54 = vsel %vm407_vm0, %v6251_v58, %v6254_v41 }
 0x2ce   : > { %v6486_v23 = vadd.f32 %v6485_v59, %v6484_v60  ;;  %v6586_v22 = vadd.f32 %v6585_v28, %v6584_v12  ;;  %v4571_v29 = vadd.f32 %v4570_v31, %v12634_v37  ;;  %4743 = vst.msk [vmem:[#allocation2 + $0x238] sm:$0xff] %vm1049_vm2, %v9174_v27  ;;  %v4455_v7 = vpop.f32.mrb[39].mxu0  ;;  %9230 = vmatmul.mubr.msk.bf16.gmra.mrb[60].mxu1 %vm1123_vm4, %v6255_v54  ;;  %v6589_v18 = vsel %vm1049_vm2, %v6551_v9, 0.0 }
 0x2cf   : > { %v4262_v50 = vpop.permute.xlu0 %4261  ;;  %v4672_v6 = vsel %vm1049_vm2, %v4637_v46, 0.0  ;;  %v4360_v62 = vsel %vm1082_vm3, %v4328_v16, %v4264_v19  ;;  %4741 = vst.msk [vmem:[#allocation2 + $0x228] sm:$0xff] %vm1049_vm2, %v4455_v7  ;;  %v4639_v13 = vmul.f32 %v9173_v0, %v9173_v0  ;;  %v4572_v48 = vsel %vm1049_vm2, %v4455_v7, 0.0 }
 0x2d0   : > { %v6588_v37 = vadd.f32 %v6587_v30, %v6586_v22  ;;  %v4673_v10 = vadd.f32 %v4672_v6, %v12637_v56  ;;  %v4358_v36 = vsel %vm1082_vm3, %v4326_v53, %v4262_v50  ;;  %v4638_v44 = vmul.f32 %v4455_v7, %v4455_v7 }
 0x2d1   : > { %9195 = vmatprep.mubr.msk.bf16.mxu0 %vm1123_vm4, %v4358_v36  ;;  %v6488_v17 = vadd.f32 %v6487_v33, %v6486_v23  ;;  %v4573_v51 = vadd.f32 %v4572_v48, %v4571_v29  ;;  %v4574_v42 = vsel %vm1049_vm2, %v9173_v0, 0.0  ;;  %v4640_v40 = vmul.f32 %v9174_v27, %v9174_v27 }
 0x2d2   : > { %9196 = vmatmul.mubr.msk.bf16.gmra.mrb[60].mxu0 %vm1123_vm4, %v4360_v62  ;;  %v6590_v63 = vadd.f32 %v6589_v18, %v6588_v37  ;;  %v4674_v5 = vsel %vm1049_vm2, %v4638_v44, 0.0  ;;  %v4676_v35 = vsel %vm1049_vm2, %v4639_v13, 0.0  ;;  %v4576_v8 = vsel %vm1049_vm2, %v9174_v27, 0.0 }
 0x2d3   : > { %v4575_v43 = vadd.f32 %v4574_v42, %v4573_v51  ;;  %v4675_v56 = vadd.f32 %v4674_v5, %v4673_v10  ;;  %v4678_v11 = vsel %vm1049_vm2, %v4640_v40, 0.0 }
 0x2d5   : > { %v4677_v39 = vadd.f32 %v4676_v35, %v4675_v56  ;;  %v4577_v32 = vadd.f32 %v4576_v8, %v4575_v43 }
 0x2d7   : > { %v4679_v55 = vadd.f32 %v4678_v11, %v4677_v39 }
 0x2eb   : > { %v9211_v26 = vpop.f32.mrb[40].mxu1 }
 0x2ec   : > { %6657 = vst.msk [vmem:[#allocation2 + $0x350] sm:$0xff] %vm1049_vm2, %v9211_v26  ;;  %v6379_v52 = vpop.f32.mrb[41].mxu1  ;;  %v6554_v49 = vmul.f32 %v9211_v26, %v9211_v26  ;;  %v6493_v4 = vsel %vm1049_vm2, %v9211_v26, 0.0 }
 0x2ed   : > { %v6489_v34 = vsel %vm1049_vm2, %v6379_v52, 0.0  ;;  %v6552_v45 = vmul.f32 %v6379_v52, %v6379_v52  ;;  %6655 = vst.msk [vmem:[#allocation2 + $0x340] sm:$0xff] %vm1049_vm2, %v6379_v52  ;;  %v9212_v1 = vpop.f32.mrb[42].mxu1 }
 0x2ee   : > { %v6490_v61 = vadd.f32 %v6489_v34, %v6488_v17  ;;  %6658 = vst.msk [vmem:[#allocation2 + $0x358] sm:$0xff] %vm1049_vm2, %v9212_v1  ;;  %v6382_v3 = vpop.f32.mrb[43].mxu1  ;;  %v6555_v59 = vmul.f32 %v9212_v1, %v9212_v1  ;;  %v6595_v60 = vsel %vm1049_vm2, %v6554_v49, 0.0  ;;  %v6495_v47 = vsel %vm1049_vm2, %v9212_v1, 0.0 }
 0x2ef   : > { %v6591_v14 = vsel %vm1049_vm2, %v6552_v45, 0.0  ;;  %v6491_v21 = vsel %vm1049_vm2, %v6382_v3, 0.0  ;;  %v6553_v58 = vmul.f32 %v6382_v3, %v6382_v3  ;;  %6656 = vst.msk [vmem:[#allocation2 + $0x348] sm:$0xff] %vm1049_vm2, %v6382_v3  ;;  %v9177_v57 = vpop.f32.mrb[40].mxu0 }
 0x2f0   : > { %v6592_v20 = vadd.f32 %v6591_v14, %v6590_v63  ;;  %v6492_v41 = vadd.f32 %v6491_v21, %v6490_v61  ;;  %4746 = vst.msk [vmem:[#allocation2 + $0x250] sm:$0xff] %vm1049_vm2, %v9177_v57  ;;  %v4468_v24 = vpop.f32.mrb[41].mxu0  ;;  %v4643_v19 = vmul.f32 %v9177_v57, %v9177_v57  ;;  %v6597_v23 = vsel %vm1049_vm2, %v6555_v59, 0.0 }
 0x2f1   : > { %v6593_v15 = vsel %vm1049_vm2, %v6553_v58, 0.0  ;;  %v4578_v12 = vsel %vm1049_vm2, %v4468_v24, 0.0  ;;  %v4641_v16 = vmul.f32 %v4468_v24, %v4468_v24  ;;  %4744 = vst.msk [vmem:[#allocation2 + $0x240] sm:$0xff] %vm1049_vm2, %v4468_v24  ;;  %v9178_v9 = vpop.f32.mrb[42].mxu0  ;;  %v4582_v7 = vsel %vm1049_vm2, %v9177_v57, 0.0 }
 0x2f2   : > { %v6494_v2 = vadd.f32 %v6493_v4, %v6492_v41  ;;  %v6594_v0 = vadd.f32 %v6593_v15, %v6592_v20  ;;  %v4579_v30 = vadd.f32 %v4578_v12, %v4577_v32  ;;  %4747 = vst.msk [vmem:[#allocation2 + $0x258] sm:$0xff] %vm1049_vm2, %v9178_v9  ;;  %v4471_v28 = vpop.f32.mrb[43].mxu0  ;;  %v4644_v33 = vmul.f32 %v9178_v9, %v9178_v9 }
 0x2f3   : > { %v4680_v46 = vsel %vm1049_vm2, %v4641_v16, 0.0  ;;  %v4580_v27 = vsel %vm1049_vm2, %v4471_v28, 0.0  ;;  %v4642_v50 = vmul.f32 %v4471_v28, %v4471_v28  ;;  %4745 = vst.msk [vmem:[#allocation2 + $0x248] sm:$0xff] %vm1049_vm2, %v4471_v28  ;;  %v4684_v37 = vsel %vm1049_vm2, %v4643_v19, 0.0 }
 0x2f4   : > { %v6596_v31 = vadd.f32 %v6595_v60, %v6594_v0  ;;  %v4681_v22 = vadd.f32 %v4680_v46, %v4679_v55  ;;  %v4581_v29 = vadd.f32 %v4580_v27, %v4579_v30  ;;  %v6496_v54 = vadd.f32 %v6495_v47, %v6494_v2 }
 0x2f5   : > { %v4682_v53 = vsel %vm1049_vm2, %v4642_v50, 0.0  ;;  %v4584_v10 = vsel %vm1049_vm2, %v9178_v9, 0.0  ;;  %v4686_v48 = vsel %vm1049_vm2, %v4644_v33, 0.0 }
 0x2f6   : > { %v6598_v6 = vadd.f32 %v6597_v23, %v6596_v31  ;;  %v4583_v62 = vadd.f32 %v4582_v7, %v4581_v29  ;;  %v4683_v18 = vadd.f32 %v4682_v53, %v4681_v22 }
 0x2f8   : > { %v4685_v36 = vadd.f32 %v4684_v37, %v4683_v18  ;;  %v4585_v13 = vadd.f32 %v4584_v10, %v4583_v62 }
 0x2fa   : > { %v4687_v44 = vadd.f32 %v4686_v48, %v4685_v36 }
 0x310   : > { %v9215_v17 = vpop.f32.mrb[44].mxu1 }
 0x311   : > { %6661 = vst.msk [vmem:[#allocation2 + $0x370] sm:$0xff] %vm1049_vm2, %v9215_v17  ;;  %v6395_v51 = vpop.f32.mrb[45].mxu1  ;;  %v6558_v5 = vmul.f32 %v9215_v17, %v9215_v17  ;;  %v6501_v11 = vsel %vm1049_vm2, %v9215_v17, 0.0 }
 0x312   : > { %v6497_v63 = vsel %vm1049_vm2, %v6395_v51, 0.0  ;;  %v6556_v42 = vmul.f32 %v6395_v51, %v6395_v51  ;;  %6659 = vst.msk [vmem:[#allocation2 + $0x360] sm:$0xff] %vm1049_vm2, %v6395_v51  ;;  %v9216_v40 = vpop.f32.mrb[46].mxu1 }
 0x313   : > { %v6498_v43 = vadd.f32 %v6497_v63, %v6496_v54  ;;  %6662 = vst.msk [vmem:[#allocation2 + $0x378] sm:$0xff] %vm1049_vm2, %v9216_v40  ;;  %v6398_v56 = vpop.f32.mrb[47].mxu1  ;;  %v6559_v34 = vmul.f32 %v9216_v40, %v9216_v40  ;;  %v6603_v49 = vsel %vm1049_vm2, %v6558_v5, 0.0  ;;  %v6503_v41 = vsel %vm1049_vm2, %v9216_v40, 0.0 }
 0x314   : > { %v6599_v35 = vsel %vm1049_vm2, %v6556_v42, 0.0  ;;  %v6499_v8 = vsel %vm1049_vm2, %v6398_v56, 0.0  ;;  %v6557_v39 = vmul.f32 %v6398_v56, %v6398_v56  ;;  %6660 = vst.msk [vmem:[#allocation2 + $0x368] sm:$0xff] %vm1049_vm2, %v6398_v56  ;;  %v9181_v32 = vpop.f32.mrb[44].mxu0 }
 0x315   : > { %v6600_v55 = vadd.f32 %v6599_v35, %v6598_v6  ;;  %v6500_v26 = vadd.f32 %v6499_v8, %v6498_v43  ;;  %4750 = vst.msk [vmem:[#allocation2 + $0x270] sm:$0xff] %vm1049_vm2, %v9181_v32  ;;  %v4484_v52 = vpop.f32.mrb[45].mxu0  ;;  %v4647_v57 = vmul.f32 %v9181_v32, %v9181_v32  ;;  %v6605_v12 = vsel %vm1049_vm2, %v6559_v34, 0.0 }
 0x316   : > { %v6601_v45 = vsel %vm1049_vm2, %v6557_v39, 0.0  ;;  %v4586_v1 = vsel %vm1049_vm2, %v4484_v52, 0.0  ;;  %v4645_v61 = vmul.f32 %v4484_v52, %v4484_v52  ;;  %4748 = vst.msk [vmem:[#allocation2 + $0x260] sm:$0xff] %vm1049_vm2, %v4484_v52  ;;  %v9182_v3 = vpop.f32.mrb[46].mxu0  ;;  %v4590_v16 = vsel %vm1049_vm2, %v9181_v32, 0.0 }
 0x317   : > { %v6502_v14 = vadd.f32 %v6501_v11, %v6500_v26  ;;  %v6602_v21 = vadd.f32 %v6601_v45, %v6600_v55  ;;  %v4587_v58 = vadd.f32 %v4586_v1, %v4585_v13  ;;  %4751 = vst.msk [vmem:[#allocation2 + $0x278] sm:$0xff] %vm1049_vm2, %v9182_v3  ;;  %v4487_v20 = vpop.f32.mrb[47].mxu0  ;;  %v4648_v60 = vmul.f32 %v9182_v3, %v9182_v3 }
 0x318   : > { %v4688_v4 = vsel %vm1049_vm2, %v4645_v61, 0.0  ;;  %v4588_v59 = vsel %vm1049_vm2, %v4487_v20, 0.0  ;;  %4749 = vst.msk [vmem:[#allocation2 + $0x268] sm:$0xff] %vm1049_vm2, %v4487_v20  ;;  %v4646_v0 = vmul.f32 %v4487_v20, %v4487_v20  ;;  %v4592_v28 = vsel %vm1049_vm2, %v9182_v3, 0.0 }
 0x319   : > { %v6604_v15 = vadd.f32 %v6603_v49, %v6602_v21  ;;  %v4689_v24 = vadd.f32 %v4688_v4, %v4687_v44  ;;  %v4589_v2 = vadd.f32 %v4588_v59, %v4587_v58  ;;  %v6504_v9 = vadd.f32 %v6503_v41, %v6502_v14 }
 0x31a   : > { %v4690_v19 = vsel %vm1049_vm2, %v4646_v0, 0.0  ;;  %v4692_v46 = vsel %vm1049_vm2, %v4647_v57, 0.0  ;;  %v4694_v23 = vsel %vm1049_vm2, %v4648_v60, 0.0 }
 0x31b   : > { %v4591_v47 = vadd.f32 %v4590_v16, %v4589_v2  ;;  %v6606_v30 = vadd.f32 %v6605_v12, %v6604_v15  ;;  %v4691_v31 = vadd.f32 %v4690_v19, %v4689_v24 }
 0x31d   : > { %v4593_v27 = vadd.f32 %v4592_v28, %v4591_v47  ;;  %v4693_v50 = vadd.f32 %v4692_v46, %v4691_v31 }
 0x31f   : > { %v4695_v22 = vadd.f32 %v4694_v23, %v4693_v50 }
 0x335   : > { %v9219_v29 = vpop.f32.mrb[48].mxu1 }
 0x336   : > { %6665 = vst.msk [vmem:[#allocation2 + $0x390] sm:$0xff] %vm1049_vm2, %v9219_v29  ;;  %v6411_v54 = vpop.f32.mrb[49].mxu1  ;;  %v6562_v6 = vmul.f32 %v9219_v29, %v9219_v29  ;;  %v6509_v48 = vsel %vm1049_vm2, %v9219_v29, 0.0 }
 0x337   : > { %v6505_v7 = vsel %vm1049_vm2, %v6411_v54, 0.0  ;;  %v6560_v33 = vmul.f32 %v6411_v54, %v6411_v54  ;;  %6663 = vst.msk [vmem:[#allocation2 + $0x380] sm:$0xff] %vm1049_vm2, %v6411_v54  ;;  %v9220_v53 = vpop.f32.mrb[50].mxu1 }
 0x338   : > { %v6506_v62 = vadd.f32 %v6505_v7, %v6504_v9  ;;  %6666 = vst.msk [vmem:[#allocation2 + $0x398] sm:$0xff] %vm1049_vm2, %v9220_v53  ;;  %v6414_v18 = vpop.f32.mrb[51].mxu1  ;;  %v6563_v63 = vmul.f32 %v9220_v53, %v9220_v53  ;;  %v6611_v56 = vsel %vm1049_vm2, %v6562_v6, 0.0  ;;  %v6511_v11 = vsel %vm1049_vm2, %v9220_v53, 0.0 }
 0x339   : > { %v6607_v37 = vsel %vm1049_vm2, %v6560_v33, 0.0  ;;  %v6507_v10 = vsel %vm1049_vm2, %v6414_v18, 0.0  ;;  %v6561_v36 = vmul.f32 %v6414_v18, %v6414_v18  ;;  %6664 = vst.msk [vmem:[#allocation2 + $0x388] sm:$0xff] %vm1049_vm2, %v6414_v18  ;;  %v9185_v13 = vpop.f32.mrb[48].mxu0 }
 0x33a   : > { %v6608_v44 = vadd.f32 %v6607_v37, %v6606_v30  ;;  %v6508_v17 = vadd.f32 %v6507_v10, %v6506_v62  ;;  %4754 = vst.msk [vmem:[#allocation2 + $0x290] sm:$0xff] %vm1049_vm2, %v9185_v13  ;;  %v4500_v51 = vpop.f32.mrb[49].mxu0  ;;  %v4651_v55 = vmul.f32 %v9185_v13, %v9185_v13  ;;  %v6613_v3 = vsel %vm1049_vm2, %v6563_v63, 0.0 }
 0x33b   : > { %v6609_v42 = vsel %vm1049_vm2, %v6561_v36, 0.0  ;;  %v4594_v40 = vsel %vm1049_vm2, %v4500_v51, 0.0  ;;  %v4649_v5 = vmul.f32 %v4500_v51, %v4500_v51  ;;  %4752 = vst.msk [vmem:[#allocation2 + $0x280] sm:$0xff] %vm1049_vm2, %v4500_v51  ;;  %v9186_v43 = vpop.f32.mrb[50].mxu0  ;;  %v4598_v49 = vsel %vm1049_vm2, %v9185_v13, 0.0 }
 0x33c   : > { %v6510_v35 = vadd.f32 %v6509_v48, %v6508_v17  ;;  %v6610_v8 = vadd.f32 %v6609_v42, %v6608_v44  ;;  %v4595_v39 = vadd.f32 %v4594_v40, %v4593_v27  ;;  %4755 = vst.msk [vmem:[#allocation2 + $0x298] sm:$0xff] %vm1049_vm2, %v9186_v43  ;;  %v4503_v32 = vpop.f32.mrb[51].mxu0  ;;  %v4652_v21 = vmul.f32 %v9186_v43, %v9186_v43 }
 0x33d   : > { %v4696_v26 = vsel %vm1049_vm2, %v4649_v5, 0.0  ;;  %v4596_v52 = vsel %vm1049_vm2, %v4503_v32, 0.0  ;;  %4753 = vst.msk [vmem:[#allocation2 + $0x288] sm:$0xff] %vm1049_vm2, %v4503_v32  ;;  %v4650_v61 = vmul.f32 %v4503_v32, %v4503_v32  ;;  %v4600_v57 = vsel %vm1049_vm2, %v9186_v43, 0.0 }
 0x33e   : > { %v6612_v34 = vadd.f32 %v6611_v56, %v6610_v8  ;;  %v4697_v45 = vadd.f32 %v4696_v26, %v4695_v22  ;;  %v4597_v1 = vadd.f32 %v4596_v52, %v4595_v39  ;;  %v6512_v14 = vadd.f32 %v6511_v11, %v6510_v35 }
 0x33f   : > { %v4698_v20 = vsel %vm1049_vm2, %v4650_v61, 0.0  ;;  %v4700_v59 = vsel %vm1049_vm2, %v4651_v55, 0.0  ;;  %v4702_v2 = vsel %vm1049_vm2, %v4652_v21, 0.0 }
 0x340   : > { %v4599_v58 = vadd.f32 %v4598_v49, %v4597_v1  ;;  %v6614_v41 = vadd.f32 %v6613_v3, %v6612_v34  ;;  %v4699_v4 = vadd.f32 %v4698_v20, %v4697_v45 }
 0x342   : > { %v4601_v15 = vadd.f32 %v4600_v57, %v4599_v58  ;;  %v4701_v24 = vadd.f32 %v4700_v59, %v4699_v4 }
 0x344   : > { %v4703_v0 = vadd.f32 %v4702_v2, %v4701_v24 }
 0x359   : > { %v9223_v12 = vpop.f32.mrb[52].mxu1 }
 0x35a   : > { %6669 = vst.msk [vmem:[#allocation2 + $0x3b0] sm:$0xff] %vm1049_vm2, %v9223_v12  ;;  %v6427_v16 = vpop.f32.mrb[53].mxu1  ;;  %v6566_v19 = vmul.f32 %v9223_v12, %v9223_v12  ;;  %v6517_v23 = vsel %vm1049_vm2, %v9223_v12, 0.0 }
 0x35b   : > { %v6513_v9 = vsel %vm1049_vm2, %v6427_v16, 0.0  ;;  %v6564_v60 = vmul.f32 %v6427_v16, %v6427_v16  ;;  %6667 = vst.msk [vmem:[#allocation2 + $0x3a0] sm:$0xff] %vm1049_vm2, %v6427_v16  ;;  %v9224_v47 = vpop.f32.mrb[54].mxu1 }
 0x35c   : > { %v6514_v30 = vadd.f32 %v6513_v9, %v6512_v14  ;;  %6670 = vst.msk [vmem:[#allocation2 + $0x3b8] sm:$0xff] %vm1049_vm2, %v9224_v47  ;;  %v6430_v28 = vpop.f32.mrb[55].mxu1  ;;  %v6567_v7 = vmul.f32 %v9224_v47, %v9224_v47  ;;  %v6619_v18 = vsel %vm1049_vm2, %v6566_v19, 0.0  ;;  %v6519_v48 = vsel %vm1049_vm2, %v9224_v47, 0.0 }
 0x35d   : > { %v6615_v31 = vsel %vm1049_vm2, %v6564_v60, 0.0  ;;  %v6515_v46 = vsel %vm1049_vm2, %v6430_v28, 0.0  ;;  %v6565_v27 = vmul.f32 %v6430_v28, %v6430_v28  ;;  %6668 = vst.msk [vmem:[#allocation2 + $0x3a8] sm:$0xff] %vm1049_vm2, %v6430_v28  ;;  %v9189_v50 = vpop.f32.mrb[52].mxu0 }
 0x35e   : > { %v6616_v22 = vadd.f32 %v6615_v31, %v6614_v41  ;;  %v6516_v29 = vadd.f32 %v6515_v46, %v6514_v30  ;;  %4758 = vst.msk [vmem:[#allocation2 + $0x2b0] sm:$0xff] %vm1049_vm2, %v9189_v50  ;;  %v4516_v54 = vpop.f32.mrb[53].mxu0  ;;  %v4655_v44 = vmul.f32 %v9189_v50, %v9189_v50  ;;  %v6621_v43 = vsel %vm1049_vm2, %v6567_v7, 0.0 }
 0x35f   : > { %v6617_v33 = vsel %vm1049_vm2, %v6565_v27, 0.0  ;;  %v4602_v53 = vsel %vm1049_vm2, %v4516_v54, 0.0  ;;  %v4653_v6 = vmul.f32 %v4516_v54, %v4516_v54  ;;  %4756 = vst.msk [vmem:[#allocation2 + $0x2a0] sm:$0xff] %vm1049_vm2, %v4516_v54  ;;  %v9190_v62 = vpop.f32.mrb[54].mxu0  ;;  %v4606_v56 = vsel %vm1049_vm2, %v9189_v50, 0.0 }
 0x360   : > { %v6518_v37 = vadd.f32 %v6517_v23, %v6516_v29  ;;  %v6618_v10 = vadd.f32 %v6617_v33, %v6616_v22  ;;  %v4603_v36 = vadd.f32 %v4602_v53, %v4601_v15  ;;  %4759 = vst.msk [vmem:[#allocation2 + $0x2b8] sm:$0xff] %vm1049_vm2, %v9190_v62  ;;  %v4519_v13 = vpop.f32.mrb[55].mxu0  ;;  %v4656_v8 = vmul.f32 %v9190_v62, %v9190_v62 }
 0x361   : > { %v4704_v17 = vsel %vm1049_vm2, %v4653_v6, 0.0  ;;  %v4604_v51 = vsel %vm1049_vm2, %v4519_v13, 0.0  ;;  %4757 = vst.msk [vmem:[#allocation2 + $0x2a8] sm:$0xff] %vm1049_vm2, %v4519_v13  ;;  %v4654_v5 = vmul.f32 %v4519_v13, %v4519_v13  ;;  %v4608_v55 = vsel %vm1049_vm2, %v9190_v62, 0.0 }
 0x362   : > { %v6620_v63 = vadd.f32 %v6619_v18, %v6618_v10  ;;  %v4705_v42 = vadd.f32 %v4704_v17, %v4703_v0  ;;  %v4605_v40 = vadd.f32 %v4604_v51, %v4603_v36  ;;  %v6520_v35 = vadd.f32 %v6519_v48, %v6518_v37 }
 0x363   : > { %v4706_v32 = vsel %vm1049_vm2, %v4654_v5, 0.0  ;;  %v4708_v52 = vsel %vm1049_vm2, %v4655_v44, 0.0  ;;  %v4710_v1 = vsel %vm1049_vm2, %v4656_v8, 0.0 }
 0x364   : > { %v4607_v39 = vadd.f32 %v4606_v56, %v4605_v40  ;;  %v6622_v11 = vadd.f32 %v6621_v43, %v6620_v63  ;;  %v4707_v26 = vadd.f32 %v4706_v32, %v4705_v42 }
 0x366   : > { %v4609_v34 = vadd.f32 %v4608_v55, %v4607_v39  ;;  %v4709_v45 = vadd.f32 %v4708_v52, %v4707_v26 }
 0x368   : > { %v4711_v61 = vadd.f32 %v4710_v1, %v4709_v45 }
 0x37d   : > { %v9227_v3 = vpop.f32.mrb[56].mxu1 }
 0x37e   : > { %6673 = vst.msk [vmem:[#allocation2 + $0x3d0] sm:$0xff] %vm1049_vm2, %v9227_v3  ;;  %v6443_v49 = vpop.f32.mrb[57].mxu1  ;;  %v6570_v57 = vmul.f32 %v9227_v3, %v9227_v3  ;;  %v6525_v12 = vsel %vm1049_vm2, %v9227_v3, 0.0 }
 0x37f   : > { %v6521_v14 = vsel %vm1049_vm2, %v6443_v49, 0.0  ;;  %v6568_v21 = vmul.f32 %v6443_v49, %v6443_v49  ;;  %6671 = vst.msk [vmem:[#allocation2 + $0x3c0] sm:$0xff] %vm1049_vm2, %v6443_v49  ;;  %v9228_v58 = vpop.f32.mrb[58].mxu1 }
 0x380   : > { %v6522_v20 = vadd.f32 %v6521_v14, %v6520_v35  ;;  %6674 = vst.msk [vmem:[#allocation2 + $0x3d8] sm:$0xff] %vm1049_vm2, %v9228_v58  ;;  %v6446_v41 = vpop.f32.mrb[59].mxu1  ;;  %v6571_v2 = vmul.f32 %v9228_v58, %v9228_v58  ;;  %v6627_v30 = vsel %vm1049_vm2, %v6570_v57, 0.0  ;;  %v6527_v27 = vsel %vm1049_vm2, %v9228_v58, 0.0 }
 0x381   : > { %v6623_v4 = vsel %vm1049_vm2, %v6568_v21, 0.0  ;;  %v6523_v59 = vsel %vm1049_vm2, %v6446_v41, 0.0  ;;  %v6569_v15 = vmul.f32 %v6446_v41, %v6446_v41  ;;  %6672 = vst.msk [vmem:[#allocation2 + $0x3c8] sm:$0xff] %vm1049_vm2, %v6446_v41  ;;  %v9193_v9 = vpop.f32.mrb[56].mxu0 }
 0x382   : > { %v6624_v24 = vadd.f32 %v6623_v4, %v6622_v11  ;;  %v6524_v0 = vadd.f32 %v6523_v59, %v6522_v20  ;;  %4762 = vst.msk [vmem:[#allocation2 + $0x2d0] sm:$0xff] %vm1049_vm2, %v9193_v9  ;;  %v4532_v19 = vpop.f32.mrb[57].mxu0  ;;  %v6629_v50 = vsel %vm1049_vm2, %v6571_v2, 0.0  ;;  %v4659_v54 = vmul.f32 %v9193_v9, %v9193_v9 }
 0x383   : > { %v6625_v16 = vsel %vm1049_vm2, %v6569_v15, 0.0  ;;  %v4610_v28 = vsel %vm1049_vm2, %v4532_v19, 0.0  ;;  %v4657_v31 = vmul.f32 %v4532_v19, %v4532_v19  ;;  %4760 = vst.msk [vmem:[#allocation2 + $0x2c0] sm:$0xff] %vm1049_vm2, %v4532_v19  ;;  %v9194_v46 = vpop.f32.mrb[58].mxu0  ;;  %v4614_v10 = vsel %vm1049_vm2, %v9193_v9, 0.0 }
 0x384   : > { %v6526_v60 = vadd.f32 %v6525_v12, %v6524_v0  ;;  %v6626_v47 = vadd.f32 %v6625_v16, %v6624_v24  ;;  %v4611_v22 = vadd.f32 %v4610_v28, %v4609_v34  ;;  %4763 = vst.msk [vmem:[#allocation2 + $0x2d8] sm:$0xff] %vm1049_vm2, %v9194_v46  ;;  %v4535_v29 = vpop.f32.mrb[59].mxu0  ;;  %v4660_v36 = vmul.f32 %v9194_v46, %v9194_v46 }
 0x385   : > { %v4712_v7 = vsel %vm1049_vm2, %v4657_v31, 0.0  ;;  %v4612_v33 = vsel %vm1049_vm2, %v4535_v29, 0.0  ;;  %v4658_v53 = vmul.f32 %v4535_v29, %v4535_v29  ;;  %4761 = vst.msk [vmem:[#allocation2 + $0x2c8] sm:$0xff] %vm1049_vm2, %v4535_v29  ;;  %v4716_v17 = vsel %vm1049_vm2, %v4659_v54, 0.0 }
 0x386   : > { %v6628_v23 = vadd.f32 %v6627_v30, %v6626_v47  ;;  %v4713_v6 = vadd.f32 %v4712_v7, %v4711_v61  ;;  %v4613_v62 = vadd.f32 %v4612_v33, %v4611_v22  ;;  %v6528_v18 = vadd.f32 %v6527_v27, %v6526_v60 }
 0x387   : > { %v4714_v13 = vsel %vm1049_vm2, %v4658_v53, 0.0  ;;  %v4616_v51 = vsel %vm1049_vm2, %v9194_v46, 0.0  ;;  %v4718_v40 = vsel %vm1049_vm2, %v4660_v36, 0.0 }
 0x388   : > { %v6630_v37 = vadd.f32 %v6629_v50, %v6628_v23  ;;  %v4615_v48 = vadd.f32 %v4614_v10, %v4613_v62  ;;  %v4715_v44 = vadd.f32 %v4714_v13, %v4713_v6 }
 0x38a   : > { %v4717_v63 = vadd.f32 %v4716_v17, %v4715_v44  ;;  %v4617_v42 = vadd.f32 %v4616_v51, %v4615_v48 }
 0x38c   : > { %v4719_v5 = vadd.f32 %v4718_v40, %v4717_v63 }
 0x3a1   : > { %v9231_v43 = vpop.f32.mrb[60].mxu1 }
 0x3a2   : > { %v6574_v56 = vmul.f32 %v9231_v43, %v9231_v43  ;;  %6677 = vst.msk [vmem:[#allocation2 + $0x3f0] sm:$0xff] %vm1049_vm2, %v9231_v43  ;;  %v6459_v35 = vpop.f32.mrb[61].mxu1  ;;  %v6533_v61 = vsel %vm1049_vm2, %v9231_v43, 0.0 }
 0x3a3   : > { %v6529_v8 = vsel %vm1049_vm2, %v6459_v35, 0.0  ;;  %v6572_v39 = vmul.f32 %v6459_v35, %v6459_v35  ;;  %6675 = vst.msk [vmem:[#allocation2 + $0x3e0] sm:$0xff] %vm1049_vm2, %v6459_v35  ;;  %v9232_v32 = vpop.f32.mrb[62].mxu1 }
 0x3a4   : > { %v6530_v11 = vadd.f32 %v6529_v8, %v6528_v18  ;;  %6678 = vst.msk [vmem:[#allocation2 + $0x3f8] sm:$0xff] %vm1049_vm2, %v9232_v32  ;;  %v6462_v55 = vpop.f32.mrb[63].mxu1  ;;  %v6635_v3 = vsel %vm1049_vm2, %v6574_v56, 0.0  ;;  %v6575_v58 = vmul.f32 %v9232_v32, %v9232_v32  ;;  %v6535_v59 = vsel %vm1049_vm2, %v9232_v32, 0.0 }
 0x3a5   : > { %v9197_v26 = vpop.f32.mrb[60].mxu0  ;;  %v6631_v52 = vsel %vm1049_vm2, %v6572_v39, 0.0  ;;  %v6531_v34 = vsel %vm1049_vm2, %v6462_v55, 0.0  ;;  %v6573_v45 = vmul.f32 %v6462_v55, %v6462_v55  ;;  %6676 = vst.msk [vmem:[#allocation2 + $0x3e8] sm:$0xff] %vm1049_vm2, %v6462_v55 }
 0x3a6   : > { %4766 = vst.msk [vmem:[#allocation2 + $0x2f0] sm:$0xff] %vm1049_vm2, %v9197_v26  ;;  %v4548_v1 = vpop.f32.mrb[61].mxu0  ;;  %v6632_v49 = vadd.f32 %v6631_v52, %v6630_v37  ;;  %v6532_v14 = vadd.f32 %v6531_v34, %v6530_v11  ;;  %v4663_v0 = vmul.f32 %v9197_v26, %v9197_v26  ;;  %v6637_v28 = vsel %vm1049_vm2, %v6575_v58, 0.0 }
 0x3a7   : > { %4764 = vst.msk [vmem:[#allocation2 + $0x2e0] sm:$0xff] %vm1049_vm2, %v4548_v1  ;;  %v9198_v21 = vpop.f32.mrb[62].mxu0  ;;  %v6633_v20 = vsel %vm1049_vm2, %v6573_v45, 0.0  ;;  %v4618_v41 = vsel %vm1049_vm2, %v4548_v1, 0.0  ;;  %v4661_v57 = vmul.f32 %v4548_v1, %v4548_v1  ;;  %v4622_v31 = vsel %vm1049_vm2, %v9197_v26, 0.0 }
 0x3a8   : > { %4767 = vst.msk [vmem:[#allocation2 + $0x2f8] sm:$0xff] %vm1049_vm2, %v9198_v21  ;;  %v4551_v4 = vpop.f32.mrb[63].mxu0  ;;  %v6534_v15 = vadd.f32 %v6533_v61, %v6532_v14  ;;  %v6634_v24 = vadd.f32 %v6633_v20, %v6632_v49  ;;  %v4619_v2 = vadd.f32 %v4618_v41, %v4617_v42  ;;  %v4664_v46 = vmul.f32 %v9198_v21, %v9198_v21  ;;  %v12844_v61 = vld [vmem:[#allocation2 + $0x10] sm:$0xff]  ;;  %v12848_v49 = vld [vmem:[#allocation2 + $0x18] sm:$0xff]  ;;  %v12850_v14 = vld [vmem:[#allocation2 + $0x8] sm:$0xff] }
 0x3a9   : > { %4765 = vst.msk [vmem:[#allocation2 + $0x2e8] sm:$0xff] %vm1049_vm2, %v4551_v4  ;;  %v4720_v12 = vsel %vm1049_vm2, %v4661_v57, 0.0  ;;  %v4620_v16 = vsel %vm1049_vm2, %v4551_v4, 0.0  ;;  %v4662_v9 = vmul.f32 %v4551_v4, %v4551_v4  ;;  %v4724_v54 = vsel %vm1049_vm2, %v4663_v0, 0.0  ;;  %v12854_v20 = vld [vmem:[#allocation2 + $0x30] sm:$0xff]  ;;  %v12856_v41 = vld [vmem:[#allocation2 + $0x20] sm:$0xff] }
 0x3aa   : > { %v6536_v60 = vadd.f32 %v6535_v59, %v6534_v15  ;;  %v6636_v47 = vadd.f32 %v6635_v3, %v6634_v24  ;;  %v4721_v19 = vadd.f32 %v4720_v12, %v4719_v5  ;;  %v4621_v30 = vadd.f32 %v4620_v16, %v4619_v2  ;;  %v12846_v3 = vld [vmem:[#allocation2] sm:$0xff]  ;;  %v12860_v57 = vld [vmem:[#allocation2 + $0x28] sm:$0xff]  ;;  %v12866_v59 = vld [vmem:[#allocation2 + $0x58] sm:$0xff] }
 0x3ab   : > { %v4722_v27 = vsel %vm1049_vm2, %v4662_v9, 0.0  ;;  %v4624_v7 = vsel %vm1049_vm2, %v9198_v21, 0.0  ;;  %v4726_v18 = vsel %vm1049_vm2, %v4664_v46, 0.0  ;;  %v12864_v4 = vld [vmem:[#allocation2 + $0x40] sm:$0xff]  ;;  %v12868_v15 = vld [vmem:[#allocation2 + $0x48] sm:$0xff]  ;;  %v12876_v16 = vld [vmem:[#allocation2 + $0x70] sm:$0xff] }
 0x3ac   : > { %v6537_v50 = vrot.slane %v6536_v60, 4  ;;  %v6638_v23 = vadd.f32 %v6637_v28, %v6636_v47  ;;  %v4623_v22 = vadd.f32 %v4622_v31, %v4621_v30  ;;  %v4723_v29 = vadd.f32 %v4722_v27, %v4721_v19  ;;  %v12878_v9 = vld [vmem:[#allocation2 + $0x60] sm:$0xff]  ;;  %v12882_v47 = vld [vmem:[#allocation2 + $0x68] sm:$0xff]  ;;  %v12892_v46 = vld [vmem:[#allocation2 + $0x90] sm:$0xff] }
 0x3ad   : > { %v12894_v27 = vld [vmem:[#allocation2 + $0x80] sm:$0xff]  ;;  %v13040_v28 = vld [vmem:[#allocation2 + $0x1b8] sm:$0xff]  ;;  %v13050_v19 = vld [vmem:[#allocation2 + $0x1a8] sm:$0xff] }
 0x3ae   : > { %v6538_v33 = vadd.f32 %v6537_v50, %v6536_v60  ;;  %v6639_v53 = vrot.slane %v6638_v23, 4  ;;  %v4625_v6 = vadd.f32 %v4624_v7, %v4623_v22  ;;  %v4725_v62 = vadd.f32 %v4724_v54, %v4723_v29  ;;  %v12880_v60 = vld [vmem:[#allocation2 + $0x78] sm:$0xff]  ;;  %v12904_v7 = vld [vmem:[#allocation2 + $0x88] sm:$0xff]  ;;  %v13036_v22 = vld [vmem:[#allocation2 + $0x1b0] sm:$0xff]  ;;  %14335 = vst [vmem:[#allocation11_spill] sm:$0xff] %v13040_v28 }
 0x3af   : > { %v12896_v50 = vld [vmem:[#allocation2 + $0x98] sm:$0xff]  ;;  %v13026_v29 = vld [vmem:[#allocation2 + $0x188] sm:$0xff]  ;;  %v13038_v31 = vld [vmem:[#allocation2 + $0x1a0] sm:$0xff]  ;;  %14336 = vst [vmem:[#allocation12_spill] sm:$0xff] %v13050_v19 }
 0x3b0   : > { %v6539_v37 = vrot.slane %v6538_v33, 2  ;;  %v6640_v10 = vadd.f32 %v6639_v53, %v6638_v23  ;;  %v4626_v36 = vrot.slane %v4625_v6, 4  ;;  %v4727_v13 = vadd.f32 %v4726_v18, %v4725_v62  ;;  %v12908_v53 = vld [vmem:[#allocation2 + $0xa0] sm:$0xff]  ;;  %v13010_v18 = vld [vmem:[#allocation2 + $0x168] sm:$0xff]  ;;  %v13020_v62 = vld [vmem:[#allocation2 + $0x190] sm:$0xff]  ;;  %14333 = vst [vmem:[#allocation9_spill] sm:$0xff] %v13026_v29 }
 0x3b1   : > { %14330 = vst [vmem:[#allocation5_spill] sm:$0xff] %v13010_v18  ;;  %v13024_v54 = vld [vmem:[#allocation2 + $0x198] sm:$0xff]  ;;  %14334 = vst [vmem:[#allocation10_spill] sm:$0xff] %v13038_v31  ;;  %v13054_v12 = vld [vmem:[#allocation2 + $0x1c0] sm:$0xff] }
 0x3b2   : > { %v6641_v48 = vrot.slane %v6640_v10, 2  ;;  %v4627_v44 = vadd.f32 %v4626_v36, %v4625_v6  ;;  %v4728_v17 = vrot.slane %v4727_v13, 4  ;;  %v6540_v51 = vadd.f32 %v6539_v37, %v6538_v33  ;;  %v12906_v33 = vld [vmem:[#allocation2 + $0xb0] sm:$0xff]  ;;  %v12920_v36 = vld [vmem:[#allocation2 + $0xa8] sm:$0xff]  ;;  %v13008_v37 = vld [vmem:[#allocation2 + $0x178] sm:$0xff]  ;;  %14332 = vst [vmem:[#allocation8_spill] sm:$0xff] %v13024_v54 }
 0x3b3   : > { %14329 = vst [vmem:[#allocation7_spill] sm:$0xff] %v13008_v37  ;;  %v13022_v6 = vld [vmem:[#allocation2 + $0x180] sm:$0xff]  ;;  %14337 = vst [vmem:[#allocation13_spill] sm:$0xff] %v13054_v12  ;;  %v13068_v18 = vld [vmem:[#allocation2 + $0x1f0] sm:$0xff] }
 0x3b4   : > { %v4628_v63 = vrot.slane %v4627_v44, 2  ;;  %v4729_v42 = vadd.f32 %v4728_v17, %v4727_v13  ;;  %v6642_v40 = vadd.f32 %v6641_v48, %v6640_v10  ;;  %v6541_v56 = vrot.slane %v6540_v51, 1  ;;  %v12918_v10 = vld [vmem:[#allocation2 + $0xb8] sm:$0xff]  ;;  %v12922_v13 = vld [vmem:[#allocation2 + $0xd0] sm:$0xff]  ;;  %14331 = vst [vmem:[#allocation6_spill] sm:$0xff] %v13022_v6  ;;  %v13078_v6 = vld [vmem:[#allocation2 + $0x1e0] sm:$0xff] }
 0x3b5   : > { %v13004_v17 = vld [vmem:[#allocation2 + $0x170] sm:$0xff]  ;;  %14339 = vst [vmem:[#allocation15_spill] sm:$0xff] %v13078_v6  ;;  %v13082_v29 = vld [vmem:[#allocation2 + $0x1e8] sm:$0xff]  ;;  %v13106_v12 = vld [vmem:[#allocation2 + $0x218] sm:$0xff] }
 0x3b6   : > { %v4629_v5 = vadd.f32 %v4628_v63, %v4627_v44  ;;  %v4730_v43 = vrot.slane %v4729_v42, 2  ;;  %v6643_v39 = vrot.slane %v6642_v40, 1  ;;  %v6542_v55 = vadd.f32 %v6541_v56, %v6540_v51  ;;  %v12930_v63 = vld [vmem:[#allocation2 + $0xc0] sm:$0xff]  ;;  %v12980_v56 = vld [vmem:[#allocation2 + $0x128] sm:$0xff]  ;;  %14341 = vst [vmem:[#allocation17_spill] sm:$0xff] %v13082_v29  ;;  %v13092_v31 = vld [vmem:[#allocation2 + $0x210] sm:$0xff] }
 0x3b7   : > { %v12994_v51 = vld [vmem:[#allocation2 + $0x148] sm:$0xff]  ;;  %v13006_v44 = vld [vmem:[#allocation2 + $0x160] sm:$0xff]  ;;  %14342 = vst [vmem:[#allocation18_spill] sm:$0xff] %v13092_v31  ;;  %14345 = vst [vmem:[#allocation21_spill] sm:$0xff] %v13106_v12 }
 0x3b8   : > { %v4630_v35 = vrot.slane %v4629_v5, 1  ;;  %v4731_v8 = vadd.f32 %v4730_v43, %v4729_v42  ;;  %v6644_v34 = vadd.f32 %v6643_v39, %v6642_v40  ;;  %v12932_v42 = vld [vmem:[#allocation2 + $0xd8] sm:$0xff]  ;;  %v12934_v40 = vld [vmem:[#allocation2 + $0xc8] sm:$0xff]  ;;  %v12946_v39 = vld [vmem:[#allocation2 + $0xe0] sm:$0xff]  ;;  %14328 = vst [vmem:[#allocation4_spill] sm:$0xff] %v13006_v44 }
 0x3b9   : > { %v12988_v43 = vld [vmem:[#allocation2 + $0x150] sm:$0xff]  ;;  %v13064_v44 = vld [vmem:[#allocation2 + $0x1d8] sm:$0xff]  ;;  %v13096_v19 = vld [vmem:[#allocation2 + $0x208] sm:$0xff] }
 0x3ba   : > { %v4631_v32 = vadd.f32 %v4630_v35, %v4629_v5  ;;  %v4732_v11 = vrot.slane %v4731_v8, 1  ;;  %v12978_v35 = vld [vmem:[#allocation2 + $0x138] sm:$0xff]  ;;  %14344 = vst [vmem:[#allocation20_spill] sm:$0xff] %v13096_v19  ;;  %v13108_v30 = vld [vmem:[#allocation2 + $0x220] sm:$0xff] }
 0x3bb   : > { %v12992_v5 = vld [vmem:[#allocation2 + $0x158] sm:$0xff]  ;;  %14346 = vst [vmem:[#allocation22_spill] sm:$0xff] %v13108_v30 }
 0x3bc   : > { %v4632_v26 = vadd.f32 %v4631_v32, %v12584_v38  ;;  %v4733_v52 = vadd.f32 %v4732_v11, %v4731_v8  ;;  %v12858_v38 = vld [vmem:[#allocation2 + $0x38] sm:$0xff]  ;;  %v12944_v8 = vld [vmem:[#allocation2 + $0xf0] sm:$0xff]  ;;  %v12950_v11 = vld [vmem:[#allocation2 + $0xe8] sm:$0xff]  ;;  %14327 = vst [vmem:[#allocation3_spill] sm:$0xff] %v12992_v5 }
 0x3bd   : > { %v12948_v32 = vld [vmem:[#allocation2 + $0xf8] sm:$0xff] }
 0x3be   : > { %v4734_v45 = vadd.f32 %v4733_v52, %v12589_v25  ;;  %v6543_v1 = vadd.f32 %v6542_v55, %v4632_v26  ;;  %v12862_v25 = vld [vmem:[#allocation2 + $0x50] sm:$0xff]  ;;  %v12976_v26 = vld [vmem:[#allocation2 + $0x120] sm:$0xff] }
 0x3bf   : > { %v12974_v52 = vld [vmem:[#allocation2 + $0x130] sm:$0xff] }
 0x3c0   : > { %v6645_v21 = vadd.f32 %v6644_v34, %v4734_v45  ;;  %v12852_v58 = vmul.f32 0.0009765625, %v6543_v1  ;;  %v12958_v45 = vld [vmem:[#allocation2 + $0x110] sm:$0xff]  ;;  %v12960_v1 = vld [vmem:[#allocation2 + $0x100] sm:$0xff] }
 0x3c1   : > { %v12990_v34 = vld [vmem:[#allocation2 + $0x140] sm:$0xff] }
 0x3c2   : > { %v6680_v24 = vmul.f32 0.0009765625, %v6645_v21  ;;  %v6681_v2 = vmul.f32 %v12852_v58, %v12852_v58  ;;  %v12962_v21 = vld [vmem:[#allocation2 + $0x118] sm:$0xff]  ;;  %v14348_v37 = vsub.f32 %v12846_v3, %v12852_v58  ;;  %v14349_v5 = vsub.f32 %v12850_v14, %v12852_v58 }
 0x3c3   : > { %v14350_v29 = vsub.f32 %v12844_v61, %v12852_v58  ;;  %v14351_v54 = vsub.f32 %v12848_v49, %v12852_v58 }
 0x3c4   : > { %v6682_v23 = vsub.f32 %v6680_v24, %v6681_v2  ;;  %v12964_v24 = vld [vmem:[#allocation2 + $0x108] sm:$0xff]  ;;  %v13080_v2 = vld [vmem:[#allocation2 + $0x1f8] sm:$0xff] }
 0x3c5   : > { %14340 = vst [vmem:[#allocation16_spill] sm:$0xff] %v13080_v2 }
 0x3c6   : > { %v6683_v48 = vmax.f32 %v6682_v23, 0.0  ;;  %v13066_v23 = vld [vmem:[#allocation2 + $0x1c8] sm:$0xff] }
 0x3c7   : > { %14338 = vst [vmem:[#allocation14_spill] sm:$0xff] %v13066_v23  ;;  %v13110_v23 = vld [vmem:[#allocation2 + $0x228] sm:$0xff] }
 0x3c8   : > { %v6684_v55 = vadd.f32 1e-05, %v6683_v48  ;;  %v13052_v48 = vld [vmem:[#allocation2 + $0x1d0] sm:$0xff]  ;;  %14347 = vst [vmem:[#allocation23_spill] sm:$0xff] %v13110_v23 }
 0x3ca   : > { %9569 = vrsqrt.f32 %v6684_v55  ;;  %v13094_v55 = vld [vmem:[#allocation2 + $0x200] sm:$0xff] }
 0x3cb   : > { %14343 = vst [vmem:[#allocation19_spill] sm:$0xff] %v13094_v55 }
 0x3d4   : > { %v13120_v6 = vpop.eup %9569 }
 0x3d5   : > { %v13134_v55 = vmul.f32 %v13120_v6, %v14348_v37  ;;  %v13140_v0 = vmul.f32 %v13120_v6, %v14349_v5  ;;  %v13146_v28 = vmul.f32 %v13120_v6, %v14350_v29  ;;  %v13152_v3 = vmul.f32 %v13120_v6, %v14351_v54 }
 0x3d6   : > { %v14352_v37 = vsub.f32 %v12856_v41, %v12852_v58  ;;  %v14353_v5 = vsub.f32 %v12860_v57, %v12852_v58  ;;  %v14354_v29 = vsub.f32 %v12854_v20, %v12852_v58  ;;  %v14355_v54 = vsub.f32 %v12858_v38, %v12852_v58 }
 0x3d7   : > { %v6785_v23 = vmax.f32 %v13152_v3, 0.0 }
 0x3d8   : > { %v13158_v14 = vmul.f32 %v13120_v6, %v14352_v37  ;;  %v13164_v61 = vmul.f32 %v13120_v6, %v14353_v5  ;;  %v13170_v49 = vmul.f32 %v13120_v6, %v14354_v29  ;;  %v13176_v41 = vmul.f32 %v13120_v6, %v14355_v54 }
 0x3d9   : > { %v14356_v37 = vsub.f32 %v12864_v4, %v12852_v58  ;;  %v14357_v5 = vsub.f32 %v12868_v15, %v12852_v58  ;;  %v14358_v29 = vsub.f32 %v12862_v25, %v12852_v58  ;;  %v14359_v54 = vsub.f32 %v12866_v59, %v12852_v58 }
 0x3da   : > { %v6788_v30 = vmax.f32 %v13170_v49, 0.0 }
 0x3db   : > { %v13182_v57 = vmul.f32 %v13120_v6, %v14356_v37  ;;  %v13188_v20 = vmul.f32 %v13120_v6, %v14357_v5  ;;  %v13194_v38 = vmul.f32 %v13120_v6, %v14358_v29  ;;  %v13200_v4 = vmul.f32 %v13120_v6, %v14359_v54 }
 0x3dc   : > { %v14360_v37 = vsub.f32 %v12878_v9, %v12852_v58  ;;  %v14361_v5 = vsub.f32 %v12882_v47, %v12852_v58  ;;  %v14362_v29 = vsub.f32 %v12876_v16, %v12852_v58  ;;  %v14363_v54 = vsub.f32 %v12880_v60, %v12852_v58 }
 0x3dd   : > { %v6791_v12 = vmax.f32 %v13188_v20, 0.0  ;;  %v8907_v31 = vpack.c.bf16 %v6788_v30, %v6788_v30 }
 0x3de   : > { %v13206_v15 = vmul.f32 %v13120_v6, %v14360_v37  ;;  %v13212_v25 = vmul.f32 %v13120_v6, %v14361_v5  ;;  %v13218_v59 = vmul.f32 %v13120_v6, %v14362_v29  ;;  %v13224_v9 = vmul.f32 %v13120_v6, %v14363_v54 }
 0x3df   : > { %v14364_v37 = vsub.f32 %v12894_v27, %v12852_v58  ;;  %v14365_v5 = vsub.f32 %v12904_v7, %v12852_v58  ;;  %v14366_v29 = vsub.f32 %v12892_v46, %v12852_v58  ;;  %v14367_v54 = vsub.f32 %v12896_v50, %v12852_v58  ;;  %6949 = vst.msk [vmem:[%s13354_s3 + $0x18] sm:$0xf] %vm6942_vm5, %v8907_v31 }
 0x3e0   : > { %v6795_v3 = vmax.f32 %v13212_v25, 0.0  ;;  %v8910_v19 = vpack.c.bf16 %v6791_v12, %v6791_v12 }
 0x3e1   : > { %v13230_v47 = vmul.f32 %v13120_v6, %v14364_v37  ;;  %v13236_v16 = vmul.f32 %v13120_v6, %v14365_v5  ;;  %v13242_v60 = vmul.f32 %v13120_v6, %v14366_v29  ;;  %v13248_v27 = vmul.f32 %v13120_v6, %v14367_v54 }
 0x3e2   : > { %v14368_v37 = vsub.f32 %v12908_v53, %v12852_v58  ;;  %v14369_v5 = vsub.f32 %v12920_v36, %v12852_v58  ;;  %v14370_v29 = vsub.f32 %v12906_v33, %v12852_v58  ;;  %v14371_v54 = vsub.f32 %v12918_v10, %v12852_v58  ;;  %6952 = vst.msk [vmem:[%s13354_s3 + $0x24] sm:$0xf] %vm6942_vm5, %v8910_v19 }
 0x3e3   : > { %v6798_v49 = vmax.f32 %v13230_v47, 0.0  ;;  %v6801_v20 = vmax.f32 %v13248_v27, 0.0 }
 0x3e4   : > { %v13254_v7 = vmul.f32 %v13120_v6, %v14368_v37  ;;  %v13260_v46 = vmul.f32 %v13120_v6, %v14369_v5  ;;  %v13266_v50 = vmul.f32 %v13120_v6, %v14370_v29  ;;  %v13272_v53 = vmul.f32 %v13120_v6, %v14371_v54 }
 0x3e5   : > { %v14372_v37 = vsub.f32 %v12930_v63, %v12852_v58  ;;  %v14373_v5 = vsub.f32 %v12934_v40, %v12852_v58  ;;  %v14374_v29 = vsub.f32 %v12922_v13, %v12852_v58  ;;  %v14375_v54 = vsub.f32 %v12932_v42, %v12852_v58 }
 0x3e6   : > { %v6805_v25 = vmax.f32 %v13272_v53, 0.0  ;;  %v8917_v12 = vpack.c.bf16 %v6798_v49, %v6798_v49  ;;  %v14380_v49 = vsub.f32 %v12960_v1, %v12852_v58 }
 0x3e7   : > { %v13278_v36 = vmul.f32 %v13120_v6, %v14372_v37  ;;  %v13284_v33 = vmul.f32 %v13120_v6, %v14373_v5  ;;  %v13290_v10 = vmul.f32 %v13120_v6, %v14374_v29  ;;  %v13296_v63 = vmul.f32 %v13120_v6, %v14375_v54 }
 0x3e8   : > { %v14376_v37 = vsub.f32 %v12946_v39, %v12852_v58  ;;  %v14377_v5 = vsub.f32 %v12950_v11, %v12852_v58  ;;  %v14378_v29 = vsub.f32 %v12944_v8, %v12852_v58  ;;  %v14379_v54 = vsub.f32 %v12948_v32, %v12852_v58  ;;  %6959 = vst.msk [vmem:[%s13354_s3 + $0x40] sm:$0xf] %vm6942_vm5, %v8917_v12 }
 0x3e9   : > { %v6783_v11 = vmax.f32 %v13140_v0, 0.0  ;;  %v6786_v8 = vmax.f32 %v13158_v14, 0.0  ;;  %v6789_v32 = vmax.f32 %v13176_v41, 0.0  ;;  %v6793_v0 = vmax.f32 %v13200_v4, 0.0 }
 0x3ea   : > { %v13302_v40 = vmul.f32 %v13120_v6, %v14376_v37  ;;  %v13308_v13 = vmul.f32 %v13120_v6, %v14377_v5  ;;  %v13314_v42 = vmul.f32 %v13120_v6, %v14378_v29  ;;  %v13320_v39 = vmul.f32 %v13120_v6, %v14379_v54 }
 0x3eb   : > { %v6782_v37 = vmax.f32 %v13134_v55, 0.0  ;;  %v6784_v5 = vmax.f32 %v13146_v28, 0.0  ;;  %v6787_v29 = vmax.f32 %v13164_v61, 0.0  ;;  %v6790_v54 = vmax.f32 %v13182_v57, 0.0 }
 0x3ec   : > { %v6792_v55 = vmax.f32 %v13194_v38, 0.0  ;;  %v6794_v28 = vmax.f32 %v13206_v15, 0.0  ;;  %v6796_v14 = vmax.f32 %v13218_v59, 0.0  ;;  %v6797_v61 = vmax.f32 %v13224_v9, 0.0 }
 0x3ed   : > { %v6799_v41 = vmax.f32 %v13236_v16, 0.0  ;;  %v6800_v57 = vmax.f32 %v13242_v60, 0.0  ;;  %v6802_v38 = vmax.f32 %v13254_v7, 0.0  ;;  %v6803_v4 = vmax.f32 %v13260_v46, 0.0 }
 0x3ee   : > { %v6804_v15 = vmax.f32 %v13266_v50, 0.0  ;;  %v6806_v59 = vmax.f32 %v13278_v36, 0.0  ;;  %v6807_v9 = vmax.f32 %v13284_v33, 0.0  ;;  %v6808_v47 = vmax.f32 %v13290_v10, 0.0 }
 0x3ef   : > { %v6809_v16 = vmax.f32 %v13296_v63, 0.0  ;;  %v6810_v60 = vmax.f32 %v13302_v40, 0.0  ;;  %v6811_v27 = vmax.f32 %v13308_v13, 0.0  ;;  %v6812_v7 = vmax.f32 %v13314_v42, 0.0 }
 0x3f0   : > { %v6813_v46 = vmax.f32 %v13320_v39, 0.0  ;;  %v8901_v50 = vpack.c.bf16 %v6782_v37, %v6782_v37  ;;  %v8902_v53 = vpack.c.bf16 %v6783_v11, %v6783_v11  ;;  %v8903_v36 = vpack.c.bf16 %v6784_v5, %v6784_v5 }
 0x3f1   : > { %v8904_v33 = vpack.c.bf16 %v6785_v23, %v6785_v23  ;;  %v8905_v10 = vpack.c.bf16 %v6786_v8, %v6786_v8  ;;  %v8906_v63 = vpack.c.bf16 %v6787_v29, %v6787_v29  ;;  %v8908_v40 = vpack.c.bf16 %v6789_v32, %v6789_v32 }
 0x3f2   : > { %v8909_v13 = vpack.c.bf16 %v6790_v54, %v6790_v54  ;;  %v8911_v2 = vpack.c.bf16 %v6792_v55, %v6792_v55  ;;  %v8912_v42 = vpack.c.bf16 %v6793_v0, %v6793_v0  ;;  %6943 = vst.msk [vmem:[%s13354_s3] sm:$0xf] %vm6942_vm5, %v8901_v50  ;;  %6944 = vst.msk [vmem:[%s13354_s3 + $0x4] sm:$0xf] %vm6942_vm5, %v8902_v53  ;;  %v14393_v50 = vld [vmem:[#allocation4_spill] sm:$0xff] }
 0x3f3   : > { %6945 = vst.msk [vmem:[%s13354_s3 + $0x8] sm:$0xf] %vm6942_vm5, %v8903_v36  ;;  %6946 = vst.msk [vmem:[%s13354_s3 + $0xc] sm:$0xf] %vm6942_vm5, %v8904_v33  ;;  %v8913_v30 = vpack.c.bf16 %v6794_v28, %v6794_v28  ;;  %v8914_v23 = vpack.c.bf16 %v6795_v3, %v6795_v3  ;;  %v8915_v39 = vpack.c.bf16 %v6796_v14, %v6796_v14  ;;  %v14395_v36 = vld [vmem:[#allocation5_spill] sm:$0xff] }
 0x3f4   : > { %v8916_v37 = vpack.c.bf16 %v6797_v61, %v6797_v61  ;;  %6947 = vst.msk [vmem:[%s13354_s3 + $0x10] sm:$0xf] %vm6942_vm5, %v8905_v10  ;;  %6948 = vst.msk [vmem:[%s13354_s3 + $0x14] sm:$0xf] %vm6942_vm5, %v8906_v63  ;;  %v8918_v11 = vpack.c.bf16 %v6799_v41, %v6799_v41  ;;  %v8919_v5 = vpack.c.bf16 %v6800_v57, %v6800_v57 }
 0x3f5   : > { %6950 = vst.msk [vmem:[%s13354_s3 + $0x1c] sm:$0xf] %vm6942_vm5, %v8908_v40  ;;  %v8920_v8 = vpack.c.bf16 %v6801_v20, %v6801_v20  ;;  %6951 = vst.msk [vmem:[%s13354_s3 + $0x20] sm:$0xf] %vm6942_vm5, %v8909_v13  ;;  %v8921_v31 = vpack.c.bf16 %v6802_v38, %v6802_v38  ;;  %v8922_v29 = vpack.c.bf16 %v6803_v4, %v6803_v4  ;;  %v14398_v40 = vld [vmem:[#allocation7_spill] sm:$0xff] }
 0x3f6   : > { %6953 = vst.msk [vmem:[%s13354_s3 + $0x28] sm:$0xf] %vm6942_vm5, %v8911_v2  ;;  %6954 = vst.msk [vmem:[%s13354_s3 + $0x2c] sm:$0xf] %vm6942_vm5, %v8912_v42  ;;  %v8923_v32 = vpack.c.bf16 %v6804_v15, %v6804_v15  ;;  %v8924_v54 = vpack.c.bf16 %v6805_v25, %v6805_v25  ;;  %v8925_v19 = vpack.c.bf16 %v6806_v59, %v6806_v59 }
 0x3f7   : > { %6955 = vst.msk [vmem:[%s13354_s3 + $0x30] sm:$0xf] %vm6942_vm5, %v8913_v30  ;;  %6956 = vst.msk [vmem:[%s13354_s3 + $0x34] sm:$0xf] %vm6942_vm5, %v8914_v23  ;;  %v8926_v2 = vpack.c.bf16 %v6807_v9, %v6807_v9  ;;  %v8927_v55 = vpack.c.bf16 %v6808_v47, %v6808_v47  ;;  %v8928_v0 = vpack.c.bf16 %v6809_v16, %v6809_v16  ;;  %v14400_v30 = vld [vmem:[#allocation6_spill] sm:$0xff] }
 0x3f8   : > { %6957 = vst.msk [vmem:[%s13354_s3 + $0x38] sm:$0xf] %vm6942_vm5, %v8915_v39  ;;  %6958 = vst.msk [vmem:[%s13354_s3 + $0x3c] sm:$0xf] %vm6942_vm5, %v8916_v37  ;;  %v8929_v28 = vpack.c.bf16 %v6810_v60, %v6810_v60  ;;  %v8930_v3 = vpack.c.bf16 %v6811_v27, %v6811_v27  ;;  %v8931_v14 = vpack.c.bf16 %v6812_v7, %v6812_v7  ;;  %v14391_v7 = vld [vmem:[#allocation3_spill] sm:$0xff]  ;;  %v14402_v37 = vld [vmem:[#allocation9_spill] sm:$0xff] }
 0x3f9   : > { %6960 = vst.msk [vmem:[%s13354_s3 + $0x44] sm:$0xf] %vm6942_vm5, %v8918_v11  ;;  %6961 = vst.msk [vmem:[%s13354_s3 + $0x48] sm:$0xf] %vm6942_vm5, %v8919_v5  ;;  %v8932_v61 = vpack.c.bf16 %v6813_v46, %v6813_v46  ;;  %v13420_v41 = vmul.f32 %v13120_v6, %v14380_v49  ;;  %v14381_v57 = vsub.f32 %v12964_v24, %v12852_v58  ;;  %v14414_v49 = vld [vmem:[#allocation13_spill] sm:$0xff] }
 0x3fa   : > { %6962 = vst.msk [vmem:[%s13354_s3 + $0x4c] sm:$0xf] %vm6942_vm5, %v8920_v8  ;;  %6963 = vst.msk [vmem:[%s13354_s3 + $0x50] sm:$0xf] %vm6942_vm5, %v8921_v31  ;;  %v14382_v38 = vsub.f32 %v12958_v45, %v12852_v58  ;;  %v14383_v15 = vsub.f32 %v12962_v21, %v12852_v58  ;;  %v14384_v45 = vsub.f32 %v12976_v26, %v12852_v58  ;;  %v14405_v8 = vld [vmem:[#allocation8_spill] sm:$0xff] }
 0x3fb   : > { %6964 = vst.msk [vmem:[%s13354_s3 + $0x54] sm:$0xf] %vm6942_vm5, %v8922_v29  ;;  %6965 = vst.msk [vmem:[%s13354_s3 + $0x58] sm:$0xf] %vm6942_vm5, %v8923_v32  ;;  %v13426_v20 = vmul.f32 %v13120_v6, %v14381_v57  ;;  %v14385_v21 = vsub.f32 %v12980_v56, %v12852_v58  ;;  %v14386_v59 = vsub.f32 %v12974_v52, %v12852_v58  ;;  %v14407_v32 = vld [vmem:[#allocation10_spill] sm:$0xff] }
 0x3fc   : > { %6966 = vst.msk [vmem:[%s13354_s3 + $0x5c] sm:$0xf] %vm6942_vm5, %v8924_v54  ;;  %6967 = vst.msk [vmem:[%s13354_s3 + $0x60] sm:$0xf] %vm6942_vm5, %v8925_v19  ;;  %v13432_v4 = vmul.f32 %v13120_v6, %v14382_v38  ;;  %v13438_v1 = vmul.f32 %v13120_v6, %v14383_v15  ;;  %v13452_v24 = vmul.f32 %v13120_v6, %v14384_v45  ;;  %v14416_v15 = vld [vmem:[#allocation14_spill] sm:$0xff] }
 0x3fd   : > { %6968 = vst.msk [vmem:[%s13354_s3 + $0x64] sm:$0xf] %vm6942_vm5, %v8926_v2  ;;  %6969 = vst.msk [vmem:[%s13354_s3 + $0x68] sm:$0xf] %vm6942_vm5, %v8927_v55  ;;  %v13458_v25 = vmul.f32 %v13120_v6, %v14385_v21  ;;  %v13464_v9 = vmul.f32 %v13120_v6, %v14386_v59  ;;  %v14387_v47 = vsub.f32 %v12978_v35, %v12852_v58  ;;  %v14409_v2 = vld [vmem:[#allocation12_spill] sm:$0xff] }
 0x3fe   : > { %6970 = vst.msk [vmem:[%s13354_s3 + $0x6c] sm:$0xf] %vm6942_vm5, %v8928_v0  ;;  %6971 = vst.msk [vmem:[%s13354_s3 + $0x70] sm:$0xf] %vm6942_vm5, %v8929_v28  ;;  %v14388_v16 = vsub.f32 %v12990_v34, %v12852_v58  ;;  %v14389_v60 = vsub.f32 %v12994_v51, %v12852_v58  ;;  %v14390_v27 = vsub.f32 %v12988_v43, %v12852_v58 }
 0x3ff   : > { %6972 = vst.msk [vmem:[%s13354_s3 + $0x74] sm:$0xf] %vm6942_vm5, %v8930_v3  ;;  %6973 = vst.msk [vmem:[%s13354_s3 + $0x78] sm:$0xf] %vm6942_vm5, %v8931_v14  ;;  %v13470_v26 = vmul.f32 %v13120_v6, %v14387_v47  ;;  %v14392_v46 = vsub.f32 %v14391_v7, %v12852_v58  ;;  %v14394_v53 = vsub.f32 %v14393_v50, %v12852_v58  ;;  %v14412_v3 = vld [vmem:[#allocation11_spill] sm:$0xff] }
 0x400   : > { %6974 = vst.msk [vmem:[%s13354_s3 + $0x7c] sm:$0xf] %vm6942_vm5, %v8932_v61  ;;  %v13476_v56 = vmul.f32 %v13120_v6, %v14388_v16  ;;  %v13482_v52 = vmul.f32 %v13120_v6, %v14389_v60  ;;  %v13488_v35 = vmul.f32 %v13120_v6, %v14390_v27  ;;  %v14396_v33 = vsub.f32 %v14395_v36, %v12852_v58  ;;  %v14420_v60 = vld [vmem:[#allocation15_spill] sm:$0xff]  ;;  %v14425_v36 = vld [vmem:[#allocation16_spill] sm:$0xff] }
 0x401   : > { %v13494_v34 = vmul.f32 %v13120_v6, %v14392_v46  ;;  %v13500_v51 = vmul.f32 %v13120_v6, %v14394_v53  ;;  %v14397_v10 = vsub.f32 %v13004_v17, %v12852_v58  ;;  %v14399_v13 = vsub.f32 %v14398_v40, %v12852_v58  ;;  %v14422_v46 = vld [vmem:[#allocation17_spill] sm:$0xff] }
 0x402   : > { %v13506_v43 = vmul.f32 %v13120_v6, %v14396_v33  ;;  %v14401_v23 = vsub.f32 %v14400_v30, %v12852_v58  ;;  %v14403_v12 = vsub.f32 %v14402_v37, %v12852_v58  ;;  %v14404_v11 = vsub.f32 %v13020_v62, %v12852_v58 }
 0x403   : > { %v13512_v63 = vmul.f32 %v13120_v6, %v14397_v10  ;;  %v13518_v42 = vmul.f32 %v13120_v6, %v14399_v13  ;;  %v14406_v31 = vsub.f32 %v14405_v8, %v12852_v58  ;;  %v14408_v54 = vsub.f32 %v14407_v32, %v12852_v58 }
 0x404   : > { %v13524_v39 = vmul.f32 %v13120_v6, %v14401_v23  ;;  %v13530_v17 = vmul.f32 %v13120_v6, %v14403_v12  ;;  %v13536_v5 = vmul.f32 %v13120_v6, %v14404_v11  ;;  %v14410_v55 = vsub.f32 %v14409_v2, %v12852_v58 }
 0x405   : > { %v13542_v29 = vmul.f32 %v13120_v6, %v14406_v31  ;;  %v13548_v19 = vmul.f32 %v13120_v6, %v14408_v54  ;;  %v14411_v0 = vsub.f32 %v13036_v22, %v12852_v58  ;;  %v14413_v14 = vsub.f32 %v14412_v3, %v12852_v58 }
 0x406   : > { %v13554_v62 = vmul.f32 %v13120_v6, %v14410_v55  ;;  %v14415_v57 = vsub.f32 %v14414_v49, %v12852_v58  ;;  %v14417_v45 = vsub.f32 %v14416_v15, %v12852_v58  ;;  %v14418_v21 = vsub.f32 %v13052_v48, %v12852_v58 }
 0x407   : > { %v13560_v28 = vmul.f32 %v13120_v6, %v14411_v0  ;;  %v13566_v61 = vmul.f32 %v13120_v6, %v14413_v14  ;;  %v14419_v47 = vsub.f32 %v13064_v44, %v12852_v58  ;;  %v14421_v27 = vsub.f32 %v14420_v60, %v12852_v58 }
 0x408   : > { %v13572_v38 = vmul.f32 %v13120_v6, %v14415_v57  ;;  %v13578_v22 = vmul.f32 %v13120_v6, %v14417_v45  ;;  %v13584_v59 = vmul.f32 %v13120_v6, %v14418_v21  ;;  %v14423_v50 = vsub.f32 %v14422_v46, %v12852_v58 }
 0x409   : > { %v13590_v16 = vmul.f32 %v13120_v6, %v14419_v47  ;;  %v13596_v7 = vmul.f32 %v13120_v6, %v14421_v27  ;;  %v14424_v53 = vsub.f32 %v13068_v18, %v12852_v58  ;;  %v14426_v33 = vsub.f32 %v14425_v36, %v12852_v58  ;;  %v13672_v27 = vld [vmem:[#allocation2 + $0x230] sm:$0xff]  ;;  %v13686_v36 = vld [vmem:[#allocation2 + $0x240] sm:$0xff] }
 0x40a   : > { %v13602_v48 = vmul.f32 %v13120_v6, %v14423_v50  ;;  %v7071_v40 = vmax.f32 %v13420_v41, 0.0  ;;  %v7072_v13 = vmax.f32 %v13426_v20, 0.0  ;;  %v7073_v30 = vmax.f32 %v13432_v4, 0.0 }
 0x40b   : > { %v13608_v44 = vmul.f32 %v13120_v6, %v14424_v53  ;;  %v13614_v10 = vmul.f32 %v13120_v6, %v14426_v33  ;;  %v7074_v23 = vmax.f32 %v13438_v1, 0.0  ;;  %v7075_v37 = vmax.f32 %v13452_v24, 0.0  ;;  %v13688_v33 = vld [vmem:[#allocation2 + $0x258] sm:$0xff] }
 0x40c   : > { %v7076_v18 = vmax.f32 %v13458_v25, 0.0  ;;  %v7077_v12 = vmax.f32 %v13464_v9, 0.0  ;;  %v7078_v11 = vmax.f32 %v13470_v26, 0.0  ;;  %v7079_v8 = vmax.f32 %v13476_v56, 0.0 }
 0x40d   : > { %v7080_v31 = vmax.f32 %v13482_v52, 0.0  ;;  %v7081_v41 = vmax.f32 %v13488_v35, 0.0  ;;  %v7082_v20 = vmax.f32 %v13494_v34, 0.0  ;;  %v7083_v4 = vmax.f32 %v13500_v51, 0.0 }
 0x40e   : > { %v7084_v1 = vmax.f32 %v13506_v43, 0.0  ;;  %v7085_v24 = vmax.f32 %v13512_v63, 0.0  ;;  %v7086_v25 = vmax.f32 %v13518_v42, 0.0  ;;  %v7087_v9 = vmax.f32 %v13524_v39, 0.0 }
 0x40f   : > { %v7088_v26 = vmax.f32 %v13530_v17, 0.0  ;;  %v7089_v56 = vmax.f32 %v13536_v5, 0.0  ;;  %v7090_v52 = vmax.f32 %v13542_v29, 0.0  ;;  %v7091_v35 = vmax.f32 %v13548_v19, 0.0 }
 0x410   : > { %v7092_v34 = vmax.f32 %v13554_v62, 0.0  ;;  %v7093_v51 = vmax.f32 %v13560_v28, 0.0  ;;  %v7094_v43 = vmax.f32 %v13566_v61, 0.0  ;;  %v7095_v63 = vmax.f32 %v13572_v38, 0.0 }
 0x411   : > { %v7096_v42 = vmax.f32 %v13578_v22, 0.0  ;;  %v7097_v39 = vmax.f32 %v13584_v59, 0.0  ;;  %v7098_v17 = vmax.f32 %v13590_v16, 0.0  ;;  %v7099_v5 = vmax.f32 %v13596_v7, 0.0  ;;  %v13674_v7 = vld [vmem:[#allocation2 + $0x238] sm:$0xff] }
 0x412   : > { %v7100_v29 = vmax.f32 %v13602_v48, 0.0  ;;  %v7101_v32 = vmax.f32 %v13608_v44, 0.0  ;;  %v7102_v54 = vmax.f32 %v13614_v10, 0.0  ;;  %v8933_v19 = vpack.c.bf16 %v7071_v40, %v7071_v40  ;;  %v13684_v44 = vld [vmem:[#allocation2 + $0x250] sm:$0xff]  ;;  %v13690_v10 = vld [vmem:[#allocation2 + $0x248] sm:$0xff] }
 0x413   : > { %v8934_v2 = vpack.c.bf16 %v7072_v13, %v7072_v13  ;;  %v8935_v55 = vpack.c.bf16 %v7073_v30, %v7073_v30  ;;  %v8936_v62 = vpack.c.bf16 %v7074_v23, %v7074_v23  ;;  %v8937_v0 = vpack.c.bf16 %v7075_v37, %v7075_v37  ;;  %v13700_v37 = vld [vmem:[#allocation2 + $0x270] sm:$0xff] }
 0x414   : > { %v8938_v28 = vpack.c.bf16 %v7076_v18, %v7076_v18  ;;  %v8939_v3 = vpack.c.bf16 %v7077_v12, %v7077_v12  ;;  %v8940_v14 = vpack.c.bf16 %v7078_v11, %v7078_v11  ;;  %v8941_v61 = vpack.c.bf16 %v7079_v8, %v7079_v8  ;;  %8738 = vst.msk [vmem:[%s13354_s3 + $0x80] sm:$0xf] %vm6942_vm5, %v8933_v19  ;;  %v13702_v18 = vld [vmem:[#allocation2 + $0x260] sm:$0xff]  ;;  %v13704_v12 = vld [vmem:[#allocation2 + $0x278] sm:$0xff]  ;;  %v7290_v19 = vld [vmem:[#allocation2 + $0x2d0] sm:$0xff] }
 0x415   : > { %v8942_v49 = vpack.c.bf16 %v7080_v31, %v7080_v31  ;;  %v8943_v57 = vpack.c.bf16 %v7081_v41, %v7081_v41  ;;  %v8944_v38 = vpack.c.bf16 %v7082_v20, %v7082_v20  ;;  %8739 = vst.msk [vmem:[%s13354_s3 + $0x84] sm:$0xf] %vm6942_vm5, %v8934_v2  ;;  %8740 = vst.msk [vmem:[%s13354_s3 + $0x88] sm:$0xf] %vm6942_vm5, %v8935_v55  ;;  %v13714_v20 = vld [vmem:[#allocation2 + $0x268] sm:$0xff]  ;;  %v7288_v2 = vld [vmem:[#allocation2 + $0x2c0] sm:$0xff] }
 0x416   : > { %8741 = vst.msk [vmem:[%s13354_s3 + $0x8c] sm:$0xf] %vm6942_vm5, %v8936_v62  ;;  %v8945_v15 = vpack.c.bf16 %v7083_v4, %v7083_v4  ;;  %v8946_v45 = vpack.c.bf16 %v7084_v1, %v7084_v1  ;;  %v8947_v22 = vpack.c.bf16 %v7085_v24, %v7085_v24  ;;  %v8948_v21 = vpack.c.bf16 %v7086_v25, %v7086_v25  ;;  %v13716_v4 = vld [vmem:[#allocation2 + $0x290] sm:$0xff]  ;;  %v13718_v1 = vld [vmem:[#allocation2 + $0x280] sm:$0xff]  ;;  %v7289_v55 = vld [vmem:[#allocation2 + $0x2c8] sm:$0xff] }
 0x417   : > { %8742 = vst.msk [vmem:[%s13354_s3 + $0x90] sm:$0xf] %vm6942_vm5, %v8937_v0  ;;  %8743 = vst.msk [vmem:[%s13354_s3 + $0x94] sm:$0xf] %vm6942_vm5, %v8938_v28  ;;  %v8949_v59 = vpack.c.bf16 %v7087_v9, %v7087_v9  ;;  %v8950_v47 = vpack.c.bf16 %v7088_v26, %v7088_v26  ;;  %v8951_v16 = vpack.c.bf16 %v7089_v56, %v7089_v56  ;;  %v7283_v56 = vld [vmem:[#allocation2 + $0x298] sm:$0xff] }
 0x418   : > { %8744 = vst.msk [vmem:[%s13354_s3 + $0x98] sm:$0xf] %vm6942_vm5, %v8939_v3  ;;  %8745 = vst.msk [vmem:[%s13354_s3 + $0x9c] sm:$0xf] %vm6942_vm5, %v8940_v14  ;;  %v8952_v60 = vpack.c.bf16 %v7090_v52, %v7090_v52  ;;  %v8953_v46 = vpack.c.bf16 %v7091_v35, %v7091_v35  ;;  %v8954_v50 = vpack.c.bf16 %v7092_v34, %v7092_v34  ;;  %v7281_v52 = vld [vmem:[#allocation2 + $0x288] sm:$0xff]  ;;  %v7286_v35 = vld [vmem:[#allocation2 + $0x2b0] sm:$0xff] }
 0x419   : > { %8746 = vst.msk [vmem:[%s13354_s3 + $0xa0] sm:$0xf] %vm6942_vm5, %v8941_v61  ;;  %8747 = vst.msk [vmem:[%s13354_s3 + $0xa4] sm:$0xf] %vm6942_vm5, %v8942_v49  ;;  %v8955_v48 = vpack.c.bf16 %v7093_v51, %v7093_v51  ;;  %v8956_v53 = vpack.c.bf16 %v7094_v43, %v7094_v43  ;;  %v8957_v40 = vpack.c.bf16 %v7095_v63, %v7095_v63  ;;  %v7291_v14 = vld [vmem:[#allocation2 + $0x2d8] sm:$0xff]  ;;  %v7292_v61 = vld [vmem:[#allocation2 + $0x2e0] sm:$0xff] }
 0x41a   : > { %8748 = vst.msk [vmem:[%s13354_s3 + $0xa8] sm:$0xf] %vm6942_vm5, %v8943_v57  ;;  %8749 = vst.msk [vmem:[%s13354_s3 + $0xac] sm:$0xf] %vm6942_vm5, %v8944_v38  ;;  %v8958_v13 = vpack.c.bf16 %v7096_v42, %v7096_v42  ;;  %v8959_v30 = vpack.c.bf16 %v7097_v39, %v7097_v39  ;;  %v8960_v23 = vpack.c.bf16 %v7098_v17, %v7098_v17  ;;  %v7284_v42 = vld [vmem:[#allocation2 + $0x2a0] sm:$0xff]  ;;  %v7287_v39 = vld [vmem:[#allocation2 + $0x2b8] sm:$0xff] }
 0x41b   : > { %8750 = vst.msk [vmem:[%s13354_s3 + $0xb0] sm:$0xf] %vm6942_vm5, %v8945_v15  ;;  %8751 = vst.msk [vmem:[%s13354_s3 + $0xb4] sm:$0xf] %vm6942_vm5, %v8946_v45  ;;  %v8961_v11 = vpack.c.bf16 %v7099_v5, %v7099_v5  ;;  %v8962_v8 = vpack.c.bf16 %v7100_v29, %v7100_v29  ;;  %v8963_v31 = vpack.c.bf16 %v7101_v32, %v7101_v32  ;;  %v7285_v17 = vld [vmem:[#allocation2 + $0x2a8] sm:$0xff] }
 0x41c   : > { %8752 = vst.msk [vmem:[%s13354_s3 + $0xb8] sm:$0xf] %vm6942_vm5, %v8947_v22  ;;  %8753 = vst.msk [vmem:[%s13354_s3 + $0xbc] sm:$0xf] %vm6942_vm5, %v8948_v21  ;;  %v8964_v41 = vpack.c.bf16 %v7102_v54, %v7102_v54  ;;  %v7302_v24 = vsub.f32 %v13672_v27, %v12852_v58  ;;  %v7303_v25 = vsub.f32 %v13674_v7, %v12852_v58  ;;  %v7293_v49 = vld [vmem:[#allocation2 + $0x2e8] sm:$0xff]  ;;  %v7294_v22 = vld [vmem:[#allocation2 + $0x2f0] sm:$0xff] }
 0x41d   : > { %8754 = vst.msk [vmem:[%s13354_s3 + $0xc0] sm:$0xf] %vm6942_vm5, %v8949_v59  ;;  %8755 = vst.msk [vmem:[%s13354_s3 + $0xc4] sm:$0xf] %vm6942_vm5, %v8950_v47  ;;  %v7304_v9 = vsub.f32 %v13686_v36, %v12852_v58  ;;  %v7305_v26 = vsub.f32 %v13690_v10, %v12852_v58  ;;  %v7306_v34 = vsub.f32 %v13684_v44, %v12852_v58  ;;  %v7295_v21 = vld [vmem:[#allocation2 + $0x2f8] sm:$0xff] }
 0x41e   : > { %8756 = vst.msk [vmem:[%s13354_s3 + $0xc8] sm:$0xf] %vm6942_vm5, %v8951_v16  ;;  %8757 = vst.msk [vmem:[%s13354_s3 + $0xcc] sm:$0xf] %vm6942_vm5, %v8952_v60  ;;  %v7307_v51 = vsub.f32 %v13688_v33, %v12852_v58  ;;  %v7308_v43 = vsub.f32 %v13702_v18, %v12852_v58  ;;  %v7309_v63 = vsub.f32 %v13714_v20, %v12852_v58  ;;  %v14431_v33 = vld [vmem:[#allocation18_spill] sm:$0xff] }
 0x41f   : > { %8758 = vst.msk [vmem:[%s13354_s3 + $0xd0] sm:$0xf] %vm6942_vm5, %v8953_v46  ;;  %8759 = vst.msk [vmem:[%s13354_s3 + $0xd4] sm:$0xf] %vm6942_vm5, %v8954_v50  ;;  %v7310_v5 = vsub.f32 %v13700_v37, %v12852_v58  ;;  %v7311_v29 = vsub.f32 %v13704_v12, %v12852_v58  ;;  %v7312_v32 = vsub.f32 %v13718_v1, %v12852_v58  ;;  %v14427_v46 = vld [vmem:[#allocation19_spill] sm:$0xff]  ;;  %v14435_v37 = vld [vmem:[#allocation22_spill] sm:$0xff] }
 0x420   : > { %8760 = vst.msk [vmem:[%s13354_s3 + $0xd8] sm:$0xf] %vm6942_vm5, %v8955_v48  ;;  %8761 = vst.msk [vmem:[%s13354_s3 + $0xdc] sm:$0xf] %vm6942_vm5, %v8956_v53  ;;  %v7313_v54 = vsub.f32 %v7281_v52, %v12852_v58  ;;  %v7314_v62 = vsub.f32 %v13716_v4, %v12852_v58  ;;  %v7315_v0 = vsub.f32 %v7283_v56, %v12852_v58  ;;  %v14429_v53 = vld [vmem:[#allocation20_spill] sm:$0xff] }
 0x421   : > { %8762 = vst.msk [vmem:[%s13354_s3 + $0xe0] sm:$0xf] %vm6942_vm5, %v8957_v40  ;;  %8763 = vst.msk [vmem:[%s13354_s3 + $0xe4] sm:$0xf] %vm6942_vm5, %v8958_v13  ;;  %v7316_v28 = vsub.f32 %v7284_v42, %v12852_v58  ;;  %v7317_v3 = vsub.f32 %v7285_v17, %v12852_v58  ;;  %v7318_v57 = vsub.f32 %v7286_v35, %v12852_v58  ;;  %v14433_v13 = vld [vmem:[#allocation21_spill] sm:$0xff] }
 0x422   : > { %8764 = vst.msk [vmem:[%s13354_s3 + $0xe8] sm:$0xf] %vm6942_vm5, %v8959_v30  ;;  %8765 = vst.msk [vmem:[%s13354_s3 + $0xec] sm:$0xf] %vm6942_vm5, %v8960_v23  ;;  %v7319_v38 = vsub.f32 %v7287_v39, %v12852_v58  ;;  %v7320_v15 = vsub.f32 %v7288_v2, %v12852_v58  ;;  %v7321_v45 = vsub.f32 %v7289_v55, %v12852_v58 }
 0x423   : > { %8766 = vst.msk [vmem:[%s13354_s3 + $0xf0] sm:$0xf] %vm6942_vm5, %v8961_v11  ;;  %8767 = vst.msk [vmem:[%s13354_s3 + $0xf4] sm:$0xf] %vm6942_vm5, %v8962_v8  ;;  %v7322_v59 = vsub.f32 %v7290_v19, %v12852_v58  ;;  %v7323_v47 = vsub.f32 %v7291_v14, %v12852_v58  ;;  %v7324_v16 = vsub.f32 %v7292_v61, %v12852_v58  ;;  %v14437_v11 = vld [vmem:[#allocation23_spill] sm:$0xff] }
 0x424   : > { %8768 = vst.msk [vmem:[%s13354_s3 + $0xf8] sm:$0xf] %vm6942_vm5, %v8963_v31  ;;  %8769 = vst.msk [vmem:[%s13354_s3 + $0xfc] sm:$0xf] %vm6942_vm5, %v8964_v41  ;;  %v7325_v60 = vsub.f32 %v7293_v49, %v12852_v58  ;;  %v7326_v27 = vsub.f32 %v7294_v22, %v12852_v58  ;;  %v7327_v7 = vsub.f32 %v7295_v21, %v12852_v58 }
 0x425   : > { %v14428_v50 = vsub.f32 %v14427_v46, %v12852_v58  ;;  %v14430_v44 = vsub.f32 %v14429_v53, %v12852_v58  ;;  %v14432_v10 = vsub.f32 %v14431_v33, %v12852_v58  ;;  %v14434_v30 = vsub.f32 %v14433_v13, %v12852_v58 }
 0x426   : > { %v14436_v18 = vsub.f32 %v14435_v37, %v12852_v58  ;;  %v14438_v8 = vsub.f32 %v14437_v11, %v12852_v58  ;;  %v13811_v41 = vmul.f32 %v13120_v6, %v7302_v24  ;;  %v13814_v20 = vmul.f32 %v13120_v6, %v7303_v25 }
 0x427   : > { %v13778_v48 = vmul.f32 %v13120_v6, %v14428_v50  ;;  %v13784_v36 = vmul.f32 %v13120_v6, %v14430_v44  ;;  %v13790_v40 = vmul.f32 %v13120_v6, %v14432_v10  ;;  %v13796_v23 = vmul.f32 %v13120_v6, %v14434_v30 }
 0x428   : > { %v13802_v12 = vmul.f32 %v13120_v6, %v14436_v18  ;;  %v13808_v31 = vmul.f32 %v13120_v6, %v14438_v8  ;;  %v13817_v4 = vmul.f32 %v13120_v6, %v7304_v9  ;;  %v13820_v1 = vmul.f32 %v13120_v6, %v7305_v26 }
 0x429   : > { %v13823_v56 = vmul.f32 %v13120_v6, %v7306_v34  ;;  %v13826_v52 = vmul.f32 %v13120_v6, %v7307_v51  ;;  %v13829_v35 = vmul.f32 %v13120_v6, %v7308_v43  ;;  %v13832_v24 = vmul.f32 %v13120_v6, %v7309_v63 }
 0x42a   : > { %v13835_v25 = vmul.f32 %v13120_v6, %v7310_v5  ;;  %v13838_v9 = vmul.f32 %v13120_v6, %v7311_v29  ;;  %v13841_v26 = vmul.f32 %v13120_v6, %v7312_v32  ;;  %v13844_v34 = vmul.f32 %v13120_v6, %v7313_v54 }
 0x42b   : > { %v13847_v51 = vmul.f32 %v13120_v6, %v7314_v62  ;;  %v13850_v43 = vmul.f32 %v13120_v6, %v7315_v0  ;;  %v13853_v63 = vmul.f32 %v13120_v6, %v7316_v28  ;;  %v13856_v42 = vmul.f32 %v13120_v6, %v7317_v3 }
 0x42c   : > { %v13859_v39 = vmul.f32 %v13120_v6, %v7318_v57  ;;  %v13862_v17 = vmul.f32 %v13120_v6, %v7319_v38  ;;  %v13865_v5 = vmul.f32 %v13120_v6, %v7320_v15  ;;  %v13868_v29 = vmul.f32 %v13120_v6, %v7321_v45 }
 0x42d   : > { %v13871_v32 = vmul.f32 %v13120_v6, %v7322_v59  ;;  %v13874_v54 = vmul.f32 %v13120_v6, %v7323_v47  ;;  %v13877_v19 = vmul.f32 %v13120_v6, %v7324_v16  ;;  %v13880_v2 = vmul.f32 %v13120_v6, %v7325_v60 }
 0x42e   : > { %v13883_v55 = vmul.f32 %v13120_v6, %v7326_v27  ;;  %v13886_v62 = vmul.f32 %v13120_v6, %v7327_v7  ;;  %v7360_v0 = vmax.f32 %v13778_v48, 0.0  ;;  %v7361_v28 = vmax.f32 %v13784_v36, 0.0 }
 0x42f   : > { %v7362_v3 = vmax.f32 %v13790_v40, 0.0  ;;  %v7363_v14 = vmax.f32 %v13796_v23, 0.0  ;;  %v7364_v61 = vmax.f32 %v13802_v12, 0.0  ;;  %v7365_v49 = vmax.f32 %v13808_v31, 0.0 }
 0x430   : > { %v7366_v57 = vmax.f32 %v13811_v41, 0.0  ;;  %v7367_v38 = vmax.f32 %v13814_v20, 0.0  ;;  %v7368_v15 = vmax.f32 %v13817_v4, 0.0  ;;  %v7369_v45 = vmax.f32 %v13820_v1, 0.0 }
 0x431   : > { %v7370_v22 = vmax.f32 %v13823_v56, 0.0  ;;  %v7371_v21 = vmax.f32 %v13826_v52, 0.0  ;;  %v7372_v59 = vmax.f32 %v13829_v35, 0.0  ;;  %v7373_v47 = vmax.f32 %v13832_v24, 0.0 }
 0x432   : > { %v7374_v16 = vmax.f32 %v13835_v25, 0.0  ;;  %v7375_v60 = vmax.f32 %v13838_v9, 0.0  ;;  %v7376_v27 = vmax.f32 %v13841_v26, 0.0  ;;  %v7377_v7 = vmax.f32 %v13844_v34, 0.0 }
 0x433   : > { %v7378_v46 = vmax.f32 %v13847_v51, 0.0  ;;  %v7379_v50 = vmax.f32 %v13850_v43, 0.0  ;;  %v7380_v48 = vmax.f32 %v13853_v63, 0.0  ;;  %v7381_v53 = vmax.f32 %v13856_v42, 0.0 }
 0x434   : > { %v7382_v44 = vmax.f32 %v13859_v39, 0.0  ;;  %v7383_v36 = vmax.f32 %v13862_v17, 0.0  ;;  %v7384_v33 = vmax.f32 %v13865_v5, 0.0  ;;  %v7385_v10 = vmax.f32 %v13868_v29, 0.0  ;;  %v13948_v5 = vld [vmem:[#allocation2 + $0x310] sm:$0xff]  ;;  %v13950_v29 = vld [vmem:[#allocation2 + $0x300] sm:$0xff] }
 0x435   : > { %v7386_v40 = vmax.f32 %v13871_v32, 0.0  ;;  %v7387_v13 = vmax.f32 %v13874_v54, 0.0  ;;  %v7388_v30 = vmax.f32 %v13877_v19, 0.0  ;;  %v7389_v23 = vmax.f32 %v13880_v2, 0.0  ;;  %v13952_v32 = vld [vmem:[#allocation2 + $0x318] sm:$0xff]  ;;  %v13954_v54 = vld [vmem:[#allocation2 + $0x308] sm:$0xff] }
 0x436   : > { %v7390_v37 = vmax.f32 %v13883_v55, 0.0  ;;  %v7391_v18 = vmax.f32 %v13886_v62, 0.0  ;;  %v8965_v12 = vpack.c.bf16 %v7360_v0, %v7360_v0  ;;  %v8966_v11 = vpack.c.bf16 %v7361_v28, %v7361_v28  ;;  %v14008_v62 = vld [vmem:[#allocation2 + $0x360] sm:$0xff] }
 0x437   : > { %v8967_v8 = vpack.c.bf16 %v7362_v3, %v7362_v3  ;;  %v8968_v31 = vpack.c.bf16 %v7363_v14, %v7363_v14  ;;  %v8969_v41 = vpack.c.bf16 %v7364_v61, %v7364_v61  ;;  %v8970_v20 = vpack.c.bf16 %v7365_v49, %v7365_v49  ;;  %v13964_v3 = vld [vmem:[#allocation2 + $0x330] sm:$0xff]  ;;  %v13966_v14 = vld [vmem:[#allocation2 + $0x320] sm:$0xff]  ;;  %v13968_v61 = vld [vmem:[#allocation2 + $0x338] sm:$0xff] }
 0x438   : > { %v8971_v4 = vpack.c.bf16 %v7366_v57, %v7366_v57  ;;  %v8972_v1 = vpack.c.bf16 %v7367_v38, %v7367_v38  ;;  %v8973_v56 = vpack.c.bf16 %v7368_v15, %v7368_v15  ;;  %v8974_v52 = vpack.c.bf16 %v7369_v45, %v7369_v45  ;;  %8802 = vst.msk [vmem:[%s13354_s3 + $0x100] sm:$0xf] %vm6942_vm5, %v8965_v12  ;;  %v13970_v49 = vld [vmem:[#allocation2 + $0x328] sm:$0xff]  ;;  %v7575_v12 = vld [vmem:[#allocation2 + $0x3b0] sm:$0xff] }
 0x439   : > { %8803 = vst.msk [vmem:[%s13354_s3 + $0x104] sm:$0xf] %vm6942_vm5, %v8966_v11  ;;  %v8975_v35 = vpack.c.bf16 %v7370_v22, %v7370_v22  ;;  %v8976_v24 = vpack.c.bf16 %v7371_v21, %v7371_v21  ;;  %v8977_v25 = vpack.c.bf16 %v7372_v59, %v7372_v59  ;;  %v8978_v9 = vpack.c.bf16 %v7373_v47, %v7373_v47  ;;  %v13980_v22 = vld [vmem:[#allocation2 + $0x350] sm:$0xff]  ;;  %v13982_v21 = vld [vmem:[#allocation2 + $0x340] sm:$0xff]  ;;  %v13984_v59 = vld [vmem:[#allocation2 + $0x358] sm:$0xff] }
 0x43a   : > { %8804 = vst.msk [vmem:[%s13354_s3 + $0x108] sm:$0xf] %vm6942_vm5, %v8967_v8  ;;  %8805 = vst.msk [vmem:[%s13354_s3 + $0x10c] sm:$0xf] %vm6942_vm5, %v8968_v31  ;;  %v8979_v26 = vpack.c.bf16 %v7374_v16, %v7374_v16  ;;  %v8980_v34 = vpack.c.bf16 %v7375_v60, %v7375_v60  ;;  %v8981_v51 = vpack.c.bf16 %v7376_v27, %v7376_v27  ;;  %v13986_v47 = vld [vmem:[#allocation2 + $0x348] sm:$0xff] }
 0x43b   : > { %8806 = vst.msk [vmem:[%s13354_s3 + $0x110] sm:$0xf] %vm6942_vm5, %v8969_v41  ;;  %8807 = vst.msk [vmem:[%s13354_s3 + $0x114] sm:$0xf] %vm6942_vm5, %v8970_v20  ;;  %v8982_v43 = vpack.c.bf16 %v7377_v7, %v7377_v7  ;;  %v8983_v63 = vpack.c.bf16 %v7378_v46, %v7378_v46  ;;  %v8984_v42 = vpack.c.bf16 %v7379_v50, %v7379_v50  ;;  %v14006_v7 = vld [vmem:[#allocation2 + $0x370] sm:$0xff]  ;;  %v14010_v46 = vld [vmem:[#allocation2 + $0x378] sm:$0xff] }
 0x43c   : > { %8808 = vst.msk [vmem:[%s13354_s3 + $0x118] sm:$0xf] %vm6942_vm5, %v8971_v4  ;;  %8809 = vst.msk [vmem:[%s13354_s3 + $0x11c] sm:$0xf] %vm6942_vm5, %v8972_v1  ;;  %v8985_v39 = vpack.c.bf16 %v7380_v48, %v7380_v48  ;;  %v8986_v17 = vpack.c.bf16 %v7381_v53, %v7381_v53  ;;  %v8987_v19 = vpack.c.bf16 %v7382_v44, %v7382_v44  ;;  %v7573_v20 = vld [vmem:[#allocation2 + $0x3a0] sm:$0xff]  ;;  %v7576_v4 = vld [vmem:[#allocation2 + $0x3b8] sm:$0xff] }
 0x43d   : > { %8810 = vst.msk [vmem:[%s13354_s3 + $0x120] sm:$0xf] %vm6942_vm5, %v8973_v56  ;;  %8811 = vst.msk [vmem:[%s13354_s3 + $0x124] sm:$0xf] %vm6942_vm5, %v8974_v52  ;;  %v8988_v2 = vpack.c.bf16 %v7383_v36, %v7383_v36  ;;  %v8989_v0 = vpack.c.bf16 %v7384_v33, %v7384_v33  ;;  %v8990_v28 = vpack.c.bf16 %v7385_v10, %v7385_v10  ;;  %v7566_v36 = vld [vmem:[#allocation2 + $0x368] sm:$0xff]  ;;  %v14028_v33 = vld [vmem:[#allocation2 + $0x390] sm:$0xff] }
 0x43e   : > { %8812 = vst.msk [vmem:[%s13354_s3 + $0x128] sm:$0xf] %vm6942_vm5, %v8975_v35  ;;  %8813 = vst.msk [vmem:[%s13354_s3 + $0x12c] sm:$0xf] %vm6942_vm5, %v8976_v24  ;;  %v8991_v57 = vpack.c.bf16 %v7386_v40, %v7386_v40  ;;  %v8992_v38 = vpack.c.bf16 %v7387_v13, %v7387_v13  ;;  %v8993_v15 = vpack.c.bf16 %v7388_v30, %v7388_v30  ;;  %v7569_v10 = vld [vmem:[#allocation2 + $0x380] sm:$0xff]  ;;  %v7574_v1 = vld [vmem:[#allocation2 + $0x3a8] sm:$0xff] }
 0x43f   : > { %8814 = vst.msk [vmem:[%s13354_s3 + $0x130] sm:$0xf] %vm6942_vm5, %v8977_v25  ;;  %8815 = vst.msk [vmem:[%s13354_s3 + $0x134] sm:$0xf] %vm6942_vm5, %v8978_v9  ;;  %v8994_v45 = vpack.c.bf16 %v7389_v23, %v7389_v23  ;;  %v8995_v16 = vpack.c.bf16 %v7390_v37, %v7390_v37  ;;  %v8996_v60 = vpack.c.bf16 %v7391_v18, %v7391_v18  ;;  %v7572_v37 = vld [vmem:[#allocation2 + $0x398] sm:$0xff]  ;;  %v7570_v18 = vld [vmem:[#allocation2 + $0x388] sm:$0xff] }
 0x440   : > { %8816 = vst.msk [vmem:[%s13354_s3 + $0x138] sm:$0xf] %vm6942_vm5, %v8979_v26  ;;  %8817 = vst.msk [vmem:[%s13354_s3 + $0x13c] sm:$0xf] %vm6942_vm5, %v8980_v34  ;;  %v7585_v27 = vsub.f32 %v13950_v29, %v12852_v58  ;;  %v7586_v55 = vsub.f32 %v13954_v54, %v12852_v58  ;;  %v7587_v50 = vsub.f32 %v13948_v5, %v12852_v58  ;;  %v7579_v25 = vld [vmem:[#allocation2 + $0x3d0] sm:$0xff]  ;;  %v7577_v9 = vld [vmem:[#allocation2 + $0x3c0] sm:$0xff] }
 0x441   : > { %8818 = vst.msk [vmem:[%s13354_s3 + $0x140] sm:$0xf] %vm6942_vm5, %v8981_v51  ;;  %8819 = vst.msk [vmem:[%s13354_s3 + $0x144] sm:$0xf] %vm6942_vm5, %v8982_v43  ;;  %v7588_v48 = vsub.f32 %v13952_v32, %v12852_v58  ;;  %v7589_v53 = vsub.f32 %v13966_v14, %v12852_v58  ;;  %v7590_v44 = vsub.f32 %v13970_v49, %v12852_v58  ;;  %v7578_v26 = vld [vmem:[#allocation2 + $0x3c8] sm:$0xff] }
 0x442   : > { %8820 = vst.msk [vmem:[%s13354_s3 + $0x148] sm:$0xf] %vm6942_vm5, %v8983_v63  ;;  %8821 = vst.msk [vmem:[%s13354_s3 + $0x14c] sm:$0xf] %vm6942_vm5, %v8984_v42  ;;  %v7591_v40 = vsub.f32 %v13964_v3, %v12852_v58  ;;  %v7592_v13 = vsub.f32 %v13968_v61, %v12852_v58  ;;  %v7593_v30 = vsub.f32 %v13982_v21, %v12852_v58  ;;  %v7580_v42 = vld [vmem:[#allocation2 + $0x3d8] sm:$0xff] }
 0x443   : > { %8822 = vst.msk [vmem:[%s13354_s3 + $0x150] sm:$0xf] %vm6942_vm5, %v8985_v39  ;;  %8823 = vst.msk [vmem:[%s13354_s3 + $0x154] sm:$0xf] %vm6942_vm5, %v8986_v17  ;;  %v7594_v23 = vsub.f32 %v13986_v47, %v12852_v58  ;;  %v7595_v11 = vsub.f32 %v13980_v22, %v12852_v58  ;;  %v7596_v8 = vsub.f32 %v13984_v59, %v12852_v58  ;;  %v7581_v39 = vld [vmem:[#allocation2 + $0x3e0] sm:$0xff]  ;;  %v7582_v17 = vld [vmem:[#allocation2 + $0x3e8] sm:$0xff] }
 0x444   : > { %8824 = vst.msk [vmem:[%s13354_s3 + $0x158] sm:$0xf] %vm6942_vm5, %v8987_v19  ;;  %8825 = vst.msk [vmem:[%s13354_s3 + $0x15c] sm:$0xf] %vm6942_vm5, %v8988_v2  ;;  %v7597_v31 = vsub.f32 %v14008_v62, %v12852_v58  ;;  %v7598_v41 = vsub.f32 %v7566_v36, %v12852_v58  ;;  %v7599_v56 = vsub.f32 %v14006_v7, %v12852_v58  ;;  %v7583_v19 = vld [vmem:[#allocation2 + $0x3f0] sm:$0xff]  ;;  %v7584_v2 = vld [vmem:[#allocation2 + $0x3f8] sm:$0xff] }
 0x445   : > { %8826 = vst.msk [vmem:[%s13354_s3 + $0x160] sm:$0xf] %vm6942_vm5, %v8989_v0  ;;  %8827 = vst.msk [vmem:[%s13354_s3 + $0x164] sm:$0xf] %vm6942_vm5, %v8990_v28  ;;  %v7600_v52 = vsub.f32 %v14010_v46, %v12852_v58  ;;  %v7601_v35 = vsub.f32 %v7569_v10, %v12852_v58  ;;  %v7602_v24 = vsub.f32 %v7570_v18, %v12852_v58 }
 0x446   : > { %8828 = vst.msk [vmem:[%s13354_s3 + $0x168] sm:$0xf] %vm6942_vm5, %v8991_v57  ;;  %8829 = vst.msk [vmem:[%s13354_s3 + $0x16c] sm:$0xf] %vm6942_vm5, %v8992_v38  ;;  %v7603_v34 = vsub.f32 %v14028_v33, %v12852_v58  ;;  %v7604_v51 = vsub.f32 %v7572_v37, %v12852_v58  ;;  %v7605_v43 = vsub.f32 %v7573_v20, %v12852_v58 }
 0x447   : > { %8830 = vst.msk [vmem:[%s13354_s3 + $0x170] sm:$0xf] %vm6942_vm5, %v8993_v15  ;;  %8831 = vst.msk [vmem:[%s13354_s3 + $0x174] sm:$0xf] %vm6942_vm5, %v8994_v45  ;;  %v7606_v63 = vsub.f32 %v7574_v1, %v12852_v58  ;;  %v7607_v5 = vsub.f32 %v7575_v12, %v12852_v58  ;;  %v7608_v29 = vsub.f32 %v7576_v4, %v12852_v58 }
 0x448   : > { %8832 = vst.msk [vmem:[%s13354_s3 + $0x178] sm:$0xf] %vm6942_vm5, %v8995_v16  ;;  %8833 = vst.msk [vmem:[%s13354_s3 + $0x17c] sm:$0xf] %vm6942_vm5, %v8996_v60  ;;  %v7609_v32 = vsub.f32 %v7577_v9, %v12852_v58  ;;  %v7610_v54 = vsub.f32 %v7578_v26, %v12852_v58  ;;  %v7611_v0 = vsub.f32 %v7579_v25, %v12852_v58 }
 0x449   : > { %v7612_v28 = vsub.f32 %v7580_v42, %v12852_v58  ;;  %v7613_v3 = vsub.f32 %v7581_v39, %v12852_v58  ;;  %v7614_v14 = vsub.f32 %v7582_v17, %v12852_v58  ;;  %v7615_v61 = vsub.f32 %v7583_v19, %v12852_v58 }
 0x44a   : > { %v7616_v49 = vsub.f32 %v7584_v2, %v12852_v58  ;;  %v14071_v57 = vmul.f32 %v13120_v6, %v7585_v27  ;;  %v14074_v38 = vmul.f32 %v13120_v6, %v7586_v55  ;;  %v14077_v15 = vmul.f32 %v13120_v6, %v7587_v50 }
 0x44b   : > { %v14080_v45 = vmul.f32 %v13120_v6, %v7588_v48  ;;  %v14083_v22 = vmul.f32 %v13120_v6, %v7589_v53  ;;  %v14086_v21 = vmul.f32 %v13120_v6, %v7590_v44  ;;  %v14089_v58 = vmul.f32 %v13120_v6, %v7591_v40 }
 0x44c   : > { %v14092_v59 = vmul.f32 %v13120_v6, %v7592_v13  ;;  %v14095_v47 = vmul.f32 %v13120_v6, %v7593_v30  ;;  %v14098_v16 = vmul.f32 %v13120_v6, %v7594_v23  ;;  %v14101_v60 = vmul.f32 %v13120_v6, %v7595_v11 }
 0x44d   : > { %v14104_v27 = vmul.f32 %v13120_v6, %v7596_v8  ;;  %v14107_v55 = vmul.f32 %v13120_v6, %v7597_v31  ;;  %v14110_v7 = vmul.f32 %v13120_v6, %v7598_v41  ;;  %v14113_v62 = vmul.f32 %v13120_v6, %v7599_v56 }
 0x44e   : > { %v14116_v46 = vmul.f32 %v13120_v6, %v7600_v52  ;;  %v14119_v50 = vmul.f32 %v13120_v6, %v7601_v35  ;;  %v14122_v48 = vmul.f32 %v13120_v6, %v7602_v24  ;;  %v14125_v53 = vmul.f32 %v13120_v6, %v7603_v34 }
 0x44f   : > { %v14128_v44 = vmul.f32 %v13120_v6, %v7604_v51  ;;  %v14131_v36 = vmul.f32 %v13120_v6, %v7605_v43  ;;  %v14134_v33 = vmul.f32 %v13120_v6, %v7606_v63  ;;  %v14137_v10 = vmul.f32 %v13120_v6, %v7607_v5 }
 0x450   : > { %v14140_v40 = vmul.f32 %v13120_v6, %v7608_v29  ;;  %v14143_v13 = vmul.f32 %v13120_v6, %v7609_v32  ;;  %v14146_v30 = vmul.f32 %v13120_v6, %v7610_v54  ;;  %v14149_v23 = vmul.f32 %v13120_v6, %v7611_v0 }
 0x451   : > { %v14152_v37 = vmul.f32 %v13120_v6, %v7612_v28  ;;  %v14155_v18 = vmul.f32 %v13120_v6, %v7613_v3  ;;  %v14158_v12 = vmul.f32 %v13120_v6, %v7614_v14  ;;  %v14161_v11 = vmul.f32 %v13120_v6, %v7615_v61 }
 0x452   : > { %v14164_v8 = vmul.f32 %v13120_v6, %v7616_v49  ;;  %v7649_v31 = vmax.f32 %v14071_v57, 0.0  ;;  %v7650_v41 = vmax.f32 %v14074_v38, 0.0  ;;  %v7651_v20 = vmax.f32 %v14077_v15, 0.0 }
 0x453   : > { %v7652_v4 = vmax.f32 %v14080_v45, 0.0  ;;  %v7653_v1 = vmax.f32 %v14083_v22, 0.0  ;;  %v7654_v56 = vmax.f32 %v14086_v21, 0.0  ;;  %v7655_v52 = vmax.f32 %v14089_v58, 0.0 }
 0x454   : > { %v7656_v35 = vmax.f32 %v14092_v59, 0.0  ;;  %v7657_v24 = vmax.f32 %v14095_v47, 0.0  ;;  %v7658_v6 = vmax.f32 %v14098_v16, 0.0  ;;  %v7659_v25 = vmax.f32 %v14101_v60, 0.0 }
 0x455   : > { %v7660_v9 = vmax.f32 %v14104_v27, 0.0  ;;  %v7661_v26 = vmax.f32 %v14107_v55, 0.0  ;;  %v7662_v34 = vmax.f32 %v14110_v7, 0.0  ;;  %v7663_v51 = vmax.f32 %v14113_v62, 0.0 }
 0x456   : > { %v7664_v43 = vmax.f32 %v14116_v46, 0.0  ;;  %v7665_v63 = vmax.f32 %v14119_v50, 0.0  ;;  %v7666_v42 = vmax.f32 %v14122_v48, 0.0  ;;  %v7667_v39 = vmax.f32 %v14125_v53, 0.0 }
 0x457   : > { %v7668_v17 = vmax.f32 %v14128_v44, 0.0  ;;  %v7669_v5 = vmax.f32 %v14131_v36, 0.0  ;;  %v7670_v29 = vmax.f32 %v14134_v33, 0.0  ;;  %v7671_v32 = vmax.f32 %v14137_v10, 0.0 }
 0x458   : > { %v7672_v54 = vmax.f32 %v14140_v40, 0.0  ;;  %v7673_v19 = vmax.f32 %v14143_v13, 0.0  ;;  %v7674_v2 = vmax.f32 %v14146_v30, 0.0  ;;  %v7675_v0 = vmax.f32 %v14149_v23, 0.0 }
 0x459   : > { %v7676_v28 = vmax.f32 %v14152_v37, 0.0  ;;  %v7677_v3 = vmax.f32 %v14155_v18, 0.0  ;;  %v7678_v14 = vmax.f32 %v14158_v12, 0.0  ;;  %v7679_v61 = vmax.f32 %v14161_v11, 0.0 }
 0x45a   : > { %v7680_v49 = vmax.f32 %v14164_v8, 0.0  ;;  %v8997_v57 = vpack.c.bf16 %v7649_v31, %v7649_v31  ;;  %v8998_v38 = vpack.c.bf16 %v7650_v41, %v7650_v41  ;;  %v8999_v15 = vpack.c.bf16 %v7651_v20, %v7651_v20 }
 0x45b   : > { %v9000_v45 = vpack.c.bf16 %v7652_v4, %v7652_v4  ;;  %v9001_v22 = vpack.c.bf16 %v7653_v1, %v7653_v1  ;;  %v9002_v21 = vpack.c.bf16 %v7654_v56, %v7654_v56  ;;  %v9003_v58 = vpack.c.bf16 %v7655_v52, %v7655_v52 }
 0x45c   : > { %v9004_v59 = vpack.c.bf16 %v7656_v35, %v7656_v35  ;;  %v9005_v47 = vpack.c.bf16 %v7657_v24, %v7657_v24  ;;  %v9006_v16 = vpack.c.bf16 %v7658_v6, %v7658_v6  ;;  %8866 = vst.msk [vmem:[%s13354_s3 + $0x180] sm:$0xf] %vm6942_vm5, %v8997_v57  ;;  %8867 = vst.msk [vmem:[%s13354_s3 + $0x184] sm:$0xf] %vm6942_vm5, %v8998_v38 }
 0x45d   : > { %v9007_v60 = vpack.c.bf16 %v7659_v25, %v7659_v25  ;;  %v9008_v27 = vpack.c.bf16 %v7660_v9, %v7660_v9  ;;  %v9009_v55 = vpack.c.bf16 %v7661_v26, %v7661_v26  ;;  %v9010_v7 = vpack.c.bf16 %v7662_v34, %v7662_v34  ;;  %8868 = vst.msk [vmem:[%s13354_s3 + $0x188] sm:$0xf] %vm6942_vm5, %v8999_v15 }
 0x45e   : > { %8869 = vst.msk [vmem:[%s13354_s3 + $0x18c] sm:$0xf] %vm6942_vm5, %v9000_v45  ;;  %8870 = vst.msk [vmem:[%s13354_s3 + $0x190] sm:$0xf] %vm6942_vm5, %v9001_v22  ;;  %v9011_v62 = vpack.c.bf16 %v7663_v51, %v7663_v51  ;;  %v9012_v46 = vpack.c.bf16 %v7664_v43, %v7664_v43  ;;  %v9013_v50 = vpack.c.bf16 %v7665_v63, %v7665_v63 }
 0x45f   : > { %8871 = vst.msk [vmem:[%s13354_s3 + $0x194] sm:$0xf] %vm6942_vm5, %v9002_v21  ;;  %v9014_v48 = vpack.c.bf16 %v7666_v42, %v7666_v42  ;;  %8872 = vst.msk [vmem:[%s13354_s3 + $0x198] sm:$0xf] %vm6942_vm5, %v9003_v58  ;;  %v9015_v53 = vpack.c.bf16 %v7667_v39, %v7667_v39  ;;  %v9016_v44 = vpack.c.bf16 %v7668_v17, %v7668_v17 }
 0x460   : > { %8873 = vst.msk [vmem:[%s13354_s3 + $0x19c] sm:$0xf] %vm6942_vm5, %v9004_v59  ;;  %8874 = vst.msk [vmem:[%s13354_s3 + $0x1a0] sm:$0xf] %vm6942_vm5, %v9005_v47  ;;  %v9017_v36 = vpack.c.bf16 %v7669_v5, %v7669_v5  ;;  %v9018_v33 = vpack.c.bf16 %v7670_v29, %v7670_v29  ;;  %v9019_v10 = vpack.c.bf16 %v7671_v32, %v7671_v32 }
 0x461   : > { %8875 = vst.msk [vmem:[%s13354_s3 + $0x1a4] sm:$0xf] %vm6942_vm5, %v9006_v16  ;;  %8876 = vst.msk [vmem:[%s13354_s3 + $0x1a8] sm:$0xf] %vm6942_vm5, %v9007_v60  ;;  %v9020_v40 = vpack.c.bf16 %v7672_v54, %v7672_v54  ;;  %v9021_v13 = vpack.c.bf16 %v7673_v19, %v7673_v19  ;;  %v9022_v30 = vpack.c.bf16 %v7674_v2, %v7674_v2 }
 0x462   : > { %8877 = vst.msk [vmem:[%s13354_s3 + $0x1ac] sm:$0xf] %vm6942_vm5, %v9008_v27  ;;  %8878 = vst.msk [vmem:[%s13354_s3 + $0x1b0] sm:$0xf] %vm6942_vm5, %v9009_v55  ;;  %v9023_v23 = vpack.c.bf16 %v7675_v0, %v7675_v0  ;;  %v9024_v37 = vpack.c.bf16 %v7676_v28, %v7676_v28  ;;  %v9025_v18 = vpack.c.bf16 %v7677_v3, %v7677_v3 }
 0x463   : > { %8879 = vst.msk [vmem:[%s13354_s3 + $0x1b4] sm:$0xf] %vm6942_vm5, %v9010_v7  ;;  %8880 = vst.msk [vmem:[%s13354_s3 + $0x1b8] sm:$0xf] %vm6942_vm5, %v9011_v62  ;;  %v9026_v12 = vpack.c.bf16 %v7678_v14, %v7678_v14  ;;  %v9027_v11 = vpack.c.bf16 %v7679_v61, %v7679_v61  ;;  %v9028_v8 = vpack.c.bf16 %v7680_v49, %v7680_v49 }
 0x464   : > { %8881 = vst.msk [vmem:[%s13354_s3 + $0x1bc] sm:$0xf] %vm6942_vm5, %v9012_v46  ;;  %8882 = vst.msk [vmem:[%s13354_s3 + $0x1c0] sm:$0xf] %vm6942_vm5, %v9013_v50 }
 0x465   : > { %8883 = vst.msk [vmem:[%s13354_s3 + $0x1c4] sm:$0xf] %vm6942_vm5, %v9014_v48  ;;  %8884 = vst.msk [vmem:[%s13354_s3 + $0x1c8] sm:$0xf] %vm6942_vm5, %v9015_v53 }
 0x466   : > { %8885 = vst.msk [vmem:[%s13354_s3 + $0x1cc] sm:$0xf] %vm6942_vm5, %v9016_v44  ;;  %8886 = vst.msk [vmem:[%s13354_s3 + $0x1d0] sm:$0xf] %vm6942_vm5, %v9017_v36 }
 0x467   : > { %8887 = vst.msk [vmem:[%s13354_s3 + $0x1d4] sm:$0xf] %vm6942_vm5, %v9018_v33  ;;  %8888 = vst.msk [vmem:[%s13354_s3 + $0x1d8] sm:$0xf] %vm6942_vm5, %v9019_v10 }
 0x468   : > { %8889 = vst.msk [vmem:[%s13354_s3 + $0x1dc] sm:$0xf] %vm6942_vm5, %v9020_v40  ;;  %8890 = vst.msk [vmem:[%s13354_s3 + $0x1e0] sm:$0xf] %vm6942_vm5, %v9021_v13 }
 0x469   : > { %8891 = vst.msk [vmem:[%s13354_s3 + $0x1e4] sm:$0xf] %vm6942_vm5, %v9022_v30  ;;  %8892 = vst.msk [vmem:[%s13354_s3 + $0x1e8] sm:$0xf] %vm6942_vm5, %v9023_v23 }
 0x46a   : > { %8893 = vst.msk [vmem:[%s13354_s3 + $0x1ec] sm:$0xf] %vm6942_vm5, %v9024_v37  ;;  %8894 = vst.msk [vmem:[%s13354_s3 + $0x1f0] sm:$0xf] %vm6942_vm5, %v9025_v18 }
 0x46b   : > { %8895 = vst.msk [vmem:[%s13354_s3 + $0x1f4] sm:$0xf] %vm6942_vm5, %v9026_v12  ;;  %8896 = vst.msk [vmem:[%s13354_s3 + $0x1f8] sm:$0xf] %vm6942_vm5, %v9027_v11 }
 0x46c   : > { %8897 = vst.msk [vmem:[%s13354_s3 + $0x1fc] sm:$0xf] %vm6942_vm5, %v9028_v8 }
 0x46d PF: > { %s12_s11 = sadd.s32 1, %s9687_s11   ;;  %s14439_s9 = smov %s9683_s10 }
 0x46e   : > { %p9_p5 = scmp.ge.s32.totalorder %s12_s11, 4   ;;  %s14440_s10 = smov %s14442_s12 }
 0x470   :  { %11 = sbr.rel (!%p9_p5) target bundleno = 2 (0x2), region = 72 }

</bundles_post_ra>
